<compile_context>
chip_gen: v7x
topology: tpu7x:2x2x1
jax: 0.10.0
libtpu: 0.0.40
codegen_flags: <defaults>
</compile_context>

<pallas_src>
import functools

import jax
import jax.numpy as jnp
from jax.experimental import pallas as pl
from jax.experimental.pallas import tpu as pltpu

_BF16 = jnp.bfloat16


def _cost(flops, bytes_accessed, transcendentals=0):
    return pl.CostEstimate(flops=int(flops), transcendentals=int(transcendentals),
                           bytes_accessed=int(bytes_accessed))


# ----------------------------------------------------------------------------------
# Fused SA layer: ball-query grouping + shared point-MLP + max-pool  (one modality)
# ----------------------------------------------------------------------------------
def _sa_group_mlp_pool_kernel(xyzt_ref, pts_ref, newpts_ref, w1_ref, b1_ref,
                              w2_ref, b2_ref, o_ref, *, radius2, nsample):
    xyz_t = xyzt_ref[0]                       # (3, N)   points, channels-first (lane dense)
    pts = pts_ref[0]                          # (N, Cin) [xyz | feats]
    newpts = newpts_ref[0]                    # (M, Cin) [query xyz | zeros]
    N = pts.shape[0]
    M = newpts.shape[0]
    Cin = pts.shape[1]

    # ---- ball query: pairwise squared distances (M, N) ----
    d2 = jnp.zeros((M, N), jnp.float32)
    for c in range(3):
        diff = newpts[:, c:c + 1] - xyz_t[c:c + 1, :]
        d2 = d2 + diff * diff
    within = (d2 <= radius2).astype(jnp.float32)                        # (M, N)

    # exclusive in-radius count (slot rank) via strictly-lower-triangular matmul (MXU)
    rid = jax.lax.broadcasted_iota(jnp.int32, (N, N), 0)
    cid = jax.lax.broadcasted_iota(jnp.int32, (N, N), 1)
    lt = (rid < cid).astype(jnp.float32)
    rank = jax.lax.dot_general(within, lt, (((1,), (0,)), ((), ())),
                               preferred_element_type=jnp.float32)      # (M, N)

    # one-hot slot selection (pointnet2 ball_query semantics), sample-major: sel[s, m, n]
    slot = jax.lax.broadcasted_iota(jnp.int32, (nsample, M), 0).astype(jnp.float32)[:, :, None]
    hit = (jnp.abs(rank[None, :, :] - slot) < 0.5).astype(jnp.float32) * within[None, :, :]
    has_hit = jnp.sum(hit, axis=-1, keepdims=True) > 0.0                # (ns, M, 1)
    sel0 = hit[0:1]                                                     # first in-radius point
    has_any = jnp.sum(sel0, axis=-1, keepdims=True) > 0.0               # (1, M, 1)
    first_pt = (jax.lax.broadcasted_iota(jnp.int32, (M, N), 1) == 0).astype(jnp.float32)[None]
    fallback = jnp.where(has_any, sel0, first_pt)                       # (1, M, N)
    sel = jnp.where(has_hit, hit, jnp.broadcast_to(fallback, hit.shape))
    sel2d = sel.reshape(nsample * M, N)                                 # (ns*M, N)

    # gather neighbours with one MXU matmul, then subtract query centre (xyz cols only)
    gathered = jnp.dot(sel2d, pts, preferred_element_type=jnp.float32)  # (ns*M, Cin)
    center = jnp.broadcast_to(newpts[None, :, :],
                              (nsample, M, Cin)).reshape(nsample * M, Cin)
    mlp_in = (gathered - center).astype(_BF16)

    # shared point MLP (bf16 operands, f32 accumulation)
    h = jnp.dot(mlp_in, w1_ref[...], preferred_element_type=jnp.float32) + b1_ref[...]
    h = jnp.maximum(h, 0.0).astype(_BF16)
    h = jnp.dot(h, w2_ref[...], preferred_element_type=jnp.float32) + b2_ref[...]
    h = jnp.maximum(h, 0.0)                                             # (ns*M, D2)

    # max-pool over samples: unrolled max over aligned (M, D2) row blocks (sample-major rows)
    out = h[0:M]
    for s in range(1, nsample):
        out = jnp.maximum(out, h[s * M:(s + 1) * M])
    o_ref[0] = out


def sa_group_mlp_pool(xyz, feats, new_xyz, p, radius, nsample):
    """xyz (B,N,3), feats (B,N,C) or None, new_xyz (B,M,3) -> pooled features (B,M,D2)."""
    B, N, _ = xyz.shape
    M = new_xyz.shape[1]
    pts = xyz if feats is None else jnp.concatenate([xyz, feats], axis=-1)
    Cin = pts.shape[-1]
    newpts = new_xyz if Cin == 3 else jnp.concatenate(
        [new_xyz, jnp.zeros((B, M, Cin - 3), xyz.dtype)], axis=-1)
    xyz_t = jnp.transpose(xyz, (0, 2, 1))                               # (B, 3, N)
    D1, D2 = p['w1'].shape[1], p['w2'].shape[1]
    w1, w2 = p['w1'].astype(_BF16), p['w2'].astype(_BF16)
    b1, b2 = p['b1'], p['b2']

    flops = B * (2 * M * N * N + 2 * nsample * M * N * Cin
                 + 2 * nsample * M * Cin * D1 + 2 * nsample * M * D1 * D2)
    bytes_acc = 4 * B * (3 * N + N * Cin + M * Cin + M * D2) + 2 * (Cin * D1 + D1 * D2)

    return pl.pallas_call(
        functools.partial(_sa_group_mlp_pool_kernel,
                          radius2=float(radius) ** 2, nsample=nsample),
        out_shape=jax.ShapeDtypeStruct((B, M, D2), jnp.float32),
        grid=(B,),
        in_specs=[
            pl.BlockSpec((1, 3, N), lambda b: (b, 0, 0)),
            pl.BlockSpec((1, N, Cin), lambda b: (b, 0, 0)),
            pl.BlockSpec((1, M, Cin), lambda b: (b, 0, 0)),
            pl.BlockSpec((Cin, D1), lambda b: (0, 0)),
            pl.BlockSpec((1, D1), lambda b: (0, 0)),
            pl.BlockSpec((D1, D2), lambda b: (0, 0)),
            pl.BlockSpec((1, D2), lambda b: (0, 0)),
        ],
        out_specs=pl.BlockSpec((1, M, D2), lambda b: (b, 0, 0)),
        compiler_params=pltpu.CompilerParams(dimension_semantics=("parallel",)),
        cost_estimate=_cost(flops, bytes_acc),
    )(xyz_t, pts, newpts, w1, b1, w2, b2)


# ----------------------------------------------------------------------------------
# Dual-direction fused cross attention (lidar<-radar and radar<-lidar in one call)
# ----------------------------------------------------------------------------------
def _dual_attn_kernel(q_ref, kv_ref, mask_ref, wq_ref, bq_ref, wk_ref, bk_ref,
                      wv_ref, bv_ref, wo_ref, bo_ref, *rest,
                      n_heads, scale, add_residual, has_agg, batch_size):
    if has_agg:
        wa_ref, ba_ref, o_ref = rest
    else:
        (o_ref,) = rest
    wq, bq = wq_ref[0], bq_ref[0]              # (H, C, dh), (H, 1, dh)
    wk, bk = wk_ref[0], bk_ref[0]
    wv, bv = wv_ref[0], bv_ref[0]
    wo, bo = wo_ref[0], bo_ref[0]              # (H, dh, C), (1, C)
    mask = mask_ref[0]                         # (1, Nk) additive key mask
    H = n_heads
    qv = q_ref[0]                              # (B, Nq, C)
    kvv = kv_ref[0]                            # (B, Nk, C)
    for b in range(batch_size):
        xq = qv[b]                             # (Nq, C)
        xkv = kvv[b]                           # (Nk, C)
        Nq, C = xq.shape
        Nk = xkv.shape[0]
        xq_h = jnp.broadcast_to(xq.astype(_BF16)[None], (H, Nq, C))
        xkv_h = jnp.broadcast_to(xkv.astype(_BF16)[None], (H, Nk, C))
        q = jnp.einsum('hnc,hcd->hnd', xq_h, wq, preferred_element_type=jnp.float32) + bq
        k = jnp.einsum('hnc,hcd->hnd', xkv_h, wk, preferred_element_type=jnp.float32) + bk
        v = jnp.einsum('hnc,hcd->hnd', xkv_h, wv, preferred_element_type=jnp.float32) + bv
        s = jnp.einsum('hqd,hkd->hqk', q.astype(_BF16), k.astype(_BF16),
                       preferred_element_type=jnp.float32) * scale
        s = s + mask[None, :, :]
        m = jnp.max(s, axis=-1, keepdims=True)
        p = jnp.exp(s - m)
        denom = jnp.sum(p, axis=-1, keepdims=True)
        p = p * pl.reciprocal(denom, approx=True)
        oh = jnp.einsum('hqk,hkd->hqd', p.astype(_BF16), v.astype(_BF16),
                        preferred_element_type=jnp.float32)
        oc = jnp.einsum('hqd,hdc->hqc', oh.astype(_BF16), wo,
                        preferred_element_type=jnp.float32)
        o = bo
        for h_i in range(H):
            o = o + oc[h_i]
        if add_residual:
            # TODO(synk): verify skip connection adds the pre-projection input features.
            o = o + xq
        if has_agg:
            o = jnp.dot(o.astype(_BF16), wa_ref[0],
                        preferred_element_type=jnp.float32) + ba_ref[0]
            o = jnp.maximum(o, 0.0)
        o_ref[0, b] = o


def _split_heads(ap, n_heads):
    """Head-major weight layout so the kernel never slices lanes per head."""
    C = ap['wq'].shape[0]
    dh = C // n_heads
    return dict(
        wq=ap['wq'].reshape(C, n_heads, dh).transpose(1, 0, 2),
        wk=ap['wkv'][:, :C].reshape(C, n_heads, dh).transpose(1, 0, 2),
        wv=ap['wkv'][:, C:].reshape(C, n_heads, dh).transpose(1, 0, 2),
        bq=ap['bq'].reshape(n_heads, 1, dh),
        bk=ap['bkv'][:, :C].reshape(n_heads, 1, dh),
        bv=ap['bkv'][:, C:].reshape(n_heads, 1, dh),
        wo=ap['wo'].reshape(n_heads, dh, C),
        bo=ap['bo'],
    )


def dual_cross_attention(l_f, r_f, p, n_heads, *, add_residual):
    """l_f (B,Ml,C), r_f (B,Mr,C) -> (lidar_out (B,Ml,Cout), radar_out (B,Mr,Cout))."""
    B, Ml, C = l_f.shape
    Mr = r_f.shape[1]
    Nmax = max(Ml, Mr)
    dh = C // n_heads
    scale = 1.0 / float(dh) ** 0.5
    agg_l, agg_r = p.get('agg_lidar'), p.get('agg_radar')
    has_agg = agg_l is not None
    Cout = agg_l['w'].shape[1] if has_agg else C

    def pad_rows(x):
        if x.shape[1] == Nmax:
            return x
        return jnp.concatenate(
            [x, jnp.zeros((B, Nmax - x.shape[1], C), x.dtype)], axis=1)

    lq, rq = pad_rows(l_f), pad_rows(r_f)
    q_all = jnp.stack([lq, rq])                    # dir0: q = lidar, dir1: q = radar
    kv_all = jnp.stack([rq, lq])                   # dir0: kv = radar, dir1: kv = lidar

    def kv_mask(nk):
        return jnp.where(jnp.arange(Nmax) < nk, 0.0, -1e9).astype(jnp.float32)

    mask_all = jnp.stack([kv_mask(Mr), kv_mask(Ml)]).reshape(2, 1, Nmax)

    hl = _split_heads(p['attn_lidar'], n_heads)
    hr = _split_heads(p['attn_radar'], n_heads)

    def stk(name, cast=False):
        a = jnp.stack([hl[name], hr[name]])
        return a.astype(_BF16) if cast else a

    wq, wk, wv, wo = stk('wq', True), stk('wk', True), stk('wv', True), stk('wo', True)
    bq, bk, bv, bo = stk('bq'), stk('bk'), stk('bv'), stk('bo')

    args = [q_all, kv_all, mask_all, wq, bq, wk, bk, wv, bv, wo, bo]
    in_specs = [
        pl.BlockSpec((1, B, Nmax, C), lambda i: (i, 0, 0, 0)),
        pl.BlockSpec((1, B, Nmax, C), lambda i: (i, 0, 0, 0)),
        pl.BlockSpec((1, 1, Nmax), lambda i: (i, 0, 0)),
        pl.BlockSpec((1, n_heads, C, dh), lambda i: (i, 0, 0, 0)),
        pl.BlockSpec((1, n_heads, 1, dh), lambda i: (i, 0, 0, 0)),
        pl.BlockSpec((1, n_heads, C, dh), lambda i: (i, 0, 0, 0)),
        pl.BlockSpec((1, n_heads, 1, dh), lambda i: (i, 0, 0, 0)),
        pl.BlockSpec((1, n_heads, C, dh), lambda i: (i, 0, 0, 0)),
        pl.BlockSpec((1, n_heads, 1, dh), lambda i: (i, 0, 0, 0)),
        pl.BlockSpec((1, n_heads, dh, C), lambda i: (i, 0, 0, 0)),
        pl.BlockSpec((1, 1, C), lambda i: (i, 0, 0)),
    ]
    if has_agg:
        ca_in, ca_out = agg_l['w'].shape
        wa = jnp.stack([agg_l['w'], agg_r['w']]).astype(_BF16)
        ba = jnp.stack([agg_l['b'], agg_r['b']])
        args += [wa, ba]
        in_specs += [pl.BlockSpec((1, ca_in, ca_out), lambda i: (i, 0, 0)),
                     pl.BlockSpec((1, 1, ca_out), lambda i: (i, 0, 0))]

    flops = 2 * B * (8 * Nmax * C * C + 4 * n_heads * Nmax * Nmax * dh
                     + (2 * Nmax * C * Cout if has_agg else 0))
    trans = 2 * B * n_heads * Nmax * Nmax
    bytes_acc = 4 * (4 * B * Nmax * C + 2 * B * Nmax * Cout) + 2 * 8 * C * C

    out = pl.pallas_call(
        functools.partial(_dual_attn_kernel, n_heads=n_heads, scale=scale,
                          add_residual=add_residual, has_agg=has_agg, batch_size=B),
        out_shape=jax.ShapeDtypeStruct((2, B, Nmax, Cout), jnp.float32),
        grid=(2,),
        in_specs=in_specs,
        out_specs=pl.BlockSpec((1, B, Nmax, Cout), lambda i: (i, 0, 0, 0)),
        compiler_params=pltpu.CompilerParams(dimension_semantics=("parallel",)),
        cost_estimate=_cost(flops, bytes_acc, trans),
    )(*args)
    return out[0, :, :Ml], out[1, :, :Mr]


# ----------------------------------------------------------------------------------
# Dual vote layer (lidar + radar in one call): shared MLP + clipped offset regression
# ----------------------------------------------------------------------------------
def _dual_vote_kernel(x_ref, wm_ref, bm_ref, wr_ref, br_ref, lim_ref, feat_ref, off_ref):
    x = x_ref[0].astype(_BF16)                                          # (R, C)
    h = jnp.dot(x, wm_ref[0], preferred_element_type=jnp.float32) + bm_ref[0]
    h = jnp.maximum(h, 0.0)
    off = jnp.dot(h.astype(_BF16), wr_ref[0], preferred_element_type=jnp.float32) + br_ref[0]
    lim = lim_ref[0]                                                    # (1, 3)
    off = jnp.minimum(jnp.maximum(off, -lim), lim)
    feat_ref[0] = h
    off_ref[0] = off


def dual_vote(lidar_xyz, radar_xyz, lidar_feats, radar_feats, p, max_range):
    B, Nl, C = lidar_feats.shape
    Nr = radar_feats.shape[1]
    Rl, Rr = B * Nl, B * Nr
    Rmax = max(Rl, Rr)
    D = p['lidar']['wm'].shape[1]

    def flat_pad(f):
        x = f.reshape(-1, C)
        if x.shape[0] < Rmax:
            x = jnp.concatenate([x, jnp.zeros((Rmax - x.shape[0], C), x.dtype)], axis=0)
        return x

    x_all = jnp.stack([flat_pad(lidar_feats), flat_pad(radar_feats)])   # (2, Rmax, C)
    wm = jnp.stack([p['lidar']['wm'], p['radar']['wm']]).astype(_BF16)
    bm = jnp.stack([p['lidar']['bm'], p['radar']['bm']])
    wr = jnp.stack([p['lidar']['wr'], p['radar']['wr']]).astype(_BF16)
    br = jnp.stack([p['lidar']['br'], p['radar']['br']])
    lim = jnp.broadcast_to(jnp.asarray(max_range, jnp.float32).reshape(1, 1, 3), (2, 1, 3))

    flops = 2 * (2 * Rmax * C * D + 2 * Rmax * D * 3)
    bytes_acc = 4 * 2 * (Rmax * C + Rmax * D + Rmax * 3) + 2 * 2 * (C * D + D * 3)

    feats, offs = pl.pallas_call(
        _dual_vote_kernel,
        out_shape=(jax.ShapeDtypeStruct((2, Rmax, D), jnp.float32),
                   jax.ShapeDtypeStruct((2, Rmax, 3), jnp.float32)),
        grid=(2,),
        in_specs=[
            pl.BlockSpec((1, Rmax, C), lambda i: (i, 0, 0)),
            pl.BlockSpec((1, C, D), lambda i: (i, 0, 0)),
            pl.BlockSpec((1, 1, D), lambda i: (i, 0, 0)),
            pl.BlockSpec((1, D, 3), lambda i: (i, 0, 0)),
            pl.BlockSpec((1, 1, 3), lambda i: (i, 0, 0)),
            pl.BlockSpec((1, 1, 3), lambda i: (i, 0, 0)),
        ],
        out_specs=(pl.BlockSpec((1, Rmax, D), lambda i: (i, 0, 0)),
                   pl.BlockSpec((1, Rmax, 3), lambda i: (i, 0, 0))),
        compiler_params=pltpu.CompilerParams(dimension_semantics=("parallel",)),
        cost_estimate=_cost(flops, bytes_acc),
    )(x_all, wm, bm, wr, br, lim)

    l_feat = feats[0].reshape(B, Nl, D)
    r_feat = feats[1, :Rr].reshape(B, Nr, D)
    l_off = offs[0].reshape(B, Nl, 3)
    r_off = offs[1, :Rr].reshape(B, Nr, 3)
    l_vote = lidar_xyz + l_off          # trivial adds stay in XLA (fused for free)
    r_vote = radar_xyz + r_off
    return {'lidar': (l_vote, l_feat, lidar_xyz, l_off),
            'radar': (r_vote, r_feat, radar_xyz, r_off)}


# ----------------------------------------------------------------------------------
# MMSA SA layer (ball-query grouping + MLP + pool + cross attention)
# ----------------------------------------------------------------------------------
def mmsa_sa_layer(lidar_xyz, radar_xyz, lidar_feats, radar_feats,
                  lidar_ctr_xyz, radar_ctr_xyz, cfg, p):
    def centers(xyz, ctr, npoint):
        if ctr is not None:
            return ctr
        return xyz[:, :npoint, :]  # TODO(synk): D-FPS/F-FPS sampling replaced by first-N

    l_new_xyz = centers(lidar_xyz, lidar_ctr_xyz, cfg['lidar_npoint'])
    r_new_xyz = centers(radar_xyz, radar_ctr_xyz, cfg['radar_npoint'])

    l_f = sa_group_mlp_pool(lidar_xyz, lidar_feats, l_new_xyz, p['lidar'],
                            cfg['lidar_radius'], cfg['lidar_nsample'])
    r_f = sa_group_mlp_pool(radar_xyz, radar_feats, r_new_xyz, p['radar'],
                            cfg['radar_radius'], cfg['radar_nsample'])

    if not cfg['disable_cross_attn']:
        l_f, r_f = dual_cross_attention(l_f, r_f, p, cfg['n_heads'],
                                        add_residual=cfg['use_skip_connection'])
    else:
        if p.get('agg_lidar') is not None:
            # rare config path (cross-attn disabled): aggregation MLP via XLA
            l_f = jax.nn.relu(jnp.einsum('bnc,cd->bnd', l_f, p['agg_lidar']['w'])
                              + p['agg_lidar']['b'])
            r_f = jax.nn.relu(jnp.einsum('bnc,cd->bnd', r_f, p['agg_radar']['w'])
                              + p['agg_radar']['b'])

    # TODO(synk): confidence MLP (ctr-aware cls preds) not configured -> cls pred stays None
    return {'lidar': (l_new_xyz, l_f, None), 'radar': (r_new_xyz, r_f, None)}


# ----------------------------------------------------------------------------------
# Layer configuration (small, self-consistent synthetic config)
# ----------------------------------------------------------------------------------
LAYER_CFG = [
    dict(type='SA_Layer', layer_input=0, ctr_idx=-1,
         lidar_npoint=64, radar_npoint=16,
         lidar_radius=2.5, radar_radius=4.0,
         lidar_nsample=16, radar_nsample=8,
         disable_cross_attn=False, n_heads=2, use_skip_connection=True),
    dict(type='Vote_Layer', layer_input=1, ctr_idx=-1,
         max_translate_range=[3.0, 3.0, 2.0]),
    dict(type='SA_Layer', layer_input=2, ctr_idx=2,
         lidar_npoint=64, radar_npoint=16,
         lidar_radius=4.0, radar_radius=6.0,
         lidar_nsample=16, radar_nsample=8,
         disable_cross_attn=False, n_heads=2, use_skip_connection=True),
]


def init_backbone_params(key):
    keys = iter(jax.random.split(key, 64))

    def dense(cin, cout):
        k = next(keys)
        w = jax.random.normal(k, (cin, cout), jnp.float32) * (float(cin) ** -0.5)
        b = jnp.zeros((1, cout), jnp.float32)
        return w, b

    def sa_branch(cin, m1, m2):
        w1, b1 = dense(cin + 3, m1)
        w2, b2 = dense(m1, m2)
        return {'w1': w1, 'b1': b1, 'w2': w2, 'b2': b2}

    def attn(c):
        wq, bq = dense(c, c)
        wkv, bkv = dense(c, 2 * c)      # fused K/V projection (split head-major in wrapper)
        wo, bo = dense(c, c)
        return dict(wq=wq, bq=bq, wkv=wkv, bkv=bkv, wo=wo, bo=bo)

    # layer 0: SA, channel_in = 1 (intensity), mlp [8,16]
    p0 = {'lidar': sa_branch(1, 8, 16), 'radar': sa_branch(1, 8, 16),
          'attn_lidar': attn(16), 'attn_radar': attn(16),
          'agg_lidar': None, 'agg_radar': None}
    # layer 1: Vote, prechannel 16, mlp [16], ctr_reg -> 3
    wm_l, bm_l = dense(16, 16)
    wr_l, br_l = dense(16, 3)
    wm_r, bm_r = dense(16, 16)
    wr_r, br_r = dense(16, 3)
    p1 = {'lidar': {'wm': wm_l, 'bm': bm_l, 'wr': wr_l, 'br': br_l},
          'radar': {'wm': wm_r, 'bm': bm_r, 'wr': wr_r, 'br': br_r}}
    # layer 2: SA, channel_in = 16, mlp [16,32], aggregation [32]
    wa_l, ba_l = dense(32, 32)
    wa_r, ba_r = dense(32, 32)
    p2 = {'lidar': sa_branch(16, 16, 32), 'radar': sa_branch(16, 16, 32),
          'attn_lidar': attn(32), 'attn_radar': attn(32),
          'agg_lidar': {'w': wa_l, 'b': ba_l}, 'agg_radar': {'w': wa_r, 'b': ba_r}}
    return [p0, p1, p2]


# ----------------------------------------------------------------------------------
# Backbone forward (mirrors BERTSSD_Backbonev2.forward)
# ----------------------------------------------------------------------------------
def bertssd_backbone_forward(batch_dict, params):
    batch_size = batch_dict['batch_size']
    lidar_points = batch_dict['points']
    radar_points = batch_dict['attach']

    def split_into_batch(points):
        batch_idx = points[:, 0]
        xyz = points[:, 1:4].reshape(batch_size, -1, 3)
        feats = None
        if points.shape[-1] > 4:
            feats = points[:, 4:].reshape(batch_size, -1, points.shape[-1] - 4)  # (B,N,C)
        return batch_idx, xyz, feats

    lidar_batch_idx, lidar_xyz, lidar_features = split_into_batch(lidar_points)
    radar_batch_idx, radar_xyz, radar_features = split_into_batch(radar_points)

    # internal feature lists are channels-last (B, N, C); converted once at the end.
    lidar_encoder_xyz, lidar_encoder_features, lidar_sa_ins_preds = [lidar_xyz], [lidar_features], []
    radar_encoder_xyz, radar_encoder_features, radar_sa_ins_preds = [radar_xyz], [radar_features], []
    lidar_encoder_coords = [jnp.concatenate(
        [lidar_batch_idx.reshape(batch_size, -1, 1), lidar_xyz], axis=-1)]
    radar_encoder_coords = [jnp.concatenate(
        [radar_batch_idx.reshape(batch_size, -1, 1), radar_xyz], axis=-1)]

    lidar_li_cls_pred = None
    radar_li_cls_pred = None
    lidar_centers = lidar_centers_origin = lidar_ctr_offsets = None
    radar_centers = radar_centers_origin = radar_ctr_offsets = None

    for i, cfg in enumerate(LAYER_CFG):
        li = cfg['layer_input']
        lidar_xyz_input = lidar_encoder_xyz[li]
        radar_xyz_input = radar_encoder_xyz[li]
        lidar_feature_input = lidar_encoder_features[li]
        radar_feature_input = radar_encoder_features[li]

        if cfg['type'] == 'SA_Layer':
            lidar_ctr_xyz = lidar_encoder_xyz[cfg['ctr_idx']] if cfg['ctr_idx'] != -1 else None
            radar_ctr_xyz = radar_encoder_xyz[cfg['ctr_idx']] if cfg['ctr_idx'] != -1 else None
            ret = mmsa_sa_layer(lidar_xyz_input, radar_xyz_input,
                                lidar_feature_input, radar_feature_input,
                                lidar_ctr_xyz, radar_ctr_xyz, cfg, params[i])
            lidar_li_xyz, lidar_li_features, lidar_li_cls_pred = ret['lidar']
            radar_li_xyz, radar_li_features, radar_li_cls_pred = ret['radar']
        else:  # Vote_Layer
            ret = dual_vote(lidar_xyz_input, radar_xyz_input,
                            lidar_feature_input, radar_feature_input,
                            params[i], cfg['max_translate_range'])
            lidar_li_xyz, lidar_li_features, lidar_xyz_select, lidar_ctr_offsets = ret['lidar']
            radar_li_xyz, radar_li_features, radar_xyz_select, radar_ctr_offsets = ret['radar']
            lidar_centers, lidar_centers_origin = lidar_li_xyz, lidar_xyz_select
            radar_centers, radar_centers_origin = radar_li_xyz, radar_xyz_select
            l_cob = lidar_batch_idx.reshape(batch_size, -1)[:, :lidar_centers_origin.shape[1]]
            r_cob = radar_batch_idx.reshape(batch_size, -1)[:, :radar_centers_origin.shape[1]]
            lidar_encoder_coords.append(jnp.concatenate(
                [l_cob[..., None], lidar_centers_origin.reshape(batch_size, -1, 3)], axis=-1))
            radar_encoder_coords.append(jnp.concatenate(
                [r_cob[..., None], radar_centers_origin.reshape(batch_size, -1, 3)], axis=-1))

        lidar_encoder_xyz.append(lidar_li_xyz)
        radar_encoder_xyz.append(radar_li_xyz)
        l_bidx = lidar_batch_idx.reshape(batch_size, -1)[:, :lidar_li_xyz.shape[1]]
        r_bidx = radar_batch_idx.reshape(batch_size, -1)[:, :radar_li_xyz.shape[1]]
        lidar_encoder_coords.append(jnp.concatenate(
            [l_bidx[..., None], lidar_li_xyz.reshape(batch_size, -1, 3)], axis=-1))
        radar_encoder_coords.append(jnp.concatenate(
            [r_bidx[..., None], radar_li_xyz.reshape(batch_size, -1, 3)], axis=-1))
        lidar_encoder_features.append(lidar_li_features)
        radar_encoder_features.append(radar_li_features)

        if lidar_li_cls_pred is not None:
            l_cls_bidx = lidar_batch_idx.reshape(batch_size, -1)[:, :lidar_li_cls_pred.shape[1]]
            r_cls_bidx = radar_batch_idx.reshape(batch_size, -1)[:, :radar_li_cls_pred.shape[1]]
            lidar_sa_ins_preds.append(jnp.concatenate(
                [l_cls_bidx[..., None],
                 lidar_li_cls_pred.reshape(batch_size, -1, lidar_li_cls_pred.shape[-1])], axis=-1))
            radar_sa_ins_preds.append(jnp.concatenate(
                [r_cls_bidx[..., None],
                 radar_li_cls_pred.reshape(batch_size, -1, radar_li_cls_pred.shape[-1])], axis=-1))
        else:
            lidar_sa_ins_preds.append([])
            radar_sa_ins_preds.append([])

    lidar_ctr_batch_idx = lidar_batch_idx.reshape(batch_size, -1)[:, :lidar_li_xyz.shape[1]].reshape(-1)
    radar_ctr_batch_idx = radar_batch_idx.reshape(batch_size, -1)[:, :radar_li_xyz.shape[1]].reshape(-1)

    batch_dict['lidar_ctr_offsets'] = jnp.concatenate(
        [lidar_ctr_batch_idx[:, None], lidar_ctr_offsets.reshape(-1, 3)], axis=1)
    batch_dict['lidar_centers'] = jnp.concatenate(
        [lidar_ctr_batch_idx[:, None], lidar_centers.reshape(-1, 3)], axis=1)
    batch_dict['lidar_centers_origin'] = jnp.concatenate(
        [lidar_ctr_batch_idx[:, None], lidar_centers_origin.reshape(-1, 3)], axis=1)
    batch_dict['lidar_ctr_batch_idx'] = lidar_ctr_batch_idx
    batch_dict['radar_ctr_offsets'] = jnp.concatenate(
        [radar_ctr_batch_idx[:, None], radar_ctr_offsets.reshape(-1, 3)], axis=1)
    batch_dict['radar_centers'] = jnp.concatenate(
        [radar_ctr_batch_idx[:, None], radar_centers.reshape(-1, 3)], axis=1)
    batch_dict['radar_centers_origin'] = jnp.concatenate(
        [radar_ctr_batch_idx[:, None], radar_centers_origin.reshape(-1, 3)], axis=1)
    batch_dict['radar_ctr_batch_idx'] = radar_ctr_batch_idx

    # centers_features: channels-last (B, N, C) -> (B*N, C)  (== permute+view in PyTorch)
    lidar_center_features = lidar_encoder_features[-1].reshape(
        -1, lidar_encoder_features[-1].shape[-1])
    radar_center_features = radar_encoder_features[-1].reshape(
        -1, radar_encoder_features[-1].shape[-1])
    batch_dict['lidar_centers_features'] = lidar_center_features
    batch_dict['radar_centers_features'] = radar_center_features

    # convert stored feature lists to the PyTorch (B, C, N) convention once, at the output
    def to_channels_first(lst):
        return [f.transpose(0, 2, 1) if f is not None else None for f in lst]

    lidar_encoder_features_cf = to_channels_first(lidar_encoder_features)
    radar_encoder_features_cf = to_channels_first(radar_encoder_features)

    batch_dict['lidar_encoder_xyz'] = lidar_encoder_xyz
    batch_dict['lidar_encoder_coords'] = lidar_encoder_coords
    batch_dict['lidar_sa_ins_preds'] = lidar_sa_ins_preds
    batch_dict['lidar_encoder_features'] = lidar_encoder_features_cf
    batch_dict['radar_encoder_xyz'] = radar_encoder_xyz
    batch_dict['radar_encoder_coords'] = radar_encoder_coords
    batch_dict['radar_sa_ins_preds'] = radar_sa_ins_preds
    batch_dict['radar_encoder_features'] = radar_encoder_features_cf
    batch_dict['ctr_offsets'] = batch_dict['lidar_ctr_offsets']
    batch_dict['centers'] = batch_dict['lidar_centers']
    batch_dict['centers_origin'] = batch_dict['lidar_centers_origin']
    batch_dict['ctr_batch_idx'] = batch_dict['lidar_ctr_batch_idx']
    batch_dict['centers_features'] = lidar_center_features
    batch_dict['encoder_xyz'] = batch_dict['lidar_encoder_xyz']
    batch_dict['encoder_coords'] = batch_dict['lidar_encoder_coords']
    batch_dict['sa_ins_preds'] = batch_dict['lidar_sa_ins_preds']
    batch_dict['encoder_features'] = batch_dict['lidar_encoder_features']
    return batch_dict


# ----------------------------------------------------------------------------------
if __name__ == "__main__":
    key = jax.random.PRNGKey(0)
    kp, kl, kr = jax.random.split(key, 3)
    params = init_backbone_params(kp)

    B, NL, NR = 2, 256, 64   # lidar/radar points per batch element (POINT_INPUT_FEATURES = 4)

    def make_points(k, n):
        kxyz, kf = jax.random.split(k)
        xyz = jax.random.uniform(kxyz, (B, n, 3), minval=-4.0, maxval=4.0, dtype=jnp.float32)
        feat = jax.random.uniform(kf, (B, n, 1), dtype=jnp.float32)
        bidx = jnp.broadcast_to(jnp.arange(B, dtype=jnp.float32)[:, None, None], (B, n, 1))
        return jnp.concatenate([bidx, xyz, feat], axis=-1).reshape(B * n, 5)

    batch_dict = {
        'batch_size': B,
        'points': make_points(kl, NL),   # (512, 5) = [batch_idx, x, y, z, intensity]
        'attach': make_points(kr, NR),   # (128, 5)
    }

    out = bertssd_backbone_forward(batch_dict, params)
    jax.block_until_ready(out['centers_features'])
    jax.block_until_ready(out['centers'])
    jax.block_until_ready(out['ctr_offsets'])
    jax.block_until_ready(out['radar_centers_features'])
    print("KERNEL_OK")
</pallas_src>

<mosaic_0001>
module attributes {stable_mosaic.version = 11 : i64} {
  func.func @_sa_group_mlp_pool_kernel(%arg0: i32, %arg1: memref<1x3x256xf32, #tpu.memory_space<vmem>>, %arg2: memref<1x256x4xf32, #tpu.memory_space<vmem>>, %arg3: memref<1x64x4xf32, #tpu.memory_space<vmem>>, %arg4: memref<4x8xbf16, #tpu.memory_space<vmem>>, %arg5: memref<1x8xf32, #tpu.memory_space<vmem>>, %arg6: memref<8x16xbf16, #tpu.memory_space<vmem>>, %arg7: memref<1x16xf32, #tpu.memory_space<vmem>>, %arg8: memref<1x64x16xf32, #tpu.memory_space<vmem>>) attributes {dimension_semantics = [#tpu.dimension_semantics<parallel>], iteration_bounds = array<i64: 2>, scalar_prefetch = 0 : i64, scratch_operands = 0 : i64, tpu.core_type = #tpu.core_type<tc>, window_params = [{transform_indices = @transform_0, window_bounds = array<i64: 1, 3, 256>}, {transform_indices = @transform_1, window_bounds = array<i64: 1, 256, 4>}, {transform_indices = @transform_2, window_bounds = array<i64: 1, 64, 4>}, {pipeline_mode = #tpu.pipeline_mode<synchronous>, transform_indices = @transform_3, window_bounds = array<i64: 4, 8>}, {pipeline_mode = #tpu.pipeline_mode<synchronous>, transform_indices = @transform_4, window_bounds = array<i64: 1, 8>}, {pipeline_mode = #tpu.pipeline_mode<synchronous>, transform_indices = @transform_5, window_bounds = array<i64: 8, 16>}, {pipeline_mode = #tpu.pipeline_mode<synchronous>, transform_indices = @transform_6, window_bounds = array<i64: 1, 16>}, {transform_indices = @transform_7, window_bounds = array<i64: 1, 64, 16>}]} {
    %c0 = arith.constant 0 : index
    %c0_0 = arith.constant 0 : index
    %c0_1 = arith.constant 0 : index
    %0 = vector.load %arg1[%c0, %c0_0, %c0_1] : memref<1x3x256xf32, #tpu.memory_space<vmem>>, vector<1x3x256xf32>
    %1 = vector.shape_cast %0 : vector<1x3x256xf32> to vector<3x256xf32>
    %c0_2 = arith.constant 0 : index
    %c0_3 = arith.constant 0 : index
    %c0_4 = arith.constant 0 : index
    %2 = vector.load %arg2[%c0_2, %c0_3, %c0_4] : memref<1x256x4xf32, #tpu.memory_space<vmem>>, vector<1x256x4xf32>
    %3 = vector.shape_cast %2 : vector<1x256x4xf32> to vector<256x4xf32>
    %c0_5 = arith.constant 0 : index
    %c0_6 = arith.constant 0 : index
    %c0_7 = arith.constant 0 : index
    %4 = vector.load %arg3[%c0_5, %c0_6, %c0_7] : memref<1x64x4xf32, #tpu.memory_space<vmem>>, vector<1x64x4xf32>
    %5 = vector.shape_cast %4 : vector<1x64x4xf32> to vector<64x4xf32>
    %cst = arith.constant 0.000000e+00 : f32
    %6 = vector.broadcast %cst : f32 to vector<64x256xf32>
    %7 = vector.extract_strided_slice %5 {offsets = [0, 0], sizes = [64, 1], strides = [1, 1]} : vector<64x4xf32> to vector<64x1xf32>
    %8 = vector.extract_strided_slice %1 {offsets = [0, 0], sizes = [1, 256], strides = [1, 1]} : vector<3x256xf32> to vector<1x256xf32>
    %9 = vector.broadcast %7 : vector<64x1xf32> to vector<64x256xf32>
    %10 = vector.broadcast %8 : vector<1x256xf32> to vector<64x256xf32>
    %11 = arith.subf %9, %10 : vector<64x256xf32>
    %12 = arith.mulf %11, %11 : vector<64x256xf32>
    %13 = arith.addf %6, %12 : vector<64x256xf32>
    %14 = vector.extract_strided_slice %5 {offsets = [0, 1], sizes = [64, 1], strides = [1, 1]} : vector<64x4xf32> to vector<64x1xf32>
    %15 = vector.extract_strided_slice %1 {offsets = [1, 0], sizes = [1, 256], strides = [1, 1]} : vector<3x256xf32> to vector<1x256xf32>
    %16 = vector.broadcast %14 : vector<64x1xf32> to vector<64x256xf32>
    %17 = vector.broadcast %15 : vector<1x256xf32> to vector<64x256xf32>
    %18 = arith.subf %16, %17 : vector<64x256xf32>
    %19 = arith.mulf %18, %18 : vector<64x256xf32>
    %20 = arith.addf %13, %19 : vector<64x256xf32>
    %21 = vector.extract_strided_slice %5 {offsets = [0, 2], sizes = [64, 1], strides = [1, 1]} : vector<64x4xf32> to vector<64x1xf32>
    %22 = vector.extract_strided_slice %1 {offsets = [2, 0], sizes = [1, 256], strides = [1, 1]} : vector<3x256xf32> to vector<1x256xf32>
    %23 = vector.broadcast %21 : vector<64x1xf32> to vector<64x256xf32>
    %24 = vector.broadcast %22 : vector<1x256xf32> to vector<64x256xf32>
    %25 = arith.subf %23, %24 : vector<64x256xf32>
    %26 = arith.mulf %25, %25 : vector<64x256xf32>
    %27 = arith.addf %20, %26 : vector<64x256xf32>
    %cst_8 = arith.constant 6.250000e+00 : f32
    %28 = vector.broadcast %cst_8 : f32 to vector<64x256xf32>
    %29 = arith.cmpf ole, %27, %28 : vector<64x256xf32>
    %30 = arith.extui %29 : vector<64x256xi1> to vector<64x256xi32>
    %31 = arith.sitofp %30 : vector<64x256xi32> to vector<64x256xf32>
    %32 = tpu.iota {dimensions = array<i32: 0>} : vector<256x256xi32>
    %33 = tpu.iota {dimensions = array<i32: 1>} : vector<256x256xi32>
    %34 = arith.cmpi slt, %32, %33 : vector<256x256xi32>
    %35 = arith.extui %34 : vector<256x256xi1> to vector<256x256xi32>
    %36 = arith.sitofp %35 : vector<256x256xi32> to vector<256x256xf32>
    %cst_9 = arith.constant dense<0.000000e+00> : vector<64x256xf32>
    %37 = tpu.matmul %31, %36, %cst_9 {dimension_numbers = #tpu.dot_dimension_numbers<[1], [0], [0], [1], [0, 0, 1, 1], [], []>} : vector<64x256xf32>, vector<256x256xf32>, vector<64x256xf32> -> vector<64x256xf32>
    %38 = tpu.iota {dimensions = array<i32: 0>} : vector<16x64xi32>
    %39 = arith.sitofp %38 : vector<16x64xi32> to vector<16x64xf32>
    %40 = vector.shape_cast %39 : vector<16x64xf32> to vector<16x64x1xf32>
    %41 = vector.shape_cast %37 : vector<64x256xf32> to vector<1x64x256xf32>
    %42 = vector.broadcast %41 : vector<1x64x256xf32> to vector<16x64x256xf32>
    %43 = vector.broadcast %40 : vector<16x64x1xf32> to vector<16x64x256xf32>
    %44 = arith.subf %42, %43 : vector<16x64x256xf32>
    %45 = math.absf %44 : vector<16x64x256xf32>
    %cst_10 = arith.constant 5.000000e-01 : f32
    %46 = vector.broadcast %cst_10 : f32 to vector<16x64x256xf32>
    %47 = arith.cmpf olt, %45, %46 : vector<16x64x256xf32>
    %48 = arith.extui %47 : vector<16x64x256xi1> to vector<16x64x256xi32>
    %49 = arith.sitofp %48 : vector<16x64x256xi32> to vector<16x64x256xf32>
    %50 = vector.shape_cast %31 : vector<64x256xf32> to vector<1x64x256xf32>
    %51 = vector.broadcast %50 : vector<1x64x256xf32> to vector<16x64x256xf32>
    %52 = arith.mulf %49, %51 : vector<16x64x256xf32>
    %cst_11 = arith.constant dense<0.000000e+00> : vector<16x64xf32>
    %53 = vector.multi_reduction <add>, %52, %cst_11 [2] : vector<16x64x256xf32> to vector<16x64xf32>
    %54 = vector.shape_cast %53 : vector<16x64xf32> to vector<16x64x1xf32>
    %cst_12 = arith.constant 0.000000e+00 : f32
    %55 = vector.broadcast %cst_12 : f32 to vector<16x64x1xf32>
    %56 = arith.cmpf ogt, %54, %55 : vector<16x64x1xf32>
    %57 = vector.extract_strided_slice %52 {offsets = [0, 0, 0], sizes = [1, 64, 256], strides = [1, 1, 1]} : vector<16x64x256xf32> to vector<1x64x256xf32>
    %cst_13 = arith.constant dense<0.000000e+00> : vector<1x64xf32>
    %58 = vector.multi_reduction <add>, %57, %cst_13 [2] : vector<1x64x256xf32> to vector<1x64xf32>
    %59 = vector.shape_cast %58 : vector<1x64xf32> to vector<1x64x1xf32>
    %cst_14 = arith.constant 0.000000e+00 : f32
    %60 = vector.broadcast %cst_14 : f32 to vector<1x64x1xf32>
    %61 = arith.cmpf ogt, %59, %60 : vector<1x64x1xf32>
    %62 = tpu.iota {dimensions = array<i32: 1>} : vector<64x256xi32>
    %c0_i32 = arith.constant 0 : i32
    %63 = vector.broadcast %c0_i32 : i32 to vector<64x256xi32>
    %64 = arith.cmpi eq, %62, %63 : vector<64x256xi32>
    %65 = arith.extui %64 : vector<64x256xi1> to vector<64x256xi32>
    %66 = arith.sitofp %65 : vector<64x256xi32> to vector<64x256xf32>
    %67 = vector.shape_cast %66 : vector<64x256xf32> to vector<1x64x256xf32>
    %68 = vector.shape_cast %61 : vector<1x64x1xi1> to vector<1x64x1xi1>
    %69 = vector.broadcast %68 : vector<1x64x1xi1> to vector<1x64x256xi1>
    %70 = arith.select %69, %57, %67 : vector<1x64x256xi1>, vector<1x64x256xf32>
    %71 = vector.shape_cast %70 : vector<1x64x256xf32> to vector<1x64x256xf32>
    %72 = vector.broadcast %71 : vector<1x64x256xf32> to vector<16x64x256xf32>
    %73 = vector.shape_cast %56 : vector<16x64x1xi1> to vector<16x64x1xi1>
    %74 = vector.broadcast %73 : vector<16x64x1xi1> to vector<16x64x256xi1>
    %75 = arith.select %74, %52, %72 : vector<16x64x256xi1>, vector<16x64x256xf32>
    %76 = vector.shape_cast %75 : vector<16x64x256xf32> to vector<1024x256xf32>
    %cst_15 = arith.constant dense<0.000000e+00> : vector<1024x4xf32>
    %77 = tpu.matmul %76, %3, %cst_15 {dimension_numbers = #tpu.dot_dimension_numbers<[1], [0], [0], [1], [0, 0, 1, 1], [], []>} : vector<1024x256xf32>, vector<256x4xf32>, vector<1024x4xf32> -> vector<1024x4xf32>
    %78 = vector.shape_cast %5 : vector<64x4xf32> to vector<1x64x4xf32>
    %79 = vector.shape_cast %78 : vector<1x64x4xf32> to vector<1x64x4xf32>
    %80 = vector.broadcast %79 : vector<1x64x4xf32> to vector<16x64x4xf32>
    %81 = vector.shape_cast %80 : vector<16x64x4xf32> to vector<1024x4xf32>
    %82 = arith.subf %77, %81 : vector<1024x4xf32>
    %83 = arith.truncf %82 : vector<1024x4xf32> to vector<1024x4xbf16>
    %c0_16 = arith.constant 0 : index
    %c0_17 = arith.constant 0 : index
    %84 = vector.load %arg4[%c0_16, %c0_17] : memref<4x8xbf16, #tpu.memory_space<vmem>>, vector<4x8xbf16>
    %cst_18 = arith.constant dense<0.000000e+00> : vector<1024x8xf32>
    %85 = tpu.matmul %83, %84, %cst_18 {dimension_numbers = #tpu.dot_dimension_numbers<[1], [0], [0], [1], [0, 0, 1, 1], [], []>} : vector<1024x4xbf16>, vector<4x8xbf16>, vector<1024x8xf32> -> vector<1024x8xf32>
    %c0_19 = arith.constant 0 : index
    %c0_20 = arith.constant 0 : index
    %86 = vector.load %arg5[%c0_19, %c0_20] : memref<1x8xf32, #tpu.memory_space<vmem>>, vector<1x8xf32>
    %87 = vector.broadcast %86 : vector<1x8xf32> to vector<1024x8xf32>
    %88 = arith.addf %85, %87 : vector<1024x8xf32>
    %cst_21 = arith.constant 0.000000e+00 : f32
    %89 = vector.broadcast %cst_21 : f32 to vector<1024x8xf32>
    %90 = arith.maximumf %88, %89 : vector<1024x8xf32>
    %91 = arith.truncf %90 : vector<1024x8xf32> to vector<1024x8xbf16>
    %c0_22 = arith.constant 0 : index
    %c0_23 = arith.constant 0 : index
    %92 = vector.load %arg6[%c0_22, %c0_23] : memref<8x16xbf16, #tpu.memory_space<vmem>>, vector<8x16xbf16>
    %cst_24 = arith.constant dense<0.000000e+00> : vector<1024x16xf32>
    %93 = tpu.matmul %91, %92, %cst_24 {dimension_numbers = #tpu.dot_dimension_numbers<[1], [0], [0], [1], [0, 0, 1, 1], [], []>} : vector<1024x8xbf16>, vector<8x16xbf16>, vector<1024x16xf32> -> vector<1024x16xf32>
    %c0_25 = arith.constant 0 : index
    %c0_26 = arith.constant 0 : index
    %94 = vector.load %arg7[%c0_25, %c0_26] : memref<1x16xf32, #tpu.memory_space<vmem>>, vector<1x16xf32>
    %95 = vector.broadcast %94 : vector<1x16xf32> to vector<1024x16xf32>
    %96 = arith.addf %93, %95 : vector<1024x16xf32>
    %cst_27 = arith.constant 0.000000e+00 : f32
    %97 = vector.broadcast %cst_27 : f32 to vector<1024x16xf32>
    %98 = arith.maximumf %96, %97 : vector<1024x16xf32>
    %99 = vector.extract_strided_slice %98 {offsets = [0, 0], sizes = [64, 16], strides = [1, 1]} : vector<1024x16xf32> to vector<64x16xf32>
    %100 = vector.extract_strided_slice %98 {offsets = [64, 0], sizes = [64, 16], strides = [1, 1]} : vector<1024x16xf32> to vector<64x16xf32>
    %101 = arith.maximumf %99, %100 : vector<64x16xf32>
    %102 = vector.extract_strided_slice %98 {offsets = [128, 0], sizes = [64, 16], strides = [1, 1]} : vector<1024x16xf32> to vector<64x16xf32>
    %103 = arith.maximumf %101, %102 : vector<64x16xf32>
    %104 = vector.extract_strided_slice %98 {offsets = [192, 0], sizes = [64, 16], strides = [1, 1]} : vector<1024x16xf32> to vector<64x16xf32>
    %105 = arith.maximumf %103, %104 : vector<64x16xf32>
    %106 = vector.extract_strided_slice %98 {offsets = [256, 0], sizes = [64, 16], strides = [1, 1]} : vector<1024x16xf32> to vector<64x16xf32>
    %107 = arith.maximumf %105, %106 : vector<64x16xf32>
    %108 = vector.extract_strided_slice %98 {offsets = [320, 0], sizes = [64, 16], strides = [1, 1]} : vector<1024x16xf32> to vector<64x16xf32>
    %109 = arith.maximumf %107, %108 : vector<64x16xf32>
    %110 = vector.extract_strided_slice %98 {offsets = [384, 0], sizes = [64, 16], strides = [1, 1]} : vector<1024x16xf32> to vector<64x16xf32>
    %111 = arith.maximumf %109, %110 : vector<64x16xf32>
    %112 = vector.extract_strided_slice %98 {offsets = [448, 0], sizes = [64, 16], strides = [1, 1]} : vector<1024x16xf32> to vector<64x16xf32>
    %113 = arith.maximumf %111, %112 : vector<64x16xf32>
    %114 = vector.extract_strided_slice %98 {offsets = [512, 0], sizes = [64, 16], strides = [1, 1]} : vector<1024x16xf32> to vector<64x16xf32>
    %115 = arith.maximumf %113, %114 : vector<64x16xf32>
    %116 = vector.extract_strided_slice %98 {offsets = [576, 0], sizes = [64, 16], strides = [1, 1]} : vector<1024x16xf32> to vector<64x16xf32>
    %117 = arith.maximumf %115, %116 : vector<64x16xf32>
    %118 = vector.extract_strided_slice %98 {offsets = [640, 0], sizes = [64, 16], strides = [1, 1]} : vector<1024x16xf32> to vector<64x16xf32>
    %119 = arith.maximumf %117, %118 : vector<64x16xf32>
    %120 = vector.extract_strided_slice %98 {offsets = [704, 0], sizes = [64, 16], strides = [1, 1]} : vector<1024x16xf32> to vector<64x16xf32>
    %121 = arith.maximumf %119, %120 : vector<64x16xf32>
    %122 = vector.extract_strided_slice %98 {offsets = [768, 0], sizes = [64, 16], strides = [1, 1]} : vector<1024x16xf32> to vector<64x16xf32>
    %123 = arith.maximumf %121, %122 : vector<64x16xf32>
    %124 = vector.extract_strided_slice %98 {offsets = [832, 0], sizes = [64, 16], strides = [1, 1]} : vector<1024x16xf32> to vector<64x16xf32>
    %125 = arith.maximumf %123, %124 : vector<64x16xf32>
    %126 = vector.extract_strided_slice %98 {offsets = [896, 0], sizes = [64, 16], strides = [1, 1]} : vector<1024x16xf32> to vector<64x16xf32>
    %127 = arith.maximumf %125, %126 : vector<64x16xf32>
    %128 = vector.extract_strided_slice %98 {offsets = [960, 0], sizes = [64, 16], strides = [1, 1]} : vector<1024x16xf32> to vector<64x16xf32>
    %129 = arith.maximumf %127, %128 : vector<64x16xf32>
    %c0_28 = arith.constant 0 : index
    %c0_29 = arith.constant 0 : index
    %c0_30 = arith.constant 0 : index
    %130 = vector.load %arg8[%c0_28, %c0_29, %c0_30] : memref<1x64x16xf32, #tpu.memory_space<vmem>>, vector<1x64x16xf32>
    %131 = vector.shape_cast %130 : vector<1x64x16xf32> to vector<64x16xf32>
    %132 = vector.shape_cast %129 : vector<64x16xf32> to vector<1x64x16xf32>
    tpu.vector_store %arg8[%c0_28, %c0_29, %c0_30], %132 {strides = array<i32>} : memref<1x64x16xf32, #tpu.memory_space<vmem>>, vector<1x64x16xf32>,
    return
  }
  func.func @transform_0(%arg0: i32) -> (i32, i32, i32) {
    %c0_i32 = arith.constant 0 : i32
    %c0_i32_0 = arith.constant 0 : i32
    %c0_i32_1 = arith.constant 0 : i32
    return %arg0, %c0_i32, %c0_i32_0 : i32, i32, i32
  }
  func.func @transform_1(%arg0: i32) -> (i32, i32, i32) {
    %c0_i32 = arith.constant 0 : i32
    %c0_i32_0 = arith.constant 0 : i32
    %c0_i32_1 = arith.constant 0 : i32
    return %arg0, %c0_i32, %c0_i32_0 : i32, i32, i32
  }
  func.func @transform_2(%arg0: i32) -> (i32, i32, i32) {
    %c0_i32 = arith.constant 0 : i32
    %c0_i32_0 = arith.constant 0 : i32
    %c0_i32_1 = arith.constant 0 : i32
    return %arg0, %c0_i32, %c0_i32_0 : i32, i32, i32
  }
  func.func @transform_3(%arg0: i32) -> (i32, i32) {
    %c0_i32 = arith.constant 0 : i32
    %c0_i32_0 = arith.constant 0 : i32
    %c0_i32_1 = arith.constant 0 : i32
    return %c0_i32, %c0_i32_0 : i32, i32
  }
  func.func @transform_4(%arg0: i32) -> (i32, i32) {
    %c0_i32 = arith.constant 0 : i32
    %c0_i32_0 = arith.constant 0 : i32
    %c0_i32_1 = arith.constant 0 : i32
    return %c0_i32, %c0_i32_0 : i32, i32
  }
  func.func @transform_5(%arg0: i32) -> (i32, i32) {
    %c0_i32 = arith.constant 0 : i32
    %c0_i32_0 = arith.constant 0 : i32
    %c0_i32_1 = arith.constant 0 : i32
    return %c0_i32, %c0_i32_0 : i32, i32
  }
  func.func @transform_6(%arg0: i32) -> (i32, i32) {
    %c0_i32 = arith.constant 0 : i32
    %c0_i32_0 = arith.constant 0 : i32
    %c0_i32_1 = arith.constant 0 : i32
    return %c0_i32, %c0_i32_0 : i32, i32
  }
  func.func @transform_7(%arg0: i32) -> (i32, i32, i32) {
    %c0_i32 = arith.constant 0 : i32
    %c0_i32_0 = arith.constant 0 : i32
    %c0_i32_1 = arith.constant 0 : i32
    return %arg0, %c0_i32, %c0_i32_0 : i32, i32, i32
  }
}

</mosaic_0001>

<bundles_post_ra>
// kernel: tpu_custom_call.1
= control target key start
LH: loop header
LB: loop body
LE: loop exit
PB: predicated region body
PF: predicated region fallthrough
CT: control target
= control target key end

     0   :  { %s7735_s24 = smov 0   ;;  %s11791_s0 = inlined_call_operand.vmem [shape: f32[2,3,256], index: 0, kind: input, shape index: {}]   ;;  %s11792_s1 = inlined_call_operand.vmem [shape: f32[2,256,4], index: 1, kind: input, shape index: {}]   ;;  %s11793_s2 = inlined_call_operand.vmem [shape: f32[2,64,4], index: 2, kind: input, shape index: {}]   ;;  %s11794_s3 = inlined_call_operand.vmem [shape: bf16[4,8], index: 3, kind: input, shape index: {}]   ;;  %s11795_s4 = inlined_call_operand.vmem [shape: f32[1,8], index: 4, kind: input, shape index: {}]   ;;  %s11796_s5 = inlined_call_operand.vmem [shape: bf16[8,16], index: 5, kind: input, shape index: {}]   ;;  %s11797_s6 = inlined_call_operand.vmem [shape: f32[1,16], index: 6, kind: input, shape index: {}]   ;;  %s11798_s7 = inlined_call_operand.vmem [shape: f32[2,64,16], index: 7, kind: output, shape index: {}]  }
   0x1 LB: > { %s6626_s25 = sadd.s32 4294967295, %s7686_s24   ;;  %p6630_p0 = scmp.ge.s32.totalorder %s7686_s24, 1  ;;  %s7686_s24 = sphi %s7735_s24, %s17_s24  }
   0x2   : > { %p257_p1 = scmp.lt.s32.totalorder %s7686_s24, 3 }
   0x4   : > { %p258_p2 = pnand %p6630_p0, %p257_p1 }
   0x6   : > { %261 = sbr.rel (%p258_p2) target bundleno = 1819 (0x71b), region = 48 }
   0xd   : > { %p299_p3 = scmp.lt.s32.totalorder %s6626_s25, 1  ;;  %v7688_v0 = vmov 2   ;;  %v7689_v1 = vmov 0   ;;  %v402_v2 = vlaneseq  ;;  %v7690_v3 = vmov 1.0|1.0  }
   0xe   : > { %7635 = vset.pattern.permute.xlu1 %v7688_v0  ;;  %7634 = vset.pattern.permute.xlu0 %v7689_v1  ;;  %v11799_v4 = vmov 0.0|0.0   ;;  %v7692_v43 = vmov 1  }
   0xf   : > { %s12611_s25 = smov (!%p299_p3, %s6626_s25), 1  ;;  %7518 = vmatprep.subr.bf16.mxu0 %v7690_v3  ;;  %7566 = vmatprep.subr.bf16.mxu1 %v11799_v4  ;;  %v7749_v5 = vshrl.u32 %v402_v2, 7  ;;  %v7751_v6 = vand.u32 127, %v402_v2 }
  0x10   : > { %s7126_s26 = sshll.u32 %s12611_s25, 6  ;;  %s7124_s30 = sshll.u32 %s12611_s25, 3 }
  0x11   : > { %12079 = vst [vmem:[#allocation2_spill] sm:$0xff] %v7751_v6  ;;  %s7759_s29 = scalar_lea.vmem %s11793_s2, %s7126_s26  ;;  %v7762_v7 = vsub.s32 0, %v7749_v5  ;;  %v7765_v8 = vsub.s32 4, %v7749_v5  ;;  %v7768_v9 = vsub.s32 1, %v7749_v5  ;;  %v7771_v10 = vsub.s32 5, %v7749_v5  ;;  %s303_s10 = scalar_lea.vmem %s11791_s0, %s7124_s30 }
  0x12   : > { %v7774_v11 = vld [vmem:[%s7759_s29] sm:$0xff]  ;;  %v7777_v12 = vsub.s32 2, %v7749_v5  ;;  %v7780_v13 = vsub.s32 6, %v7749_v5  ;;  %v714_v14 = vadd.s32 8, %v7749_v5  ;;  %vm748_vm0 = vcmp.lt.s32.totalorder %v7749_v5, %v7751_v6  ;;  %v354_v22 = vld [vmem:[%s7759_s29 + $0x8] sm:$0xff]  ;;  %v355_v39 = vld [vmem:[%s7759_s29 + $0x10] sm:$0xff]  ;;  %s11766_s9 = scalar_lea.vmem %s11798_s7, %s7126_s26 }
  0x13   : > { %567 = vperm.xlu1 %7635, %v7774_v11   ;;  %363 = vperm.xlu0 %7634, %v7774_v11   ;;  %v1053_v15 = vcvt.s32.f32 %v7749_v5  ;;  %v1069_v16 = vsub.s32 3, %v7749_v5  ;;  %v1085_v17 = vsub.s32 7, %v7749_v5  ;;  %v715_v18 = vadd.s32 16, %v7749_v5  ;;  %v320_v46 = vld [vmem:[%s303_s10] sm:$0x77]  ;;  %v356_v51 = vld [vmem:[%s7759_s29 + $0x18] sm:$0xff] }
  0x14   : > { %vm750_vm1 = vcmp.lt.s32.totalorder %v714_v14, %v7751_v6  ;;  %v1054_v19 = vcvt.s32.f32 %v714_v14  ;;  %v716_v20 = vadd.s32 24, %v7749_v5  ;;  %v717_v21 = vadd.s32 32, %v7749_v5  ;;  %v357_v61 = vld [vmem:[%s7759_s29 + $0x20] sm:$0xff]  ;;  %s7125_s11 = sshll.u32 %s12611_s25, 8 }
  0x15   : > { %vm7519_vm2 = vmpackc.low %vm750_vm1, %vm748_vm0  ;;  %v7796_v23 = vrot.slane %v1053_v15, %v7762_v7  ;;  %v7799_v24 = vrot.slane %v1053_v15, %v7768_v9  ;;  %v7802_v25 = vrot.slane %v1053_v15, %v7777_v12  ;;  %v7804_v26 = vrot.slane %v1053_v15, %v1069_v16  ;;  %s8137_s14 = scalar_lea.vmem %s11792_s1, %s7125_s11 }
  0x16   : > { %7520 = vmatpush1.bf16.msk.msra.mxu0 %vm7519_vm2, %v7690_v3  ;;  %v7808_v27 = vrot.slane %v1053_v15, %v7765_v8  ;;  %v7811_v28 = vrot.slane %v1053_v15, %v7771_v10  ;;  %v7814_v29 = vrot.slane %v1053_v15, %v7780_v13  ;;  %v7816_v30 = vrot.slane %v1053_v15, %v1085_v17  ;;  %v359_v15 = vld [vmem:[%s7759_s29 + $0x30] sm:$0xff] }
  0x17   : > { %7636 = vset.pattern.permute.xlu1 %v7689_v1  ;;  %7638 = vset.pattern.permute.xlu0 %v7688_v0  ;;  %v7821_v31 = vrot.slane %v1054_v19, %v7762_v7  ;;  %v7824_v32 = vrot.slane %v1054_v19, %v7768_v9  ;;  %v7827_v33 = vrot.slane %v1054_v19, %v7777_v12  ;;  %v718_v34 = vadd.s32 40, %v7749_v5 }
  0x18   : > { %12080 = vst [vmem:[#allocation3_spill] sm:$0xff] %v7808_v27  ;;  %12081 = vst [vmem:[#allocation4_spill] sm:$0xff] %v7811_v28  ;;  %368 = vperm.xlu1 %7636, %v354_v22   ;;  %571 = vperm.xlu0 %7638, %v354_v22   ;;  %v7831_v35 = vrot.slane %v1054_v19, %v1069_v16  ;;  %v7834_v36 = vrot.slane %v1054_v19, %v7765_v8  ;;  %v719_v38 = vadd.s32 48, %v7749_v5 }
  0x19   : > { %12082 = vst [vmem:[#allocation5_spill] sm:$0xff] %v7814_v29  ;;  %12083 = vst [vmem:[#allocation6_spill] sm:$0xff] %v7816_v30  ;;  %v7837_v37 = vrot.slane %v1054_v19, %v7771_v10  ;;  %v7842_v40 = vrot.slane %v1054_v19, %v7780_v13  ;;  %v7844_v41 = vrot.slane %v1054_v19, %v1085_v17  ;;  %7521 = vmatprep.subr.bf16.mxu0 %v7690_v3 }
  0x1a   : > { %12084 = vst [vmem:[#allocation7_spill] sm:$0xff] %v7821_v31  ;;  %12085 = vst [vmem:[#allocation8_spill] sm:$0xff] %v7824_v32  ;;  %vm752_vm3 = vcmp.lt.s32.totalorder %v715_v18, %v7751_v6  ;;  %vm754_vm4 = vcmp.lt.s32.totalorder %v716_v20, %v7751_v6  ;;  %vm756_vm6 = vcmp.lt.s32.totalorder %v717_v21, %v7751_v6  ;;  %v720_v42 = vadd.s32 56, %v7749_v5  ;;  %v360_v20 = vld [vmem:[%s7759_s29 + $0x38] sm:$0xff] }
  0x1b   : > { %12086 = vst [vmem:[#allocation9_spill] sm:$0xff] %v7827_v33  ;;  %12087 = vst [vmem:[#allocation10_spill] sm:$0xff] %v7831_v35  ;;  %vm758_vm7 = vcmp.lt.s32.totalorder %v718_v34, %v7751_v6  ;;  %vm760_vm9 = vcmp.lt.s32.totalorder %v719_v38, %v7751_v6  ;;  %v721_v44 = vadd.s32 64, %v7749_v5  ;;  %v722_v45 = vadd.s32 72, %v7749_v5 }
  0x1c   : > { %12088 = vst [vmem:[#allocation11_spill] sm:$0xff] %v7834_v36  ;;  %12089 = vst [vmem:[#allocation12_spill] sm:$0xff] %v7837_v37  ;;  %7637 = vset.pattern.permute.xlu1 %v7692_v43  ;;  %575 = vperm.xlu0 %7638, %v355_v39   ;;  %vm762_vm10 = vcmp.lt.s32.totalorder %v720_v42, %v7751_v6  ;;  %v723_v47 = vadd.s32 80, %v7749_v5  ;;  %v601_v48 = vrot.slane %v320_v46, %v7777_v12 }
  0x1d   : > { %12090 = vst [vmem:[#allocation13_spill] sm:$0xff] %v7842_v40  ;;  %12091 = vst [vmem:[#allocation14_spill] sm:$0xff] %v7844_v41  ;;  %473 = vperm.xlu1 %7637, %v354_v22   ;;  %vm764_vm12 = vcmp.lt.s32.totalorder %v721_v44, %v7751_v6  ;;  %vm766_vm13 = vcmp.lt.s32.totalorder %v722_v45, %v7751_v6  ;;  %v724_v49 = vadd.s32 88, %v7749_v5  ;;  %v725_v55 = vadd.s32 96, %v7749_v5 }
  0x1e   : > { %vm7522_vm5 = vmpackc.low %vm754_vm4, %vm752_vm3  ;;  %v405_v50 = vrot.slane %v320_v46, %v7762_v7  ;;  %v7875_v52 = vrot.slane %v601_v48, %v7777_v12  ;;  %v409_v53 = vrot.slane %v320_v46, %v7765_v8  ;;  %vm768_vm15 = vcmp.lt.s32.totalorder %v723_v47, %v7751_v6 }
  0x1f   : > { %7523 = vmatpush1.bf16.msk.msra.mxu0 %vm7522_vm5, %v7690_v3  ;;  %vm7525_vm8 = vmpackc.low %vm758_vm7, %vm756_vm6  ;;  %v726_v56 = vadd.s32 104, %v7749_v5  ;;  %v605_v57 = vrot.slane %v320_v46, %v7780_v13  ;;  %vm770_vm0 = vcmp.lt.s32.totalorder %v724_v49, %v7751_v6  ;;  %v503_v59 = vrot.slane %v320_v46, %v7768_v9 }
  0x20   : > { %7524 = vmatprep.subr.bf16.mxu0 %v7690_v3  ;;  %7641 = vset.pattern.permute.xlu0 %v7692_v43  ;;  %vm7528_vm11 = vmpackc.low %vm762_vm10, %vm760_vm9  ;;  %v7880_v54 = vrot.slane %v405_v50, %v7762_v7  ;;  %v7889_v58 = vrot.slane %v409_v53, %v7762_v7  ;;  %v507_v60 = vrot.slane %v320_v46, %v7771_v10  ;;  %v727_v7 = vadd.s32 112, %v7749_v5 }
  0x21   : > { %7639 = vset.pattern.permute.xlu1 %v7689_v1  ;;  %469 = vperm.xlu0 %7641, %v7774_v11   ;;  %vm7531_vm14 = vmpackc.low %vm766_vm13, %vm764_vm12  ;;  %v7896_v62 = vrot.slane %v605_v57, %v7777_v12  ;;  %v7900_v63 = vrot.slane %v503_v59, %v7768_v9  ;;  %vm772_vm2 = vcmp.lt.s32.totalorder %v725_v55, %v7751_v6  ;;  %v728_v8 = vadd.s32 120, %v7749_v5  ;;  %v7919_v12 = vld [vmem:[%s7759_s29 + $0x28] sm:$0xff] }
  0x22   : > { %373 = vperm.xlu1 %7639, %v355_v39   ;;  %v7903_v2 = vrot.slane %v507_v60, %v7768_v9  ;;  %vm7534_vm1 = vmpackc.low %vm770_vm0, %vm768_vm15  ;;  %vm774_vm3 = vcmp.lt.s32.totalorder %v726_v56, %v7751_v6  ;;  %v729_v10 = vadd.s32 128, %v7749_v5  ;;  %v730_v11 = vadd.s32 136, %v7749_v5 }
  0x23   : > { %7526 = vmatpush1.bf16.msk.msra.mxu0 %vm7525_vm8, %v7690_v3  ;;  %v7915_v9 = vadd.s32 128, %v7751_v6  ;;  %vm7537_vm4 = vmpackc.low %vm774_vm3, %vm772_vm2  ;;  %vm776_vm5 = vcmp.lt.s32.totalorder %v727_v7, %v7751_v6  ;;  %vm778_vm6 = vcmp.lt.s32.totalorder %v728_v8, %v7751_v6  ;;  %v731_v13 = vadd.s32 144, %v7749_v5 }
  0x24   : > { %7527 = vmatprep.subr.bf16.mxu0 %v7690_v3  ;;  %v732_v14 = vadd.s32 152, %v7749_v5  ;;  %vm7540_vm9 = vmpackc.low %vm778_vm6, %vm776_vm5  ;;  %v733_v16 = vadd.s32 160, %v7749_v5  ;;  %v734_v17 = vadd.s32 168, %v7749_v5  ;;  %v735_v18 = vadd.s32 176, %v7749_v5 }
  0x25   : > { %481 = vperm.xlu0 %7641, %v356_v51   ;;  %vm781_vm7 = vcmp.lt.s32.totalorder %v729_v10, %v7915_v9  ;;  %vm783_vm8 = vcmp.lt.s32.totalorder %v730_v11, %v7915_v9  ;;  %v736_v19 = vadd.s32 184, %v7749_v5  ;;  %v737_v21 = vadd.s32 192, %v7749_v5 }
  0x26   : > { %7640 = vset.pattern.permute.xlu1 %v7692_v43  ;;  %vm7542_vm10 = vmpackc.low %vm783_vm8, %vm781_vm7  ;;  %vm787_vm12 = vcmp.lt.s32.totalorder %v732_v14, %v7915_v9  ;;  %vm791_vm15 = vcmp.lt.s32.totalorder %v734_v17, %v7915_v9  ;;  %v738_v22 = vadd.s32 200, %v7749_v5  ;;  %v739_v34 = vadd.s32 208, %v7749_v5 }
  0x27   : > { %7529 = vmatpush1.bf16.msk.msra.mxu0 %vm7528_vm11, %v7690_v3  ;;  %477 = vperm.xlu1 %7640, %v355_v39   ;;  %vm785_vm11 = vcmp.lt.s32.totalorder %v731_v13, %v7915_v9  ;;  %vm795_vm2 = vcmp.lt.s32.totalorder %v736_v19, %v7915_v9  ;;  %v740_v38 = vadd.s32 216, %v7749_v5  ;;  %v741_v39 = vadd.s32 224, %v7749_v5 }
  0x28   : > { %7530 = vmatprep.subr.bf16.mxu0 %v7690_v3  ;;  %vm7545_vm13 = vmpackc.low %vm787_vm12, %vm785_vm11  ;;  %vm799_vm5 = vcmp.lt.s32.totalorder %v738_v22, %v7915_v9  ;;  %vm801_vm7 = vcmp.lt.s32.totalorder %v739_v34, %v7915_v9  ;;  %v742_v42 = vadd.s32 232, %v7749_v5  ;;  %v743_v44 = vadd.s32 240, %v7749_v5 }
  0x29   : > { %485 = vperm.xlu0 %7641, %v357_v61   ;;  %vm803_vm8 = vcmp.lt.s32.totalorder %v740_v38, %v7915_v9  ;;  %v744_v45 = vadd.s32 248, %v7749_v5 }
  0x2a   : > { %vm807_vm11 = vcmp.lt.s32.totalorder %v742_v42, %v7915_v9 }
  0x2b   : > { %7532 = vmatpush1.bf16.msk.msra.mxu0 %vm7531_vm14, %v7690_v3  ;;  %7642 = vset.pattern.permute.xlu1 %v7689_v1  ;;  %vm789_vm14 = vcmp.lt.s32.totalorder %v733_v16, %v7915_v9 }
  0x2c   : > { %7533 = vmatprep.subr.bf16.mxu0 %v7690_v3  ;;  %378 = vperm.xlu1 %7642, %v356_v51   ;;  %vm7548_vm0 = vmpackc.low %vm791_vm15, %vm789_vm14  ;;  %vm811_vm14 = vcmp.lt.s32.totalorder %v744_v45, %v7915_v9 }
  0x2d   : > { %7646 = vset.pattern.permute.xlu0 %v7689_v1 }
  0x2e   : > { %388 = vperm.xlu0 %7646, %v7919_v12  }
  0x2f   : > { %7535 = vmatpush1.bf16.msk.msra.mxu0 %vm7534_vm1, %v7690_v3  ;;  %vm793_vm1 = vcmp.lt.s32.totalorder %v735_v18, %v7915_v9 }
  0x30   : > { %7536 = vmatprep.subr.bf16.mxu0 %v7690_v3  ;;  %7643 = vset.pattern.permute.xlu1 %v7688_v0  ;;  %vm7551_vm3 = vmpackc.low %vm795_vm2, %vm793_vm1 }
  0x31   : > { %579 = vperm.xlu1 %7643, %v356_v51  }
  0x32   : > { %393 = vperm.xlu0 %7646, %v359_v15  }
  0x33   : > { %7538 = vmatpush1.bf16.msk.msra.mxu0 %vm7537_vm4, %v7690_v3  ;;  %vm797_vm4 = vcmp.lt.s32.totalorder %v737_v21, %v7915_v9 }
  0x34   : > { %7539 = vmatprep.subr.bf16.mxu0 %v7690_v3  ;;  %vm7554_vm6 = vmpackc.low %vm799_vm5, %vm797_vm4 }
  0x35   : > { %7644 = vset.pattern.permute.xlu1 %v7689_v1 }
  0x36   : > { %383 = vperm.xlu1 %7644, %v357_v61   ;;  %7650 = vset.pattern.permute.xlu0 %v7688_v0 }
  0x37   : > { %7541 = vmatpush1.bf16.msk.msra.mxu0 %vm7540_vm9, %v7690_v3  ;;  %591 = vperm.xlu0 %7650, %v359_v15   ;;  %vm7557_vm9 = vmpackc.low %vm803_vm8, %vm801_vm7 }
  0x38   : > { %7543 = vmatprep.subr.msk.bf16.mxu0 %vm7542_vm10, %v7690_v3  ;;  %vm805_vm10 = vcmp.lt.s32.totalorder %v741_v39, %v7915_v9 }
  0x39   : > { %vm7560_vm12 = vmpackc.low %vm807_vm11, %vm805_vm10 }
  0x3a   : > { %7645 = vset.pattern.permute.xlu1 %v7688_v0 }
  0x3b   : > { %7544 = vmatpush1.bf16.msra.mxu0 %v11799_v4  ;;  %583 = vperm.xlu1 %7645, %v357_v61  }
  0x3c   : > { %7546 = vmatprep.subr.msk.bf16.mxu0 %vm7545_vm13, %v7690_v3  ;;  %595 = vperm.xlu0 %7650, %v360_v20   ;;  %vm809_vm13 = vcmp.lt.s32.totalorder %v743_v44, %v7915_v9 }
  0x3d   : > { %vm7563_vm15 = vmpackc.low %vm811_vm14, %vm809_vm13 }
  0x3f   : > { %7547 = vmatpush1.bf16.msra.mxu0 %v11799_v4  ;;  %7647 = vset.pattern.permute.xlu1 %v7692_v43 }
  0x40   : > { %7549 = vmatprep.subr.msk.bf16.mxu0 %vm7548_vm0, %v7690_v3  ;;  %489 = vperm.xlu1 %7647, %v7919_v12  }
  0x43   : > { %7550 = vmatpush1.bf16.msra.mxu0 %v11799_v4 }
  0x44   : > { %7552 = vmatprep.subr.msk.bf16.mxu0 %vm7551_vm3, %v7690_v3  ;;  %7648 = vset.pattern.permute.xlu1 %v7688_v0 }
  0x45   : > { %587 = vperm.xlu1 %7648, %v7919_v12  }
  0x47   : > { %7553 = vmatpush1.bf16.msra.mxu0 %v11799_v4 }
  0x48   : > { %7555 = vmatprep.subr.msk.bf16.mxu0 %vm7554_vm6, %v7690_v3 }
  0x49   : > { %7649 = vset.pattern.permute.xlu1 %v7692_v43 }
  0x4a   : > { %493 = vperm.xlu1 %7649, %v359_v15  }
  0x4b   : > { %7556 = vmatpush1.bf16.msra.mxu0 %v11799_v4 }
  0x4c   : > { %7558 = vmatprep.subr.msk.bf16.mxu0 %vm7557_vm9, %v7690_v3 }
  0x4e   : > { %7651 = vset.pattern.permute.xlu1 %v7689_v1 }
  0x4f   : > { %7559 = vmatpush1.bf16.msra.mxu0 %v11799_v4  ;;  %398 = vperm.xlu1 %7651, %v360_v20  }
  0x50   : > { %7561 = vmatprep.subr.msk.bf16.mxu0 %vm7560_vm12, %v7690_v3 }
  0x53   : > { %7562 = vmatpush1.bf16.msra.mxu0 %v11799_v4  ;;  %7652 = vset.pattern.permute.xlu1 %v7692_v43 }
  0x54   : > { %7564 = vmatprep.subr.msk.bf16.mxu0 %vm7563_vm15, %v7690_v3  ;;  %497 = vperm.xlu1 %7652, %v360_v20  }
  0x57   : > { %7565 = vmatpush1.bf16.msra.mxu0 %v11799_v4 }
  0x92   : > { %v568_v0 = vpop.permute.xlu1 %567  ;;  %v364_v5 = vpop.permute.xlu0 %363 }
  0x93   : > { %v420_v3 = vsub.f32 %v364_v5, %v7880_v54  ;;  %v421_v43 = vsub.f32 %v364_v5, %v7889_v58  ;;  %v617_v12 = vsub.f32 %v568_v0, %v7896_v62  ;;  %v616_v18 = vsub.f32 %v568_v0, %v7875_v52 }
  0x95   : > { %v436_v10 = vmul.f32 %v420_v3, %v420_v3  ;;  %v437_v11 = vmul.f32 %v421_v43, %v421_v43  ;;  %v633_v45 = vmul.f32 %v617_v12, %v617_v12 }
  0x97   : > { %v369_v46 = vpop.permute.xlu1 %368  ;;  %v572_v47 = vpop.permute.xlu0 %571 }
  0x98   : > { %v422_v48 = vsub.f32 %v369_v46, %v7880_v54  ;;  %v423_v49 = vsub.f32 %v369_v46, %v7889_v58  ;;  %v618_v1 = vsub.f32 %v572_v47, %v7875_v52  ;;  %v619_v50 = vsub.f32 %v572_v47, %v7896_v62 }
  0x99   : > { %v632_v47 = vmul.f32 %v616_v18, %v616_v18 }
  0x9a   : > { %v438_v57 = vmul.f32 %v422_v48, %v422_v48  ;;  %v439_v59 = vmul.f32 %v423_v49, %v423_v49  ;;  %v634_v60 = vmul.f32 %v618_v1, %v618_v1  ;;  %v635_v61 = vmul.f32 %v619_v50, %v619_v50 }
  0x9b   : > { %v576_v51 = vpop.permute.xlu0 %575 }
  0x9c   : > { %v474_v53 = vpop.permute.xlu1 %473  ;;  %v620_v19 = vsub.f32 %v576_v51, %v7875_v52  ;;  %v621_v20 = vsub.f32 %v576_v51, %v7896_v62 }
  0x9d   : > { %v520_v55 = vsub.f32 %v474_v53, %v7900_v63  ;;  %v521_v56 = vsub.f32 %v474_v53, %v7903_v2 }
  0x9e   : > { %v636_v0 = vmul.f32 %v620_v19, %v620_v19  ;;  %v637_v49 = vmul.f32 %v621_v20, %v621_v20 }
  0x9f   : > { %v536_v7 = vmul.f32 %v520_v55, %v520_v55  ;;  %v537_v8 = vmul.f32 %v521_v56, %v521_v56 }
  0xa0   : > { %v470_v9 = vpop.permute.xlu0 %469 }
  0xa1   : > { %v518_v13 = vsub.f32 %v470_v9, %v7900_v63  ;;  %v519_v14 = vsub.f32 %v470_v9, %v7903_v2  ;;  %v374_v15 = vpop.permute.xlu1 %373  ;;  %v553_v16 = vadd.f32 %v537_v8, %v439_v59  ;;  %v552_v17 = vadd.f32 %v536_v7, %v438_v57 }
  0xa2   : > { %v424_v39 = vsub.f32 %v374_v15, %v7880_v54  ;;  %v425_v42 = vsub.f32 %v374_v15, %v7889_v58 }
  0xa3   : > { %v534_v21 = vmul.f32 %v518_v13, %v518_v13  ;;  %v535_v22 = vmul.f32 %v519_v14, %v519_v14  ;;  %v8003_v34 = vadd.f32 %v635_v61, %v553_v16  ;;  %v8005_v38 = vadd.f32 %v634_v60, %v552_v17 }
  0xa4   : > { %v482_v5 = vpop.permute.xlu0 %481  ;;  %v440_v3 = vmul.f32 %v424_v39, %v424_v39  ;;  %v441_v56 = vmul.f32 %v425_v42, %v425_v42  ;;  %v7693_v60 = vmov 1.0  }
  0xa5   : > { %v551_v44 = vadd.f32 %v535_v22, %v437_v11  ;;  %v550_v46 = vadd.f32 %v534_v21, %v436_v10  ;;  %v524_v43 = vsub.f32 %v482_v5, %v7900_v63  ;;  %v525_v53 = vsub.f32 %v482_v5, %v7903_v2 }
  0xa6   : > { %v478_v48 = vpop.permute.xlu1 %477  ;;  %vm667_vm2 = vcmp.le.f32.partialorder %v8003_v34, 6.25  ;;  %vm666_vm3 = vcmp.le.f32.partialorder %v8005_v38, 6.25 }
  0xa7   : > { %v522_v1 = vsub.f32 %v478_v48, %v7900_v63  ;;  %v523_v50 = vsub.f32 %v478_v48, %v7903_v2  ;;  %v8011_v51 = vadd.f32 %v633_v45, %v551_v44  ;;  %v8015_v55 = vadd.f32 %v632_v47, %v550_v46 }
  0xa8   : > { %v540_v9 = vmul.f32 %v524_v43, %v524_v43  ;;  %v541_v12 = vmul.f32 %v525_v53, %v525_v53  ;;  %v486_v17 = vpop.permute.xlu0 %485 }
  0xa9   : > { %v538_v57 = vmul.f32 %v522_v1, %v522_v1  ;;  %v539_v59 = vmul.f32 %v523_v50, %v523_v50  ;;  %vm665_vm0 = vcmp.le.f32.partialorder %v8011_v51, 6.25  ;;  %vm664_vm1 = vcmp.le.f32.partialorder %v8015_v55, 6.25  ;;  %v337_v51 = vld [vmem:[%s8137_s14 + $0x80] sm:$0xff] }
  0xaa   : > { %6719 = vmatprep.mubr.msk.f32.mxu0 %vm665_vm0, %v7693_v60  ;;  %v526_v39 = vsub.f32 %v486_v17, %v7900_v63  ;;  %v527_v42 = vsub.f32 %v486_v17, %v7903_v2 }
  0xab   : > { %v379_v61 = vpop.permute.xlu1 %378  ;;  %6720 = vmatmul.mubr.msk.f32.vlgmr.msra.gmra.mrb[0].mxu0 %vm664_vm1, %v7693_v60  ;;  %v555_v7 = vadd.f32 %v539_v59, %v441_v56  ;;  %v554_v8 = vadd.f32 %v538_v57, %v440_v3 }
  0xac   : > { %v426_v10 = vsub.f32 %v379_v61, %v7880_v54  ;;  %v427_v11 = vsub.f32 %v379_v61, %v7889_v58  ;;  %6721 = vmatprep.mubr.msk.f32.mxu0 %vm667_vm2, %v7693_v60  ;;  %v543_v1 = vmul.f32 %v527_v42, %v527_v42 }
  0xad   : > { %v8031_v13 = vadd.f32 %v637_v49, %v555_v7  ;;  %v8033_v14 = vadd.f32 %v636_v0, %v554_v8  ;;  %v542_v49 = vmul.f32 %v526_v39, %v526_v39  ;;  %v389_v43 = vpop.permute.xlu0 %388 }
  0xae   : > { %v442_v15 = vmul.f32 %v426_v10, %v426_v10  ;;  %v443_v16 = vmul.f32 %v427_v11, %v427_v11  ;;  %v430_v7 = vsub.f32 %v389_v43, %v7880_v54  ;;  %v431_v8 = vsub.f32 %v389_v43, %v7889_v58 }
  0xaf   : > { %6722 = vmatmul.mubr.msk.f32.gmra.mrb[2].mxu0 %vm666_vm3, %v7693_v60  ;;  %vm669_vm4 = vcmp.le.f32.partialorder %v8031_v13, 6.25  ;;  %vm668_vm5 = vcmp.le.f32.partialorder %v8033_v14, 6.25 }
  0xb0   : > { %v580_v18 = vpop.permute.xlu1 %579  ;;  %6723 = vmatprep.mubr.msk.f32.mxu0 %vm669_vm4, %v7693_v60  ;;  %v557_v19 = vadd.f32 %v541_v12, %v443_v16  ;;  %v556_v20 = vadd.f32 %v540_v9, %v442_v15 }
  0xb1   : > { %v622_v21 = vsub.f32 %v580_v18, %v7875_v52  ;;  %v623_v22 = vsub.f32 %v580_v18, %v7896_v62  ;;  %v394_v16 = vpop.permute.xlu0 %393 }
  0xb3   : > { %v638_v44 = vmul.f32 %v622_v21, %v622_v21  ;;  %v639_v45 = vmul.f32 %v623_v22, %v623_v22  ;;  %6724 = vmatmul.mubr.msk.f32.gmra.mrb[4].mxu0 %vm668_vm5, %v7693_v60 }
  0xb5   : > { %v384_v5 = vpop.permute.xlu1 %383  ;;  %v8051_v46 = vadd.f32 %v639_v45, %v557_v19  ;;  %v8053_v47 = vadd.f32 %v638_v44, %v556_v20  ;;  %v446_v19 = vmul.f32 %v430_v7, %v430_v7  ;;  %v447_v20 = vmul.f32 %v431_v8, %v431_v8 }
  0xb6   : > { %v428_v0 = vsub.f32 %v384_v5, %v7880_v54  ;;  %v429_v48 = vsub.f32 %v384_v5, %v7889_v58 }
  0xb7   : > { %vm671_vm6 = vcmp.le.f32.partialorder %v8051_v46, 6.25  ;;  %vm670_vm7 = vcmp.le.f32.partialorder %v8053_v47, 6.25 }
  0xb8   : > { %v444_v50 = vmul.f32 %v428_v0, %v428_v0  ;;  %v445_v3 = vmul.f32 %v429_v48, %v429_v48  ;;  %6725 = vmatprep.mubr.msk.f32.mxu0 %vm671_vm6, %v7693_v60  ;;  %v592_v0 = vpop.permute.xlu0 %591  ;;  %v432_v48 = vsub.f32 %v394_v16, %v7880_v54 }
  0xb9   : > { %6726 = vmatmul.mubr.msk.f32.gmra.mrb[6].mxu0 %vm670_vm7, %v7693_v60  ;;  %v629_v43 = vsub.f32 %v592_v0, %v7896_v62 }
  0xba   : > { %v584_v53 = vpop.permute.xlu1 %583  ;;  %v559_v56 = vadd.f32 %v543_v1, %v445_v3  ;;  %v558_v57 = vadd.f32 %v542_v49, %v444_v50  ;;  %v433_v49 = vsub.f32 %v394_v16, %v7889_v58  ;;  %v628_v3 = vsub.f32 %v592_v0, %v7875_v52 }
  0xbb   : > { %v624_v59 = vsub.f32 %v584_v53, %v7875_v52  ;;  %v625_v61 = vsub.f32 %v584_v53, %v7896_v62  ;;  %v645_v16 = vmul.f32 %v629_v43, %v629_v43 }
  0xbd   : > { %v640_v10 = vmul.f32 %v624_v59, %v624_v59  ;;  %v641_v11 = vmul.f32 %v625_v61, %v625_v61  ;;  %v448_v59 = vmul.f32 %v432_v48, %v432_v48  ;;  %v449_v61 = vmul.f32 %v433_v49, %v433_v49 }
  0xbf   : > { %v490_v9 = vpop.permute.xlu1 %489  ;;  %v8069_v12 = vadd.f32 %v641_v11, %v559_v56  ;;  %v8071_v15 = vadd.f32 %v640_v10, %v558_v57 }
  0xc0   : > { %v528_v17 = vsub.f32 %v490_v9, %v7900_v63  ;;  %v529_v18 = vsub.f32 %v490_v9, %v7903_v2  ;;  %v644_v9 = vmul.f32 %v628_v3, %v628_v3 }
  0xc1   : > { %vm673_vm8 = vcmp.le.f32.partialorder %v8069_v12, 6.25  ;;  %vm672_vm9 = vcmp.le.f32.partialorder %v8071_v15, 6.25 }
  0xc2   : > { %v544_v21 = vmul.f32 %v528_v17, %v528_v17  ;;  %v545_v22 = vmul.f32 %v529_v18, %v529_v18  ;;  %6727 = vmatprep.mubr.msk.f32.mxu0 %vm673_vm8, %v7693_v60 }
  0xc3   : > { %6728 = vmatmul.mubr.msk.f32.gmra.mrb[8].mxu0 %vm672_vm9, %v7693_v60 }
  0xc4   : > { %v588_v39 = vpop.permute.xlu1 %587  ;;  %v561_v42 = vadd.f32 %v545_v22, %v447_v20  ;;  %v560_v44 = vadd.f32 %v544_v21, %v446_v19  ;;  %v596_v22 = vpop.permute.xlu0 %595 }
  0xc5   : > { %v626_v45 = vsub.f32 %v588_v39, %v7875_v52  ;;  %v627_v5 = vsub.f32 %v588_v39, %v7896_v62 }
  0xc7   : > { %v642_v1 = vmul.f32 %v626_v45, %v626_v45  ;;  %v643_v50 = vmul.f32 %v627_v5, %v627_v5  ;;  %v630_v45 = vsub.f32 %v596_v22, %v7875_v52  ;;  %v631_v5 = vsub.f32 %v596_v22, %v7896_v62 }
  0xc9   : > { %v494_v53 = vpop.permute.xlu1 %493  ;;  %v8089_v56 = vadd.f32 %v643_v50, %v561_v42  ;;  %v8091_v57 = vadd.f32 %v642_v1, %v560_v44  ;;  %v646_v50 = vmul.f32 %v630_v45, %v630_v45  ;;  %v647_v3 = vmul.f32 %v631_v5, %v631_v5  ;;  %v333_v45 = vld [vmem:[%s8137_s14 + $0x60] sm:$0xff]  ;;  %v334_v5 = vld [vmem:[%s8137_s14 + $0x68] sm:$0xff] }
  0xca   : > { %v530_v7 = vsub.f32 %v494_v53, %v7900_v63  ;;  %v531_v8 = vsub.f32 %v494_v53, %v7903_v2 }
  0xcb   : > { %vm675_vm10 = vcmp.le.f32.partialorder %v8089_v56, 6.25  ;;  %vm674_vm11 = vcmp.le.f32.partialorder %v8091_v57, 6.25 }
  0xcc   : > { %v546_v10 = vmul.f32 %v530_v7, %v530_v7  ;;  %v547_v11 = vmul.f32 %v531_v8, %v531_v8  ;;  %6729 = vmatprep.mubr.msk.f32.mxu0 %vm675_vm10, %v7693_v60  ;;  %v325_v8 = vld [vmem:[%s8137_s14 + $0x20] sm:$0xff] }
  0xcd   : > { %6730 = vmatmul.mubr.msk.f32.gmra.mrb[10].mxu0 %vm674_vm11, %v7693_v60 }
  0xce   : > { %v399_v17 = vpop.permute.xlu1 %398  ;;  %v563_v18 = vadd.f32 %v547_v11, %v449_v61  ;;  %v562_v19 = vadd.f32 %v546_v10, %v448_v59  ;;  %v324_v61 = vld [vmem:[%s8137_s14 + $0x18] sm:$0xff]  ;;  %v326_v10 = vld [vmem:[%s8137_s14 + $0x28] sm:$0xff] }
  0xcf   : > { %v434_v39 = vsub.f32 %v399_v17, %v7880_v54  ;;  %v435_v42 = vsub.f32 %v399_v17, %v7889_v58  ;;  %v7573_v11 = vpack.c.bf16 %v326_v10, %v325_v8 }
  0xd0   : > { %v8103_v20 = vadd.f32 %v645_v16, %v563_v18  ;;  %v8105_v21 = vadd.f32 %v644_v9, %v562_v19  ;;  %v327_v9 = vld [vmem:[%s8137_s14 + $0x30] sm:$0xff]  ;;  %v328_v16 = vld [vmem:[%s8137_s14 + $0x38] sm:$0xff]  ;;  %v329_v18 = vld [vmem:[%s8137_s14 + $0x40] sm:$0xff] }
  0xd1   : > { %v450_v54 = vmul.f32 %v434_v39, %v434_v39  ;;  %v451_v58 = vmul.f32 %v435_v42, %v435_v42  ;;  %v7576_v17 = vpack.c.bf16 %v328_v16, %v327_v9  ;;  %v330_v19 = vld [vmem:[%s8137_s14 + $0x48] sm:$0xff]  ;;  %v331_v39 = vld [vmem:[%s8137_s14 + $0x50] sm:$0xff]  ;;  %v332_v42 = vld [vmem:[%s8137_s14 + $0x58] sm:$0xff] }
  0xd2   : > { %vm677_vm12 = vcmp.le.f32.partialorder %v8103_v20, 6.25  ;;  %vm676_vm13 = vcmp.le.f32.partialorder %v8105_v21, 6.25  ;;  %v7579_v22 = vpack.c.bf16 %v330_v19, %v329_v18 }
  0xd3   : > { %v498_v44 = vpop.permute.xlu1 %497  ;;  %6731 = vmatprep.mubr.msk.f32.mxu0 %vm677_vm12, %v7693_v60 }
  0xd4   : > { %v532_v0 = vsub.f32 %v498_v44, %v7900_v63  ;;  %v533_v48 = vsub.f32 %v498_v44, %v7903_v2  ;;  %6732 = vmatmul.mubr.msk.f32.gmra.mrb[12].mxu0 %vm676_vm13, %v7693_v60  ;;  %v321_v63 = vld [vmem:[%s8137_s14] sm:$0xff]  ;;  %v322_v2 = vld [vmem:[%s8137_s14 + $0x8] sm:$0xff]  ;;  %v7582_v44 = vpack.c.bf16 %v332_v42, %v331_v39 }
  0xd5   : > { %v7567_v59 = vpack.c.bf16 %v322_v2, %v321_v63 }
  0xd6   : > { %v548_v49 = vmul.f32 %v532_v0, %v532_v0  ;;  %v549_v1 = vmul.f32 %v533_v48, %v533_v48  ;;  %v7585_v0 = vpack.c.bf16 %v334_v5, %v333_v45  ;;  %v335_v48 = vld [vmem:[%s8137_s14 + $0x70] sm:$0xff] }
  0xd7   : > { %7568 = vmatpush1.bf16.msra.mxu1 %v7567_v59 }
  0xd8   : > { %v565_v43 = vadd.f32 %v549_v1, %v451_v58  ;;  %v564_v53 = vadd.f32 %v548_v49, %v450_v54  ;;  %7569 = vmatprep.subr.bf16.mxu1 %v11799_v4  ;;  %v336_v54 = vld [vmem:[%s8137_s14 + $0x78] sm:$0xff]  ;;  %v11804_v49 = vmov 0.0  }
  0xd9   : > { %v7588_v58 = vpack.c.bf16 %v336_v54, %v335_v48  ;;  %v8165_v1 = vsel %vm667_vm2, 1.0, %v11804_v49  ;;  %v8185_v34 = vsel %vm669_vm4, 1.0, %v11804_v49  ;;  %v8193_v55 = vsel %vm668_vm5, 1.0, %v11804_v49 }
  0xda   : > { %v8121_v52 = vadd.f32 %v647_v3, %v565_v43  ;;  %v8123_v62 = vadd.f32 %v646_v50, %v564_v53  ;;  %v8170_v50 = vsel %vm665_vm0, 1.0, %v11804_v49  ;;  %v8175_v3 = vsel %vm664_vm1, 1.0, %v11804_v49  ;;  %v338_v53 = vld [vmem:[%s8137_s14 + $0x88] sm:$0xff] }
  0xdb   : > { %v8180_v43 = vsel %vm666_vm3, 1.0, %v11804_v49  ;;  %v8198_v38 = vsel %vm671_vm6, 1.0, %v11804_v49  ;;  %v8203_v13 = vsel %vm670_vm7, 1.0, %v11804_v49  ;;  %v7591_v63 = vpack.c.bf16 %v338_v53, %v337_v51 }
  0xdc   : > { %vm679_vm14 = vcmp.le.f32.partialorder %v8121_v52, 6.25  ;;  %vm678_vm15 = vcmp.le.f32.partialorder %v8123_v62, 6.25  ;;  %v8208_v2 = vsel %vm673_vm8, 1.0, %v11804_v49  ;;  %v8213_v14 = vsel %vm672_vm9, 1.0, %v11804_v49 }
  0xdd   : > { %6733 = vmatprep.mubr.msk.f32.mxu0 %vm679_vm14, %v7693_v60  ;;  %v8218_v46 = vsel %vm675_vm10, 1.0, %v11804_v49  ;;  %v8223_v47 = vsel %vm674_vm11, 1.0, %v11804_v49  ;;  %v8228_v12 = vsel %vm677_vm12, 1.0, %v11804_v49  ;;  %v8233_v15 = vsel %vm676_vm13, 1.0, %v11804_v49 }
  0xde   : > { %6734 = vmatmul.mubr.msk.f32.gmra.mrb[14].mxu0 %vm678_vm15, %v7693_v60  ;;  %v323_v60 = vld [vmem:[%s8137_s14 + $0x10] sm:$0xff]  ;;  %v8238_v56 = vsel %vm679_vm14, 1.0, %v11804_v49  ;;  %v8243_v57 = vsel %vm678_vm15, 1.0, %v11804_v49 }
  0xdf   : > { %v7570_v7 = vpack.c.bf16 %v324_v61, %v323_v60 }
  0xe1   : > { %7571 = vmatpush1.bf16.msra.mxu1 %v7570_v7 }
  0xe2   : > { %7572 = vmatprep.subr.bf16.mxu1 %v11799_v4 }
  0xe5   : > { %7574 = vmatpush1.bf16.msra.mxu1 %v7573_v11 }
  0xe6   : > { %7575 = vmatprep.subr.bf16.mxu1 %v11799_v4 }
  0xe9   : > { %7577 = vmatpush1.bf16.msra.mxu1 %v7576_v17 }
  0xea   : > { %7578 = vmatprep.subr.bf16.mxu1 %v11799_v4 }
  0xed   : > { %7580 = vmatpush1.bf16.msra.mxu1 %v7579_v22 }
  0xee   : > { %7581 = vmatprep.subr.bf16.mxu1 %v11799_v4 }
  0xf1   : > { %7583 = vmatpush1.bf16.msra.mxu1 %v7582_v44 }
  0xf2   : > { %7584 = vmatprep.subr.bf16.mxu1 %v11799_v4 }
  0xf5   : > { %7586 = vmatpush1.bf16.msra.mxu1 %v7585_v0 }
  0xf6   : > { %7587 = vmatprep.subr.bf16.mxu1 %v11799_v4 }
  0xf9   : > { %7589 = vmatpush1.bf16.msra.mxu1 %v7588_v58 }
  0xfa   : > { %7590 = vmatprep.subr.bf16.mxu1 %v11799_v4 }
  0xfd   : > { %7592 = vmatpush1.bf16.msra.mxu1 %v7591_v63 }
  0xfe   : > { %7593 = vmatprep.subr.bf16.mxu1 %v11799_v4 }
 0x17e   : > { %v8245_v59 = vpop.f32.mrb[0].mxu0 }
 0x17f   : > { %v8247_v20 = vpop.f32.mrb[1].mxu0  ;;  %v1119_v21 = vsub.f32 %v8245_v59, %v7796_v23  ;;  %v1135_v60 = vsub.f32 %v8245_v59, %v7799_v24  ;;  %v1151_v52 = vsub.f32 %v8245_v59, %v7802_v25 }
 0x180   : > { %v1120_v62 = vsub.f32 %v8247_v20, %v7796_v23  ;;  %v1136_v7 = vsub.f32 %v8247_v20, %v7799_v24  ;;  %v1152_v8 = vsub.f32 %v8247_v20, %v7802_v25 }
 0x181   : > { %v1375_v11 = vand.u32 2147483647, %v1119_v21  ;;  %v1391_v9 = vand.u32 2147483647, %v1135_v60  ;;  %v8266_v16 = vand.u32 2147483647, %v1151_v52 }
 0x182   : > { %v8270_v18 = vpop.f32.mrb[2].mxu0  ;;  %v1376_v19 = vand.u32 2147483647, %v1120_v62  ;;  %v1392_v22 = vand.u32 2147483647, %v1136_v7 }
 0x183   : > { %v8276_v44 = vpop.f32.mrb[3].mxu0  ;;  %vm1631_vm0 = vcmp.lt.f32.partialorder %v1375_v11, 0.5  ;;  %v1121_v45 = vsub.f32 %v8270_v18, %v7796_v23  ;;  %vm1647_vm1 = vcmp.lt.f32.partialorder %v1391_v9, 0.5  ;;  %v1137_v5 = vsub.f32 %v8270_v18, %v7799_v24 }
 0x184   : > { %vm1632_vm2 = vcmp.lt.f32.partialorder %v1376_v19, 0.5  ;;  %v6735_v0 = vsel %vm1631_vm0, 1.0, %v11804_v49  ;;  %v1122_v48 = vsub.f32 %v8276_v44, %v7796_v23  ;;  %vm1648_vm3 = vcmp.lt.f32.partialorder %v1392_v22, 0.5 }
 0x185   : > { %v6736_v54 = vsel %vm1632_vm2, 1.0, %v11804_v49  ;;  %v8287_v58 = vmul.f32 %v6735_v0, %v8175_v3  ;;  %v1377_v51 = vand.u32 2147483647, %v1121_v45  ;;  %v6751_v53 = vsel %vm1647_vm1, 1.0, %v11804_v49 }
 0x186   : > { %v8290_v63 = vpop.f32.mrb[4].mxu0  ;;  %v8293_v21 = vmul.f32 %v6736_v54, %v8170_v50  ;;  %v1378_v60 = vand.u32 2147483647, %v1122_v48  ;;  %v6752_v52 = vsel %vm1648_vm3, 1.0, %v11804_v49  ;;  %v8297_v62 = vmul.f32 %v6751_v53, %v8175_v3 }
 0x187   : > { %12092 = vst [vmem:[#allocation15_spill] sm:$0xff] %v8287_v58  ;;  %v8299_v7 = vpop.f32.mrb[5].mxu0  ;;  %vm1633_vm4 = vcmp.lt.f32.partialorder %v1377_v51, 0.5  ;;  %v1123_v11 = vsub.f32 %v8290_v63, %v7796_v23  ;;  %v8304_v9 = vmul.f32 %v6752_v52, %v8170_v50  ;;  %v1139_v19 = vsub.f32 %v8290_v63, %v7799_v24 }
 0x188   : > { %12093 = vst [vmem:[#allocation16_spill] sm:$0xff] %v8293_v21  ;;  %12094 = vst [vmem:[#allocation17_spill] sm:$0xff] %v8297_v62  ;;  %v2655_v22 = vadd.f32 %v8293_v21, %v8287_v58  ;;  %vm1634_vm5 = vcmp.lt.f32.partialorder %v1378_v60, 0.5  ;;  %v6737_v45 = vsel %vm1633_vm4, 1.0, %v11804_v49  ;;  %v1124_v0 = vsub.f32 %v8299_v7, %v7796_v23 }
 0x189   : > { %12095 = vst [vmem:[#allocation18_spill] sm:$0xff] %v8304_v9  ;;  %v6738_v48 = vsel %vm1634_vm5, 1.0, %v11804_v49  ;;  %v8315_v54 = vmul.f32 %v6737_v45, %v8180_v43  ;;  %v1379_v51 = vand.u32 2147483647, %v1123_v11  ;;  %v8319_v53 = vadd.f32 %v8304_v9, %v8297_v62 }
 0x18a   : > { %2656 = vadd.xlane.f32.xlu1 %v2655_v22  ;;  %v8322_v52 = vmul.f32 %v6738_v48, %v8165_v1  ;;  %v1380_v60 = vand.u32 2147483647, %v1124_v0  ;;  %v1140_v4 = vsub.f32 %v8299_v7, %v7799_v24  ;;  %v1395_v42 = vand.u32 2147483647, %v1139_v19 }
 0x18b   : > { %12096 = vst [vmem:[#allocation19_spill] sm:$0xff] %v8315_v54  ;;  %vm1635_vm6 = vcmp.lt.f32.partialorder %v1379_v51, 0.5  ;;  %v1138_v39 = vsub.f32 %v8276_v44, %v7799_v24  ;;  %v1393_v45 = vand.u32 2147483647, %v1137_v5  ;;  %v1408_v17 = vand.u32 2147483647, %v1152_v8 }
 0x18c   : > { %12097 = vst [vmem:[#allocation20_spill] sm:$0xff] %v8322_v52  ;;  %v8328_v11 = vpop.f32.mrb[6].mxu0  ;;  %v2658_v10 = vadd.f32 %v8322_v52, %v8315_v54  ;;  %vm1636_vm7 = vcmp.lt.f32.partialorder %v1380_v60, 0.5  ;;  %v6739_v22 = vsel %vm1635_vm6, 1.0, %v11804_v49  ;;  %v1396_v48 = vand.u32 2147483647, %v1140_v4 }
 0x18d   : > { %v8333_v0 = vpop.f32.mrb[7].mxu0  ;;  %v6740_v61 = vsel %vm1636_vm7, 1.0, %v11804_v49  ;;  %v8337_v19 = vmul.f32 %v6739_v22, %v8193_v55  ;;  %v1125_v5 = vsub.f32 %v8328_v11, %v7796_v23  ;;  %vm1651_vm8 = vcmp.lt.f32.partialorder %v1395_v42, 0.5 }
 0x18e   : > { %2659 = vadd.xlane.f32.xlu0 %v2658_v10  ;;  %v8342_v8 = vmul.f32 %v6740_v61, %v8185_v34  ;;  %v1126_v51 = vsub.f32 %v8333_v0, %v7796_v23  ;;  %vm1652_vm9 = vcmp.lt.f32.partialorder %v1396_v48, 0.5  ;;  %v6755_v4 = vsel %vm1651_vm8, 1.0, %v11804_v49 }
 0x18f   : > { %12098 = vst [vmem:[#allocation21_spill] sm:$0xff] %v8337_v19  ;;  %v1381_v60 = vand.u32 2147483647, %v1125_v5  ;;  %v6756_v41 = vsel %vm1652_vm9, 1.0, %v11804_v49  ;;  %v8349_v22 = vmul.f32 %v6755_v4, %v8193_v55  ;;  %v1394_v40 = vand.u32 2147483647, %v1138_v39 }
 0x190   : > { %12099 = vst [vmem:[#allocation22_spill] sm:$0xff] %v8342_v8  ;;  %v2661_v42 = vadd.f32 %v8342_v8, %v8337_v19  ;;  %v1382_v10 = vand.u32 2147483647, %v1126_v51  ;;  %v8354_v61 = vmul.f32 %v6756_v41, %v8185_v34  ;;  %vm1649_vm10 = vcmp.lt.f32.partialorder %v1393_v45, 0.5 }
 0x191   : > { %12100 = vst [vmem:[#allocation23_spill] sm:$0xff] %v8349_v22  ;;  %vm1637_vm11 = vcmp.lt.f32.partialorder %v1381_v60, 0.5  ;;  %vm1650_vm12 = vcmp.lt.f32.partialorder %v1394_v40, 0.5  ;;  %v6753_v48 = vsel %vm1649_vm10, 1.0, %v11804_v49  ;;  %v1141_v5 = vsub.f32 %v8328_v11, %v7799_v24 }
 0x192   : > { %12101 = vst [vmem:[#allocation24_spill] sm:$0xff] %v8354_v61  ;;  %2662 = vadd.xlane.f32.xlu0 %v2661_v42  ;;  %vm1638_vm13 = vcmp.lt.f32.partialorder %v1382_v10, 0.5  ;;  %v6741_v4 = vsel %vm1637_vm11, 1.0, %v11804_v49  ;;  %v8362_v39 = vadd.f32 %v8354_v61, %v8349_v22  ;;  %v6754_v51 = vsel %vm1650_vm12, 1.0, %v11804_v49 }
 0x193   : > { %v6742_v41 = vsel %vm1638_vm13, 1.0, %v11804_v49  ;;  %v8367_v45 = vmul.f32 %v6741_v4, %v8203_v13  ;;  %v8370_v40 = vmul.f32 %v6753_v48, %v8180_v43  ;;  %v8373_v60 = vmul.f32 %v6754_v51, %v8165_v1 }
 0x194   : > { %v8376_v42 = vmul.f32 %v6742_v41, %v8198_v38  ;;  %v1142_v10 = vsub.f32 %v8333_v0, %v7799_v24  ;;  %v1397_v37 = vand.u32 2147483647, %v1141_v5  ;;  %vm1663_vm14 = vcmp.lt.f32.partialorder %v8266_v16, 0.5 }
 0x195   : > { %12102 = vst [vmem:[#allocation25_spill] sm:$0xff] %v8367_v45  ;;  %12103 = vst [vmem:[#allocation26_spill] sm:$0xff] %v8370_v40  ;;  %v8383_v49 = vadd.f32 %v8373_v60, %v8370_v40  ;;  %vm1664_vm15 = vcmp.lt.f32.partialorder %v1408_v17, 0.5  ;;  %v12106_v4 = vmov 0.0   ;;  %v1155_v51 = vsub.f32 %v8290_v63, %v7802_v25 }
 0x196   : > { %12104 = vst [vmem:[#allocation27_spill] sm:$0xff] %v8373_v60  ;;  %12105 = vst [vmem:[#allocation28_spill] sm:$0xff] %v8376_v42  ;;  %v6767_v48 = vsel %vm1663_vm14, 1.0, %v12106_v4  ;;  %v8388_v36 = vpop.f32.mrb[8].mxu0  ;;  %v2664_v41 = vadd.f32 %v8376_v42, %v8367_v45  ;;  %v1398_v22 = vand.u32 2147483647, %v1142_v10  ;;  %v1156_v42 = vsub.f32 %v8299_v7, %v7802_v25 }
 0x197   : > { %vm1653_vm0 = vcmp.lt.f32.partialorder %v1397_v37, 0.5  ;;  %v6768_v5 = vsel %vm1664_vm15, 1.0, %v12106_v4  ;;  %v8393_v16 = vpop.f32.mrb[9].mxu0  ;;  %v1127_v61 = vsub.f32 %v8388_v36, %v7796_v23  ;;  %v1143_v17 = vsub.f32 %v8388_v36, %v7799_v24 }
 0x198   : > { %v6757_v40 = vsel %vm1653_vm0, 1.0, %v12106_v4  ;;  %v8401_v35 = vmul.f32 %v6767_v48, %v8175_v3  ;;  %2665 = vadd.xlane.f32.xlu1 %v2664_v41  ;;  %v1128_v10 = vsub.f32 %v8393_v16, %v7796_v23  ;;  %v1144_v37 = vsub.f32 %v8393_v16, %v7799_v24 }
 0x199   : > { %vm1654_vm1 = vcmp.lt.f32.partialorder %v1398_v22, 0.5  ;;  %v8408_v60 = vmul.f32 %v6757_v40, %v8203_v13  ;;  %v1383_v62 = vand.u32 2147483647, %v1127_v61  ;;  %v1399_v9 = vand.u32 2147483647, %v1143_v17 }
 0x19a   : > { %12107 = vst [vmem:[#allocation29_spill] sm:$0xff] %v8401_v35  ;;  %v6758_v33 = vsel %vm1654_vm1, 1.0, %v12106_v4  ;;  %v8412_v32 = vmul.f32 %v6768_v5, %v8170_v50  ;;  %v1384_v48 = vand.u32 2147483647, %v1128_v10  ;;  %v1400_v31 = vand.u32 2147483647, %v1144_v37 }
 0x19b   : > { %12108 = vst [vmem:[#allocation30_spill] sm:$0xff] %v8408_v60  ;;  %v8415_v41 = vmul.f32 %v6758_v33, %v8198_v38  ;;  %vm1639_vm2 = vcmp.lt.f32.partialorder %v1383_v62, 0.5  ;;  %vm1655_vm3 = vcmp.lt.f32.partialorder %v1399_v9, 0.5  ;;  %v1411_v61 = vand.u32 2147483647, %v1155_v51 }
 0x19c   : > { %12109 = vst [vmem:[#allocation31_spill] sm:$0xff] %v8412_v32  ;;  %v8421_v22 = vadd.f32 %v8412_v32, %v8401_v35  ;;  %vm1640_vm4 = vcmp.lt.f32.partialorder %v1384_v48, 0.5  ;;  %v6743_v40 = vsel %vm1639_vm2, 1.0, %v12106_v4  ;;  %vm1656_vm5 = vcmp.lt.f32.partialorder %v1400_v31, 0.5 }
 0x19d   : > { %12110 = vst [vmem:[#allocation32_spill] sm:$0xff] %v8415_v41  ;;  %v6759_v5 = vsel %vm1655_vm3, 1.0, %v12106_v4  ;;  %v6744_v17 = vsel %vm1640_vm4, 1.0, %v12106_v4  ;;  %v8427_v33 = vmul.f32 %v6743_v40, %v8213_v14  ;;  %v6760_v10 = vsel %vm1656_vm5, 1.0, %v12106_v4 }
 0x19e   : > { %v8431_v62 = vmul.f32 %v6759_v5, %v8213_v14  ;;  %v8434_v9 = vmul.f32 %v6744_v17, %v8208_v2  ;;  %v8437_v51 = vmul.f32 %v6760_v10, %v8208_v2  ;;  %v8441_v31 = vadd.f32 %v8415_v41, %v8408_v60 }
 0x19f   : > { %12111 = vst [vmem:[#allocation33_spill] sm:$0xff] %v8427_v33  ;;  %v1412_v37 = vand.u32 2147483647, %v1156_v42  ;;  %vm1667_vm6 = vcmp.lt.f32.partialorder %v1411_v61, 0.5  ;;  %v1159_v48 = vsub.f32 %v8388_v36, %v7802_v25  ;;  %v1160_v40 = vsub.f32 %v8393_v16, %v7802_v25 }
 0x1a0   : > { %12112 = vst [vmem:[#allocation34_spill] sm:$0xff] %v8431_v62  ;;  %12113 = vst [vmem:[#allocation35_spill] sm:$0xff] %v8434_v9  ;;  %v1153_v5 = vsub.f32 %v8270_v18, %v7802_v25  ;;  %v8449_v17 = vpop.f32.mrb[10].mxu0  ;;  %v2667_v10 = vadd.f32 %v8434_v9, %v8427_v33  ;;  %v8455_v35 = vadd.f32 %v8437_v51, %v8431_v62  ;;  %v6771_v42 = vsel %vm1667_vm6, 1.0, %v12106_v4 }
 0x1a1   : > { %12114 = vst [vmem:[#allocation36_spill] sm:$0xff] %v8437_v51  ;;  %vm1668_vm7 = vcmp.lt.f32.partialorder %v1412_v37, 0.5  ;;  %v8458_v61 = vpop.f32.mrb[11].mxu0  ;;  %v1129_v32 = vsub.f32 %v8449_v17, %v7796_v23  ;;  %v1145_v60 = vsub.f32 %v8449_v17, %v7799_v24  ;;  %v8466_v45 = vmul.f32 %v6771_v42, %v8193_v55 }
 0x1a2   : > { %v6772_v41 = vsel %vm1668_vm7, 1.0, %v12106_v4  ;;  %2668 = vadd.xlane.f32.xlu0 %v2667_v10  ;;  %v1130_v62 = vsub.f32 %v8458_v61, %v7796_v23  ;;  %v1146_v37 = vsub.f32 %v8458_v61, %v7799_v24  ;;  %v1415_v9 = vand.u32 2147483647, %v1159_v48 }
 0x1a3   : > { %12115 = vst [vmem:[#allocation37_spill] sm:$0xff] %v8466_v45  ;;  %v8473_v51 = vmul.f32 %v6772_v41, %v8185_v34  ;;  %v1385_v33 = vand.u32 2147483647, %v1129_v32  ;;  %v1401_v8 = vand.u32 2147483647, %v1145_v60  ;;  %v1154_v52 = vsub.f32 %v8276_v44, %v7802_v25 }
 0x1a4   : > { %v1416_v19 = vand.u32 2147483647, %v1160_v40  ;;  %v1386_v54 = vand.u32 2147483647, %v1130_v62  ;;  %v1402_v42 = vand.u32 2147483647, %v1146_v37 }
 0x1a5   : > { %12116 = vst [vmem:[#allocation38_spill] sm:$0xff] %v8473_v51  ;;  %v8479_v10 = vadd.f32 %v8473_v51, %v8466_v45  ;;  %vm1671_vm8 = vcmp.lt.f32.partialorder %v1415_v9, 0.5  ;;  %vm1641_vm9 = vcmp.lt.f32.partialorder %v1385_v33, 0.5  ;;  %vm1657_vm10 = vcmp.lt.f32.partialorder %v1401_v8, 0.5 }
 0x1a6   : > { %vm1672_vm11 = vcmp.lt.f32.partialorder %v1416_v19, 0.5  ;;  %v6775_v41 = vsel %vm1671_vm8, 1.0, %v12106_v4  ;;  %vm1642_vm12 = vcmp.lt.f32.partialorder %v1386_v54, 0.5  ;;  %v6745_v32 = vsel %vm1641_vm9, 1.0, %v12106_v4 }
 0x1a7   : > { %vm1658_vm13 = vcmp.lt.f32.partialorder %v1402_v42, 0.5  ;;  %v6761_v60 = vsel %vm1657_vm10, 1.0, %v12106_v4  ;;  %v8484_v48 = vpop.f32.mrb[12].mxu0  ;;  %v6746_v62 = vsel %vm1642_vm12, 1.0, %v12106_v4  ;;  %v8488_v40 = vmul.f32 %v6745_v32, %v8223_v47 }
 0x1a8   : > { %v6762_v9 = vsel %vm1658_vm13, 1.0, %v12106_v4  ;;  %v8492_v8 = vmul.f32 %v6761_v60, %v8223_v47  ;;  %v8494_v33 = vpop.f32.mrb[13].mxu0  ;;  %v8497_v54 = vmul.f32 %v6746_v62, %v8218_v46  ;;  %v1131_v37 = vsub.f32 %v8484_v48, %v7796_v23 }
 0x1a9   : > { %v1147_v42 = vsub.f32 %v8484_v48, %v7799_v24  ;;  %v8504_v45 = vmul.f32 %v6762_v9, %v8218_v46  ;;  %v1132_v32 = vsub.f32 %v8494_v33, %v7796_v23  ;;  %v1148_v60 = vsub.f32 %v8494_v33, %v7799_v24 }
 0x1aa   : > { %12117 = vst [vmem:[#allocation39_spill] sm:$0xff] %v8492_v8  ;;  %v6776_v51 = vsel %vm1672_vm11, 1.0, %v12106_v4  ;;  %v8513_v62 = vmul.f32 %v6775_v41, %v8213_v14  ;;  %v2670_v21 = vadd.f32 %v8497_v54, %v8488_v40  ;;  %v1387_v58 = vand.u32 2147483647, %v1131_v37 }
 0x1ab   : > { %12118 = vst [vmem:[#allocation40_spill] sm:$0xff] %v8504_v45  ;;  %v1403_v6 = vand.u32 2147483647, %v1147_v42  ;;  %v8519_v9 = vadd.f32 %v8504_v45, %v8492_v8  ;;  %v1388_v30 = vand.u32 2147483647, %v1132_v32  ;;  %v8522_v28 = vmul.f32 %v6776_v51, %v8208_v2 }
 0x1ac   : > { %12119 = vst [vmem:[#allocation41_spill] sm:$0xff] %v8513_v62  ;;  %v1404_v29 = vand.u32 2147483647, %v1148_v60  ;;  %v1409_v27 = vand.u32 2147483647, %v1153_v5  ;;  %2671 = vadd.xlane.f32.xlu1 %v2670_v21  ;;  %vm1643_vm14 = vcmp.lt.f32.partialorder %v1387_v58, 0.5  ;;  %v1163_v41 = vsub.f32 %v8484_v48, %v7802_v25 }
 0x1ad   : > { %12120 = vst [vmem:[#allocation42_spill] sm:$0xff] %v8522_v28  ;;  %vm1659_vm15 = vcmp.lt.f32.partialorder %v1403_v6, 0.5  ;;  %v1410_v19 = vand.u32 2147483647, %v1154_v52  ;;  %vm1644_vm0 = vcmp.lt.f32.partialorder %v1388_v30, 0.5  ;;  %v6747_v37 = vsel %vm1643_vm14, 1.0, %v12106_v4 }
 0x1ae   : > { %vm1660_vm1 = vcmp.lt.f32.partialorder %v1404_v29, 0.5  ;;  %v6763_v42 = vsel %vm1659_vm15, 1.0, %v12106_v4  ;;  %v6748_v32 = vsel %vm1644_vm0, 1.0, %v12106_v4  ;;  %v8530_v60 = vmul.f32 %v6747_v37, %v8233_v15 }
 0x1af   : > { %v6764_v51 = vsel %vm1660_vm1, 1.0, %v12106_v4  ;;  %v8534_v58 = vmul.f32 %v6763_v42, %v8233_v15  ;;  %v8537_v6 = vmul.f32 %v6748_v32, %v8228_v12  ;;  %v8544_v29 = vadd.f32 %v8522_v28, %v8513_v62 }
 0x1b0   : > { %12121 = vst [vmem:[#allocation43_spill] sm:$0xff] %v8530_v60  ;;  %v8540_v30 = vmul.f32 %v6764_v51, %v8228_v12  ;;  %vm1665_vm2 = vcmp.lt.f32.partialorder %v1409_v27, 0.5  ;;  %vm1666_vm3 = vcmp.lt.f32.partialorder %v1410_v19, 0.5  ;;  %v1164_v52 = vsub.f32 %v8494_v33, %v7802_v25 }
 0x1b1   : > { %12122 = vst [vmem:[#allocation44_spill] sm:$0xff] %v8534_v58  ;;  %12123 = vst [vmem:[#allocation45_spill] sm:$0xff] %v8537_v6  ;;  %v6769_v21 = vsel %vm1665_vm2, 1.0, %v12106_v4  ;;  %v1419_v5 = vand.u32 2147483647, %v1163_v41  ;;  %v8549_v37 = vpop.f32.mrb[14].mxu0  ;;  %v2673_v42 = vadd.f32 %v8537_v6, %v8530_v60 }
 0x1b2   : > { %12124 = vst [vmem:[#allocation46_spill] sm:$0xff] %v8540_v30  ;;  %v8555_v32 = vadd.f32 %v8540_v30, %v8534_v58  ;;  %v6770_v51 = vsel %vm1666_vm3, 1.0, %v12106_v4  ;;  %v8559_v27 = vmul.f32 %v6769_v21, %v8180_v43  ;;  %v8561_v19 = vpop.f32.mrb[15].mxu0  ;;  %v1133_v62 = vsub.f32 %v8549_v37, %v7796_v23 }
 0x1b3   : > { %v1149_v41 = vsub.f32 %v8549_v37, %v7799_v24  ;;  %v8568_v28 = vmul.f32 %v6770_v51, %v8165_v1  ;;  %v1420_v8 = vand.u32 2147483647, %v1164_v52  ;;  %2674 = vadd.xlane.f32.xlu0 %v2673_v42  ;;  %v1134_v58 = vsub.f32 %v8561_v19, %v7796_v23 }
 0x1b4   : > { %12125 = vst [vmem:[#allocation47_spill] sm:$0xff] %v8559_v27  ;;  %v1150_v21 = vsub.f32 %v8561_v19, %v7799_v24  ;;  %vm1675_vm4 = vcmp.lt.f32.partialorder %v1419_v5, 0.5  ;;  %v1157_v30 = vsub.f32 %v8328_v11, %v7802_v25  ;;  %v1389_v45 = vand.u32 2147483647, %v1133_v62 }
 0x1b5   : > { %12126 = vst [vmem:[#allocation48_spill] sm:$0xff] %v8568_v28  ;;  %v1405_v60 = vand.u32 2147483647, %v1149_v41  ;;  %v8578_v6 = vadd.f32 %v8568_v28, %v8559_v27  ;;  %vm1676_vm5 = vcmp.lt.f32.partialorder %v1420_v8, 0.5  ;;  %v1390_v51 = vand.u32 2147483647, %v1134_v58 }
 0x1b6   : > { %v1406_v52 = vand.u32 2147483647, %v1150_v21  ;;  %v6779_v42 = vsel %vm1675_vm4, 1.0, %v12106_v4  ;;  %v6780_v23 = vsel %vm1676_vm5, 1.0, %v12106_v4  ;;  %vm1645_vm6 = vcmp.lt.f32.partialorder %v1389_v45, 0.5 }
 0x1b7   : > { %vm1661_vm7 = vcmp.lt.f32.partialorder %v1405_v60, 0.5  ;;  %v8583_v24 = vmul.f32 %v6779_v42, %v8233_v15  ;;  %v8586_v5 = vmul.f32 %v6780_v23, %v8228_v12  ;;  %2680 = vadd.xlane.f32.xlu0 %v8319_v53  ;;  %vm1646_vm8 = vcmp.lt.f32.partialorder %v1390_v51, 0.5 }
 0x1b8   : > { %v6749_v62 = vsel %vm1645_vm6, 1.0, %v12106_v4  ;;  %vm1662_vm9 = vcmp.lt.f32.partialorder %v1406_v52, 0.5  ;;  %v6765_v8 = vsel %vm1661_vm7, 1.0, %v12106_v4  ;;  %v6750_v58 = vsel %vm1646_vm8, 1.0, %v12106_v4 }
 0x1b9   : > { %12127 = vst [vmem:[#allocation49_spill] sm:$0xff] %v8583_v24  ;;  %12128 = vst [vmem:[#allocation50_spill] sm:$0xff] %v8586_v5  ;;  %v8593_v41 = vmul.f32 %v6749_v62, %v8243_v57  ;;  %v6766_v45 = vsel %vm1662_vm9, 1.0, %v12106_v4  ;;  %v8597_v60 = vmul.f32 %v6765_v8, %v8243_v57  ;;  %v8600_v21 = vmul.f32 %v6750_v58, %v8238_v56 }
 0x1ba   : > { %v8603_v53 = vmul.f32 %v6766_v45, %v8238_v56  ;;  %v8607_v51 = vadd.f32 %v8586_v5, %v8583_v24  ;;  %v1158_v52 = vsub.f32 %v8333_v0, %v7802_v25  ;;  %v1413_v42 = vand.u32 2147483647, %v1157_v30 }
 0x1bb   : > { %12129 = vst [vmem:[#allocation51_spill] sm:$0xff] %v8593_v41  ;;  %12130 = vst [vmem:[#allocation52_spill] sm:$0xff] %v8597_v60  ;;  %v12132_v23 = vsub.f32 %v8245_v59, %v7804_v26  ;;  %v12133_v8 = vsub.f32 %v8247_v20, %v7804_v26  ;;  %v1161_v45 = vsub.f32 %v8449_v17, %v7802_v25  ;;  %2686 = vadd.xlane.f32.xlu0 %v8362_v39 }
 0x1bc   : > { %12131 = vst [vmem:[#allocation53_spill] sm:$0xff] %v8603_v53  ;;  %v2676_v24 = vadd.f32 %v8600_v21, %v8593_v41  ;;  %v8624_v5 = vadd.f32 %v8603_v53, %v8597_v60  ;;  %v1414_v30 = vand.u32 2147483647, %v1158_v52  ;;  %vm1669_vm10 = vcmp.lt.f32.partialorder %v1413_v42, 0.5 }
 0x1bd   : > { %v1423_v62 = vand.u32 2147483647, %v12132_v23  ;;  %v1424_v58 = vand.u32 2147483647, %v12133_v8  ;;  %v1162_v23 = vsub.f32 %v8458_v61, %v7802_v25  ;;  %v1417_v8 = vand.u32 2147483647, %v1161_v45 }
 0x1be   : > { %2677 = vadd.xlane.f32.xlu1 %v2676_v24  ;;  %vm1670_vm13 = vcmp.lt.f32.partialorder %v1414_v30, 0.5  ;;  %v6773_v27 = vsel %vm1669_vm10, 1.0, %v12106_v4 }
 0x1bf   : > { %vm1679_vm11 = vcmp.lt.f32.partialorder %v1423_v62, 0.5  ;;  %vm1680_vm12 = vcmp.lt.f32.partialorder %v1424_v58, 0.5  ;;  %v6774_v41 = vsel %vm1670_vm13, 1.0, %v12106_v4  ;;  %v8633_v60 = vmul.f32 %v6773_v27, %v8203_v13  ;;  %2692 = vadd.xlane.f32.xlu0 %v8455_v35 }
 0x1c0   : > { %v6783_v39 = vsel %vm1679_vm11, 1.0, %v12106_v4  ;;  %v6784_v28 = vsel %vm1680_vm12, 1.0, %v12106_v4  ;;  %v8643_v24 = vmul.f32 %v6774_v41, %v8198_v38  ;;  %v1418_v62 = vand.u32 2147483647, %v1162_v23 }
 0x1c1   : > { %12134 = vst [vmem:[#allocation54_spill] sm:$0xff] %v8633_v60  ;;  %v8636_v52 = vmul.f32 %v6783_v39, %v8175_v3  ;;  %v8639_v42 = vmul.f32 %v6784_v28, %v8170_v50  ;;  %vm1673_vm14 = vcmp.lt.f32.partialorder %v1417_v8, 0.5  ;;  %v1171_v58 = vsub.f32 %v8290_v63, %v7804_v26 }
 0x1c2   : > { %12137 = vst [vmem:[#allocation57_spill] sm:$0xff] %v8643_v24  ;;  %v6777_v45 = vsel %vm1673_vm14, 1.0, %v12106_v4  ;;  %v1172_v28 = vsub.f32 %v8299_v7, %v7804_v26  ;;  %v1165_v35 = vsub.f32 %v8549_v37, %v7802_v25  ;;  %2683 = vadd.xlane.f32.xlu1 %v8383_v49  ;;  %v8659_v41 = vadd.f32 %v8643_v24, %v8633_v60  ;;  %v12220_v60 = vld [vmem:[#allocation22_spill] sm:$0xff] }
 0x1c3   : > { %12135 = vst [vmem:[#allocation55_spill] sm:$0xff] %v8636_v52  ;;  %12136 = vst [vmem:[#allocation56_spill] sm:$0xff] %v8639_v42  ;;  %v8649_v27 = vadd.f32 %v8639_v42, %v8636_v52  ;;  %vm1674_vm15 = vcmp.lt.f32.partialorder %v1418_v62, 0.5  ;;  %v8662_v30 = vmul.f32 %v6777_v45, %v8223_v47  ;;  %v1427_v23 = vand.u32 2147483647, %v1171_v58  ;;  %2698 = vadd.xlane.f32.xlu0 %v8555_v32 }
 0x1c4   : > { %v6778_v8 = vsel %vm1674_vm15, 1.0, %v12106_v4  ;;  %v1428_v39 = vand.u32 2147483647, %v1172_v28  ;;  %v1166_v52 = vsub.f32 %v8561_v19, %v7802_v25  ;;  %v1421_v42 = vand.u32 2147483647, %v1165_v35 }
 0x1c5   : > { %12138 = vst [vmem:[#allocation58_spill] sm:$0xff] %v8662_v30  ;;  %v8669_v49 = vmul.f32 %v6778_v8, %v8218_v46  ;;  %vm1683_vm0 = vcmp.lt.f32.partialorder %v1427_v23, 0.5  ;;  %v1175_v62 = vsub.f32 %v8388_v36, %v7804_v26  ;;  %v1176_v45 = vsub.f32 %v8393_v16, %v7804_v26 }
 0x1c6   : > { %vm1684_vm1 = vcmp.lt.f32.partialorder %v1428_v39, 0.5  ;;  %v6787_v58 = vsel %vm1683_vm0, 1.0, %v12106_v4  ;;  %v1422_v28 = vand.u32 2147483647, %v1166_v52  ;;  %vm1677_vm2 = vcmp.lt.f32.partialorder %v1421_v42, 0.5  ;;  %2689 = vadd.xlane.f32.xlu1 %v8441_v31 }
 0x1c7   : > { %12139 = vst [vmem:[#allocation59_spill] sm:$0xff] %v8669_v49  ;;  %v8679_v25 = vadd.f32 %v8669_v49, %v8662_v30  ;;  %v6788_v32 = vsel %vm1684_vm1, 1.0, %v12106_v4  ;;  %v8683_v35 = vmul.f32 %v6787_v58, %v8193_v55  ;;  %v6781_v23 = vsel %vm1677_vm2, 1.0, %v12106_v4  ;;  %2704 = vadd.xlane.f32.xlu0 %v8421_v22 }
 0x1c8   : > { %v8687_v8 = vmul.f32 %v6788_v32, %v8185_v34  ;;  %vm1678_vm3 = vcmp.lt.f32.partialorder %v1422_v28, 0.5  ;;  %v8690_v52 = vmul.f32 %v6781_v23, %v8243_v57  ;;  %v1431_v42 = vand.u32 2147483647, %v1175_v62 }
 0x1c9   : > { %12140 = vst [vmem:[#allocation60_spill] sm:$0xff] %v8683_v35  ;;  %v6782_v31 = vsel %vm1678_vm3, 1.0, %v12106_v4  ;;  %v1432_v39 = vand.u32 2147483647, %v1176_v45  ;;  %v1169_v30 = vsub.f32 %v8270_v18, %v7804_v26  ;;  %v1170_v58 = vsub.f32 %v8276_v44, %v7804_v26 }
 0x1ca   : > { %12141 = vst [vmem:[#allocation61_spill] sm:$0xff] %v8687_v8  ;;  %12142 = vst [vmem:[#allocation62_spill] sm:$0xff] %v8690_v52  ;;  %v8700_v32 = vadd.f32 %v8687_v8, %v8683_v35  ;;  %v8703_v28 = vmul.f32 %v6782_v31, %v8238_v56  ;;  %vm1687_vm4 = vcmp.lt.f32.partialorder %v1431_v42, 0.5  ;;  %v1179_v22 = vsub.f32 %v8484_v48, %v7804_v26 }
 0x1cb   : > { %2695 = vadd.xlane.f32.xlu1 %v8519_v9  ;;  %vm1688_vm5 = vcmp.lt.f32.partialorder %v1432_v39, 0.5  ;;  %v6791_v62 = vsel %vm1687_vm4, 1.0, %v12106_v4  ;;  %v1425_v45 = vand.u32 2147483647, %v1169_v30  ;;  %v1426_v23 = vand.u32 2147483647, %v1170_v58  ;;  %2710 = vadd.xlane.f32.xlu0 %v8479_v10 }
 0x1cc   : > { %12143 = vst [vmem:[#allocation63_spill] sm:$0xff] %v8703_v28  ;;  %v8711_v49 = vadd.f32 %v8703_v28, %v8690_v52  ;;  %v6792_v35 = vsel %vm1688_vm5, 1.0, %v12106_v4  ;;  %v8715_v31 = vmul.f32 %v6791_v62, %v8213_v14  ;;  %v1180_v42 = vsub.f32 %v8494_v33, %v7804_v26 }
 0x1cd   : > { %v8721_v9 = vmul.f32 %v6792_v35, %v8208_v2  ;;  %vm1681_vm6 = vcmp.lt.f32.partialorder %v1425_v45, 0.5  ;;  %vm1682_vm7 = vcmp.lt.f32.partialorder %v1426_v23, 0.5  ;;  %v1435_v30 = vand.u32 2147483647, %v1179_v22 }
 0x1ce   : > { %12144 = vst [vmem:[#allocation64_spill] sm:$0xff] %v8715_v31  ;;  %v6785_v39 = vsel %vm1681_vm6, 1.0, %v12106_v4  ;;  %v6786_v58 = vsel %vm1682_vm7, 1.0, %v12106_v4  ;;  %v1436_v8 = vand.u32 2147483647, %v1180_v42  ;;  %v1173_v62 = vsub.f32 %v8328_v11, %v7804_v26 }
 0x1cf   : > { %12145 = vst [vmem:[#allocation65_spill] sm:$0xff] %v8721_v9  ;;  %2701 = vadd.xlane.f32.xlu1 %v8624_v5  ;;  %v8730_v52 = vadd.f32 %v8721_v9, %v8715_v31  ;;  %v8733_v10 = vmul.f32 %v6785_v39, %v8180_v43  ;;  %v8736_v35 = vmul.f32 %v6786_v58, %v8165_v1  ;;  %vm1691_vm8 = vcmp.lt.f32.partialorder %v1435_v30, 0.5  ;;  %v12149_v30 = vld [vmem:[#allocation3_spill] sm:$0xff] }
 0x1d0   : > { %vm1692_vm9 = vcmp.lt.f32.partialorder %v1436_v8, 0.5  ;;  %v6795_v22 = vsel %vm1691_vm8, 1.0, %v12106_v4  ;;  %v1174_v45 = vsub.f32 %v8333_v0, %v7804_v26  ;;  %v1429_v23 = vand.u32 2147483647, %v1173_v62  ;;  %2716 = vadd.xlane.f32.xlu0 %v8544_v29 }
 0x1d1   : > { %12146 = vst [vmem:[#allocation66_spill] sm:$0xff] %v8733_v10  ;;  %12147 = vst [vmem:[#allocation67_spill] sm:$0xff] %v8736_v35  ;;  %v8744_v5 = vadd.f32 %v8736_v35, %v8733_v10  ;;  %v6796_v42 = vsel %vm1692_vm9, 1.0, %v12106_v4  ;;  %v8748_v39 = vmul.f32 %v6795_v22, %v8233_v15  ;;  %v12150_v8 = vsub.f32 %v8245_v59, %v12149_v30 }
 0x1d2   : > { %v8754_v31 = vmul.f32 %v6796_v42, %v8228_v12  ;;  %v1430_v9 = vand.u32 2147483647, %v1174_v45  ;;  %vm1685_vm10 = vcmp.lt.f32.partialorder %v1429_v23, 0.5  ;;  %v12152_v29 = vsub.f32 %v8247_v20, %v12149_v30 }
 0x1d3   : > { %12148 = vst [vmem:[#allocation68_spill] sm:$0xff] %v8748_v39  ;;  %v1439_v58 = vand.u32 2147483647, %v12150_v8  ;;  %2707 = vadd.xlane.f32.xlu1 %v8578_v6  ;;  %v6789_v10 = vsel %vm1685_vm10, 1.0, %v12106_v4  ;;  %v1177_v22 = vsub.f32 %v8449_v17, %v7804_v26  ;;  %v1178_v8 = vsub.f32 %v8458_v61, %v7804_v26 }
 0x1d4   : > { %12151 = vst [vmem:[#allocation3_spill] sm:$0xff] %v8754_v31  ;;  %v1440_v62 = vand.u32 2147483647, %v12152_v29  ;;  %v8767_v42 = vadd.f32 %v8754_v31, %v8748_v39  ;;  %vm1686_vm12 = vcmp.lt.f32.partialorder %v1430_v9, 0.5  ;;  %v8770_v45 = vmul.f32 %v6789_v10, %v8203_v13  ;;  %2722 = vadd.xlane.f32.xlu0 %v8607_v51 }
 0x1d5   : > { %vm1695_vm11 = vcmp.lt.f32.partialorder %v1439_v58, 0.5  ;;  %v6790_v6 = vsel %vm1686_vm12, 1.0, %v12106_v4  ;;  %v1433_v29 = vand.u32 2147483647, %v1177_v22  ;;  %v1434_v10 = vand.u32 2147483647, %v1178_v8 }
 0x1d6   : > { %12153 = vst [vmem:[#allocation69_spill] sm:$0xff] %v8770_v45  ;;  %vm1696_vm13 = vcmp.lt.f32.partialorder %v1440_v62, 0.5  ;;  %v6799_v23 = vsel %vm1695_vm11, 1.0, %v12106_v4  ;;  %v8777_v35 = vmul.f32 %v6790_v6, %v8198_v38  ;;  %v1187_v51 = vsub.f32 %v8290_v63, %v12149_v30 }
 0x1d7   : > { %v6800_v58 = vsel %vm1696_vm13, 1.0, %v12106_v4  ;;  %v8780_v39 = vmul.f32 %v6799_v23, %v8175_v3  ;;  %2713 = vadd.xlane.f32.xlu1 %v8659_v41  ;;  %vm1689_vm14 = vcmp.lt.f32.partialorder %v1433_v29, 0.5  ;;  %v1188_v62 = vsub.f32 %v8299_v7, %v12149_v30 }
 0x1d8   : > { %12154 = vst [vmem:[#allocation70_spill] sm:$0xff] %v8777_v35  ;;  %v8783_v9 = vmul.f32 %v6800_v58, %v8170_v50  ;;  %v1181_v22 = vsub.f32 %v8549_v37, %v7804_v26  ;;  %v8794_v6 = vadd.f32 %v8777_v35, %v8770_v45  ;;  %vm1690_vm15 = vcmp.lt.f32.partialorder %v1434_v10, 0.5  ;;  %2728 = vadd.xlane.f32.xlu0 %v8649_v27 }
 0x1d9   : > { %12155 = vst [vmem:[#allocation71_spill] sm:$0xff] %v8780_v39  ;;  %v6793_v41 = vsel %vm1689_vm14, 1.0, %v12106_v4  ;;  %v6794_v8 = vsel %vm1690_vm15, 1.0, %v12106_v4  ;;  %v1443_v29 = vand.u32 2147483647, %v1187_v51  ;;  %v1182_v45 = vsub.f32 %v8561_v19, %v7804_v26 }
 0x1da   : > { %12156 = vst [vmem:[#allocation72_spill] sm:$0xff] %v8783_v9  ;;  %v8798_v23 = vadd.f32 %v8783_v9, %v8780_v39  ;;  %v8804_v58 = vmul.f32 %v6793_v41, %v8223_v47  ;;  %v1444_v31 = vand.u32 2147483647, %v1188_v62  ;;  %v8807_v28 = vmul.f32 %v6794_v8, %v8218_v46 }
 0x1db   : > { %v1437_v39 = vand.u32 2147483647, %v1181_v22  ;;  %v1191_v10 = vsub.f32 %v8388_v36, %v12149_v30  ;;  %2719 = vadd.xlane.f32.xlu1 %v8679_v25  ;;  %vm1699_vm0 = vcmp.lt.f32.partialorder %v1443_v29, 0.5  ;;  %v1192_v27 = vsub.f32 %v8393_v16, %v12149_v30 }
 0x1dc   : > { %12157 = vst [vmem:[#allocation73_spill] sm:$0xff] %v8804_v58  ;;  %12158 = vst [vmem:[#allocation74_spill] sm:$0xff] %v8807_v28  ;;  %vm1700_vm1 = vcmp.lt.f32.partialorder %v1444_v31, 0.5  ;;  %v1185_v51 = vsub.f32 %v8270_v18, %v12149_v30  ;;  %v8820_v62 = vadd.f32 %v8807_v28, %v8804_v58  ;;  %v6803_v26 = vsel %vm1699_vm0, 1.0, %v12106_v4  ;;  %2734 = vadd.xlane.f32.xlu0 %v8700_v32 }
 0x1dd   : > { %v6804_v22 = vsel %vm1700_vm1, 1.0, %v12106_v4  ;;  %v1438_v41 = vand.u32 2147483647, %v1182_v45  ;;  %v8826_v25 = vmul.f32 %v6803_v26, %v8193_v55  ;;  %vm1693_vm2 = vcmp.lt.f32.partialorder %v1437_v39, 0.5 }
 0x1de   : > { %v8829_v31 = vmul.f32 %v6804_v22, %v8185_v34  ;;  %v1447_v8 = vand.u32 2147483647, %v1191_v10  ;;  %v6797_v29 = vsel %vm1693_vm2, 1.0, %v12106_v4  ;;  %v1448_v9 = vand.u32 2147483647, %v1192_v27 }
 0x1df   : > { %12159 = vst [vmem:[#allocation75_spill] sm:$0xff] %v8826_v25  ;;  %vm1694_vm3 = vcmp.lt.f32.partialorder %v1438_v41, 0.5  ;;  %v1186_v58 = vsub.f32 %v8276_v44, %v12149_v30  ;;  %2725 = vadd.xlane.f32.xlu1 %v8711_v49  ;;  %v8839_v26 = vmul.f32 %v6797_v29, %v8243_v57  ;;  %v1441_v27 = vand.u32 2147483647, %v1185_v51 }
 0x1e0   : > { %12160 = vst [vmem:[#allocation76_spill] sm:$0xff] %v8829_v31  ;;  %v2757_v32 = vadd.f32 %v8829_v31, %v8826_v25  ;;  %v6798_v45 = vsel %vm1694_vm3, 1.0, %v12106_v4  ;;  %vm1703_vm4 = vcmp.lt.f32.partialorder %v1447_v8, 0.5  ;;  %vm1704_vm5 = vcmp.lt.f32.partialorder %v1448_v9, 0.5  ;;  %2740 = vadd.xlane.f32.xlu0 %v8730_v52 }
 0x1e1   : > { %12161 = vst [vmem:[#allocation77_spill] sm:$0xff] %v8839_v26  ;;  %v8842_v39 = vmul.f32 %v6798_v45, %v8238_v56  ;;  %v6807_v10 = vsel %vm1703_vm4, 1.0, %v12106_v4  ;;  %v6808_v49 = vsel %vm1704_vm5, 1.0, %v12106_v4  ;;  %v1442_v41 = vand.u32 2147483647, %v1186_v58 }
 0x1e2   : > { %v8848_v22 = vmul.f32 %v6807_v10, %v8213_v14  ;;  %v1195_v29 = vsub.f32 %v8484_v48, %v12149_v30  ;;  %v8855_v45 = vmul.f32 %v6808_v49, %v8208_v2  ;;  %vm1697_vm6 = vcmp.lt.f32.partialorder %v1441_v27, 0.5 }
 0x1e3   : > { %12162 = vst [vmem:[#allocation78_spill] sm:$0xff] %v8842_v39  ;;  %v2748_v8 = vadd.f32 %v8842_v39, %v8839_v26  ;;  %v1196_v9 = vsub.f32 %v8494_v33, %v12149_v30  ;;  %2731 = vadd.xlane.f32.xlu1 %v8744_v5  ;;  %vm1698_vm7 = vcmp.lt.f32.partialorder %v1442_v41, 0.5  ;;  %v6801_v52 = vsel %vm1697_vm6, 1.0, %v12106_v4 }
 0x1e4   : > { %12163 = vst [vmem:[#allocation79_spill] sm:$0xff] %v8848_v22  ;;  %12164 = vst [vmem:[#allocation80_spill] sm:$0xff] %v8855_v45  ;;  %v1451_v51 = vand.u32 2147483647, %v1195_v29  ;;  %v1189_v58 = vsub.f32 %v8328_v11, %v12149_v30  ;;  %v2763_v10 = vadd.f32 %v8855_v45, %v8848_v22  ;;  %v6802_v25 = vsel %vm1698_vm7, 1.0, %v12106_v4  ;;  %2746 = vadd.xlane.f32.xlu0 %v8767_v42  ;;  %v12167_v22 = vld [vmem:[#allocation4_spill] sm:$0xff] }
 0x1e5   : > { %v8867_v49 = vmul.f32 %v6801_v52, %v8180_v43  ;;  %v1452_v27 = vand.u32 2147483647, %v1196_v9  ;;  %v8871_v5 = vmul.f32 %v6802_v25, %v8165_v1  ;;  %v1190_v41 = vsub.f32 %v8333_v0, %v12149_v30 }
 0x1e6   : > { %vm1707_vm8 = vcmp.lt.f32.partialorder %v1451_v51, 0.5  ;;  %v1445_v29 = vand.u32 2147483647, %v1189_v58  ;;  %v1200_v45 = vsub.f32 %v8247_v20, %v12167_v22  ;;  %v12168_v52 = vsub.f32 %v8245_v59, %v12167_v22 }
 0x1e7   : > { %12165 = vst [vmem:[#allocation81_spill] sm:$0xff] %v8867_v49  ;;  %12166 = vst [vmem:[#allocation82_spill] sm:$0xff] %v8871_v5  ;;  %vm1708_vm9 = vcmp.lt.f32.partialorder %v1452_v27, 0.5  ;;  %v6811_v31 = vsel %vm1707_vm8, 1.0, %v12106_v4  ;;  %2737 = vadd.xlane.f32.xlu1 %v8794_v6  ;;  %v2754_v42 = vadd.f32 %v8871_v5, %v8867_v49  ;;  %v1446_v58 = vand.u32 2147483647, %v1190_v41 }
 0x1e8   : > { %v1455_v9 = vand.u32 2147483647, %v12168_v52  ;;  %v6812_v25 = vsel %vm1708_vm9, 1.0, %v12106_v4  ;;  %v8886_v51 = vmul.f32 %v6811_v31, %v8233_v15  ;;  %vm1701_vm10 = vcmp.lt.f32.partialorder %v1445_v29, 0.5  ;;  %2752 = vadd.xlane.f32.xlu0 %v8798_v23 }
 0x1e9   : > { %v8889_v27 = vmul.f32 %v6812_v25, %v8228_v12  ;;  %v1456_v26 = vand.u32 2147483647, %v1200_v45  ;;  %vm1702_vm12 = vcmp.lt.f32.partialorder %v1446_v58, 0.5  ;;  %v6805_v6 = vsel %vm1701_vm10, 1.0, %v12106_v4 }
 0x1ea   : > { %12169 = vst [vmem:[#allocation4_spill] sm:$0xff] %v8886_v51  ;;  %vm1711_vm11 = vcmp.lt.f32.partialorder %v1455_v9, 0.5  ;;  %v1193_v49 = vsub.f32 %v8449_v17, %v12149_v30  ;;  %v6806_v41 = vsel %vm1702_vm12, 1.0, %v12106_v4  ;;  %v8900_v25 = vmul.f32 %v6805_v6, %v8203_v13 }
 0x1eb   : > { %12170 = vst [vmem:[#allocation83_spill] sm:$0xff] %v8889_v27  ;;  %v6815_v52 = vsel %vm1711_vm11, 1.0, %v12106_v4  ;;  %v2769_v31 = vadd.f32 %v8889_v27, %v8886_v51  ;;  %vm1712_vm13 = vcmp.lt.f32.partialorder %v1456_v26, 0.5  ;;  %2743 = vadd.xlane.f32.xlu1 %v8820_v62  ;;  %v8904_v23 = vmul.f32 %v6806_v41, %v8198_v38 }
 0x1ec   : > { %12171 = vst [vmem:[#allocation84_spill] sm:$0xff] %v8900_v25  ;;  %v6816_v45 = vsel %vm1712_vm13, 1.0, %v12106_v4  ;;  %v8908_v29 = vmul.f32 %v6815_v52, %v8175_v3  ;;  %v1194_v9 = vsub.f32 %v8458_v61, %v12149_v30  ;;  %v1449_v51 = vand.u32 2147483647, %v1193_v49  ;;  %2758 = vadd.xlane.f32.xlu0 %v2757_v32 }
 0x1ed   : > { %12172 = vst [vmem:[#allocation85_spill] sm:$0xff] %v8904_v23  ;;  %v8913_v58 = vmul.f32 %v6816_v45, %v8170_v50  ;;  %v1203_v26 = vsub.f32 %v8290_v63, %v12167_v22  ;;  %v1204_v62 = vsub.f32 %v8299_v7, %v12167_v22  ;;  %v2760_v6 = vadd.f32 %v8904_v23, %v8900_v25 }
 0x1ee   : > { %12173 = vst [vmem:[#allocation86_spill] sm:$0xff] %v8908_v29  ;;  %v1450_v41 = vand.u32 2147483647, %v1194_v9  ;;  %v1197_v52 = vsub.f32 %v8549_v37, %v12149_v30  ;;  %v1198_v27 = vsub.f32 %v8561_v19, %v12149_v30  ;;  %vm1705_vm14 = vcmp.lt.f32.partialorder %v1449_v51, 0.5 }
 0x1ef   : > { %12174 = vst [vmem:[#allocation87_spill] sm:$0xff] %v8913_v58  ;;  %v2775_v49 = vadd.f32 %v8913_v58, %v8908_v29  ;;  %v1459_v45 = vand.u32 2147483647, %v1203_v26  ;;  %v1460_v5 = vand.u32 2147483647, %v1204_v62  ;;  %2749 = vadd.xlane.f32.xlu1 %v2748_v8  ;;  %v6809_v32 = vsel %vm1705_vm14, 1.0, %v12106_v4 }
 0x1f0   : > { %vm1706_vm15 = vcmp.lt.f32.partialorder %v1450_v41, 0.5  ;;  %v1453_v25 = vand.u32 2147483647, %v1197_v52  ;;  %v1454_v9 = vand.u32 2147483647, %v1198_v27  ;;  %v8930_v39 = vmul.f32 %v6809_v32, %v8223_v47  ;;  %2764 = vadd.xlane.f32.xlu0 %v2763_v10  ;;  %v339_v26 = vld [vmem:[%s8137_s14 + $0x90] sm:$0xff] }
 0x1f1   : > { %v6810_v23 = vsel %vm1706_vm15, 1.0, %v12106_v4  ;;  %vm1715_vm0 = vcmp.lt.f32.partialorder %v1459_v45, 0.5  ;;  %vm1716_vm1 = vcmp.lt.f32.partialorder %v1460_v5, 0.5  ;;  %v340_v27 = vld [vmem:[%s8137_s14 + $0x98] sm:$0xff]  ;;  %v341_v45 = vld [vmem:[%s8137_s14 + $0xa0] sm:$0xff]  ;;  %v342_v32 = vld [vmem:[%s8137_s14 + $0xa8] sm:$0xff]  ;;  %v1202_v58 = vsub.f32 %v8276_v44, %v12167_v22 }
 0x1f2   : > { %12175 = vst [vmem:[#allocation88_spill] sm:$0xff] %v8930_v39  ;;  %v8933_v30 = vmul.f32 %v6810_v23, %v8218_v46  ;;  %v6819_v8 = vsel %vm1715_vm0, 1.0, %v12106_v4  ;;  %v6820_v51 = vsel %vm1716_vm1, 1.0, %v12106_v4  ;;  %vm1709_vm2 = vcmp.lt.f32.partialorder %v1453_v25, 0.5 }
 0x1f3   : > { %v8940_v62 = vmul.f32 %v6819_v8, %v8193_v55  ;;  %v8943_v41 = vmul.f32 %v6820_v51, %v8185_v34  ;;  %vm1710_vm3 = vcmp.lt.f32.partialorder %v1454_v9, 0.5  ;;  %v6813_v10 = vsel %vm1709_vm2, 1.0, %v12106_v4  ;;  %2755 = vadd.xlane.f32.xlu1 %v2754_v42 }
 0x1f4   : > { %12176 = vst [vmem:[#allocation89_spill] sm:$0xff] %v8933_v30  ;;  %v2766_v5 = vadd.f32 %v8933_v30, %v8930_v39  ;;  %v6814_v23 = vsel %vm1710_vm3, 1.0, %v12106_v4  ;;  %v8950_v52 = vmul.f32 %v6813_v10, %v8243_v57  ;;  %v1207_v25 = vsub.f32 %v8388_v36, %v12167_v22  ;;  %2770 = vadd.xlane.f32.xlu0 %v2769_v31 }
 0x1f5   : > { %12177 = vst [vmem:[#allocation90_spill] sm:$0xff] %v8940_v62  ;;  %12178 = vst [vmem:[#allocation91_spill] sm:$0xff] %v8943_v41  ;;  %v2781_v8 = vadd.f32 %v8943_v41, %v8940_v62  ;;  %v8959_v9 = vmul.f32 %v6814_v23, %v8238_v56  ;;  %v1208_v42 = vsub.f32 %v8393_v16, %v12167_v22 }
 0x1f6   : > { %12179 = vst [vmem:[#allocation92_spill] sm:$0xff] %v8950_v52  ;;  %v7594_v51 = vpack.c.bf16 %v340_v27, %v339_v26  ;;  %v1463_v29 = vand.u32 2147483647, %v1207_v25  ;;  %v1201_v10 = vsub.f32 %v8270_v18, %v12167_v22  ;;  %v1211_v39 = vsub.f32 %v8484_v48, %v12167_v22 }
 0x1f7   : > { %12180 = vst [vmem:[#allocation93_spill] sm:$0xff] %v8959_v9  ;;  %v2772_v62 = vadd.f32 %v8959_v9, %v8950_v52  ;;  %v1464_v23 = vand.u32 2147483647, %v1208_v42  ;;  %v1212_v41 = vsub.f32 %v8494_v33, %v12167_v22  ;;  %v7597_v26 = vpack.c.bf16 %v342_v32, %v341_v45  ;;  %2761 = vadd.xlane.f32.xlu1 %v2760_v6  ;;  %v344_v32 = vld [vmem:[%s8137_s14 + $0xb8] sm:$0xff] }
 0x1f8   : > { %7595 = vmatpush1.bf16.msra.mxu1 %v7594_v51  ;;  %vm1719_vm4 = vcmp.lt.f32.partialorder %v1463_v29, 0.5  ;;  %v1457_v31 = vand.u32 2147483647, %v1201_v10  ;;  %v1458_v27 = vand.u32 2147483647, %v1202_v58  ;;  %v12181_v25 = vmov 0.0|0.0   ;;  %2776 = vadd.xlane.f32.xlu0 %v2775_v49 }
 0x1f9   : > { %7596 = vmatprep.subr.bf16.mxu1 %v12181_v25  ;;  %v1205_v30 = vsub.f32 %v8328_v11, %v12167_v22  ;;  %vm1720_vm5 = vcmp.lt.f32.partialorder %v1464_v23, 0.5  ;;  %v6823_v28 = vsel %vm1719_vm4, 1.0, %v12106_v4  ;;  %v1467_v35 = vand.u32 2147483647, %v1211_v39 }
 0x1fa   : > { %v1468_v52 = vand.u32 2147483647, %v1212_v41  ;;  %v6824_v42 = vsel %vm1720_vm5, 1.0, %v12106_v4  ;;  %v8979_v6 = vmul.f32 %v6823_v28, %v8213_v14  ;;  %vm1713_vm6 = vcmp.lt.f32.partialorder %v1457_v31, 0.5  ;;  %v343_v41 = vld [vmem:[%s8137_s14 + $0xb0] sm:$0xff]  ;;  %v12188_v31 = vld [vmem:[#allocation5_spill] sm:$0xff] }
 0x1fb   : > { %vm1714_vm7 = vcmp.lt.f32.partialorder %v1458_v27, 0.5  ;;  %v8982_v29 = vmul.f32 %v6824_v42, %v8208_v2  ;;  %v6817_v58 = vsel %vm1713_vm6, 1.0, %v12106_v4  ;;  %vm1723_vm8 = vcmp.lt.f32.partialorder %v1467_v35, 0.5  ;;  %2767 = vadd.xlane.f32.xlu1 %v2766_v5 }
 0x1fc   : > { %12182 = vst [vmem:[#allocation94_spill] sm:$0xff] %v8979_v6  ;;  %v6818_v45 = vsel %vm1714_vm7, 1.0, %v12106_v4  ;;  %7598 = vmatpush1.bf16.msra.mxu1 %v7597_v26  ;;  %v8987_v39 = vmul.f32 %v6817_v58, %v8180_v43  ;;  %vm1724_vm9 = vcmp.lt.f32.partialorder %v1468_v52, 0.5  ;;  %v6827_v28 = vsel %vm1723_vm8, 1.0, %v12106_v4  ;;  %2782 = vadd.xlane.f32.xlu0 %v2781_v8 }
 0x1fd   : > { %12183 = vst [vmem:[#allocation95_spill] sm:$0xff] %v8982_v29  ;;  %v8990_v49 = vmul.f32 %v6818_v45, %v8165_v1  ;;  %7599 = vmatprep.subr.bf16.mxu1 %v12181_v25  ;;  %v2787_v51 = vadd.f32 %v8982_v29, %v8979_v6  ;;  %v6828_v35 = vsel %vm1724_vm9, 1.0, %v12106_v4  ;;  %v9000_v5 = vmul.f32 %v6827_v28, %v8233_v15 }
 0x1fe   : > { %12184 = vst [vmem:[#allocation96_spill] sm:$0xff] %v8987_v39  ;;  %v1206_v10 = vsub.f32 %v8333_v0, %v12167_v22  ;;  %v9007_v23 = vmul.f32 %v6828_v35, %v8228_v12  ;;  %v1461_v26 = vand.u32 2147483647, %v1205_v30  ;;  %v1215_v27 = vsub.f32 %v8245_v59, %v12188_v31 }
 0x1ff   : > { %12185 = vst [vmem:[#allocation97_spill] sm:$0xff] %v8990_v49  ;;  %12186 = vst [vmem:[#allocation98_spill] sm:$0xff] %v9000_v5  ;;  %v2778_v52 = vadd.f32 %v8990_v49, %v8987_v39  ;;  %v1216_v58 = vsub.f32 %v8247_v20, %v12188_v31  ;;  %v7600_v45 = vpack.c.bf16 %v344_v32, %v343_v41  ;;  %2773 = vadd.xlane.f32.xlu1 %v2772_v62 }
 0x200   : > { %12187 = vst [vmem:[#allocation99_spill] sm:$0xff] %v9007_v23  ;;  %v1462_v42 = vand.u32 2147483647, %v1206_v10  ;;  %v1209_v28 = vsub.f32 %v8449_v17, %v12167_v22  ;;  %v2793_v8 = vadd.f32 %v9007_v23, %v9000_v5  ;;  %vm1717_vm10 = vcmp.lt.f32.partialorder %v1461_v26, 0.5  ;;  %2788 = vadd.xlane.f32.xlu0 %v2787_v51  ;;  %v347_v5 = vld [vmem:[%s8137_s14 + $0xd0] sm:$0xff]  ;;  %v348_v23 = vld [vmem:[%s8137_s14 + $0xd8] sm:$0xff] }
 0x201   : > { %v1471_v6 = vand.u32 2147483647, %v1215_v27  ;;  %v1210_v30 = vsub.f32 %v8458_v61, %v12167_v22  ;;  %v6821_v35 = vsel %vm1717_vm10, 1.0, %v12106_v4  ;;  %v1472_v10 = vand.u32 2147483647, %v1216_v58  ;;  %7601 = vmatpush1.bf16.msra.mxu1 %v7600_v45  ;;  %v345_v58 = vld [vmem:[%s8137_s14 + $0xc0] sm:$0xff] }
 0x202   : > { %vm1718_vm11 = vcmp.lt.f32.partialorder %v1462_v42, 0.5  ;;  %v1465_v41 = vand.u32 2147483647, %v1209_v28  ;;  %v9022_v62 = vmul.f32 %v6821_v35, %v8203_v13  ;;  %7602 = vmatprep.subr.bf16.mxu1 %v12181_v25  ;;  %v346_v45 = vld [vmem:[%s8137_s14 + $0xc8] sm:$0xff]  ;;  %v7606_v39 = vpack.c.bf16 %v348_v23, %v347_v5 }
 0x203   : > { %v6822_v32 = vsel %vm1718_vm11, 1.0, %v12106_v4  ;;  %vm1727_vm12 = vcmp.lt.f32.partialorder %v1471_v6, 0.5  ;;  %v1466_v26 = vand.u32 2147483647, %v1210_v30  ;;  %vm1728_vm13 = vcmp.lt.f32.partialorder %v1472_v10, 0.5  ;;  %2779 = vadd.xlane.f32.xlu1 %v2778_v52 }
 0x204   : > { %12189 = vst [vmem:[#allocation5_spill] sm:$0xff] %v9022_v62  ;;  %v9026_v27 = vmul.f32 %v6822_v32, %v8198_v38  ;;  %v6831_v42 = vsel %vm1727_vm12, 1.0, %v12106_v4  ;;  %vm1721_vm14 = vcmp.lt.f32.partialorder %v1465_v41, 0.5  ;;  %v6832_v51 = vsel %vm1728_vm13, 1.0, %v12106_v4  ;;  %2794 = vadd.xlane.f32.xlu0 %v2793_v8 }
 0x205   : > { %v9033_v28 = vmul.f32 %v6831_v42, %v8175_v3  ;;  %vm1722_vm15 = vcmp.lt.f32.partialorder %v1466_v26, 0.5  ;;  %v6825_v6 = vsel %vm1721_vm14, 1.0, %v12106_v4  ;;  %v9039_v35 = vmul.f32 %v6832_v51, %v8170_v50 }
 0x206   : > { %12190 = vst [vmem:[#allocation100_spill] sm:$0xff] %v9026_v27  ;;  %v2784_v30 = vadd.f32 %v9026_v27, %v9022_v62  ;;  %v6826_v10 = vsel %vm1722_vm15, 1.0, %v12106_v4  ;;  %v9043_v41 = vmul.f32 %v6825_v6, %v8223_v47  ;;  %v1219_v32 = vsub.f32 %v8290_v63, %v12188_v31 }
 0x207   : > { %12191 = vst [vmem:[#allocation101_spill] sm:$0xff] %v9033_v28  ;;  %12192 = vst [vmem:[#allocation102_spill] sm:$0xff] %v9039_v35  ;;  %v9046_v52 = vmul.f32 %v6826_v10, %v8218_v46  ;;  %v1220_v26 = vsub.f32 %v8299_v7, %v12188_v31  ;;  %v7603_v42 = vpack.c.bf16 %v346_v45, %v345_v58 }
 0x208   : > { %12193 = vst [vmem:[#allocation103_spill] sm:$0xff] %v9043_v41  ;;  %v2799_v51 = vadd.f32 %v9039_v35, %v9033_v28  ;;  %v1213_v6 = vsub.f32 %v8549_v37, %v12167_v22  ;;  %v1214_v8 = vsub.f32 %v8561_v19, %v12167_v22  ;;  %v1223_v10 = vsub.f32 %v8388_v36, %v12188_v31 }
 0x209   : > { %12194 = vst [vmem:[#allocation104_spill] sm:$0xff] %v9046_v52  ;;  %2785 = vadd.xlane.f32.xlu1 %v2784_v30  ;;  %v2790_v29 = vadd.f32 %v9046_v52, %v9043_v41  ;;  %v1475_v62 = vand.u32 2147483647, %v1219_v32  ;;  %v1476_v58 = vand.u32 2147483647, %v1220_v26  ;;  %7604 = vmatpush1.bf16.msra.mxu1 %v7603_v42  ;;  %v1224_v45 = vsub.f32 %v8393_v16, %v12188_v31 }
 0x20a   : > { %v1469_v28 = vand.u32 2147483647, %v1213_v6  ;;  %v1470_v35 = vand.u32 2147483647, %v1214_v8  ;;  %v1479_v27 = vand.u32 2147483647, %v1223_v10  ;;  %7605 = vmatprep.subr.bf16.mxu1 %v12181_v25  ;;  %2800 = vadd.xlane.f32.xlu0 %v2799_v51  ;;  %v1217_v30 = vsub.f32 %v8270_v18, %v12188_v31 }
 0x20b   : > { %vm1731_vm0 = vcmp.lt.f32.partialorder %v1475_v62, 0.5  ;;  %vm1732_vm1 = vcmp.lt.f32.partialorder %v1476_v58, 0.5  ;;  %v1480_v22 = vand.u32 2147483647, %v1224_v45 }
 0x20c   : > { %v6835_v32 = vsel %vm1731_vm0, 1.0, %v12106_v4  ;;  %v6836_v26 = vsel %vm1732_vm1, 1.0, %v12106_v4  ;;  %vm1725_vm2 = vcmp.lt.f32.partialorder %v1469_v28, 0.5  ;;  %vm1726_vm3 = vcmp.lt.f32.partialorder %v1470_v35, 0.5  ;;  %v350_v28 = vld [vmem:[%s8137_s14 + $0xe8] sm:$0xff] }
 0x20d   : > { %2791 = vadd.xlane.f32.xlu1 %v2790_v29  ;;  %v9072_v42 = vmul.f32 %v6835_v32, %v8193_v55  ;;  %v9075_v5 = vmul.f32 %v6836_v26, %v8185_v34  ;;  %v6829_v23 = vsel %vm1725_vm2, 1.0, %v12106_v4  ;;  %v6830_v62 = vsel %vm1726_vm3, 1.0, %v12106_v4  ;;  %7607 = vmatpush1.bf16.msra.mxu1 %v7606_v39  ;;  %v349_v29 = vld [vmem:[%s8137_s14 + $0xe0] sm:$0xff] }
 0x20e   : > { %v9080_v51 = vmul.f32 %v6829_v23, %v8243_v57  ;;  %v9083_v6 = vmul.f32 %v6830_v62, %v8238_v56  ;;  %vm1735_vm4 = vcmp.lt.f32.partialorder %v1479_v27, 0.5  ;;  %vm1736_vm5 = vcmp.lt.f32.partialorder %v1480_v22, 0.5  ;;  %7608 = vmatprep.subr.bf16.mxu1 %v12181_v25 }
 0x20f   : > { %12195 = vst [vmem:[#allocation105_spill] sm:$0xff] %v9072_v42  ;;  %12196 = vst [vmem:[#allocation106_spill] sm:$0xff] %v9075_v5  ;;  %v2805_v35 = vadd.f32 %v9075_v5, %v9072_v42  ;;  %v6839_v8 = vsel %vm1735_vm4, 1.0, %v12106_v4  ;;  %v6840_v10 = vsel %vm1736_vm5, 1.0, %v12106_v4  ;;  %v1218_v39 = vsub.f32 %v8276_v44, %v12188_v31 }
 0x210   : > { %12197 = vst [vmem:[#allocation107_spill] sm:$0xff] %v9080_v51  ;;  %12198 = vst [vmem:[#allocation108_spill] sm:$0xff] %v9083_v6  ;;  %v2796_v58 = vadd.f32 %v9083_v6, %v9080_v51  ;;  %v9097_v27 = vmul.f32 %v6839_v8, %v8213_v14  ;;  %v9100_v45 = vmul.f32 %v6840_v10, %v8208_v2  ;;  %v1473_v22 = vand.u32 2147483647, %v1217_v30  ;;  %v12216_v6 = vld [vmem:[#allocation20_spill] sm:$0xff] }
 0x211   : > { %2806 = vadd.xlane.f32.xlu0 %v2805_v35  ;;  %v1474_v32 = vand.u32 2147483647, %v1218_v39  ;;  %v1227_v26 = vsub.f32 %v8484_v48, %v12188_v31  ;;  %v1228_v23 = vsub.f32 %v8494_v33, %v12188_v31  ;;  %v7609_v62 = vpack.c.bf16 %v350_v28, %v349_v29 }
 0x212   : > { %12199 = vst [vmem:[#allocation109_spill] sm:$0xff] %v9097_v27  ;;  %12200 = vst [vmem:[#allocation110_spill] sm:$0xff] %v9100_v45  ;;  %2797 = vadd.xlane.f32.xlu1 %v2796_v58  ;;  %v2811_v42 = vadd.f32 %v9100_v45, %v9097_v27  ;;  %vm1729_vm6 = vcmp.lt.f32.partialorder %v1473_v22, 0.5  ;;  %v1221_v8 = vsub.f32 %v8328_v11, %v12188_v31 }
 0x213   : > { %v1222_v30 = vsub.f32 %v8333_v0, %v12188_v31  ;;  %vm1730_vm7 = vcmp.lt.f32.partialorder %v1474_v32, 0.5  ;;  %v6833_v35 = vsel %vm1729_vm6, 1.0, %v12106_v4  ;;  %v1483_v10 = vand.u32 2147483647, %v1227_v26  ;;  %7610 = vmatpush1.bf16.msra.mxu1 %v7609_v62  ;;  %v12203_v32 = vld [vmem:[#allocation6_spill] sm:$0xff] }
 0x214   : > { %v1484_v39 = vand.u32 2147483647, %v1228_v23  ;;  %v6834_v29 = vsel %vm1730_vm7, 1.0, %v12106_v4  ;;  %v9115_v28 = vmul.f32 %v6833_v35, %v8180_v43  ;;  %v1477_v58 = vand.u32 2147483647, %v1221_v8  ;;  %7611 = vmatprep.subr.bf16.mxu1 %v12181_v25  ;;  %v351_v35 = vld [vmem:[%s8137_s14 + $0xf0] sm:$0xff] }
 0x215   : > { %v1478_v22 = vand.u32 2147483647, %v1222_v30  ;;  %2812 = vadd.xlane.f32.xlu0 %v2811_v42  ;;  %v9119_v27 = vmul.f32 %v6834_v29, %v8165_v1  ;;  %vm1739_vm8 = vcmp.lt.f32.partialorder %v1483_v10, 0.5  ;;  %v1231_v26 = vsub.f32 %v8245_v59, %v12203_v32  ;;  %v352_v8 = vld [vmem:[%s8137_s14 + $0xf8] sm:$0xff] }
 0x216   : > { %12201 = vst [vmem:[#allocation111_spill] sm:$0xff] %v9115_v28  ;;  %vm1740_vm9 = vcmp.lt.f32.partialorder %v1484_v39, 0.5  ;;  %v6843_v23 = vsel %vm1739_vm8, 1.0, %v12106_v4  ;;  %vm1733_vm10 = vcmp.lt.f32.partialorder %v1477_v58, 0.5  ;;  %v1232_v58 = vsub.f32 %v8247_v20, %v12203_v32 }
 0x217   : > { %12202 = vst [vmem:[#allocation112_spill] sm:$0xff] %v9119_v27  ;;  %v6844_v62 = vsel %vm1740_vm9, 1.0, %v12106_v4  ;;  %vm1734_vm11 = vcmp.lt.f32.partialorder %v1478_v22, 0.5  ;;  %v2802_v25 = vadd.f32 %v9119_v27, %v9115_v28  ;;  %v9130_v42 = vmul.f32 %v6843_v23, %v8233_v15 }
 0x218   : > { %v9133_v30 = vmul.f32 %v6844_v62, %v8228_v12  ;;  %v6837_v10 = vsel %vm1733_vm10, 1.0, %v12106_v4  ;;  %v6838_v39 = vsel %vm1734_vm11, 1.0, %v12106_v4  ;;  %v1487_v22 = vand.u32 2147483647, %v1231_v26  ;;  %v12208_v62 = vld [vmem:[#allocation2_spill] sm:$0xff] }
 0x219   : > { %12204 = vst [vmem:[#allocation6_spill] sm:$0xff] %v9130_v42  ;;  %v9138_v29 = vmul.f32 %v6837_v10, %v8203_v13  ;;  %2803 = vadd.xlane.f32.xlu1 %v2802_v25  ;;  %v9145_v23 = vmul.f32 %v6838_v39, %v8198_v38  ;;  %vm3167_vm12 = vcmp.eq.s32.totalorder %v12208_v62, 0  ;;  %v7612_v5 = vpack.c.bf16 %v352_v8, %v351_v35 }
 0x21a   : > { %12205 = vst [vmem:[#allocation113_spill] sm:$0xff] %v9133_v30  ;;  %v2817_v45 = vadd.f32 %v9133_v30, %v9130_v42  ;;  %v1488_v28 = vand.u32 2147483647, %v1232_v58  ;;  %vm1743_vm13 = vcmp.lt.f32.partialorder %v1487_v22, 0.5  ;;  %v9149_v27 = vsel %vm3167_vm12, 1.0, %v12106_v4  ;;  %v2657_v42 = vpop.xlane.xlu1 %2656  ;;  %v12210_v22 = vld [vmem:[#allocation15_spill] sm:$0xff] }
 0x21b   : > { %12206 = vst [vmem:[#allocation114_spill] sm:$0xff] %v9138_v29  ;;  %12207 = vst [vmem:[#allocation115_spill] sm:$0xff] %v9145_v23  ;;  %v1225_v10 = vsub.f32 %v8449_v17, %v12188_v31  ;;  %v2808_v26 = vadd.f32 %v9145_v23, %v9138_v29  ;;  %v6847_v25 = vsel %vm1743_vm13, 1.0, %v12106_v4  ;;  %7613 = vmatpush1.bf16.msra.mxu1 %v7612_v5  ;;  %vm3039_vm15 = vcmp.gt.f32.partialorder %v2657_v42, 0.0  ;;  %v12211_v5 = vld [vmem:[#allocation16_spill] sm:$0xff] }
 0x21c   : > { %2818 = vadd.xlane.f32.xlu0 %v2817_v45  ;;  %v1226_v39 = vsub.f32 %v8458_v61, %v12188_v31  ;;  %v1235_v35 = vsub.f32 %v8290_v63, %v12203_v32  ;;  %vm1744_vm14 = vcmp.lt.f32.partialorder %v1488_v28, 0.5  ;;  %v9161_v8 = vmul.f32 %v6847_v25, %v8175_v3 }
 0x21d   : > { %v1481_v58 = vand.u32 2147483647, %v1225_v10  ;;  %2809 = vadd.xlane.f32.xlu1 %v2808_v26  ;;  %v6848_v45 = vsel %vm1744_vm14, 1.0, %v12106_v4  ;;  %v9166_v62 = vsel %vm3039_vm15, %v12210_v22, %v9149_v27  ;;  %v9169_v30 = vsel %vm3039_vm15, %v12211_v5, 0.0  ;;  %v2660_v26 = vpop.xlane.xlu0 %2659 }
 0x21e   : > { %12209 = vst [vmem:[#allocation2_spill] sm:$0xff] %v9161_v8  ;;  %v1482_v29 = vand.u32 2147483647, %v1226_v39  ;;  %v9172_v23 = vmul.f32 %v6848_v45, %v8170_v50  ;;  %v1236_v28 = vsub.f32 %v8299_v7, %v12203_v32  ;;  %v1491_v42 = vand.u32 2147483647, %v1235_v35  ;;  %v12215_v35 = vld [vmem:[#allocation19_spill] sm:$0xff] }
 0x21f   : > { %vm1737_vm0 = vcmp.lt.f32.partialorder %v1481_v58, 0.5  ;;  %v3446_v25 = vsel %vm3039_vm15, %v12211_v5, %v9169_v30  ;;  %v3445_v51 = vsel %vm3039_vm15, %v12210_v22, %v9166_v62  ;;  %vm3040_vm2 = vcmp.gt.f32.partialorder %v2660_v26, 0.0 }
 0x220   : > { %12212 = vst [vmem:[#allocation15_spill] sm:$0xff] %v9172_v23  ;;  %vm1738_vm1 = vcmp.lt.f32.partialorder %v1482_v29, 0.5  ;;  %v6841_v10 = vsel %vm1737_vm0, 1.0, %v12106_v4  ;;  %v2823_v39 = vadd.f32 %v9172_v23, %v9161_v8  ;;  %3765 = vmatprep.mubr.f32.mxu1 %v3446_v25  ;;  %v9193_v5 = vsel %vm3040_vm2, %v12215_v35, %v9149_v27 }
 0x221   : > { %v6842_v45 = vsel %vm1738_vm1, 1.0, %v12106_v4  ;;  %v9185_v58 = vmul.f32 %v6841_v10, %v8223_v47  ;;  %v9197_v22 = vsel %vm3040_vm2, %v12216_v6, 0.0  ;;  %v1492_v8 = vand.u32 2147483647, %v1236_v28  ;;  %3766 = vmatmul.mubr.f32.vlgmr.msra.gmra.mrb[0].mxu1 %v3445_v51  ;;  %v2663_v52 = vpop.xlane.xlu0 %2662 }
 0x222   : > { %v9188_v29 = vmul.f32 %v6842_v45, %v8218_v46  ;;  %2824 = vadd.xlane.f32.xlu0 %v2823_v39  ;;  %vm1747_vm3 = vcmp.lt.f32.partialorder %v1491_v42, 0.5  ;;  %v1229_v10 = vsub.f32 %v8549_v37, %v12188_v31  ;;  %v1230_v25 = vsub.f32 %v8561_v19, %v12188_v31 }
 0x223   : > { %12213 = vst [vmem:[#allocation16_spill] sm:$0xff] %v9185_v58  ;;  %v1239_v45 = vsub.f32 %v8388_v36, %v12203_v32  ;;  %vm1748_vm4 = vcmp.lt.f32.partialorder %v1492_v8, 0.5  ;;  %v6851_v41 = vsel %vm1747_vm3, 1.0, %v12106_v4  ;;  %v1240_v51 = vsub.f32 %v8393_v16, %v12203_v32 }
 0x224   : > { %12214 = vst [vmem:[#allocation116_spill] sm:$0xff] %v9188_v29  ;;  %v2814_v23 = vadd.f32 %v9188_v29, %v9185_v58  ;;  %v6852_v28 = vsel %vm1748_vm4, 1.0, %v12106_v4  ;;  %v9212_v42 = vmul.f32 %v6851_v41, %v8193_v55  ;;  %v1485_v39 = vand.u32 2147483647, %v1229_v10  ;;  %v12219_v29 = vld [vmem:[#allocation21_spill] sm:$0xff] }
 0x225   : > { %v1486_v31 = vand.u32 2147483647, %v1230_v25  ;;  %v9215_v49 = vmul.f32 %v6852_v28, %v8185_v34  ;;  %vm3041_vm5 = vcmp.gt.f32.partialorder %v2663_v52, 0.0  ;;  %v1495_v58 = vand.u32 2147483647, %v1239_v45  ;;  %v12225_v52 = vld [vmem:[#allocation25_spill] sm:$0xff] }
 0x226   : > { %12217 = vst [vmem:[#allocation19_spill] sm:$0xff] %v9212_v42  ;;  %2815 = vadd.xlane.f32.xlu1 %v2814_v23  ;;  %v1496_v8 = vand.u32 2147483647, %v1240_v51  ;;  %vm1741_vm6 = vcmp.lt.f32.partialorder %v1485_v39, 0.5  ;;  %v9220_v9 = vsel %vm3041_vm5, %v12219_v29, %v9149_v27  ;;  %v9224_v41 = vsel %vm3041_vm5, %v12220_v60, 0.0 }
 0x227   : > { %12218 = vst [vmem:[#allocation20_spill] sm:$0xff] %v9215_v49  ;;  %vm1742_vm7 = vcmp.lt.f32.partialorder %v1486_v31, 0.5  ;;  %v2829_v23 = vadd.f32 %v9215_v49, %v9212_v42  ;;  %v6845_v10 = vsel %vm1741_vm6, 1.0, %v12106_v4  ;;  %vm1751_vm8 = vcmp.lt.f32.partialorder %v1495_v58, 0.5 }
 0x228   : > { %v6846_v25 = vsel %vm1742_vm7, 1.0, %v12106_v4  ;;  %v9231_v45 = vmul.f32 %v6845_v10, %v8243_v57  ;;  %vm1752_vm9 = vcmp.lt.f32.partialorder %v1496_v8, 0.5  ;;  %v6855_v28 = vsel %vm1751_vm8, 1.0, %v12106_v4 }
 0x229   : > { %v9234_v51 = vmul.f32 %v6846_v25, %v8238_v56  ;;  %2830 = vadd.xlane.f32.xlu0 %v2829_v23  ;;  %v6856_v39 = vsel %vm1752_vm9, 1.0, %v12106_v4  ;;  %v9239_v31 = vmul.f32 %v6855_v28, %v8213_v14  ;;  %v3448_v42 = vsel %vm3040_vm2, %v12216_v6, %v9197_v22  ;;  %v2666_v28 = vpop.xlane.xlu1 %2665 }
 0x22a   : > { %12221 = vst [vmem:[#allocation21_spill] sm:$0xff] %v9231_v45  ;;  %v3447_v58 = vsel %vm3040_vm2, %v12215_v35, %v9193_v5  ;;  %v9250_v8 = vmul.f32 %v6856_v39, %v8208_v2  ;;  %3770 = vmatprep.mubr.f32.mxu1 %v3448_v42  ;;  %v1233_v23 = vsub.f32 %v8270_v18, %v12203_v32  ;;  %vm3042_vm10 = vcmp.gt.f32.partialorder %v2666_v28, 0.0 }
 0x22b   : > { %12222 = vst [vmem:[#allocation22_spill] sm:$0xff] %v9234_v51  ;;  %12223 = vst [vmem:[#allocation117_spill] sm:$0xff] %v9239_v31  ;;  %v2820_v10 = vadd.f32 %v9234_v51, %v9231_v45  ;;  %v1234_v25 = vsub.f32 %v8276_v44, %v12203_v32  ;;  %3771 = vmatmul.mubr.f32.gmra.mrb[2].mxu1 %v3447_v58  ;;  %v1243_v6 = vsub.f32 %v8484_v48, %v12203_v32 }
 0x22c   : > { %12224 = vst [vmem:[#allocation118_spill] sm:$0xff] %v9250_v8  ;;  %v1244_v26 = vsub.f32 %v8494_v33, %v12203_v32  ;;  %v3450_v35 = vsel %vm3041_vm5, %v12220_v60, %v9224_v41  ;;  %v3449_v42 = vsel %vm3041_vm5, %v12219_v29, %v9220_v9  ;;  %v2835_v39 = vadd.f32 %v9250_v8, %v9239_v31 }
 0x22d   : > { %2821 = vadd.xlane.f32.xlu1 %v2820_v10  ;;  %v1489_v49 = vand.u32 2147483647, %v1233_v23  ;;  %v1490_v58 = vand.u32 2147483647, %v1234_v25  ;;  %3775 = vmatprep.mubr.f32.mxu1 %v3450_v35  ;;  %v1237_v45 = vsub.f32 %v8328_v11, %v12203_v32  ;;  %v1499_v51 = vand.u32 2147483647, %v1243_v6 }
 0x22e   : > { %v1500_v24 = vand.u32 2147483647, %v1244_v26  ;;  %v1238_v53 = vsub.f32 %v8333_v0, %v12203_v32  ;;  %2836 = vadd.xlane.f32.xlu0 %v2835_v39  ;;  %v9275_v29 = vsel %vm3042_vm10, %v12225_v52, %v9149_v27  ;;  %v1241_v8 = vsub.f32 %v8449_v17, %v12203_v32 }
 0x22f   : > { %vm1745_vm11 = vcmp.lt.f32.partialorder %v1489_v49, 0.5  ;;  %vm1746_vm12 = vcmp.lt.f32.partialorder %v1490_v58, 0.5  ;;  %v1493_v60 = vand.u32 2147483647, %v1237_v45  ;;  %12226 = vst [vmem:[#allocation25_spill] sm:$0xff] %v9275_v29  ;;  %vm1755_vm13 = vcmp.lt.f32.partialorder %v1499_v51, 0.5  ;;  %3776 = vmatmul.mubr.f32.gmra.mrb[4].mxu1 %v3449_v42 }
 0x230   : > { %v6849_v10 = vsel %vm1745_vm11, 1.0, %v12106_v4  ;;  %v6850_v23 = vsel %vm1746_vm12, 1.0, %v12106_v4  ;;  %vm1756_vm14 = vcmp.lt.f32.partialorder %v1500_v24, 0.5  ;;  %v6859_v49 = vsel %vm1755_vm13, 1.0, %v12106_v4  ;;  %v12231_v42 = vld [vmem:[#allocation28_spill] sm:$0xff] }
 0x231   : > { %v9280_v25 = vmul.f32 %v6849_v10, %v8180_v43  ;;  %v9283_v6 = vmul.f32 %v6850_v23, %v8165_v1  ;;  %v6860_v45 = vsel %vm1756_vm14, 1.0, %v12106_v4  ;;  %v9288_v26 = vmul.f32 %v6859_v49, %v8233_v15  ;;  %v12233_v10 = vld [vmem:[#allocation7_spill] sm:$0xff] }
 0x232   : > { %v9291_v35 = vmul.f32 %v6860_v45, %v8228_v12  ;;  %v1494_v39 = vand.u32 2147483647, %v1238_v53  ;;  %vm1749_vm15 = vcmp.lt.f32.partialorder %v1493_v60, 0.5  ;;  %v9298_v58 = vsel %vm3042_vm10, %v12231_v42, 0.0 }
 0x233   : > { %12227 = vst [vmem:[#allocation119_spill] sm:$0xff] %v9280_v25  ;;  %12228 = vst [vmem:[#allocation120_spill] sm:$0xff] %v9283_v6  ;;  %v2826_v24 = vadd.f32 %v9283_v6, %v9280_v25  ;;  %v6853_v51 = vsel %vm1749_vm15, 1.0, %v12106_v4  ;;  %v1247_v23 = vsub.f32 %v8245_v59, %v12233_v10  ;;  %v1248_v53 = vsub.f32 %v8247_v20, %v12233_v10 }
 0x234   : > { %12229 = vst [vmem:[#allocation121_spill] sm:$0xff] %v9288_v26  ;;  %12230 = vst [vmem:[#allocation122_spill] sm:$0xff] %v9291_v35  ;;  %v2841_v49 = vadd.f32 %v9291_v35, %v9288_v26  ;;  %vm1750_vm0 = vcmp.lt.f32.partialorder %v1494_v39, 0.5  ;;  %v9305_v45 = vmul.f32 %v6853_v51, %v8203_v13  ;;  %v1242_v25 = vsub.f32 %v8458_v61, %v12203_v32 }
 0x235   : > { %12232 = vst [vmem:[#allocation28_spill] sm:$0xff] %v9298_v58  ;;  %2827 = vadd.xlane.f32.xlu1 %v2826_v24  ;;  %v6854_v60 = vsel %vm1750_vm0, 1.0, %v12106_v4  ;;  %v1503_v31 = vand.u32 2147483647, %v1247_v23  ;;  %v1504_v39 = vand.u32 2147483647, %v1248_v53  ;;  %v3452_v51 = vsel %vm3042_vm10, %v12231_v42, %v9298_v58 }
 0x236   : > { %12234 = vst [vmem:[#allocation7_spill] sm:$0xff] %v9305_v45  ;;  %2842 = vadd.xlane.f32.xlu0 %v2841_v49  ;;  %v9315_v26 = vmul.f32 %v6854_v60, %v8198_v38  ;;  %v3451_v24 = vsel %vm3042_vm10, %v12225_v52, %v9275_v29  ;;  %v1497_v23 = vand.u32 2147483647, %v1241_v8  ;;  %v1498_v35 = vand.u32 2147483647, %v1242_v25  ;;  %3780 = vmatprep.mubr.f32.mxu1 %v3452_v51  ;;  %v9334_v8 = vpop.xlane.xlu0 %2668 }
 0x237   : > { %vm1759_vm1 = vcmp.lt.f32.partialorder %v1503_v31, 0.5  ;;  %v1251_v6 = vsub.f32 %v8290_v63, %v12233_v10  ;;  %vm1760_vm2 = vcmp.lt.f32.partialorder %v1504_v39, 0.5  ;;  %3781 = vmatmul.mubr.f32.gmra.mrb[6].mxu1 %v3451_v24  ;;  %v1252_v42 = vsub.f32 %v8299_v7, %v12233_v10 }
 0x238   : > { %12235 = vst [vmem:[#allocation123_spill] sm:$0xff] %v9315_v26  ;;  %v2832_v49 = vadd.f32 %v9315_v26, %v9305_v45  ;;  %v6863_v53 = vsel %vm1759_vm1, 1.0, %v12106_v4  ;;  %v6864_v28 = vsel %vm1760_vm2, 1.0, %v12106_v4  ;;  %vm1753_vm3 = vcmp.lt.f32.partialorder %v1497_v23, 0.5 }
 0x239   : > { %v9332_v31 = vmul.f32 %v6863_v53, %v8175_v3  ;;  %vm1754_vm4 = vcmp.lt.f32.partialorder %v1498_v35, 0.5  ;;  %v9337_v52 = vmul.f32 %v6864_v28, %v8170_v50  ;;  %v6857_v25 = vsel %vm1753_vm3, 1.0, %v12106_v4 }
 0x23a   : > { %2833 = vadd.xlane.f32.xlu1 %v2832_v49  ;;  %v6858_v60 = vsel %vm1754_vm4, 1.0, %v12106_v4  ;;  %v1507_v39 = vand.u32 2147483647, %v1251_v6  ;;  %v9342_v51 = vmul.f32 %v6857_v25, %v8223_v47  ;;  %v1508_v53 = vand.u32 2147483647, %v1252_v42 }
 0x23b   : > { %12236 = vst [vmem:[#allocation124_spill] sm:$0xff] %v9332_v31  ;;  %12237 = vst [vmem:[#allocation125_spill] sm:$0xff] %v9337_v52  ;;  %v9345_v24 = vmul.f32 %v6858_v60, %v8218_v46  ;;  %v1245_v35 = vsub.f32 %v8549_v37, %v12203_v32  ;;  %v2847_v23 = vadd.f32 %v9337_v52, %v9332_v31  ;;  %vm3043_vm6 = vcmp.gt.f32.partialorder %v9334_v8, 0.0 }
 0x23c   : > { %12238 = vst [vmem:[#allocation126_spill] sm:$0xff] %v9342_v51  ;;  %vm1763_vm5 = vcmp.lt.f32.partialorder %v1507_v39, 0.5  ;;  %v1246_v49 = vsub.f32 %v8561_v19, %v12203_v32  ;;  %vm1764_vm7 = vcmp.lt.f32.partialorder %v1508_v53, 0.5  ;;  %v12241_v39 = vld [vmem:[#allocation33_spill] sm:$0xff]  ;;  %v12244_v53 = vld [vmem:[#allocation35_spill] sm:$0xff]  ;;  %v1250_v26 = vsub.f32 %v8276_v44, %v12233_v10 }
 0x23d   : > { %12239 = vst [vmem:[#allocation127_spill] sm:$0xff] %v9345_v24  ;;  %v2838_v6 = vadd.f32 %v9345_v24, %v9342_v51  ;;  %v6867_v28 = vsel %vm1763_vm5, 1.0, %v12106_v4  ;;  %v1501_v25 = vand.u32 2147483647, %v1245_v35  ;;  %2848 = vadd.xlane.f32.xlu0 %v2847_v23  ;;  %v6868_v42 = vsel %vm1764_vm7, 1.0, %v12106_v4 }
 0x23e   : > { %v9359_v60 = vmul.f32 %v6867_v28, %v8193_v55  ;;  %v1502_v31 = vand.u32 2147483647, %v1246_v49  ;;  %v9365_v32 = vsel %vm3043_vm6, %v12241_v39, %v9149_v27  ;;  %v9368_v52 = vmul.f32 %v6868_v42, %v8185_v34 }
 0x23f   : > { %12242 = vst [vmem:[#allocation33_spill] sm:$0xff] %v9365_v32  ;;  %2839 = vadd.xlane.f32.xlu1 %v2838_v6  ;;  %vm1757_vm8 = vcmp.lt.f32.partialorder %v1501_v25, 0.5  ;;  %v9373_v35 = vsel %vm3043_vm6, %v12244_v53, 0.0  ;;  %v1255_v23 = vsub.f32 %v8388_v36, %v12233_v10  ;;  %v1256_v28 = vsub.f32 %v8393_v16, %v12233_v10 }
 0x240   : > { %12240 = vst [vmem:[#allocation128_spill] sm:$0xff] %v9359_v60  ;;  %12243 = vst [vmem:[#allocation129_spill] sm:$0xff] %v9368_v52  ;;  %vm1758_vm9 = vcmp.lt.f32.partialorder %v1502_v31, 0.5  ;;  %v6861_v49 = vsel %vm1757_vm8, 1.0, %v12106_v4  ;;  %v1249_v6 = vsub.f32 %v8270_v18, %v12233_v10  ;;  %v2853_v25 = vadd.f32 %v9368_v52, %v9359_v60 }
 0x241   : > { %12245 = vst [vmem:[#allocation35_spill] sm:$0xff] %v9373_v35  ;;  %v6862_v42 = vsel %vm1758_vm9, 1.0, %v12106_v4  ;;  %v9386_v51 = vmul.f32 %v6861_v49, %v8243_v57  ;;  %v1511_v24 = vand.u32 2147483647, %v1255_v23  ;;  %v1512_v31 = vand.u32 2147483647, %v1256_v28 }
 0x242   : > { %v9389_v45 = vmul.f32 %v6862_v42, %v8238_v56  ;;  %v1505_v29 = vand.u32 2147483647, %v1249_v6  ;;  %2854 = vadd.xlane.f32.xlu0 %v2853_v25  ;;  %v1259_v58 = vsub.f32 %v8484_v48, %v12233_v10  ;;  %v1260_v60 = vsub.f32 %v8494_v33, %v12233_v10 }
 0x243   : > { %12246 = vst [vmem:[#allocation130_spill] sm:$0xff] %v9386_v51  ;;  %vm1767_vm10 = vcmp.lt.f32.partialorder %v1511_v24, 0.5  ;;  %v3454_v23 = vsel %vm3043_vm6, %v12244_v53, %v9373_v35  ;;  %vm1768_vm11 = vcmp.lt.f32.partialorder %v1512_v31, 0.5  ;;  %v1506_v6 = vand.u32 2147483647, %v1250_v26 }
 0x244   : > { %12247 = vst [vmem:[#allocation131_spill] sm:$0xff] %v9389_v45  ;;  %v2844_v49 = vadd.f32 %v9389_v45, %v9386_v51  ;;  %v6871_v28 = vsel %vm1767_vm10, 1.0, %v12106_v4  ;;  %3785 = vmatprep.mubr.f32.mxu1 %v3454_v23  ;;  %v6872_v24 = vsel %vm1768_vm11, 1.0, %v12106_v4  ;;  %vm1761_vm12 = vcmp.lt.f32.partialorder %v1505_v29, 0.5 }
 0x245   : > { %v9406_v25 = vmul.f32 %v6871_v28, %v8213_v14  ;;  %v1515_v42 = vand.u32 2147483647, %v1259_v58  ;;  %v9409_v52 = vmul.f32 %v6872_v24, %v8208_v2  ;;  %vm1762_vm13 = vcmp.lt.f32.partialorder %v1506_v6, 0.5 }
 0x246   : > { %2845 = vadd.xlane.f32.xlu1 %v2844_v49  ;;  %v6865_v53 = vsel %vm1761_vm12, 1.0, %v12106_v4  ;;  %v1516_v51 = vand.u32 2147483647, %v1260_v60  ;;  %v6866_v31 = vsel %vm1762_vm13, 1.0, %v12106_v4  ;;  %v3453_v29 = vsel %vm3043_vm6, %v12241_v39, %v9365_v32  ;;  %v2672_v39 = vpop.xlane.xlu1 %2671 }
 0x247   : > { %12248 = vst [vmem:[#allocation132_spill] sm:$0xff] %v9406_v25  ;;  %12249 = vst [vmem:[#allocation133_spill] sm:$0xff] %v9409_v52  ;;  %v9414_v26 = vmul.f32 %v6865_v53, %v8180_v43  ;;  %vm1771_vm14 = vcmp.lt.f32.partialorder %v1515_v42, 0.5  ;;  %v2859_v58 = vadd.f32 %v9409_v52, %v9406_v25  ;;  %v9423_v23 = vmul.f32 %v6866_v31, %v8165_v1  ;;  %v12254_v42 = vld [vmem:[#allocation8_spill] sm:$0xff] }
 0x248   : > { %vm1772_vm15 = vcmp.lt.f32.partialorder %v1516_v51, 0.5  ;;  %v6875_v60 = vsel %vm1771_vm14, 1.0, %v12106_v4  ;;  %3786 = vmatmul.mubr.f32.gmra.mrb[8].mxu1 %v3453_v29  ;;  %v1253_v6 = vsub.f32 %v8328_v11, %v12233_v10  ;;  %v1254_v8 = vsub.f32 %v8333_v0, %v12233_v10 }
 0x249   : > { %12250 = vst [vmem:[#allocation134_spill] sm:$0xff] %v9414_v26  ;;  %12251 = vst [vmem:[#allocation135_spill] sm:$0xff] %v9423_v23  ;;  %v6876_v49 = vsel %vm1772_vm15, 1.0, %v12106_v4  ;;  %v9428_v28 = vmul.f32 %v6875_v60, %v8233_v15  ;;  %2860 = vadd.xlane.f32.xlu0 %v2859_v58  ;;  %v2850_v24 = vadd.f32 %v9423_v23, %v9414_v26  ;;  %vm3044_vm0 = vcmp.gt.f32.partialorder %v2672_v39, 0.0 }
 0x24a   : > { %v9437_v51 = vmul.f32 %v6876_v49, %v8228_v12  ;;  %v1263_v53 = vsub.f32 %v8245_v59, %v12254_v42  ;;  %v1264_v31 = vsub.f32 %v8247_v20, %v12254_v42  ;;  %v1509_v29 = vand.u32 2147483647, %v1253_v6 }
 0x24b   : > { %12252 = vst [vmem:[#allocation136_spill] sm:$0xff] %v9428_v28  ;;  %v1510_v60 = vand.u32 2147483647, %v1254_v8  ;;  %v1257_v25 = vsub.f32 %v8449_v17, %v12233_v10  ;;  %v1258_v58 = vsub.f32 %v8458_v61, %v12233_v10  ;;  %2851 = vadd.xlane.f32.xlu1 %v2850_v24 }
 0x24c   : > { %12253 = vst [vmem:[#allocation137_spill] sm:$0xff] %v9437_v51  ;;  %v2865_v52 = vadd.f32 %v9437_v51, %v9428_v28  ;;  %v1519_v49 = vand.u32 2147483647, %v1263_v53  ;;  %v1520_v26 = vand.u32 2147483647, %v1264_v31  ;;  %vm1765_vm1 = vcmp.lt.f32.partialorder %v1509_v29, 0.5 }
 0x24d   : > { %vm1766_vm2 = vcmp.lt.f32.partialorder %v1510_v60, 0.5  ;;  %v1513_v23 = vand.u32 2147483647, %v1257_v25  ;;  %v1514_v45 = vand.u32 2147483647, %v1258_v58  ;;  %v6869_v6 = vsel %vm1765_vm1, 1.0, %v12106_v4 }
 0x24e   : > { %2866 = vadd.xlane.f32.xlu0 %v2865_v52  ;;  %v6870_v8 = vsel %vm1766_vm2, 1.0, %v12106_v4  ;;  %vm1775_vm3 = vcmp.lt.f32.partialorder %v1519_v49, 0.5  ;;  %vm1776_vm4 = vcmp.lt.f32.partialorder %v1520_v26, 0.5  ;;  %v9452_v32 = vmul.f32 %v6869_v6, %v8203_v13 }
 0x24f   : > { %v9455_v24 = vmul.f32 %v6870_v8, %v8198_v38  ;;  %v6879_v53 = vsel %vm1775_vm3, 1.0, %v12106_v4  ;;  %v6880_v31 = vsel %vm1776_vm4, 1.0, %v12106_v4  ;;  %vm1769_vm5 = vcmp.lt.f32.partialorder %v1513_v23, 0.5 }
 0x250   : > { %12255 = vst [vmem:[#allocation8_spill] sm:$0xff] %v9452_v32  ;;  %v9460_v25 = vmul.f32 %v6879_v53, %v8175_v3  ;;  %v9463_v52 = vmul.f32 %v6880_v31, %v8170_v50  ;;  %vm1770_vm6 = vcmp.lt.f32.partialorder %v1514_v45, 0.5  ;;  %v6873_v29 = vsel %vm1769_vm5, 1.0, %v12106_v4 }
 0x251   : > { %12256 = vst [vmem:[#allocation138_spill] sm:$0xff] %v9455_v24  ;;  %v2856_v26 = vadd.f32 %v9455_v24, %v9452_v32  ;;  %v6874_v60 = vsel %vm1770_vm6, 1.0, %v12106_v4  ;;  %v9472_v58 = vsel %vm3044_vm0, %v8488_v40, %v9149_v27  ;;  %v9477_v6 = vmul.f32 %v6873_v29, %v8223_v47 }
 0x252   : > { %12257 = vst [vmem:[#allocation139_spill] sm:$0xff] %v9460_v25  ;;  %12258 = vst [vmem:[#allocation140_spill] sm:$0xff] %v9463_v52  ;;  %v2871_v49 = vadd.f32 %v9463_v52, %v9460_v25  ;;  %v9480_v45 = vmul.f32 %v6874_v60, %v8218_v46  ;;  %v9484_v23 = vsel %vm3044_vm0, %v8497_v54, 0.0  ;;  %v1267_v8 = vsub.f32 %v8290_v63, %v12254_v42  ;;  %v2675_v25 = vpop.xlane.xlu0 %2674 }
 0x253   : > { %12259 = vst [vmem:[#allocation141_spill] sm:$0xff] %v9472_v58  ;;  %12260 = vst [vmem:[#allocation142_spill] sm:$0xff] %v9477_v6  ;;  %2857 = vadd.xlane.f32.xlu1 %v2856_v26  ;;  %v1268_v53 = vsub.f32 %v8299_v7, %v12254_v42  ;;  %v1261_v31 = vsub.f32 %v8549_v37, %v12233_v10  ;;  %v1262_v29 = vsub.f32 %v8561_v19, %v12233_v10 }
 0x254   : > { %12261 = vst [vmem:[#allocation143_spill] sm:$0xff] %v9480_v45  ;;  %12262 = vst [vmem:[#allocation144_spill] sm:$0xff] %v9484_v23  ;;  %2872 = vadd.xlane.f32.xlu0 %v2871_v49  ;;  %v2862_v60 = vadd.f32 %v9480_v45, %v9477_v6  ;;  %v3456_v26 = vsel %vm3044_vm0, %v8497_v54, %v9484_v23  ;;  %v3455_v52 = vsel %vm3044_vm0, %v8488_v40, %v9472_v58 }
 0x255   : > { %v1271_v28 = vsub.f32 %v8388_v36, %v12254_v42  ;;  %v1523_v51 = vand.u32 2147483647, %v1267_v8  ;;  %v1524_v32 = vand.u32 2147483647, %v1268_v53  ;;  %v1517_v24 = vand.u32 2147483647, %v1261_v31  ;;  %3790 = vmatprep.mubr.f32.mxu1 %v3456_v26 }
 0x256   : > { %v1272_v10 = vsub.f32 %v8393_v16, %v12254_v42  ;;  %v1518_v49 = vand.u32 2147483647, %v1262_v29  ;;  %3791 = vmatmul.mubr.f32.gmra.mrb[10].mxu1 %v3455_v52  ;;  %vm3045_vm7 = vcmp.gt.f32.partialorder %v2675_v25, 0.0  ;;  %v1265_v54 = vsub.f32 %v8270_v18, %v12254_v42  ;;  %v12267_v26 = vld [vmem:[#allocation45_spill] sm:$0xff] }
 0x257   : > { %v1527_v6 = vand.u32 2147483647, %v1271_v28  ;;  %2863 = vadd.xlane.f32.xlu1 %v2862_v60  ;;  %vm1779_vm8 = vcmp.lt.f32.partialorder %v1523_v51, 0.5  ;;  %vm1780_vm9 = vcmp.lt.f32.partialorder %v1524_v32, 0.5  ;;  %vm1773_vm10 = vcmp.lt.f32.partialorder %v1517_v24, 0.5 }
 0x258   : > { %v1528_v40 = vand.u32 2147483647, %v1272_v10  ;;  %v6883_v39 = vsel %vm1779_vm8, 1.0, %v12106_v4  ;;  %v6884_v8 = vsel %vm1780_vm9, 1.0, %v12106_v4  ;;  %vm1774_vm11 = vcmp.lt.f32.partialorder %v1518_v49, 0.5 }
 0x259   : > { %v6877_v53 = vsel %vm1773_vm10, 1.0, %v12106_v4  ;;  %v9512_v31 = vmul.f32 %v6883_v39, %v8193_v55  ;;  %v9515_v28 = vmul.f32 %v6884_v8, %v8185_v34  ;;  %v6878_v52 = vsel %vm1774_vm11, 1.0, %v12106_v4  ;;  %v12270_v8 = vld [vmem:[#allocation43_spill] sm:$0xff] }
 0x25a   : > { %v9519_v51 = vmul.f32 %v6877_v53, %v8243_v57  ;;  %v9522_v32 = vmul.f32 %v6878_v52, %v8238_v56  ;;  %vm1783_vm12 = vcmp.lt.f32.partialorder %v1527_v6, 0.5  ;;  %vm1784_vm13 = vcmp.lt.f32.partialorder %v1528_v40, 0.5 }
 0x25b   : > { %12263 = vst [vmem:[#allocation145_spill] sm:$0xff] %v9512_v31  ;;  %12264 = vst [vmem:[#allocation146_spill] sm:$0xff] %v9515_v28  ;;  %v2877_v24 = vadd.f32 %v9515_v28, %v9512_v31  ;;  %v6887_v29 = vsel %vm1783_vm12, 1.0, %v12106_v4  ;;  %v6888_v60 = vsel %vm1784_vm13, 1.0, %v12106_v4  ;;  %v9530_v10 = vsel %vm3045_vm7, %v12267_v26, 0.0 }
 0x25c   : > { %12265 = vst [vmem:[#allocation147_spill] sm:$0xff] %v9519_v51  ;;  %12266 = vst [vmem:[#allocation148_spill] sm:$0xff] %v9522_v32  ;;  %v2868_v49 = vadd.f32 %v9522_v32, %v9519_v51  ;;  %v9535_v39 = vmul.f32 %v6887_v29, %v8213_v14  ;;  %v9538_v6 = vmul.f32 %v6888_v60, %v8208_v2  ;;  %v1521_v52 = vand.u32 2147483647, %v1265_v54 }
 0x25d   : > { %v1266_v40 = vsub.f32 %v8276_v44, %v12254_v42  ;;  %2878 = vadd.xlane.f32.xlu0 %v2877_v24  ;;  %v9545_v53 = vsel %vm3045_vm7, %v12270_v8, %v9149_v27  ;;  %v1275_v31 = vsub.f32 %v8484_v48, %v12254_v42  ;;  %v1276_v29 = vsub.f32 %v8494_v33, %v12254_v42 }
 0x25e   : > { %12268 = vst [vmem:[#allocation45_spill] sm:$0xff] %v9535_v39  ;;  %12269 = vst [vmem:[#allocation149_spill] sm:$0xff] %v9538_v6  ;;  %2869 = vadd.xlane.f32.xlu1 %v2868_v49  ;;  %v2883_v60 = vadd.f32 %v9538_v6, %v9535_v39  ;;  %v3458_v24 = vsel %vm3045_vm7, %v12267_v26, %v9530_v10  ;;  %v1269_v51 = vsub.f32 %v8328_v11, %v12254_v42  ;;  %v9597_v6 = vpop.xlane.xlu0 %2680 }
 0x25f   : > { %v1522_v28 = vand.u32 2147483647, %v1266_v40  ;;  %vm1777_vm14 = vcmp.lt.f32.partialorder %v1521_v52, 0.5  ;;  %v1531_v54 = vand.u32 2147483647, %v1275_v31  ;;  %3795 = vmatprep.mubr.f32.mxu1 %v3458_v24  ;;  %v1270_v45 = vsub.f32 %v8333_v0, %v12254_v42 }
 0x260   : > { %v1532_v32 = vand.u32 2147483647, %v1276_v29  ;;  %v6881_v49 = vsel %vm1777_vm14, 1.0, %v12106_v4  ;;  %v1525_v58 = vand.u32 2147483647, %v1269_v51  ;;  %v3457_v40 = vsel %vm3045_vm7, %v12270_v8, %v9545_v53  ;;  %v12275_v29 = vld [vmem:[#allocation9_spill] sm:$0xff] }
 0x261   : > { %vm1778_vm15 = vcmp.lt.f32.partialorder %v1522_v28, 0.5  ;;  %2884 = vadd.xlane.f32.xlu0 %v2883_v60  ;;  %v9566_v39 = vmul.f32 %v6881_v49, %v8180_v43  ;;  %vm1787_vm0 = vcmp.lt.f32.partialorder %v1531_v54, 0.5  ;;  %3796 = vmatmul.mubr.f32.gmra.mrb[12].mxu1 %v3457_v40  ;;  %v1526_v52 = vand.u32 2147483647, %v1270_v45  ;;  %v2678_v45 = vpop.xlane.xlu1 %2677 }
 0x262   : > { %v6882_v26 = vsel %vm1778_vm15, 1.0, %v12106_v4  ;;  %vm1788_vm1 = vcmp.lt.f32.partialorder %v1532_v32, 0.5  ;;  %v6891_v28 = vsel %vm1787_vm0, 1.0, %v12106_v4  ;;  %vm1781_vm2 = vcmp.lt.f32.partialorder %v1525_v58, 0.5 }
 0x263   : > { %12271 = vst [vmem:[#allocation43_spill] sm:$0xff] %v9566_v39  ;;  %v9569_v31 = vmul.f32 %v6882_v26, %v8165_v1  ;;  %v6892_v51 = vsel %vm1788_vm1, 1.0, %v12106_v4  ;;  %v9574_v25 = vmul.f32 %v6891_v28, %v8233_v15  ;;  %v1279_v60 = vsub.f32 %v8245_v59, %v12275_v29 }
 0x264   : > { %v9577_v8 = vmul.f32 %v6892_v51, %v8228_v12  ;;  %vm1782_vm3 = vcmp.lt.f32.partialorder %v1526_v52, 0.5  ;;  %v6885_v24 = vsel %vm1781_vm2, 1.0, %v12106_v4  ;;  %v1280_v54 = vsub.f32 %v8247_v20, %v12275_v29 }
 0x265   : > { %12272 = vst [vmem:[#allocation150_spill] sm:$0xff] %v9569_v31  ;;  %12273 = vst [vmem:[#allocation151_spill] sm:$0xff] %v9574_v25  ;;  %v2874_v32 = vadd.f32 %v9569_v31, %v9566_v39  ;;  %v6886_v40 = vsel %vm1782_vm3, 1.0, %v12106_v4  ;;  %v9590_v58 = vmul.f32 %v6885_v24, %v8203_v13  ;;  %v1535_v26 = vand.u32 2147483647, %v1279_v60 }
 0x266   : > { %12274 = vst [vmem:[#allocation152_spill] sm:$0xff] %v9577_v8  ;;  %v2889_v49 = vadd.f32 %v9577_v8, %v9574_v25  ;;  %v9593_v28 = vmul.f32 %v6886_v40, %v8198_v38  ;;  %v1536_v51 = vand.u32 2147483647, %v1280_v54  ;;  %v1273_v52 = vsub.f32 %v8449_v17, %v12254_v42 }
 0x267   : > { %12276 = vst [vmem:[#allocation9_spill] sm:$0xff] %v9590_v58  ;;  %2875 = vadd.xlane.f32.xlu1 %v2874_v32  ;;  %vm1791_vm4 = vcmp.lt.f32.partialorder %v1535_v26, 0.5  ;;  %v1274_v25 = vsub.f32 %v8458_v61, %v12254_v42  ;;  %vm3046_vm5 = vcmp.gt.f32.partialorder %v2678_v45, 0.0  ;;  %v1283_v24 = vsub.f32 %v8290_v63, %v12275_v29 }
 0x268   : > { %12277 = vst [vmem:[#allocation153_spill] sm:$0xff] %v9593_v28  ;;  %2890 = vadd.xlane.f32.xlu0 %v2889_v49  ;;  %v2880_v60 = vadd.f32 %v9593_v28, %v9590_v58  ;;  %vm1792_vm6 = vcmp.lt.f32.partialorder %v1536_v51, 0.5  ;;  %v6895_v32 = vsel %vm1791_vm4, 1.0, %v12106_v4  ;;  %v1529_v54 = vand.u32 2147483647, %v1273_v52 }
 0x269   : > { %v6896_v40 = vsel %vm1792_vm6, 1.0, %v12106_v4  ;;  %v9608_v49 = vmul.f32 %v6895_v32, %v8175_v3  ;;  %v1530_v26 = vand.u32 2147483647, %v1274_v25  ;;  %vm3047_vm7 = vcmp.gt.f32.partialorder %v9597_v6, 0.0 }
 0x26a   : > { %v9612_v8 = vmul.f32 %v6896_v40, %v8170_v50  ;;  %vm1785_vm8 = vcmp.lt.f32.partialorder %v1529_v54, 0.5  ;;  %v1284_v58 = vsub.f32 %v8299_v7, %v12275_v29  ;;  %v9619_v52 = vsel %vm3046_vm5, %v8600_v21, 0.0 }
 0x26b   : > { %12278 = vst [vmem:[#allocation154_spill] sm:$0xff] %v9608_v49  ;;  %2881 = vadd.xlane.f32.xlu1 %v2880_v60  ;;  %vm1786_vm9 = vcmp.lt.f32.partialorder %v1530_v26, 0.5  ;;  %v6889_v51 = vsel %vm1785_vm8, 1.0, %v12106_v4  ;;  %v1539_v32 = vand.u32 2147483647, %v1283_v24  ;;  %v1277_v26 = vsub.f32 %v8549_v37, %v12254_v42  ;;  %v12282_v24 = vld [vmem:[#allocation51_spill] sm:$0xff] }
 0x26c   : > { %12279 = vst [vmem:[#allocation155_spill] sm:$0xff] %v9612_v8  ;;  %v2895_v25 = vadd.f32 %v9612_v8, %v9608_v49  ;;  %v6890_v60 = vsel %vm1786_vm9, 1.0, %v12106_v4  ;;  %v9625_v40 = vmul.f32 %v6889_v51, %v8223_v47  ;;  %v1540_v54 = vand.u32 2147483647, %v1284_v58 }
 0x26d   : > { %v9628_v28 = vmul.f32 %v6890_v60, %v8218_v46  ;;  %vm1795_vm10 = vcmp.lt.f32.partialorder %v1539_v32, 0.5  ;;  %v1278_v39 = vsub.f32 %v8561_v19, %v12254_v42  ;;  %v9637_v49 = vsel %vm3046_vm5, %v12282_v24, %v9149_v27 }
 0x26e   : > { %12280 = vst [vmem:[#allocation156_spill] sm:$0xff] %v9625_v40  ;;  %2896 = vadd.xlane.f32.xlu0 %v2895_v25  ;;  %vm1796_vm11 = vcmp.lt.f32.partialorder %v1540_v54, 0.5  ;;  %v6899_v51 = vsel %vm1795_vm10, 1.0, %v12106_v4  ;;  %v3460_v58 = vsel %vm3046_vm5, %v8600_v21, %v9619_v52  ;;  %v1533_v25 = vand.u32 2147483647, %v1277_v26  ;;  %v12285_v26 = vld [vmem:[#allocation18_spill] sm:$0xff] }
 0x26f   : > { %12281 = vst [vmem:[#allocation157_spill] sm:$0xff] %v9628_v28  ;;  %v2886_v32 = vadd.f32 %v9628_v28, %v9625_v40  ;;  %v6900_v60 = vsel %vm1796_vm11, 1.0, %v12106_v4  ;;  %v9647_v42 = vmul.f32 %v6899_v51, %v8193_v55  ;;  %3800 = vmatprep.mubr.f32.mxu1 %v3460_v58  ;;  %v1534_v54 = vand.u32 2147483647, %v1278_v39  ;;  %v9656_v40 = vpop.xlane.xlu1 %2683 }
 0x270   : > { %v9650_v27 = vmul.f32 %v6900_v60, %v8185_v34  ;;  %v1287_v8 = vsub.f32 %v8388_v36, %v12275_v29  ;;  %v1288_v21 = vsub.f32 %v8393_v16, %v12275_v29  ;;  %vm1789_vm12 = vcmp.lt.f32.partialorder %v1533_v25, 0.5 }
 0x271   : > { %12283 = vst [vmem:[#allocation51_spill] sm:$0xff] %v9647_v42  ;;  %2887 = vadd.xlane.f32.xlu1 %v2886_v32  ;;  %v3459_v51 = vsel %vm3046_vm5, %v12282_v24, %v9637_v49  ;;  %v3462_v58 = vsel %vm3047_vm7, %v12285_v26, %v9169_v30  ;;  %vm1790_vm13 = vcmp.lt.f32.partialorder %v1534_v54, 0.5  ;;  %v6893_v60 = vsel %vm1789_vm12, 1.0, %v12106_v4 }
 0x272   : > { %12284 = vst [vmem:[#allocation158_spill] sm:$0xff] %v9650_v27  ;;  %v2901_v39 = vadd.f32 %v9650_v27, %v9647_v42  ;;  %v1543_v28 = vand.u32 2147483647, %v1287_v8  ;;  %3801 = vmatmul.mubr.f32.gmra.mrb[14].mxu1 %v3459_v51  ;;  %v6894_v32 = vsel %vm1790_vm13, 1.0, %v12106_v4  ;;  %v9670_v25 = vmul.f32 %v6893_v60, %v8243_v57  ;;  %v9694_v42 = vpop.xlane.xlu0 %2686 }
 0x273   : > { %v1544_v45 = vand.u32 2147483647, %v1288_v21  ;;  %3805 = vmatprep.mubr.f32.mxu1 %v3462_v58  ;;  %v1281_v24 = vsub.f32 %v8270_v18, %v12275_v29  ;;  %v9675_v26 = vmul.f32 %v6894_v32, %v8238_v56  ;;  %vm3048_vm14 = vcmp.gt.f32.partialorder %v9656_v40, 0.0 }
 0x274   : > { %12286 = vst [vmem:[#allocation18_spill] sm:$0xff] %v9670_v25  ;;  %2902 = vadd.xlane.f32.xlu0 %v2901_v39  ;;  %vm1799_vm15 = vcmp.lt.f32.partialorder %v1543_v28, 0.5  ;;  %v1282_v8 = vsub.f32 %v8276_v44, %v12275_v29  ;;  %v1291_v21 = vsub.f32 %v8484_v48, %v12275_v29  ;;  %vm3049_vm4 = vcmp.gt.f32.partialorder %v9694_v42, 0.0 }
 0x275   : > { %12287 = vst [vmem:[#allocation159_spill] sm:$0xff] %v9675_v26  ;;  %vm1800_vm0 = vcmp.lt.f32.partialorder %v1544_v45, 0.5  ;;  %v6903_v54 = vsel %vm1799_vm15, 1.0, %v12106_v4  ;;  %v1537_v51 = vand.u32 2147483647, %v1281_v24  ;;  %v2892_v58 = vadd.f32 %v9675_v26, %v9670_v25  ;;  %v12290_v25 = vld [vmem:[#allocation17_spill] sm:$0xff]  ;;  %v9733_v26 = vpop.xlane.xlu1 %2689 }
 0x276   : > { %v6904_v39 = vsel %vm1800_vm0, 1.0, %v12106_v4  ;;  %v9687_v60 = vmul.f32 %v6903_v54, %v8213_v14  ;;  %v1538_v32 = vand.u32 2147483647, %v1282_v8  ;;  %v1292_v45 = vsub.f32 %v8494_v33, %v12275_v29 }
 0x277   : > { %v9690_v28 = vmul.f32 %v6904_v39, %v8208_v2  ;;  %vm1793_vm1 = vcmp.lt.f32.partialorder %v1537_v51, 0.5  ;;  %v1547_v24 = vand.u32 2147483647, %v1291_v21  ;;  %2893 = vadd.xlane.f32.xlu1 %v2892_v58  ;;  %v3461_v54 = vsel %vm3047_vm7, %v12290_v25, %v9166_v62 }
 0x278   : > { %12288 = vst [vmem:[#allocation160_spill] sm:$0xff] %v9687_v60  ;;  %vm1794_vm2 = vcmp.lt.f32.partialorder %v1538_v32, 0.5  ;;  %v6897_v27 = vsel %vm1793_vm1, 1.0, %v12106_v4  ;;  %v1548_v21 = vand.u32 2147483647, %v1292_v45  ;;  %3806 = vmatmul.mubr.f32.gmra.mrb[16].mxu1 %v3461_v54  ;;  %v12293_v32 = vld [vmem:[#allocation27_spill] sm:$0xff]  ;;  %v1285_v25 = vsub.f32 %v8328_v11, %v12275_v29 }
 0x279   : > { %12289 = vst [vmem:[#allocation161_spill] sm:$0xff] %v9690_v28  ;;  %v2907_v8 = vadd.f32 %v9690_v28, %v9687_v60  ;;  %v6898_v51 = vsel %vm1794_vm2, 1.0, %v12106_v4  ;;  %v9705_v39 = vmul.f32 %v6897_v27, %v8180_v43  ;;  %vm1803_vm3 = vcmp.lt.f32.partialorder %v1547_v24, 0.5 }
 0x27a   : > { %v9708_v58 = vmul.f32 %v6898_v51, %v8165_v1  ;;  %v3464_v6 = vsel %vm3048_vm14, %v12293_v32, %v9197_v22  ;;  %vm1804_vm5 = vcmp.lt.f32.partialorder %v1548_v21, 0.5  ;;  %v6907_v27 = vsel %vm1803_vm3, 1.0, %v12106_v4  ;;  %v12296_v21 = vld [vmem:[#allocation10_spill] sm:$0xff] }
 0x27b   : > { %12291 = vst [vmem:[#allocation17_spill] sm:$0xff] %v9705_v39  ;;  %2908 = vadd.xlane.f32.xlu0 %v2907_v8  ;;  %3810 = vmatprep.mubr.f32.mxu1 %v3464_v6  ;;  %v1286_v45 = vsub.f32 %v8333_v0, %v12275_v29  ;;  %v6908_v54 = vsel %vm1804_vm5, 1.0, %v12106_v4  ;;  %v9724_v51 = vmul.f32 %v6907_v27, %v8233_v15  ;;  %v1541_v32 = vand.u32 2147483647, %v1285_v25  ;;  %v12298_v25 = vld [vmem:[#allocation24_spill] sm:$0xff] }
 0x27c   : > { %12292 = vst [vmem:[#allocation162_spill] sm:$0xff] %v9708_v58  ;;  %v2898_v24 = vadd.f32 %v9708_v58, %v9705_v39  ;;  %v9727_v60 = vmul.f32 %v6908_v54, %v8228_v12  ;;  %v1295_v28 = vsub.f32 %v8245_v59, %v12296_v21  ;;  %v1296_v6 = vsub.f32 %v8247_v20, %v12296_v21  ;;  %v12297_v39 = vld [vmem:[#allocation26_spill] sm:$0xff] }
 0x27d   : > { %12294 = vst [vmem:[#allocation27_spill] sm:$0xff] %v9724_v51  ;;  %v1542_v8 = vand.u32 2147483647, %v1286_v45  ;;  %vm1797_vm6 = vcmp.lt.f32.partialorder %v1541_v32, 0.5  ;;  %v3463_v27 = vsel %vm3048_vm14, %v12297_v39, %v9193_v5  ;;  %v3466_v45 = vsel %vm3049_vm4, %v12298_v25, %v9224_v41 }
 0x27e   : > { %12295 = vst [vmem:[#allocation163_spill] sm:$0xff] %v9727_v60  ;;  %2899 = vadd.xlane.f32.xlu1 %v2898_v24  ;;  %v2913_v54 = vadd.f32 %v9727_v60, %v9724_v51  ;;  %v6901_v58 = vsel %vm1797_vm6, 1.0, %v12106_v4  ;;  %v1551_v24 = vand.u32 2147483647, %v1295_v28  ;;  %3811 = vmatmul.mubr.f32.gmra.mrb[18].mxu1 %v3463_v27  ;;  %v1552_v40 = vand.u32 2147483647, %v1296_v6  ;;  %v9772_v51 = vpop.xlane.xlu0 %2692 }
 0x27f   : > { %vm1798_vm7 = vcmp.lt.f32.partialorder %v1542_v8, 0.5  ;;  %v9748_v31 = vmul.f32 %v6901_v58, %v8203_v13  ;;  %3815 = vmatprep.mubr.f32.mxu1 %v3466_v45  ;;  %v1289_v39 = vsub.f32 %v8449_v17, %v12275_v29  ;;  %vm3050_vm8 = vcmp.gt.f32.partialorder %v9733_v26, 0.0 }
 0x280   : > { %v6902_v32 = vsel %vm1798_vm7, 1.0, %v12106_v4  ;;  %2914 = vadd.xlane.f32.xlu0 %v2913_v54  ;;  %vm1807_vm9 = vcmp.lt.f32.partialorder %v1551_v24, 0.5  ;;  %v1290_v28 = vsub.f32 %v8458_v61, %v12275_v29  ;;  %vm1808_vm10 = vcmp.lt.f32.partialorder %v1552_v40, 0.5 }
 0x281   : > { %12299 = vst [vmem:[#allocation10_spill] sm:$0xff] %v9748_v31  ;;  %v9754_v25 = vmul.f32 %v6902_v32, %v8198_v38  ;;  %v6911_v8 = vsel %vm1807_vm9, 1.0, %v12106_v4  ;;  %v1545_v58 = vand.u32 2147483647, %v1289_v39  ;;  %v1299_v6 = vsub.f32 %v8290_v63, %v12296_v21 }
 0x282   : > { %v6912_v45 = vsel %vm1808_vm10, 1.0, %v12106_v4  ;;  %v9765_v54 = vmul.f32 %v6911_v8, %v8175_v3  ;;  %v1546_v32 = vand.u32 2147483647, %v1290_v28  ;;  %v1300_v40 = vsub.f32 %v8299_v7, %v12296_v21 }
 0x283   : > { %12300 = vst [vmem:[#allocation26_spill] sm:$0xff] %v9754_v25  ;;  %v2904_v27 = vadd.f32 %v9754_v25, %v9748_v31  ;;  %v9768_v24 = vmul.f32 %v6912_v45, %v8170_v50  ;;  %vm1801_vm11 = vcmp.lt.f32.partialorder %v1545_v58, 0.5  ;;  %v1555_v39 = vand.u32 2147483647, %v1299_v6  ;;  %v12303_v31 = vld [vmem:[#allocation23_spill] sm:$0xff]  ;;  %v12307_v25 = vld [vmem:[#allocation32_spill] sm:$0xff] }
 0x284   : > { %12301 = vst [vmem:[#allocation24_spill] sm:$0xff] %v9765_v54  ;;  %vm1802_vm12 = vcmp.lt.f32.partialorder %v1546_v32, 0.5  ;;  %v6905_v60 = vsel %vm1801_vm11, 1.0, %v12106_v4  ;;  %v3465_v8 = vsel %vm3049_vm4, %v12303_v31, %v9220_v9  ;;  %v1556_v6 = vand.u32 2147483647, %v1300_v40  ;;  %v12306_v32 = vld [vmem:[#allocation28_spill] sm:$0xff] }
 0x285   : > { %12302 = vst [vmem:[#allocation164_spill] sm:$0xff] %v9768_v24  ;;  %2905 = vadd.xlane.f32.xlu1 %v2904_v27  ;;  %v2919_v28 = vadd.f32 %v9768_v24, %v9765_v54  ;;  %v6906_v58 = vsel %vm1802_vm12, 1.0, %v12106_v4  ;;  %v9783_v45 = vmul.f32 %v6905_v60, %v8223_v47  ;;  %3816 = vmatmul.mubr.f32.gmra.mrb[20].mxu1 %v3465_v8  ;;  %vm1811_vm13 = vcmp.lt.f32.partialorder %v1555_v39, 0.5  ;;  %v12310_v24 = vld [vmem:[#allocation25_spill] sm:$0xff] }
 0x286   : > { %v9786_v27 = vmul.f32 %v6906_v58, %v8218_v46  ;;  %v3468_v42 = vsel %vm3050_vm8, %v12307_v25, %v12306_v32  ;;  %v1293_v31 = vsub.f32 %v8549_v37, %v12275_v29  ;;  %vm3051_vm14 = vcmp.gt.f32.partialorder %v9772_v51, 0.0 }
 0x287   : > { %12304 = vst [vmem:[#allocation23_spill] sm:$0xff] %v9783_v45  ;;  %2920 = vadd.xlane.f32.xlu0 %v2919_v28  ;;  %vm1812_vm15 = vcmp.lt.f32.partialorder %v1556_v6, 0.5  ;;  %v6915_v60 = vsel %vm1811_vm13, 1.0, %v12106_v4  ;;  %3820 = vmatprep.mubr.f32.mxu1 %v3468_v42  ;;  %v1294_v40 = vsub.f32 %v8561_v19, %v12275_v29  ;;  %v1303_v6 = vsub.f32 %v8388_v36, %v12296_v21  ;;  %v9811_v29 = vpop.xlane.xlu1 %2695 }
 0x288   : > { %12305 = vst [vmem:[#allocation165_spill] sm:$0xff] %v9786_v27  ;;  %v2910_v39 = vadd.f32 %v9786_v27, %v9783_v45  ;;  %v6916_v8 = vsel %vm1812_vm15, 1.0, %v12106_v4  ;;  %v9802_v25 = vmul.f32 %v6915_v60, %v8193_v55  ;;  %v1549_v58 = vand.u32 2147483647, %v1293_v31  ;;  %v12311_v45 = vld [vmem:[#allocation30_spill] sm:$0xff]  ;;  %v12312_v31 = vld [vmem:[#allocation36_spill] sm:$0xff] }
 0x289   : > { %v9805_v54 = vmul.f32 %v6916_v8, %v8185_v34  ;;  %v1550_v28 = vand.u32 2147483647, %v1294_v40  ;;  %v1304_v42 = vsub.f32 %v8393_v16, %v12296_v21  ;;  %v3467_v60 = vsel %vm3050_vm8, %v12311_v45, %v12310_v24 }
 0x28a   : > { %12308 = vst [vmem:[#allocation32_spill] sm:$0xff] %v9802_v25  ;;  %2911 = vadd.xlane.f32.xlu1 %v2910_v39  ;;  %vm1805_vm0 = vcmp.lt.f32.partialorder %v1549_v58, 0.5  ;;  %v3470_v40 = vsel %vm3051_vm14, %v12312_v31, %v9373_v35  ;;  %v1559_v32 = vand.u32 2147483647, %v1303_v6  ;;  %3821 = vmatmul.mubr.f32.gmra.mrb[22].mxu1 %v3467_v60  ;;  %v1297_v45 = vsub.f32 %v8270_v18, %v12296_v21 }
 0x28b   : > { %12309 = vst [vmem:[#allocation166_spill] sm:$0xff] %v9805_v54  ;;  %v2925_v8 = vadd.f32 %v9805_v54, %v9802_v25  ;;  %vm1806_vm1 = vcmp.lt.f32.partialorder %v1550_v28, 0.5  ;;  %v6909_v27 = vsel %vm1805_vm0, 1.0, %v12106_v4  ;;  %v1560_v26 = vand.u32 2147483647, %v1304_v42  ;;  %3825 = vmatprep.mubr.f32.mxu1 %v3470_v40  ;;  %v9850_v25 = vpop.xlane.xlu0 %2698 }
 0x28c   : > { %v6910_v39 = vsel %vm1806_vm1, 1.0, %v12106_v4  ;;  %v9826_v58 = vmul.f32 %v6909_v27, %v8243_v57  ;;  %vm3052_vm2 = vcmp.gt.f32.partialorder %v9811_v29, 0.0  ;;  %vm1815_vm3 = vcmp.lt.f32.partialorder %v1559_v32, 0.5 }
 0x28d   : > { %2926 = vadd.xlane.f32.xlu0 %v2925_v8  ;;  %v9832_v31 = vmul.f32 %v6910_v39, %v8238_v56  ;;  %v1298_v28 = vsub.f32 %v8276_v44, %v12296_v21  ;;  %vm1816_vm4 = vcmp.lt.f32.partialorder %v1560_v26, 0.5  ;;  %v6919_v6 = vsel %vm1815_vm3, 1.0, %v12106_v4 }
 0x28e   : > { %12313 = vst [vmem:[#allocation25_spill] sm:$0xff] %v9826_v58  ;;  %v1553_v27 = vand.u32 2147483647, %v1297_v45  ;;  %v1307_v42 = vsub.f32 %v8484_v48, %v12296_v21  ;;  %v6920_v40 = vsel %vm1816_vm4, 1.0, %v12106_v4  ;;  %v9843_v8 = vmul.f32 %v6919_v6, %v8213_v14 }
 0x28f   : > { %12314 = vst [vmem:[#allocation30_spill] sm:$0xff] %v9832_v31  ;;  %v2916_v60 = vadd.f32 %v9832_v31, %v9826_v58  ;;  %v1554_v39 = vand.u32 2147483647, %v1298_v28  ;;  %v9846_v32 = vmul.f32 %v6920_v40, %v8208_v2  ;;  %v1308_v26 = vsub.f32 %v8494_v33, %v12296_v21  ;;  %v12317_v58 = vld [vmem:[#allocation33_spill] sm:$0xff]  ;;  %v12318_v31 = vld [vmem:[#allocation34_spill] sm:$0xff] }
 0x290   : > { %12315 = vst [vmem:[#allocation36_spill] sm:$0xff] %v9843_v8  ;;  %vm1809_vm5 = vcmp.lt.f32.partialorder %v1553_v27, 0.5  ;;  %v1563_v45 = vand.u32 2147483647, %v1307_v42  ;;  %v3469_v6 = vsel %vm3051_vm14, %v12318_v31, %v12317_v58  ;;  %v1301_v31 = vsub.f32 %v8328_v11, %v12296_v21 }
 0x291   : > { %12316 = vst [vmem:[#allocation167_spill] sm:$0xff] %v9846_v32  ;;  %2917 = vadd.xlane.f32.xlu1 %v2916_v60  ;;  %vm1810_vm6 = vcmp.lt.f32.partialorder %v1554_v39, 0.5  ;;  %v6913_v54 = vsel %vm1809_vm5, 1.0, %v12106_v4  ;;  %v2931_v28 = vadd.f32 %v9846_v32, %v9843_v8  ;;  %v1564_v42 = vand.u32 2147483647, %v1308_v26  ;;  %3826 = vmatmul.mubr.f32.gmra.mrb[24].mxu1 %v3469_v6  ;;  %v12321_v39 = vld [vmem:[#allocation40_spill] sm:$0xff] }
 0x292   : > { %v6914_v27 = vsel %vm1810_vm6, 1.0, %v12106_v4  ;;  %v9861_v40 = vmul.f32 %v6913_v54, %v8180_v43  ;;  %vm1819_vm7 = vcmp.lt.f32.partialorder %v1563_v45, 0.5  ;;  %v3472_v51 = vsel %vm3052_vm2, %v12321_v39, %v9484_v23  ;;  %v9889_v23 = vpop.xlane.xlu1 %2701 }
 0x293   : > { %v9864_v60 = vmul.f32 %v6914_v27, %v8165_v1  ;;  %vm3053_vm8 = vcmp.gt.f32.partialorder %v9850_v25, 0.0  ;;  %2932 = vadd.xlane.f32.xlu0 %v2931_v28  ;;  %vm1820_vm9 = vcmp.lt.f32.partialorder %v1564_v42, 0.5  ;;  %v6923_v54 = vsel %vm1819_vm7, 1.0, %v12106_v4  ;;  %3830 = vmatprep.mubr.f32.mxu1 %v3472_v51  ;;  %v12324_v42 = vld [vmem:[#allocation11_spill] sm:$0xff] }
 0x294   : > { %12319 = vst [vmem:[#allocation34_spill] sm:$0xff] %v9861_v40  ;;  %v1302_v26 = vsub.f32 %v8333_v0, %v12296_v21  ;;  %v6924_v6 = vsel %vm1820_vm9, 1.0, %v12106_v4  ;;  %v9880_v27 = vmul.f32 %v6923_v54, %v8233_v15  ;;  %v1557_v39 = vand.u32 2147483647, %v1301_v31  ;;  %v12327_v31 = vld [vmem:[#allocation46_spill] sm:$0xff] }
 0x295   : > { %12320 = vst [vmem:[#allocation168_spill] sm:$0xff] %v9864_v60  ;;  %v2922_v45 = vadd.f32 %v9864_v60, %v9861_v40  ;;  %v9883_v8 = vmul.f32 %v6924_v6, %v8228_v12  ;;  %v1311_v32 = vsub.f32 %v8245_v59, %v12324_v42  ;;  %v1312_v51 = vsub.f32 %v8247_v20, %v12324_v42  ;;  %v12325_v40 = vld [vmem:[#allocation141_spill] sm:$0xff]  ;;  %v12326_v60 = vld [vmem:[#allocation39_spill] sm:$0xff] }
 0x296   : > { %12322 = vst [vmem:[#allocation40_spill] sm:$0xff] %v9880_v27  ;;  %v1558_v28 = vand.u32 2147483647, %v1302_v26  ;;  %vm1813_vm10 = vcmp.lt.f32.partialorder %v1557_v39, 0.5  ;;  %v3471_v54 = vsel %vm3052_vm2, %v12326_v60, %v12325_v40  ;;  %v3474_v26 = vsel %vm3053_vm8, %v12327_v31, %v9530_v10 }
 0x297   : > { %12323 = vst [vmem:[#allocation169_spill] sm:$0xff] %v9883_v8  ;;  %2923 = vadd.xlane.f32.xlu1 %v2922_v45  ;;  %v2937_v6 = vadd.f32 %v9883_v8, %v9880_v27  ;;  %v6917_v58 = vsel %vm1813_vm10, 1.0, %v12106_v4  ;;  %v1567_v35 = vand.u32 2147483647, %v1311_v32  ;;  %3831 = vmatmul.mubr.f32.gmra.mrb[26].mxu1 %v3471_v54  ;;  %v1568_v29 = vand.u32 2147483647, %v1312_v51  ;;  %v9928_v27 = vpop.xlane.xlu0 %2704 }
 0x298   : > { %vm1814_vm11 = vcmp.lt.f32.partialorder %v1558_v28, 0.5  ;;  %v9904_v39 = vmul.f32 %v6917_v58, %v8203_v13  ;;  %3835 = vmatprep.mubr.f32.mxu1 %v3474_v26  ;;  %v1305_v60 = vsub.f32 %v8449_v17, %v12296_v21  ;;  %vm3054_vm12 = vcmp.gt.f32.partialorder %v9889_v23, 0.0 }
 0x299   : > { %v6918_v45 = vsel %vm1814_vm11, 1.0, %v12106_v4  ;;  %2938 = vadd.xlane.f32.xlu0 %v2937_v6  ;;  %vm1823_vm13 = vcmp.lt.f32.partialorder %v1567_v35, 0.5  ;;  %v1306_v32 = vsub.f32 %v8458_v61, %v12296_v21  ;;  %vm1824_vm14 = vcmp.lt.f32.partialorder %v1568_v29, 0.5 }
 0x29a   : > { %12328 = vst [vmem:[#allocation11_spill] sm:$0xff] %v9904_v39  ;;  %v9910_v31 = vmul.f32 %v6918_v45, %v8198_v38  ;;  %v6927_v28 = vsel %vm1823_vm13, 1.0, %v12106_v4  ;;  %v1561_v58 = vand.u32 2147483647, %v1305_v60  ;;  %v1315_v51 = vsub.f32 %v8290_v63, %v12324_v42 }
 0x29b   : > { %v6928_v26 = vsel %vm1824_vm14, 1.0, %v12106_v4  ;;  %v9921_v6 = vmul.f32 %v6927_v28, %v8175_v3  ;;  %v1562_v45 = vand.u32 2147483647, %v1306_v32  ;;  %v1316_v29 = vsub.f32 %v8299_v7, %v12324_v42 }
 0x29c   : > { %12329 = vst [vmem:[#allocation141_spill] sm:$0xff] %v9910_v31  ;;  %v2928_v54 = vadd.f32 %v9910_v31, %v9904_v39  ;;  %v9924_v35 = vmul.f32 %v6928_v26, %v8170_v50  ;;  %vm1817_vm15 = vcmp.lt.f32.partialorder %v1561_v58, 0.5  ;;  %v1571_v60 = vand.u32 2147483647, %v1315_v51  ;;  %v12332_v39 = vld [vmem:[#allocation44_spill] sm:$0xff] }
 0x29d   : > { %12330 = vst [vmem:[#allocation39_spill] sm:$0xff] %v9921_v6  ;;  %vm1818_vm0 = vcmp.lt.f32.partialorder %v1562_v45, 0.5  ;;  %v6921_v8 = vsel %vm1817_vm15, 1.0, %v12106_v4  ;;  %v3473_v28 = vsel %vm3053_vm8, %v12332_v39, %v9545_v53  ;;  %v1572_v51 = vand.u32 2147483647, %v1316_v29  ;;  %v12335_v45 = vld [vmem:[#allocation53_spill] sm:$0xff] }
 0x29e   : > { %12331 = vst [vmem:[#allocation46_spill] sm:$0xff] %v9924_v35  ;;  %2929 = vadd.xlane.f32.xlu1 %v2928_v54  ;;  %v2943_v32 = vadd.f32 %v9924_v35, %v9921_v6  ;;  %v6922_v58 = vsel %vm1818_vm0, 1.0, %v12106_v4  ;;  %v9939_v26 = vmul.f32 %v6921_v8, %v8223_v47  ;;  %3836 = vmatmul.mubr.f32.gmra.mrb[28].mxu1 %v3473_v28  ;;  %vm1827_vm1 = vcmp.lt.f32.partialorder %v1571_v60, 0.5  ;;  %v12338_v35 = vld [vmem:[#allocation52_spill] sm:$0xff] }
 0x29f   : > { %v9942_v54 = vmul.f32 %v6922_v58, %v8218_v46  ;;  %v3476_v25 = vsel %vm3054_vm12, %v12335_v45, %v9619_v52  ;;  %v1309_v39 = vsub.f32 %v8549_v37, %v12296_v21  ;;  %vm3055_vm2 = vcmp.gt.f32.partialorder %v9928_v27, 0.0 }
 0x2a0   : > { %12333 = vst [vmem:[#allocation44_spill] sm:$0xff] %v9939_v26  ;;  %2944 = vadd.xlane.f32.xlu0 %v2943_v32  ;;  %vm1828_vm3 = vcmp.lt.f32.partialorder %v1572_v51, 0.5  ;;  %v6931_v8 = vsel %vm1827_vm1, 1.0, %v12106_v4  ;;  %3840 = vmatprep.mubr.f32.mxu1 %v3476_v25  ;;  %v1310_v29 = vsub.f32 %v8561_v19, %v12296_v21  ;;  %v1319_v51 = vsub.f32 %v8388_v36, %v12324_v42  ;;  %v9967_v21 = vpop.xlane.xlu1 %2707 }
 0x2a1   : > { %12334 = vst [vmem:[#allocation170_spill] sm:$0xff] %v9942_v54  ;;  %v2934_v60 = vadd.f32 %v9942_v54, %v9939_v26  ;;  %v6932_v28 = vsel %vm1828_vm3, 1.0, %v12106_v4  ;;  %v9958_v58 = vmul.f32 %v6931_v8, %v8193_v55  ;;  %v1565_v45 = vand.u32 2147483647, %v1309_v39  ;;  %v12339_v39 = vld [vmem:[#allocation31_spill] sm:$0xff] }
 0x2a2   : > { %v9961_v6 = vmul.f32 %v6932_v28, %v8185_v34  ;;  %v1566_v32 = vand.u32 2147483647, %v1310_v29  ;;  %v1320_v25 = vsub.f32 %v8393_v16, %v12324_v42  ;;  %v3475_v8 = vsel %vm3054_vm12, %v12338_v35, %v9637_v49 }
 0x2a3   : > { %12336 = vst [vmem:[#allocation53_spill] sm:$0xff] %v9958_v58  ;;  %2935 = vadd.xlane.f32.xlu1 %v2934_v60  ;;  %vm1821_vm4 = vcmp.lt.f32.partialorder %v1565_v45, 0.5  ;;  %v3478_v29 = vsel %vm3055_vm2, %v12339_v39, %v9169_v30  ;;  %v1575_v54 = vand.u32 2147483647, %v1319_v51  ;;  %3841 = vmatmul.mubr.f32.gmra.mrb[30].mxu1 %v3475_v8  ;;  %v1313_v35 = vsub.f32 %v8270_v18, %v12324_v42 }
 0x2a4   : > { %12337 = vst [vmem:[#allocation171_spill] sm:$0xff] %v9961_v6  ;;  %v2949_v28 = vadd.f32 %v9961_v6, %v9958_v58  ;;  %vm1822_vm5 = vcmp.lt.f32.partialorder %v1566_v32, 0.5  ;;  %v6925_v26 = vsel %vm1821_vm4, 1.0, %v12106_v4  ;;  %v1576_v23 = vand.u32 2147483647, %v1320_v25  ;;  %3845 = vmatprep.mubr.f32.mxu1 %v3478_v29  ;;  %v10006_v58 = vpop.xlane.xlu0 %2710 }
 0x2a5   : > { %v6926_v60 = vsel %vm1822_vm5, 1.0, %v12106_v4  ;;  %v9982_v45 = vmul.f32 %v6925_v26, %v8243_v57  ;;  %vm3056_vm6 = vcmp.gt.f32.partialorder %v9967_v21, 0.0  ;;  %vm1831_vm7 = vcmp.lt.f32.partialorder %v1575_v54, 0.5 }
 0x2a6   : > { %2950 = vadd.xlane.f32.xlu0 %v2949_v28  ;;  %v9988_v39 = vmul.f32 %v6926_v60, %v8238_v56  ;;  %v1314_v32 = vsub.f32 %v8276_v44, %v12324_v42  ;;  %vm1832_vm8 = vcmp.lt.f32.partialorder %v1576_v23, 0.5  ;;  %v6935_v51 = vsel %vm1831_vm7, 1.0, %v12106_v4 }
 0x2a7   : > { %12340 = vst [vmem:[#allocation52_spill] sm:$0xff] %v9982_v45  ;;  %v1569_v26 = vand.u32 2147483647, %v1313_v35  ;;  %v1323_v25 = vsub.f32 %v8484_v48, %v12324_v42  ;;  %v6936_v29 = vsel %vm1832_vm8, 1.0, %v12106_v4  ;;  %v9999_v28 = vmul.f32 %v6935_v51, %v8213_v14 }
 0x2a8   : > { %12341 = vst [vmem:[#allocation31_spill] sm:$0xff] %v9988_v39  ;;  %v2940_v8 = vadd.f32 %v9988_v39, %v9982_v45  ;;  %v1570_v60 = vand.u32 2147483647, %v1314_v32  ;;  %v10002_v54 = vmul.f32 %v6936_v29, %v8208_v2  ;;  %v1324_v23 = vsub.f32 %v8494_v33, %v12324_v42  ;;  %v12344_v45 = vld [vmem:[#allocation29_spill] sm:$0xff]  ;;  %v10045_v39 = vpop.xlane.xlu1 %2713 }
 0x2a9   : > { %12342 = vst [vmem:[#allocation172_spill] sm:$0xff] %v9999_v28  ;;  %vm1825_vm9 = vcmp.lt.f32.partialorder %v1569_v26, 0.5  ;;  %v1579_v35 = vand.u32 2147483647, %v1323_v25  ;;  %v3477_v51 = vsel %vm3055_vm2, %v12344_v45, %v9166_v62  ;;  %v1317_v45 = vsub.f32 %v8328_v11, %v12324_v42 }
 0x2aa   : > { %12343 = vst [vmem:[#allocation173_spill] sm:$0xff] %v10002_v54  ;;  %2941 = vadd.xlane.f32.xlu1 %v2940_v8  ;;  %vm1826_vm10 = vcmp.lt.f32.partialorder %v1570_v60, 0.5  ;;  %v6929_v6 = vsel %vm1825_vm9, 1.0, %v12106_v4  ;;  %v2955_v32 = vadd.f32 %v10002_v54, %v9999_v28  ;;  %v1580_v25 = vand.u32 2147483647, %v1324_v23  ;;  %3846 = vmatmul.mubr.f32.gmra.mrb[32].mxu1 %v3477_v51  ;;  %v12347_v60 = vld [vmem:[#allocation48_spill] sm:$0xff] }
 0x2ab   : > { %v6930_v26 = vsel %vm1826_vm10, 1.0, %v12106_v4  ;;  %v10017_v29 = vmul.f32 %v6929_v6, %v8180_v43  ;;  %vm1835_vm11 = vcmp.lt.f32.partialorder %v1579_v35, 0.5  ;;  %v3480_v27 = vsel %vm3056_vm6, %v12347_v60, %v9197_v22 }
 0x2ac   : > { %v10020_v8 = vmul.f32 %v6930_v26, %v8165_v1  ;;  %vm3057_vm12 = vcmp.gt.f32.partialorder %v10006_v58, 0.0  ;;  %2956 = vadd.xlane.f32.xlu0 %v2955_v32  ;;  %vm1836_vm13 = vcmp.lt.f32.partialorder %v1580_v25, 0.5  ;;  %v6939_v6 = vsel %vm1835_vm11, 1.0, %v12106_v4  ;;  %3850 = vmatprep.mubr.f32.mxu1 %v3480_v27  ;;  %v12350_v25 = vld [vmem:[#allocation12_spill] sm:$0xff] }
 0x2ad   : > { %12345 = vst [vmem:[#allocation29_spill] sm:$0xff] %v10017_v29  ;;  %v1318_v23 = vsub.f32 %v8333_v0, %v12324_v42  ;;  %v6940_v51 = vsel %vm1836_vm13, 1.0, %v12106_v4  ;;  %v10036_v26 = vmul.f32 %v6939_v6, %v8233_v15  ;;  %v1573_v60 = vand.u32 2147483647, %v1317_v45  ;;  %v12352_v45 = vld [vmem:[#allocation38_spill] sm:$0xff] }
 0x2ae   : > { %12346 = vst [vmem:[#allocation174_spill] sm:$0xff] %v10020_v8  ;;  %v2946_v35 = vadd.f32 %v10020_v8, %v10017_v29  ;;  %v10039_v28 = vmul.f32 %v6940_v51, %v8228_v12  ;;  %v1327_v54 = vsub.f32 %v8245_v59, %v12350_v25  ;;  %v1328_v27 = vsub.f32 %v8247_v20, %v12350_v25  ;;  %v12351_v29 = vld [vmem:[#allocation47_spill] sm:$0xff] }
 0x2af   : > { %12348 = vst [vmem:[#allocation48_spill] sm:$0xff] %v10036_v26  ;;  %v1574_v32 = vand.u32 2147483647, %v1318_v23  ;;  %vm1829_vm14 = vcmp.lt.f32.partialorder %v1573_v60, 0.5  ;;  %v3479_v6 = vsel %vm3056_vm6, %v12351_v29, %v9193_v5  ;;  %v3482_v23 = vsel %vm3057_vm12, %v12352_v45, %v9224_v41 }
 0x2b0   : > { %12349 = vst [vmem:[#allocation175_spill] sm:$0xff] %v10039_v28  ;;  %2947 = vadd.xlane.f32.xlu1 %v2946_v35  ;;  %v2961_v51 = vadd.f32 %v10039_v28, %v10036_v26  ;;  %v6933_v8 = vsel %vm1829_vm14, 1.0, %v12106_v4  ;;  %v1583_v31 = vand.u32 2147483647, %v1327_v54  ;;  %3851 = vmatmul.mubr.f32.gmra.mrb[34].mxu1 %v3479_v6  ;;  %v1584_v21 = vand.u32 2147483647, %v1328_v27  ;;  %v10084_v26 = vpop.xlane.xlu0 %2716 }
 0x2b1   : > { %vm1830_vm15 = vcmp.lt.f32.partialorder %v1574_v32, 0.5  ;;  %v10060_v60 = vmul.f32 %v6933_v8, %v8203_v13  ;;  %3855 = vmatprep.mubr.f32.mxu1 %v3482_v23  ;;  %v1321_v29 = vsub.f32 %v8449_v17, %v12324_v42  ;;  %vm3058_vm0 = vcmp.gt.f32.partialorder %v10045_v39, 0.0 }
 0x2b2   : > { %v6934_v35 = vsel %vm1830_vm15, 1.0, %v12106_v4  ;;  %2962 = vadd.xlane.f32.xlu0 %v2961_v51  ;;  %vm1839_vm1 = vcmp.lt.f32.partialorder %v1583_v31, 0.5  ;;  %v1322_v54 = vsub.f32 %v8458_v61, %v12324_v42  ;;  %vm1840_vm2 = vcmp.lt.f32.partialorder %v1584_v21, 0.5 }
 0x2b3   : > { %12353 = vst [vmem:[#allocation12_spill] sm:$0xff] %v10060_v60  ;;  %v10066_v45 = vmul.f32 %v6934_v35, %v8198_v38  ;;  %v6943_v32 = vsel %vm1839_vm1, 1.0, %v12106_v4  ;;  %v1577_v8 = vand.u32 2147483647, %v1321_v29  ;;  %v1331_v27 = vsub.f32 %v8290_v63, %v12350_v25 }
 0x2b4   : > { %v6944_v23 = vsel %vm1840_vm2, 1.0, %v12106_v4  ;;  %v10077_v51 = vmul.f32 %v6943_v32, %v8175_v3  ;;  %v1578_v35 = vand.u32 2147483647, %v1322_v54  ;;  %v1332_v21 = vsub.f32 %v8299_v7, %v12350_v25 }
 0x2b5   : > { %12354 = vst [vmem:[#allocation47_spill] sm:$0xff] %v10066_v45  ;;  %v2952_v6 = vadd.f32 %v10066_v45, %v10060_v60  ;;  %v10080_v31 = vmul.f32 %v6944_v23, %v8170_v50  ;;  %vm1833_vm3 = vcmp.lt.f32.partialorder %v1577_v8, 0.5  ;;  %v1587_v29 = vand.u32 2147483647, %v1331_v27  ;;  %v12357_v60 = vld [vmem:[#allocation37_spill] sm:$0xff] }
 0x2b6   : > { %12355 = vst [vmem:[#allocation38_spill] sm:$0xff] %v10077_v51  ;;  %vm1834_vm4 = vcmp.lt.f32.partialorder %v1578_v35, 0.5  ;;  %v6937_v28 = vsel %vm1833_vm3, 1.0, %v12106_v4  ;;  %v3481_v32 = vsel %vm3057_vm12, %v12357_v60, %v9220_v9  ;;  %v1588_v27 = vand.u32 2147483647, %v1332_v21  ;;  %v12360_v35 = vld [vmem:[#allocation28_spill] sm:$0xff] }
 0x2b7   : > { %12356 = vst [vmem:[#allocation176_spill] sm:$0xff] %v10080_v31  ;;  %2953 = vadd.xlane.f32.xlu1 %v2952_v6  ;;  %v2967_v54 = vadd.f32 %v10080_v31, %v10077_v51  ;;  %v6938_v8 = vsel %vm1834_vm4, 1.0, %v12106_v4  ;;  %v10095_v23 = vmul.f32 %v6937_v28, %v8223_v47  ;;  %3856 = vmatmul.mubr.f32.gmra.mrb[36].mxu1 %v3481_v32  ;;  %vm1843_vm5 = vcmp.lt.f32.partialorder %v1587_v29, 0.5  ;;  %v12361_v45 = vld [vmem:[#allocation57_spill] sm:$0xff]  ;;  %v12364_v31 = vld [vmem:[#allocation54_spill] sm:$0xff] }
 0x2b8   : > { %v10098_v6 = vmul.f32 %v6938_v8, %v8218_v46  ;;  %v3484_v58 = vsel %vm3058_vm0, %v12361_v45, %v12360_v35  ;;  %v1325_v60 = vsub.f32 %v8549_v37, %v12324_v42  ;;  %vm3059_vm6 = vcmp.gt.f32.partialorder %v10084_v26, 0.0 }
 0x2b9   : > { %12358 = vst [vmem:[#allocation37_spill] sm:$0xff] %v10095_v23  ;;  %2968 = vadd.xlane.f32.xlu0 %v2967_v54  ;;  %vm1844_vm7 = vcmp.lt.f32.partialorder %v1588_v27, 0.5  ;;  %v6947_v28 = vsel %vm1843_vm5, 1.0, %v12106_v4  ;;  %3860 = vmatprep.mubr.f32.mxu1 %v3484_v58  ;;  %v1326_v21 = vsub.f32 %v8561_v19, %v12324_v42  ;;  %v1335_v27 = vsub.f32 %v8388_v36, %v12350_v25  ;;  %v10123_v42 = vpop.xlane.xlu1 %2719 }
 0x2ba   : > { %12359 = vst [vmem:[#allocation177_spill] sm:$0xff] %v10098_v6  ;;  %v2958_v29 = vadd.f32 %v10098_v6, %v10095_v23  ;;  %v6948_v32 = vsel %vm1844_vm7, 1.0, %v12106_v4  ;;  %v10114_v45 = vmul.f32 %v6947_v28, %v8193_v55  ;;  %v1581_v8 = vand.u32 2147483647, %v1325_v60  ;;  %v12365_v60 = vld [vmem:[#allocation35_spill] sm:$0xff]  ;;  %v12366_v23 = vld [vmem:[#allocation42_spill] sm:$0xff] }
 0x2bb   : > { %v10117_v51 = vmul.f32 %v6948_v32, %v8185_v34  ;;  %v1582_v54 = vand.u32 2147483647, %v1326_v21  ;;  %v1336_v58 = vsub.f32 %v8393_v16, %v12350_v25  ;;  %v3483_v28 = vsel %vm3058_vm0, %v12364_v31, %v12310_v24 }
 0x2bc   : > { %12362 = vst [vmem:[#allocation57_spill] sm:$0xff] %v10114_v45  ;;  %2959 = vadd.xlane.f32.xlu1 %v2958_v29  ;;  %vm1837_vm8 = vcmp.lt.f32.partialorder %v1581_v8, 0.5  ;;  %v3486_v21 = vsel %vm3059_vm6, %v12366_v23, %v12365_v60  ;;  %v1591_v35 = vand.u32 2147483647, %v1335_v27  ;;  %3861 = vmatmul.mubr.f32.gmra.mrb[38].mxu1 %v3483_v28  ;;  %v1329_v31 = vsub.f32 %v8270_v18, %v12350_v25  ;;  %v12376_v60 = vld [vmem:[#allocation59_spill] sm:$0xff] }
 0x2bd   : > { %12363 = vst [vmem:[#allocation178_spill] sm:$0xff] %v10117_v51  ;;  %v2973_v32 = vadd.f32 %v10117_v51, %v10114_v45  ;;  %vm1838_vm9 = vcmp.lt.f32.partialorder %v1582_v54, 0.5  ;;  %v6941_v6 = vsel %vm1837_vm8, 1.0, %v12106_v4  ;;  %v1592_v39 = vand.u32 2147483647, %v1336_v58  ;;  %3865 = vmatprep.mubr.f32.mxu1 %v3486_v21  ;;  %v10162_v45 = vpop.xlane.xlu0 %2722 }
 0x2be   : > { %v6942_v29 = vsel %vm1838_vm9, 1.0, %v12106_v4  ;;  %v10138_v8 = vmul.f32 %v6941_v6, %v8243_v57  ;;  %vm3060_vm10 = vcmp.gt.f32.partialorder %v10123_v42, 0.0  ;;  %vm1847_vm11 = vcmp.lt.f32.partialorder %v1591_v35, 0.5 }
 0x2bf   : > { %2974 = vadd.xlane.f32.xlu0 %v2973_v32  ;;  %v10144_v23 = vmul.f32 %v6942_v29, %v8238_v56  ;;  %v1330_v54 = vsub.f32 %v8276_v44, %v12350_v25  ;;  %vm1848_vm12 = vcmp.lt.f32.partialorder %v1592_v39, 0.5  ;;  %v6951_v27 = vsel %vm1847_vm11, 1.0, %v12106_v4 }
 0x2c0   : > { %12367 = vst [vmem:[#allocation54_spill] sm:$0xff] %v10138_v8  ;;  %v1585_v6 = vand.u32 2147483647, %v1329_v31  ;;  %v1339_v58 = vsub.f32 %v8484_v48, %v12350_v25  ;;  %v6952_v21 = vsel %vm1848_vm12, 1.0, %v12106_v4  ;;  %v10155_v32 = vmul.f32 %v6951_v27, %v8213_v14 }
 0x2c1   : > { %12368 = vst [vmem:[#allocation42_spill] sm:$0xff] %v10144_v23  ;;  %v2964_v28 = vadd.f32 %v10144_v23, %v10138_v8  ;;  %v1586_v29 = vand.u32 2147483647, %v1330_v54  ;;  %v10158_v35 = vmul.f32 %v6952_v21, %v8208_v2  ;;  %v1340_v39 = vsub.f32 %v8494_v33, %v12350_v25  ;;  %v12371_v8 = vld [vmem:[#allocation33_spill] sm:$0xff] }
 0x2c2   : > { %12369 = vst [vmem:[#allocation179_spill] sm:$0xff] %v10155_v32  ;;  %vm1841_vm13 = vcmp.lt.f32.partialorder %v1585_v6, 0.5  ;;  %v1595_v31 = vand.u32 2147483647, %v1339_v58  ;;  %v12372_v23 = vld [vmem:[#allocation41_spill] sm:$0xff]  ;;  %vm3061_vm0 = vcmp.gt.f32.partialorder %v10162_v45, 0.0 }
 0x2c3   : > { %12370 = vst [vmem:[#allocation180_spill] sm:$0xff] %v10158_v35  ;;  %2965 = vadd.xlane.f32.xlu1 %v2964_v28  ;;  %vm1842_vm14 = vcmp.lt.f32.partialorder %v1586_v29, 0.5  ;;  %v6945_v51 = vsel %vm1841_vm13, 1.0, %v12106_v4  ;;  %v3485_v27 = vsel %vm3059_vm6, %v12372_v23, %v12371_v8  ;;  %v2979_v54 = vadd.f32 %v10158_v35, %v10155_v32  ;;  %v12375_v29 = vld [vmem:[#allocation144_spill] sm:$0xff] }
 0x2c4   : > { %v6946_v6 = vsel %vm1842_vm14, 1.0, %v12106_v4  ;;  %v10173_v21 = vmul.f32 %v6945_v51, %v8180_v43  ;;  %v1596_v58 = vand.u32 2147483647, %v1340_v39  ;;  %3866 = vmatmul.mubr.f32.gmra.mrb[40].mxu1 %v3485_v27  ;;  %vm1851_vm15 = vcmp.lt.f32.partialorder %v1595_v31, 0.5 }
 0x2c5   : > { %v10176_v28 = vmul.f32 %v6946_v6, %v8165_v1  ;;  %v3488_v26 = vsel %vm3060_vm10, %v12376_v60, %v12375_v29  ;;  %v1333_v23 = vsub.f32 %v8328_v11, %v12350_v25  ;;  %2980 = vadd.xlane.f32.xlu0 %v2979_v54  ;;  %v6955_v51 = vsel %vm1851_vm15, 1.0, %v12106_v4  ;;  %v10201_v29 = vpop.xlane.xlu1 %2725 }
 0x2c6   : > { %12373 = vst [vmem:[#allocation41_spill] sm:$0xff] %v10173_v21  ;;  %vm1852_vm1 = vcmp.lt.f32.partialorder %v1596_v58, 0.5  ;;  %3870 = vmatprep.mubr.f32.mxu1 %v3488_v26  ;;  %v1334_v39 = vsub.f32 %v8333_v0, %v12350_v25  ;;  %v10192_v60 = vmul.f32 %v6955_v51, %v8233_v15  ;;  %v12379_v58 = vld [vmem:[#allocation13_spill] sm:$0xff]  ;;  %vm3062_vm4 = vcmp.gt.f32.partialorder %v10201_v29, 0.0 }
 0x2c7   : > { %12374 = vst [vmem:[#allocation181_spill] sm:$0xff] %v10176_v28  ;;  %v2970_v31 = vadd.f32 %v10176_v28, %v10173_v21  ;;  %v6956_v27 = vsel %vm1852_vm1, 1.0, %v12106_v4  ;;  %v1589_v6 = vand.u32 2147483647, %v1333_v23  ;;  %v1343_v35 = vsub.f32 %v8245_v59, %v12379_v58  ;;  %v12380_v21 = vld [vmem:[#allocation58_spill] sm:$0xff] }
 0x2c8   : > { %12377 = vst [vmem:[#allocation59_spill] sm:$0xff] %v10192_v60  ;;  %v10195_v32 = vmul.f32 %v6956_v27, %v8228_v12  ;;  %v1590_v54 = vand.u32 2147483647, %v1334_v39  ;;  %v1344_v26 = vsub.f32 %v8247_v20, %v12379_v58  ;;  %v3487_v51 = vsel %vm3060_vm10, %v12380_v21, %v12325_v40  ;;  %v12381_v23 = vld [vmem:[#allocation50_spill] sm:$0xff] }
 0x2c9   : > { %2971 = vadd.xlane.f32.xlu1 %v2970_v31  ;;  %vm1845_vm2 = vcmp.lt.f32.partialorder %v1589_v6, 0.5  ;;  %v3490_v39 = vsel %vm3061_vm0, %v12381_v23, %v9530_v10  ;;  %v1599_v8 = vand.u32 2147483647, %v1343_v35  ;;  %3871 = vmatmul.mubr.f32.gmra.mrb[42].mxu1 %v3487_v51  ;;  %v1337_v21 = vsub.f32 %v8449_v17, %v12350_v25 }
 0x2ca   : > { %12378 = vst [vmem:[#allocation182_spill] sm:$0xff] %v10195_v32  ;;  %v2985_v27 = vadd.f32 %v10195_v32, %v10192_v60  ;;  %vm1846_vm3 = vcmp.lt.f32.partialorder %v1590_v54, 0.5  ;;  %v6949_v28 = vsel %vm1845_vm2, 1.0, %v12106_v4  ;;  %v1600_v42 = vand.u32 2147483647, %v1344_v26  ;;  %3875 = vmatprep.mubr.f32.mxu1 %v3490_v39  ;;  %v10240_v60 = vpop.xlane.xlu0 %2728 }
 0x2cb   : > { %v6950_v31 = vsel %vm1846_vm3, 1.0, %v12106_v4  ;;  %v10216_v6 = vmul.f32 %v6949_v28, %v8203_v13  ;;  %vm1855_vm5 = vcmp.lt.f32.partialorder %v1599_v8, 0.5  ;;  %v1338_v35 = vsub.f32 %v8458_v61, %v12350_v25 }
 0x2cc   : > { %2986 = vadd.xlane.f32.xlu0 %v2985_v27  ;;  %v10222_v23 = vmul.f32 %v6950_v31, %v8198_v38  ;;  %vm1856_vm6 = vcmp.lt.f32.partialorder %v1600_v42, 0.5  ;;  %v6959_v54 = vsel %vm1855_vm5, 1.0, %v12106_v4  ;;  %v1593_v28 = vand.u32 2147483647, %v1337_v21 }
 0x2cd   : > { %12382 = vst [vmem:[#allocation13_spill] sm:$0xff] %v10216_v6  ;;  %v1347_v26 = vsub.f32 %v8290_v63, %v12379_v58  ;;  %v6960_v39 = vsel %vm1856_vm6, 1.0, %v12106_v4  ;;  %v10233_v27 = vmul.f32 %v6959_v54, %v8175_v3  ;;  %v1594_v31 = vand.u32 2147483647, %v1338_v35 }
 0x2ce   : > { %v2976_v51 = vadd.f32 %v10222_v23, %v10216_v6  ;;  %v10236_v8 = vmul.f32 %v6960_v39, %v8170_v50  ;;  %vm1849_vm7 = vcmp.lt.f32.partialorder %v1593_v28, 0.5  ;;  %v1348_v42 = vsub.f32 %v8299_v7, %v12379_v58  ;;  %v12385_v6 = vld [vmem:[#allocation49_spill] sm:$0xff] }
 0x2cf   : > { %12383 = vst [vmem:[#allocation58_spill] sm:$0xff] %v10233_v27  ;;  %v1603_v21 = vand.u32 2147483647, %v1347_v26  ;;  %vm1850_vm8 = vcmp.lt.f32.partialorder %v1594_v31, 0.5  ;;  %v6953_v32 = vsel %vm1849_vm7, 1.0, %v12106_v4  ;;  %v3489_v54 = vsel %vm3061_vm0, %v12385_v6, %v9545_v53  ;;  %v12388_v31 = vld [vmem:[#allocation63_spill] sm:$0xff] }
 0x2d0   : > { %12384 = vst [vmem:[#allocation50_spill] sm:$0xff] %v10236_v8  ;;  %2977 = vadd.xlane.f32.xlu1 %v2976_v51  ;;  %v2991_v35 = vadd.f32 %v10236_v8, %v10233_v27  ;;  %v6954_v28 = vsel %vm1850_vm8, 1.0, %v12106_v4  ;;  %v10251_v39 = vmul.f32 %v6953_v32, %v8223_v47  ;;  %v1604_v26 = vand.u32 2147483647, %v1348_v42  ;;  %3876 = vmatmul.mubr.f32.gmra.mrb[44].mxu1 %v3489_v54  ;;  %v12391_v8 = vld [vmem:[#allocation62_spill] sm:$0xff] }
 0x2d1   : > { %v10254_v51 = vmul.f32 %v6954_v28, %v8218_v46  ;;  %vm1859_vm9 = vcmp.lt.f32.partialorder %v1603_v21, 0.5  ;;  %v3492_v45 = vsel %vm3062_vm4, %v12388_v31, %v9619_v52  ;;  %v1341_v6 = vsub.f32 %v8549_v37, %v12350_v25 }
 0x2d2   : > { %12386 = vst [vmem:[#allocation49_spill] sm:$0xff] %v10251_v39  ;;  %vm3063_vm10 = vcmp.gt.f32.partialorder %v10240_v60, 0.0  ;;  %2992 = vadd.xlane.f32.xlu0 %v2991_v35  ;;  %vm1860_vm11 = vcmp.lt.f32.partialorder %v1604_v26, 0.5  ;;  %v6963_v32 = vsel %vm1859_vm9, 1.0, %v12106_v4  ;;  %3880 = vmatprep.mubr.f32.mxu1 %v3492_v45  ;;  %v1342_v42 = vsub.f32 %v8561_v19, %v12350_v25  ;;  %v10279_v25 = vpop.xlane.xlu1 %2731 }
 0x2d3   : > { %12387 = vst [vmem:[#allocation183_spill] sm:$0xff] %v10254_v51  ;;  %v2982_v21 = vadd.f32 %v10254_v51, %v10251_v39  ;;  %v6964_v54 = vsel %vm1860_vm11, 1.0, %v12106_v4  ;;  %v10270_v28 = vmul.f32 %v6963_v32, %v8193_v55  ;;  %v1597_v31 = vand.u32 2147483647, %v1341_v6  ;;  %v12392_v6 = vld [vmem:[#allocation56_spill] sm:$0xff] }
 0x2d4   : > { %v10273_v27 = vmul.f32 %v6964_v54, %v8185_v34  ;;  %v1598_v35 = vand.u32 2147483647, %v1342_v42  ;;  %v1351_v26 = vsub.f32 %v8388_v36, %v12379_v58  ;;  %v1352_v45 = vsub.f32 %v8393_v16, %v12379_v58 }
 0x2d5   : > { %12389 = vst [vmem:[#allocation63_spill] sm:$0xff] %v10270_v28  ;;  %2983 = vadd.xlane.f32.xlu1 %v2982_v21  ;;  %vm1853_vm12 = vcmp.lt.f32.partialorder %v1597_v31, 0.5  ;;  %v3491_v32 = vsel %vm3062_vm4, %v12391_v8, %v9637_v49  ;;  %v3494_v42 = vsel %vm3063_vm10, %v12392_v6, %v9169_v30  ;;  %v1345_v8 = vsub.f32 %v8270_v18, %v12379_v58 }
 0x2d6   : > { %12390 = vst [vmem:[#allocation184_spill] sm:$0xff] %v10273_v27  ;;  %v2997_v54 = vadd.f32 %v10273_v27, %v10270_v28  ;;  %vm1854_vm13 = vcmp.lt.f32.partialorder %v1598_v35, 0.5  ;;  %v6957_v39 = vsel %vm1853_vm12, 1.0, %v12106_v4  ;;  %v1607_v51 = vand.u32 2147483647, %v1351_v26  ;;  %3881 = vmatmul.mubr.f32.gmra.mrb[46].mxu1 %v3491_v32  ;;  %v10318_v28 = vpop.xlane.xlu0 %2734 }
 0x2d7   : > { %v6958_v21 = vsel %vm1854_vm13, 1.0, %v12106_v4  ;;  %v10294_v31 = vmul.f32 %v6957_v39, %v8243_v57  ;;  %v1608_v29 = vand.u32 2147483647, %v1352_v45  ;;  %3885 = vmatprep.mubr.f32.mxu1 %v3494_v42  ;;  %vm3064_vm14 = vcmp.gt.f32.partialorder %v10279_v25, 0.0 }
 0x2d8   : > { %2998 = vadd.xlane.f32.xlu0 %v2997_v54  ;;  %v10300_v6 = vmul.f32 %v6958_v21, %v8238_v56  ;;  %vm1863_vm15 = vcmp.lt.f32.partialorder %v1607_v51, 0.5  ;;  %v1346_v35 = vsub.f32 %v8276_v44, %v12379_v58  ;;  %v1601_v39 = vand.u32 2147483647, %v1345_v8 }
 0x2d9   : > { %12393 = vst [vmem:[#allocation62_spill] sm:$0xff] %v10294_v31  ;;  %vm1864_vm0 = vcmp.lt.f32.partialorder %v1608_v29, 0.5  ;;  %v6967_v26 = vsel %vm1863_vm15, 1.0, %v12106_v4  ;;  %v1355_v45 = vsub.f32 %v8484_v48, %v12379_v58  ;;  %v1356_v29 = vsub.f32 %v8494_v33, %v12379_v58 }
 0x2da   : > { %12394 = vst [vmem:[#allocation56_spill] sm:$0xff] %v10300_v6  ;;  %v2988_v32 = vadd.f32 %v10300_v6, %v10294_v31  ;;  %v6968_v42 = vsel %vm1864_vm0, 1.0, %v12106_v4  ;;  %v10311_v54 = vmul.f32 %v6967_v26, %v8213_v14  ;;  %v1602_v21 = vand.u32 2147483647, %v1346_v35  ;;  %v12397_v31 = vld [vmem:[#allocation55_spill] sm:$0xff]  ;;  %v10357_v6 = vpop.xlane.xlu1 %2737 }
 0x2db   : > { %v10314_v51 = vmul.f32 %v6968_v42, %v8208_v2  ;;  %vm1857_vm1 = vcmp.lt.f32.partialorder %v1601_v39, 0.5  ;;  %v1611_v8 = vand.u32 2147483647, %v1355_v45  ;;  %v3493_v26 = vsel %vm3063_vm10, %v12397_v31, %v9166_v62 }
 0x2dc   : > { %12395 = vst [vmem:[#allocation185_spill] sm:$0xff] %v10311_v54  ;;  %2989 = vadd.xlane.f32.xlu1 %v2988_v32  ;;  %vm1858_vm2 = vcmp.lt.f32.partialorder %v1602_v21, 0.5  ;;  %v6961_v27 = vsel %vm1857_vm1, 1.0, %v12106_v4  ;;  %v1612_v45 = vand.u32 2147483647, %v1356_v29  ;;  %3886 = vmatmul.mubr.f32.gmra.mrb[48].mxu1 %v3493_v26  ;;  %v12399_v21 = vld [vmem:[#allocation67_spill] sm:$0xff]  ;;  %v1349_v31 = vsub.f32 %v8328_v11, %v12379_v58 }
 0x2dd   : > { %12396 = vst [vmem:[#allocation186_spill] sm:$0xff] %v10314_v51  ;;  %v3003_v35 = vadd.f32 %v10314_v51, %v10311_v54  ;;  %v6962_v39 = vsel %vm1858_vm2, 1.0, %v12106_v4  ;;  %v10329_v42 = vmul.f32 %v6961_v27, %v8180_v43  ;;  %vm1867_vm3 = vcmp.lt.f32.partialorder %v1611_v8, 0.5 }
 0x2de   : > { %v10332_v32 = vmul.f32 %v6962_v39, %v8165_v1  ;;  %v3496_v60 = vsel %vm3064_vm14, %v12399_v21, %v9197_v22  ;;  %vm3065_vm4 = vcmp.gt.f32.partialorder %v10318_v28, 0.0  ;;  %vm1868_vm5 = vcmp.lt.f32.partialorder %v1612_v45, 0.5  ;;  %v12402_v45 = vld [vmem:[#allocation14_spill] sm:$0xff] }
 0x2df   : > { %12398 = vst [vmem:[#allocation55_spill] sm:$0xff] %v10329_v42  ;;  %3004 = vadd.xlane.f32.xlu0 %v3003_v35  ;;  %v6971_v27 = vsel %vm1867_vm3, 1.0, %v12106_v4  ;;  %3890 = vmatprep.mubr.f32.mxu1 %v3496_v60  ;;  %v1350_v29 = vsub.f32 %v8333_v0, %v12379_v58  ;;  %v6972_v26 = vsel %vm1868_vm5, 1.0, %v12106_v4  ;;  %v1605_v21 = vand.u32 2147483647, %v1349_v31  ;;  %v12404_v31 = vld [vmem:[#allocation61_spill] sm:$0xff] }
 0x2e0   : > { %v2994_v8 = vadd.f32 %v10332_v32, %v10329_v42  ;;  %v10348_v39 = vmul.f32 %v6971_v27, %v8233_v15  ;;  %v10351_v54 = vmul.f32 %v6972_v26, %v8228_v12  ;;  %v1359_v51 = vsub.f32 %v8245_v59, %v12402_v45  ;;  %v12403_v42 = vld [vmem:[#allocation66_spill] sm:$0xff] }
 0x2e1   : > { %v1606_v35 = vand.u32 2147483647, %v1350_v29  ;;  %v1360_v60 = vsub.f32 %v8247_v20, %v12402_v45  ;;  %vm1861_vm6 = vcmp.lt.f32.partialorder %v1605_v21, 0.5  ;;  %v3495_v27 = vsel %vm3064_vm14, %v12403_v42, %v9193_v5 }
 0x2e2   : > { %12400 = vst [vmem:[#allocation67_spill] sm:$0xff] %v10348_v39  ;;  %12401 = vst [vmem:[#allocation187_spill] sm:$0xff] %v10351_v54  ;;  %2995 = vadd.xlane.f32.xlu1 %v2994_v8  ;;  %v3498_v29 = vsel %vm3065_vm4, %v12404_v31, %v9224_v41  ;;  %v3009_v59 = vadd.f32 %v10351_v54, %v10348_v39  ;;  %v6965_v20 = vsel %vm1861_vm6, 1.0, %v12106_v4  ;;  %v1615_v26 = vand.u32 2147483647, %v1359_v51  ;;  %v10396_v39 = vpop.xlane.xlu0 %2740  ;;  %v12405_v54 = vld [vmem:[#allocation60_spill] sm:$0xff] }
 0x2e3   : > { %vm1862_vm7 = vcmp.lt.f32.partialorder %v1606_v35, 0.5  ;;  %3891 = vmatmul.mubr.f32.gmra.mrb[50].mxu1 %v3495_v27  ;;  %v10372_v21 = vmul.f32 %v6965_v20, %v8203_v13  ;;  %v1616_v25 = vand.u32 2147483647, %v1360_v60  ;;  %v1353_v42 = vsub.f32 %v8449_v17, %v12379_v58 }
 0x2e4   : > { %v6966_v8 = vsel %vm1862_vm7, 1.0, %v12106_v4  ;;  %3895 = vmatprep.mubr.f32.mxu1 %v3498_v29  ;;  %vm3066_vm8 = vcmp.gt.f32.partialorder %v10357_v6, 0.0  ;;  %3010 = vadd.xlane.f32.xlu0 %v3009_v59  ;;  %vm1871_vm9 = vcmp.lt.f32.partialorder %v1615_v26, 0.5  ;;  %v1354_v51 = vsub.f32 %v8458_v61, %v12379_v58 }
 0x2e5   : > { %v10378_v31 = vmul.f32 %v6966_v8, %v8198_v38  ;;  %vm1872_vm10 = vcmp.lt.f32.partialorder %v1616_v25, 0.5  ;;  %v6975_v35 = vsel %vm1871_vm9, 1.0, %v12106_v4  ;;  %v1609_v27 = vand.u32 2147483647, %v1353_v42 }
 0x2e6   : > { %v1363_v60 = vsub.f32 %v8290_v63, %v12402_v45  ;;  %v6976_v20 = vsel %vm1872_vm10, 1.0, %v12106_v4  ;;  %v10389_v59 = vmul.f32 %v6975_v35, %v8175_v3  ;;  %v1610_v8 = vand.u32 2147483647, %v1354_v51 }
 0x2e7   : > { %v3000_v29 = vadd.f32 %v10378_v31, %v10372_v21  ;;  %v10392_v26 = vmul.f32 %v6976_v20, %v8170_v50  ;;  %vm1865_vm11 = vcmp.lt.f32.partialorder %v1609_v27, 0.5  ;;  %v1364_v25 = vsub.f32 %v8299_v7, %v12402_v45 }
 0x2e8   : > { %v1619_v42 = vand.u32 2147483647, %v1363_v60  ;;  %vm1866_vm12 = vcmp.lt.f32.partialorder %v1610_v8, 0.5  ;;  %v6969_v63 = vsel %vm1865_vm11, 1.0, %v12106_v4  ;;  %v3497_v3 = vsel %vm3065_vm4, %v12405_v54, %v9220_v9  ;;  %v12406_v60 = vld [vmem:[#allocation28_spill] sm:$0xff] }
 0x2e9   : > { %3001 = vadd.xlane.f32.xlu1 %v3000_v29  ;;  %v3015_v50 = vadd.f32 %v10392_v26, %v10389_v59  ;;  %v6970_v51 = vsel %vm1866_vm12, 1.0, %v12106_v4  ;;  %v10407_v35 = vmul.f32 %v6969_v63, %v8223_v47  ;;  %v1620_v7 = vand.u32 2147483647, %v1364_v25  ;;  %3896 = vmatmul.mubr.f32.gmra.mrb[52].mxu1 %v3497_v3  ;;  %v12407_v29 = vld [vmem:[#allocation70_spill] sm:$0xff] }
 0x2ea   : > { %v10410_v27 = vmul.f32 %v6970_v51, %v8218_v46  ;;  %vm1875_vm13 = vcmp.lt.f32.partialorder %v1619_v42, 0.5  ;;  %v3500_v28 = vsel %vm3066_vm8, %v12407_v29, %v12406_v60  ;;  %v1357_v54 = vsub.f32 %v8549_v37, %v12379_v58 }
 0x2eb   : > { %vm3067_vm14 = vcmp.gt.f32.partialorder %v10396_v39, 0.0  ;;  %3016 = vadd.xlane.f32.xlu0 %v3015_v50  ;;  %vm1876_vm15 = vcmp.lt.f32.partialorder %v1620_v7, 0.5  ;;  %v6979_v20 = vsel %vm1875_vm13, 1.0, %v12106_v4  ;;  %3900 = vmatprep.mubr.f32.mxu1 %v3500_v28  ;;  %v1358_v8 = vsub.f32 %v8561_v19, %v12379_v58  ;;  %v10435_v58 = vpop.xlane.xlu1 %2743  ;;  %v12409_v28 = vld [vmem:[#allocation69_spill] sm:$0xff] }
 0x2ec   : > { %v3006_v25 = vadd.f32 %v10410_v27, %v10407_v35  ;;  %v6980_v42 = vsel %vm1876_vm15, 1.0, %v12106_v4  ;;  %v10426_v63 = vmul.f32 %v6979_v20, %v8193_v55  ;;  %v1613_v3 = vand.u32 2147483647, %v1357_v54  ;;  %v12410_v54 = vld [vmem:[#allocation35_spill] sm:$0xff]  ;;  %v12411_v20 = vld [vmem:[#allocation65_spill] sm:$0xff] }
 0x2ed   : > { %v10429_v51 = vmul.f32 %v6980_v42, %v8185_v34  ;;  %v1614_v50 = vand.u32 2147483647, %v1358_v8  ;;  %v1367_v7 = vsub.f32 %v8388_v36, %v12402_v45  ;;  %v1368_v29 = vsub.f32 %v8393_v16, %v12402_v45 }
 0x2ee   : > { %12408 = vst [vmem:[#allocation14_spill] sm:$0xff] %v10426_v63  ;;  %3007 = vadd.xlane.f32.xlu1 %v3006_v25  ;;  %vm1869_vm0 = vcmp.lt.f32.partialorder %v1613_v3, 0.5  ;;  %v3499_v55 = vsel %vm3066_vm8, %v12409_v28, %v12310_v24  ;;  %v3502_v34 = vsel %vm3067_vm14, %v12411_v20, %v12410_v54  ;;  %v1361_v3 = vsub.f32 %v8270_v18, %v12402_v45 }
 0x2ef   : > { %v3021_v36 = vadd.f32 %v10429_v51, %v10426_v63  ;;  %vm1870_vm1 = vcmp.lt.f32.partialorder %v1614_v50, 0.5  ;;  %v6973_v16 = vsel %vm1869_vm0, 1.0, %v12106_v4  ;;  %v1623_v8 = vand.u32 2147483647, %v1367_v7  ;;  %3901 = vmatmul.mubr.f32.gmra.mrb[54].mxu1 %v3499_v55  ;;  %v12413_v63 = vld [vmem:[#allocation64_spill] sm:$0xff] }
 0x2f0   : > { %v6974_v25 = vsel %vm1870_vm1, 1.0, %v12106_v4  ;;  %v10450_v42 = vmul.f32 %v6973_v16, %v8243_v57  ;;  %v1624_v6 = vand.u32 2147483647, %v1368_v29  ;;  %3905 = vmatprep.mubr.f32.mxu1 %v3502_v34  ;;  %vm3068_vm2 = vcmp.gt.f32.partialorder %v10435_v58, 0.0 }
 0x2f1   : > { %3022 = vadd.xlane.f32.xlu0 %v3021_v36  ;;  %v10458_v50 = vmul.f32 %v6974_v25, %v8238_v56  ;;  %vm1879_vm3 = vcmp.lt.f32.partialorder %v1623_v8, 0.5  ;;  %v1362_v7 = vsub.f32 %v8276_v44, %v12402_v45  ;;  %v1617_v20 = vand.u32 2147483647, %v1361_v3  ;;  %v2747_v3 = vpop.xlane.xlu0 %2746 }
 0x2f2   : > { %vm1880_vm4 = vcmp.lt.f32.partialorder %v1624_v6, 0.5  ;;  %v6983_v29 = vsel %vm1879_vm3, 1.0, %v12106_v4  ;;  %v1371_v18 = vsub.f32 %v8484_v48, %v12402_v45  ;;  %v1372_v44 = vsub.f32 %v8494_v33, %v12402_v45 }
 0x2f3   : > { %v3012_v34 = vadd.f32 %v10458_v50, %v10450_v42  ;;  %v6984_v36 = vsel %vm1880_vm4, 1.0, %v12106_v4  ;;  %v10469_v16 = vmul.f32 %v6983_v29, %v8213_v14  ;;  %v1618_v8 = vand.u32 2147483647, %v1362_v7 }
 0x2f4   : > { %v10454_v28 = vpop.f32.mrb[0].mxu1  ;;  %v10472_v25 = vmul.f32 %v6984_v36, %v8208_v2  ;;  %vm1873_vm5 = vcmp.lt.f32.partialorder %v1617_v20, 0.5  ;;  %v1627_v6 = vand.u32 2147483647, %v1371_v18  ;;  %v1628_v33 = vand.u32 2147483647, %v1372_v44  ;;  %v2750_v20 = vpop.xlane.xlu1 %2749 }
 0x2f5   : > { %v3769_v55 = vpop.f32.mrb[1].mxu1  ;;  %3013 = vadd.xlane.f32.xlu1 %v3012_v34  ;;  %vm1874_vm6 = vcmp.lt.f32.partialorder %v1618_v8, 0.5  ;;  %v6977_v48 = vsel %vm1873_vm5, 1.0, %v12106_v4  ;;  %v12414_v34 = vld [vmem:[#allocation144_spill] sm:$0xff]  ;;  %v12415_v36 = vld [vmem:[#allocation74_spill] sm:$0xff]  ;;  %vm3069_vm8 = vcmp.gt.f32.partialorder %v2747_v3, 0.0  ;;  %v1366_v8 = vsub.f32 %v8333_v0, %v12402_v45 }
 0x2f6   : > { %v12412_v55 = vld [vmem:[#allocation33_spill] sm:$0xff]  ;;  %v3027_v7 = vadd.f32 %v10472_v25, %v10469_v16  ;;  %v6978_v2 = vsel %vm1874_vm6, 1.0, %v12106_v4  ;;  %v10485_v29 = vmul.f32 %v6977_v48, %v8180_v43  ;;  %vm1883_vm7 = vcmp.lt.f32.partialorder %v1627_v6, 0.5 }
 0x2f7   : > { %v3501_v14 = vsel %vm3067_vm14, %v12413_v63, %v12412_v55  ;;  %v10488_v18 = vmul.f32 %v6978_v2, %v8165_v1  ;;  %v3504_v39 = vsel %vm3068_vm2, %v12415_v36, %v12414_v34  ;;  %v1365_v63 = vsub.f32 %v8328_v11, %v12402_v45 }
 0x2f8   : > { %3906 = vmatmul.mubr.f32.gmra.mrb[56].mxu1 %v3501_v14  ;;  %3028 = vadd.xlane.f32.xlu0 %v3027_v7  ;;  %vm1884_vm9 = vcmp.lt.f32.partialorder %v1628_v33, 0.5  ;;  %v6987_v43 = vsel %vm1883_vm7, 1.0, %v12106_v4  ;;  %vm3070_vm10 = vcmp.gt.f32.partialorder %v2750_v20, 0.0  ;;  %v1622_v14 = vand.u32 2147483647, %v1366_v8  ;;  %v12418_v7 = vld [vmem:[#allocation73_spill] sm:$0xff] }
 0x2f9   : > { %3910 = vmatprep.mubr.f32.mxu1 %v3504_v39  ;;  %v3018_v1 = vadd.f32 %v10488_v18, %v10485_v29  ;;  %v6988_v44 = vsel %vm1884_vm9, 1.0, %v12106_v4  ;;  %v10503_v6 = vmul.f32 %v6987_v43, %v8233_v15  ;;  %v1621_v48 = vand.u32 2147483647, %v1365_v63  ;;  %v12419_v33 = vld [vmem:[#allocation3_spill] sm:$0xff]  ;;  %v2753_v43 = vpop.xlane.xlu0 %2752 }
 0x2fa   : > { %v10506_v11 = vmul.f32 %v6988_v44, %v8228_v12  ;;  %v3503_v2 = vsel %vm3068_vm2, %v12418_v7, %v12325_v40  ;;  %v3506_v15 = vsel %vm3069_vm8, %v12419_v33, %v9530_v10  ;;  %v1369_v36 = vsub.f32 %v8449_v17, %v12402_v45 }
 0x2fb   : > { %12416 = vst [vmem:[#allocation66_spill] sm:$0xff] %v10503_v6  ;;  %3019 = vadd.xlane.f32.xlu1 %v3018_v1  ;;  %vm1877_vm11 = vcmp.lt.f32.partialorder %v1621_v48, 0.5  ;;  %v1370_v12 = vsub.f32 %v8458_v61, %v12402_v45  ;;  %vm1878_vm12 = vcmp.lt.f32.partialorder %v1622_v14, 0.5  ;;  %v12420_v61 = vld [vmem:[#allocation68_spill] sm:$0xff]  ;;  %v12421_v14 = vld [vmem:[#allocation78_spill] sm:$0xff]  ;;  %vm3071_vm15 = vcmp.gt.f32.partialorder %v2753_v43, 0.0 }
 0x2fc   : > { %12417 = vst [vmem:[#allocation61_spill] sm:$0xff] %v10506_v11  ;;  %3911 = vmatmul.mubr.f32.gmra.mrb[58].mxu1 %v3503_v2  ;;  %v3033_v58 = vadd.f32 %v10506_v11, %v10503_v6  ;;  %v6981_v63 = vsel %vm1877_vm11, 1.0, %v12106_v4  ;;  %v6982_v8 = vsel %vm1878_vm12, 1.0, %v12106_v4  ;;  %v1625_v44 = vand.u32 2147483647, %v1369_v36 }
 0x2fd   : > { %3915 = vmatprep.mubr.f32.mxu1 %v3506_v15  ;;  %v10526_v1 = vmul.f32 %v6981_v63, %v8203_v13  ;;  %v1626_v48 = vand.u32 2147483647, %v1370_v12  ;;  %v10529_v17 = vmul.f32 %v6982_v8, %v8198_v38  ;;  %v3505_v7 = vsel %vm3069_vm8, %v12420_v61, %v9545_v53 }
 0x2fe   : > { %v10512_v0 = vpop.f32.mrb[2].mxu1  ;;  %3034 = vadd.xlane.f32.xlu0 %v3033_v58  ;;  %v3508_v2 = vsel %vm3070_vm10, %v12421_v14, %v9619_v52  ;;  %vm1881_vm13 = vcmp.lt.f32.partialorder %v1625_v44, 0.5  ;;  %v1373_v13 = vsub.f32 %v8549_v37, %v12402_v45  ;;  %v1374_v38 = vsub.f32 %v8561_v19, %v12402_v45  ;;  %v12424_v19 = vld [vmem:[#allocation77_spill] sm:$0xff]  ;;  %v12425_v44 = vld [vmem:[#allocation72_spill] sm:$0xff] }
 0x2ff   : > { %v3774_v39 = vpop.f32.mrb[3].mxu1  ;;  %vm1882_vm14 = vcmp.lt.f32.partialorder %v1626_v48, 0.5  ;;  %v3024_v3 = vadd.f32 %v10529_v17, %v10526_v1  ;;  %v6985_v36 = vsel %vm1881_vm13, 1.0, %v12106_v4  ;;  %v3507_v45 = vsel %vm3070_vm10, %v12424_v19, %v9637_v49  ;;  %v12432_v19 = vld [vmem:[#allocation75_spill] sm:$0xff] }
 0x300   : > { %3916 = vmatmul.mubr.f32.gmra.mrb[60].mxu1 %v3505_v7  ;;  %v6986_v12 = vsel %vm1882_vm14, 1.0, %v12106_v4  ;;  %v2756_v39 = vpop.xlane.xlu1 %2755  ;;  %v10548_v58 = vmul.f32 %v6985_v36, %v8223_v47  ;;  %v1629_v37 = vand.u32 2147483647, %v1373_v13  ;;  %v1630_v8 = vand.u32 2147483647, %v1374_v38  ;;  %v2759_v7 = vpop.xlane.xlu0 %2758 }
 0x301   : > { %3920 = vmatprep.mubr.f32.mxu1 %v3508_v2  ;;  %v10551_v63 = vmul.f32 %v6986_v12, %v8218_v46  ;;  %3025 = vadd.xlane.f32.xlu1 %v3024_v3  ;;  %v3510_v48 = vsel %vm3071_vm15, %v12425_v44, %v9169_v30  ;;  %vm3072_vm2 = vcmp.gt.f32.partialorder %v2756_v39, 0.0  ;;  %v12428_v2 = vld [vmem:[#allocation71_spill] sm:$0xff]  ;;  %vm3073_vm3 = vcmp.gt.f32.partialorder %v2759_v7, 0.0  ;;  %v12431_v12 = vld [vmem:[#allocation76_spill] sm:$0xff]  ;;  %v12433_v44 = vld [vmem:[#allocation85_spill] sm:$0xff] }
 0x302   : > { %v10537_v33 = vpop.f32.mrb[4].mxu1  ;;  %12422 = vst [vmem:[#allocation60_spill] sm:$0xff] %v10548_v58  ;;  %vm1885_vm0 = vcmp.lt.f32.partialorder %v1629_v37, 0.5  ;;  %vm1886_vm1 = vcmp.lt.f32.partialorder %v1630_v8, 0.5  ;;  %v3509_v13 = vsel %vm3071_vm15, %v12428_v2, %v9166_v62  ;;  %v3514_v37 = vsel %vm3073_vm3, %v12431_v12, %v9224_v41  ;;  %v10592_v2 = vld [vmem:[%s7759_s29] sm:$0xff]  ;;  %v10608_v12 = vld [vmem:[%s7759_s29 + $0x10] sm:$0xff] }
 0x303   : > { %v3779_v15 = vpop.f32.mrb[5].mxu1  ;;  %12423 = vst [vmem:[#allocation28_spill] sm:$0xff] %v10551_v63  ;;  %v3030_v47 = vadd.f32 %v10551_v63, %v10548_v58  ;;  %v6989_v46 = vsel %vm1885_vm0, 1.0, %v12106_v4  ;;  %v6990_v61 = vsel %vm1886_vm1, 1.0, %v12106_v4  ;;  %vm4606_vm7 = vcmask 31744   ;;  %v12585_v58 = vld [vmem:[#allocation49_spill] sm:$0xff] }
 0x304   : > { %3921 = vmatmul.mubr.f32.gmra.mrb[62].mxu1 %v3507_v45  ;;  %v10564_v20 = vmul.f32 %v6989_v46, %v8243_v57  ;;  %v10567_v14 = vmul.f32 %v6990_v61, %v8238_v56  ;;  %v12429_v15 = vld [vmem:[#allocation82_spill] sm:$0xff]  ;;  %v2762_v36 = vpop.xlane.xlu1 %2761  ;;  %v12430_v56 = vld [vmem:[#allocation81_spill] sm:$0xff]  ;;  %v2765_v8 = vpop.xlane.xlu0 %2764  ;;  %v3513_v45 = vsel %vm3073_vm3, %v12432_v19, %v9220_v9  ;;  %v12435_v61 = vld [vmem:[#allocation80_spill] sm:$0xff]  ;;  %vm4799_vm8 = vcmask 1041408  }
 0x305   : > { %3925 = vmatprep.mubr.f32.mxu1 %v3510_v48  ;;  %3031 = vadd.xlane.f32.xlu1 %v3030_v47  ;;  %v3512_v3 = vsel %vm3072_vm2, %v12429_v15, %v9197_v22  ;;  %v3511_v43 = vsel %vm3072_vm2, %v12430_v56, %v9193_v5  ;;  %vm3074_vm4 = vcmp.gt.f32.partialorder %v2762_v36, 0.0  ;;  %vm3075_vm5 = vcmp.gt.f32.partialorder %v2765_v8, 0.0  ;;  %v12434_v47 = vld [vmem:[#allocation84_spill] sm:$0xff]  ;;  %v10597_v15 = vld [vmem:[%s7759_s29 + $0x8] sm:$0xff]  ;;  %v12436_v56 = vld [vmem:[#allocation79_spill] sm:$0xff] }
 0x306   : > { %12426 = vst [vmem:[#allocation70_spill] sm:$0xff] %v10564_v20  ;;  %12427 = vst [vmem:[#allocation69_spill] sm:$0xff] %v10567_v14  ;;  %v3036_v57 = vadd.f32 %v10567_v14, %v10564_v20  ;;  %v3516_v48 = vsel %vm3074_vm4, %v12433_v44, %v12406_v60  ;;  %v3515_v46 = vsel %vm3074_vm4, %v12434_v47, %v12310_v24 }
 0x307   : > { %v3518_v7 = vsel %vm3075_vm5, %v12435_v61, %v12410_v54  ;;  %v12439_v61 = vld [vmem:[#allocation83_spill] sm:$0xff] }
 0x308   : > { %3926 = vmatmul.mubr.f32.gmra.mrb[64].mxu1 %v3509_v13  ;;  %v2768_v39 = vpop.xlane.xlu1 %2767  ;;  %v4406_v13 = vsub.f32 %v10454_v28, %v10592_v2  ;;  %v4408_v28 = vsub.f32 %v10537_v33, %v10608_v12 }
 0x309   : > { %3930 = vmatprep.mubr.f32.mxu1 %v3512_v3  ;;  %3037 = vadd.xlane.f32.xlu1 %v3036_v57  ;;  %v4407_v3 = vsub.f32 %v10512_v0, %v10597_v15  ;;  %vm3076_vm6 = vcmp.gt.f32.partialorder %v2768_v39, 0.0  ;;  %v2771_v57 = vpop.xlane.xlu0 %2770 }
 0x30a   : > { %v3782_v38 = vpop.f32.mrb[6].mxu1  ;;  %vm3077_vm9 = vcmp.gt.f32.partialorder %v2771_v57, 0.0 }
 0x30b   : > { %v3784_v4 = vpop.f32.mrb[7].mxu1  ;;  %v4534_v36 = vpack.c.bf16 %v4407_v3, %v4406_v13  ;;  %v12440_v3 = vld [vmem:[#allocation4_spill] sm:$0xff] }
 0x30c   : > { %3931 = vmatmul.mubr.f32.gmra.mrb[66].mxu1 %v3511_v43  ;;  %v4598_v4 = vld [vmem:[%s11794_s3] sm:$0x3]  ;;  %v3517_v43 = vsel %vm3075_vm5, %v12436_v56, %v12412_v55  ;;  %v2774_v33 = vpop.xlane.xlu1 %2773  ;;  %v3521_v57 = vsel %vm3077_vm9, %v12440_v3, %v9545_v53 }
 0x30d   : > { %3935 = vmatprep.mubr.f32.mxu1 %v3514_v37  ;;  %v10613_v37 = vld [vmem:[%s7759_s29 + $0x18] sm:$0xff]  ;;  %7260 = vmatprep.mubr.msk.bf16.mxu0 %vm4606_vm7, %v4534_v36  ;;  %v4801_v8 = vsel %vm4799_vm8, %v4598_v4, 0  ;;  %vm3078_vm10 = vcmp.gt.f32.partialorder %v2774_v33, 0.0  ;;  %v2777_v13 = vpop.xlane.xlu0 %2776  ;;  %v12442_v56 = vld [vmem:[#allocation92_spill] sm:$0xff] }
 0x30e   : > { %v4409_v0 = vsub.f32 %v3782_v38, %v10613_v37  ;;  %7616 = vmatprep.subr.msk.bf16.mxu0 %vm4799_vm8, %v4598_v4  ;;  %7617 = vmatprep.subr.msk.bf16.mxu1 %vm4799_vm8, %v4598_v4  ;;  %v12438_v38 = vld [vmem:[#allocation88_spill] sm:$0xff]  ;;  %v12441_v4 = vld [vmem:[#allocation93_spill] sm:$0xff]  ;;  %vm3079_vm11 = vcmp.gt.f32.partialorder %v2777_v13, 0.0 }
 0x30f   : > { %7259 = vmatpush3.bf16.msra.mxu0 %v4801_v8  ;;  %7615 = vmatpush3.bf16.msra.mxu1 %v4801_v8  ;;  %v3524_v39 = vsel %vm3078_vm10, %v12441_v4, %v9619_v52  ;;  %v10635_v8 = vld [vmem:[%s7759_s29 + $0x20] sm:$0xff] }
 0x310   : > { %3936 = vmatmul.mubr.f32.gmra.mrb[68].mxu1 %v3513_v45  ;;  %v12437_v45 = vld [vmem:[#allocation89_spill] sm:$0xff]  ;;  %v4535_v47 = vpack.c.bf16 %v4409_v0, %v4408_v28  ;;  %v2780_v36 = vpop.xlane.xlu1 %2779  ;;  %v12443_v28 = vld [vmem:[#allocation87_spill] sm:$0xff] }
 0x311   : > { %3940 = vmatprep.mubr.f32.mxu1 %v3516_v48  ;;  %v3520_v44 = vsel %vm3076_vm6, %v12437_v45, %v12414_v34  ;;  %v3526_v0 = vsel %vm3079_vm11, %v12443_v28, %v9169_v30  ;;  %vm3080_vm12 = vcmp.gt.f32.partialorder %v2780_v36, 0.0  ;;  %v12448_v28 = vld [vmem:[#allocation90_spill] sm:$0xff] }
 0x312   : > { %7261 = vmatmul.mubr.msk.bf16.vlgmr.msra.gmra.mrb[16].mxu0 %vm4606_vm7, %v4535_v47  ;;  %v10639_v47 = vld [vmem:[%s7759_s29 + $0x28] sm:$0xff] }
 0x314   : > { %3941 = vmatmul.mubr.f32.gmra.mrb[70].mxu1 %v3515_v46  ;;  %v3519_v46 = vsel %vm3076_vm6, %v12438_v38, %v12325_v40 }
 0x315   : > { %3945 = vmatprep.mubr.f32.mxu1 %v3518_v7  ;;  %v3522_v7 = vsel %vm3077_vm9, %v12439_v61, %v9530_v10 }
 0x318   : > { %3946 = vmatmul.mubr.f32.gmra.mrb[72].mxu1 %v3517_v43  ;;  %v3523_v43 = vsel %vm3078_vm10, %v12442_v56, %v9637_v49 }
 0x319   : > { %3950 = vmatprep.mubr.f32.mxu1 %v3520_v44  ;;  %v2783_v44 = vpop.xlane.xlu0 %2782 }
 0x31a   : > { %vm3081_vm13 = vcmp.gt.f32.partialorder %v2783_v44, 0.0 }
 0x31b   : > { %v3787_v19 = vpop.f32.mrb[8].mxu1 }
 0x31c   : > { %v3789_v48 = vpop.f32.mrb[9].mxu1  ;;  %3951 = vmatmul.mubr.f32.gmra.mrb[74].mxu1 %v3519_v46  ;;  %v12444_v46 = vld [vmem:[#allocation86_spill] sm:$0xff] }
 0x31d   : > { %3955 = vmatprep.mubr.f32.mxu1 %v3522_v7  ;;  %v4410_v48 = vsub.f32 %v3787_v19, %v10635_v8  ;;  %v3525_v61 = vsel %vm3079_vm11, %v12444_v46, %v9166_v62  ;;  %v12445_v7 = vld [vmem:[#allocation97_spill] sm:$0xff]  ;;  %v12446_v19 = vld [vmem:[#allocation96_spill] sm:$0xff] }
 0x31e   : > { %v3528_v13 = vsel %vm3080_vm12, %v12445_v7, %v9197_v22  ;;  %v3527_v4 = vsel %vm3080_vm12, %v12446_v19, %v9193_v5  ;;  %v12453_v19 = vld [vmem:[#allocation104_spill] sm:$0xff] }
 0x320   : > { %3956 = vmatmul.mubr.f32.gmra.mrb[76].mxu1 %v3521_v57  ;;  %v2786_v57 = vpop.xlane.xlu1 %2785 }
 0x321   : > { %3960 = vmatprep.mubr.f32.mxu1 %v3524_v39  ;;  %v12447_v39 = vld [vmem:[#allocation91_spill] sm:$0xff]  ;;  %vm3082_vm14 = vcmp.gt.f32.partialorder %v2786_v57, 0.0 }
 0x322   : > { %v3530_v56 = vsel %vm3081_vm13, %v12447_v39, %v9224_v41 }
 0x324   : > { %3961 = vmatmul.mubr.f32.gmra.mrb[78].mxu1 %v3523_v43  ;;  %v2789_v43 = vpop.xlane.xlu0 %2788  ;;  %v2792_v36 = vpop.xlane.xlu1 %2791 }
 0x325   : > { %3965 = vmatprep.mubr.f32.mxu1 %v3526_v0  ;;  %v3529_v0 = vsel %vm3081_vm13, %v12448_v28, %v9220_v9  ;;  %vm3083_vm15 = vcmp.gt.f32.partialorder %v2789_v43, 0.0  ;;  %vm3084_vm0 = vcmp.gt.f32.partialorder %v2792_v36, 0.0  ;;  %v12455_v28 = vld [vmem:[#allocation99_spill] sm:$0xff]  ;;  %v12457_v36 = vld [vmem:[#allocation108_spill] sm:$0xff] }
 0x328   : > { %3966 = vmatmul.mubr.f32.gmra.mrb[80].mxu1 %v3525_v61  ;;  %v12451_v61 = vld [vmem:[#allocation95_spill] sm:$0xff]  ;;  %v2798_v39 = vpop.xlane.xlu1 %2797 }
 0x329   : > { %v3792_v45 = vpop.f32.mrb[10].mxu1  ;;  %3970 = vmatprep.mubr.f32.mxu1 %v3528_v13  ;;  %v3534_v7 = vsel %vm3083_vm15, %v12451_v61, %v12410_v54  ;;  %v2795_v13 = vpop.xlane.xlu0 %2794  ;;  %vm3086_vm2 = vcmp.gt.f32.partialorder %v2798_v39, 0.0 }
 0x32a   : > { %v4411_v33 = vsub.f32 %v3792_v45, %v10639_v47  ;;  %v3794_v38 = vpop.f32.mrb[11].mxu1  ;;  %v12449_v45 = vld [vmem:[#allocation100_spill] sm:$0xff]  ;;  %vm3085_vm1 = vcmp.gt.f32.partialorder %v2795_v13, 0.0 }
 0x32b   : > { %v3532_v44 = vsel %vm3082_vm14, %v12449_v45, %v12406_v60  ;;  %v12450_v38 = vld [vmem:[#allocation5_spill] sm:$0xff] }
 0x32c   : > { %v4536_v3 = vpack.c.bf16 %v4411_v33, %v4410_v48  ;;  %3971 = vmatmul.mubr.f32.gmra.mrb[82].mxu1 %v3527_v4  ;;  %v3531_v46 = vsel %vm3082_vm14, %v12450_v38, %v12310_v24  ;;  %v3536_v4 = vsel %vm3084_vm0, %v12453_v19, %v12414_v34  ;;  %v3540_v38 = vsel %vm3086_vm2, %v12457_v36, %v9619_v52  ;;  %v2804_v61 = vpop.xlane.xlu1 %2803 }
 0x32d   : > { %3975 = vmatprep.mubr.f32.mxu1 %v3530_v56  ;;  %v12454_v56 = vld [vmem:[#allocation103_spill] sm:$0xff]  ;;  %v2801_v45 = vpop.xlane.xlu0 %2800  ;;  %vm3088_vm4 = vcmp.gt.f32.partialorder %v2804_v61, 0.0 }
 0x32e   : > { %7264 = vmatprep.mubr.msk.bf16.mxu0 %vm4606_vm7, %v4536_v3  ;;  %v12452_v3 = vld [vmem:[#allocation94_spill] sm:$0xff]  ;;  %v3535_v43 = vsel %vm3084_vm0, %v12454_v56, %v12325_v40  ;;  %vm3087_vm3 = vcmp.gt.f32.partialorder %v2801_v45, 0.0 }
 0x32f   : > { %v3533_v57 = vsel %vm3083_vm15, %v12452_v3, %v12412_v55  ;;  %v10678_v3 = vld [vmem:[%s7759_s29 + $0x38] sm:$0xff]  ;;  %v12459_v56 = vld [vmem:[#allocation102_spill] sm:$0xff] }
 0x330   : > { %3976 = vmatmul.mubr.f32.gmra.mrb[84].mxu1 %v3529_v0  ;;  %v3538_v0 = vsel %vm3085_vm1, %v12455_v28, %v9530_v10 }
 0x331   : > { %3980 = vmatprep.mubr.f32.mxu1 %v3532_v44  ;;  %v12456_v44 = vld [vmem:[#allocation98_spill] sm:$0xff] }
 0x334   : > { %v3797_v48 = vpop.f32.mrb[12].mxu1  ;;  %3981 = vmatmul.mubr.f32.gmra.mrb[86].mxu1 %v3531_v46 }
 0x335   : > { %v3799_v33 = vpop.f32.mrb[13].mxu1  ;;  %3985 = vmatprep.mubr.f32.mxu1 %v3534_v7  ;;  %v10674_v7 = vld [vmem:[%s7759_s29 + $0x30] sm:$0xff] }
 0x336   : > { %v3537_v33 = vsel %vm3085_vm1, %v12456_v44, %v9545_v53  ;;  %v4412_v13 = vsub.f32 %v3797_v48, %v10674_v7  ;;  %v12460_v48 = vld [vmem:[#allocation101_spill] sm:$0xff] }
 0x337   : > { %v3541_v44 = vsel %vm3087_vm3, %v12460_v48, %v9166_v62 }
 0x338   : > { %3986 = vmatmul.mubr.f32.gmra.mrb[88].mxu1 %v3533_v57 }
 0x339   : > { %3990 = vmatprep.mubr.f32.mxu1 %v3536_v4  ;;  %v12458_v4 = vld [vmem:[#allocation107_spill] sm:$0xff] }
 0x33a   : > { %v3539_v39 = vsel %vm3086_vm2, %v12458_v4, %v9637_v49 }
 0x33c   : > { %3991 = vmatmul.mubr.f32.gmra.mrb[90].mxu1 %v3535_v43  ;;  %v3542_v43 = vsel %vm3087_vm3, %v12459_v56, %v9169_v30  ;;  %v12464_v56 = vld [vmem:[#allocation105_spill] sm:$0xff] }
 0x33d   : > { %3995 = vmatprep.mubr.f32.mxu1 %v3538_v0  ;;  %v2807_v0 = vpop.xlane.xlu0 %2806 }
 0x33e   : > { %vm3089_vm5 = vcmp.gt.f32.partialorder %v2807_v0, 0.0 }
 0x340   : > { %3996 = vmatmul.mubr.f32.gmra.mrb[92].mxu1 %v3537_v33  ;;  %v12461_v33 = vld [vmem:[#allocation112_spill] sm:$0xff] }
 0x341   : > { %4000 = vmatprep.mubr.f32.mxu1 %v3540_v38  ;;  %v3544_v36 = vsel %vm3088_vm4, %v12461_v33, %v9197_v22  ;;  %v2813_v45 = vpop.xlane.xlu0 %2812 }
 0x342   : > { %vm3091_vm8 = vcmp.gt.f32.partialorder %v2813_v45, 0.0 }
 0x344   : > { %4001 = vmatmul.mubr.f32.gmra.mrb[94].mxu1 %v3539_v39 }
 0x345   : > { %v3802_v46 = vpop.f32.mrb[14].mxu1  ;;  %4005 = vmatprep.mubr.f32.mxu1 %v3542_v43  ;;  %v3545_v43 = vsel %vm3089_vm5, %v12464_v56, %v9220_v9  ;;  %v12468_v56 = vld [vmem:[#allocation109_spill] sm:$0xff] }
 0x346   : > { %v4413_v57 = vsub.f32 %v3802_v46, %v10678_v3  ;;  %v3804_v19 = vpop.f32.mrb[15].mxu1  ;;  %v3549_v45 = vsel %vm3091_vm8, %v12468_v56, %v12412_v55 }
 0x347   : > { %v2810_v19 = vpop.xlane.xlu1 %2809 }
 0x348   : > { %v4537_v28 = vpack.c.bf16 %v4413_v57, %v4412_v13  ;;  %4006 = vmatmul.mubr.f32.gmra.mrb[96].mxu1 %v3541_v44  ;;  %v12462_v13 = vld [vmem:[#allocation111_spill] sm:$0xff]  ;;  %v12463_v57 = vld [vmem:[#allocation106_spill] sm:$0xff]  ;;  %vm3090_vm6 = vcmp.gt.f32.partialorder %v2810_v19, 0.0 }
 0x349   : > { %4010 = vmatprep.mubr.f32.mxu1 %v3544_v36  ;;  %v3543_v61 = vsel %vm3088_vm4, %v12462_v13, %v9193_v5  ;;  %v3546_v4 = vsel %vm3089_vm5, %v12463_v57, %v9224_v41  ;;  %v12465_v44 = vld [vmem:[#allocation115_spill] sm:$0xff]  ;;  %v12466_v19 = vld [vmem:[#allocation114_spill] sm:$0xff] }
 0x34a   : > { %7265 = vmatmul.mubr.msk.bf16.gmra.mrb[20].mxu0 %vm4606_vm7, %v4537_v28  ;;  %v3548_v33 = vsel %vm3090_vm6, %v12465_v44, %v12406_v60  ;;  %v3547_v13 = vsel %vm3090_vm6, %v12466_v19, %v12310_v24 }
 0x34b   : > { %v3807_v38 = vpop.f32.mrb[16].mxu1 }
 0x34c   : > { %v3809_v46 = vpop.f32.mrb[17].mxu1  ;;  %4011 = vmatmul.mubr.f32.gmra.mrb[98].mxu1 %v3543_v61  ;;  %v4414_v28 = vsub.f32 %v3807_v38, %v10592_v2  ;;  %v12467_v61 = vld [vmem:[#allocation110_spill] sm:$0xff] }
 0x34d   : > { %4015 = vmatprep.mubr.f32.mxu1 %v3546_v4  ;;  %v2816_v46 = vpop.xlane.xlu1 %2815  ;;  %v3550_v38 = vsel %vm3091_vm8, %v12467_v61, %v12410_v54  ;;  %v2819_v4 = vpop.xlane.xlu0 %2818 }
 0x34e   : > { %vm3092_vm9 = vcmp.gt.f32.partialorder %v2816_v46, 0.0  ;;  %vm3093_vm10 = vcmp.gt.f32.partialorder %v2819_v4, 0.0  ;;  %v12472_v4 = vld [vmem:[#allocation6_spill] sm:$0xff] }
 0x34f   : > { %v3553_v56 = vsel %vm3093_vm10, %v12472_v4, %v9545_v53 }
 0x350   : > { %4016 = vmatmul.mubr.f32.gmra.mrb[100].mxu1 %v3545_v43  ;;  %v12469_v43 = vld [vmem:[#allocation116_spill] sm:$0xff] }
 0x351   : > { %v3812_v39 = vpop.f32.mrb[18].mxu1  ;;  %4020 = vmatprep.mubr.f32.mxu1 %v3548_v33 }
 0x352   : > { %v4415_v0 = vsub.f32 %v3812_v39, %v10597_v15  ;;  %v3814_v48 = vpop.f32.mrb[19].mxu1 }
 0x353   : > { %v12470_v48 = vld [vmem:[#allocation16_spill] sm:$0xff] }
 0x354   : > { %v4538_v36 = vpack.c.bf16 %v4415_v0, %v4414_v28  ;;  %4021 = vmatmul.mubr.f32.gmra.mrb[102].mxu1 %v3547_v13  ;;  %v3552_v28 = vsel %vm3092_vm9, %v12469_v43, %v12414_v34  ;;  %v2822_v0 = vpop.xlane.xlu1 %2821  ;;  %v3551_v44 = vsel %vm3092_vm9, %v12470_v48, %v12325_v40  ;;  %v12474_v48 = vld [vmem:[#allocation21_spill] sm:$0xff] }
 0x355   : > { %4025 = vmatprep.mubr.f32.mxu1 %v3550_v38  ;;  %vm3094_vm11 = vcmp.gt.f32.partialorder %v2822_v0, 0.0  ;;  %v2825_v38 = vpop.xlane.xlu0 %2824 }
 0x356   : > { %7268 = vmatprep.mubr.msk.bf16.mxu0 %vm4606_vm7, %v4538_v36  ;;  %v12471_v36 = vld [vmem:[#allocation113_spill] sm:$0xff]  ;;  %vm3095_vm12 = vcmp.gt.f32.partialorder %v2825_v38, 0.0 }
 0x357   : > { %v3554_v46 = vsel %vm3093_vm10, %v12471_v36, %v9530_v10 }
 0x358   : > { %v3817_v57 = vpop.f32.mrb[20].mxu1  ;;  %4026 = vmatmul.mubr.f32.gmra.mrb[104].mxu1 %v3549_v45  ;;  %v12473_v45 = vld [vmem:[#allocation22_spill] sm:$0xff] }
 0x359   : > { %v3819_v39 = vpop.f32.mrb[21].mxu1  ;;  %4030 = vmatprep.mubr.f32.mxu1 %v3552_v28  ;;  %v4416_v19 = vsub.f32 %v3817_v57, %v10608_v12  ;;  %v3556_v43 = vsel %vm3094_vm11, %v12473_v45, %v9619_v52  ;;  %v2828_v28 = vpop.xlane.xlu1 %2827 }
 0x35a   : > { %vm3096_vm13 = vcmp.gt.f32.partialorder %v2828_v28, 0.0  ;;  %v12478_v28 = vld [vmem:[#allocation119_spill] sm:$0xff] }
 0x35c   : > { %4031 = vmatmul.mubr.f32.gmra.mrb[106].mxu1 %v3551_v44  ;;  %v3555_v44 = vsel %vm3094_vm11, %v12474_v48, %v9637_v49  ;;  %v3559_v48 = vsel %vm3096_vm13, %v12478_v28, %v9193_v5 }
 0x35d   : > { %v3822_v33 = vpop.f32.mrb[22].mxu1  ;;  %4035 = vmatprep.mubr.f32.mxu1 %v3554_v46  ;;  %v2831_v46 = vpop.xlane.xlu0 %2830 }
 0x35e   : > { %v4417_v13 = vsub.f32 %v3822_v33, %v10613_v37  ;;  %v3824_v61 = vpop.f32.mrb[23].mxu1  ;;  %v12475_v33 = vld [vmem:[#allocation15_spill] sm:$0xff]  ;;  %vm3097_vm14 = vcmp.gt.f32.partialorder %v2831_v46, 0.0 }
 0x35f   : > { %v3558_v36 = vsel %vm3095_vm12, %v12475_v33, %v9169_v30  ;;  %v12477_v61 = vld [vmem:[#allocation120_spill] sm:$0xff]  ;;  %v12480_v46 = vld [vmem:[#allocation19_spill] sm:$0xff] }
 0x360   : > { %v4539_v39 = vpack.c.bf16 %v4417_v13, %v4416_v19  ;;  %4036 = vmatmul.mubr.f32.gmra.mrb[108].mxu1 %v3553_v56  ;;  %v12476_v19 = vld [vmem:[#allocation2_spill] sm:$0xff]  ;;  %v3560_v38 = vsel %vm3096_vm13, %v12477_v61, %v9197_v22 }
 0x361   : > { %4040 = vmatprep.mubr.f32.mxu1 %v3556_v43  ;;  %v3557_v13 = vsel %vm3095_vm12, %v12476_v19, %v9166_v62  ;;  %v2834_v43 = vpop.xlane.xlu1 %2833 }
 0x362   : > { %7269 = vmatmul.mubr.msk.bf16.gmra.mrb[24].mxu0 %vm4606_vm7, %v4539_v39  ;;  %vm3098_vm15 = vcmp.gt.f32.partialorder %v2834_v43, 0.0 }
 0x364   : > { %v3827_v57 = vpop.f32.mrb[24].mxu1  ;;  %4041 = vmatmul.mubr.f32.gmra.mrb[110].mxu1 %v3555_v44 }
 0x365   : > { %v3829_v0 = vpop.f32.mrb[25].mxu1  ;;  %4045 = vmatprep.mubr.f32.mxu1 %v3558_v36  ;;  %v4418_v4 = vsub.f32 %v3827_v57, %v10635_v8  ;;  %v2837_v36 = vpop.xlane.xlu0 %2836  ;;  %v3561_v57 = vsel %vm3097_vm14, %v12480_v46, %v9220_v9 }
 0x366   : > { %v12479_v0 = vld [vmem:[#allocation20_spill] sm:$0xff]  ;;  %vm3099_vm0 = vcmp.gt.f32.partialorder %v2837_v36, 0.0  ;;  %v12484_v36 = vld [vmem:[#allocation117_spill] sm:$0xff] }
 0x367   : > { %v3562_v33 = vsel %vm3097_vm14, %v12479_v0, %v9224_v41  ;;  %v3565_v46 = vsel %vm3099_vm0, %v12484_v36, %v12412_v55 }
 0x368   : > { %4046 = vmatmul.mubr.f32.gmra.mrb[112].mxu1 %v3557_v13  ;;  %v12481_v13 = vld [vmem:[#allocation123_spill] sm:$0xff] }
 0x369   : > { %4050 = vmatprep.mubr.f32.mxu1 %v3560_v38  ;;  %v3564_v61 = vsel %vm3098_vm15, %v12481_v13, %v12406_v60 }
 0x36a   : > { %v3832_v39 = vpop.f32.mrb[26].mxu1 }
 0x36b   : > { %v4419_v56 = vsub.f32 %v3832_v39, %v10639_v47  ;;  %v3834_v45 = vpop.f32.mrb[27].mxu1  ;;  %v2840_v39 = vpop.xlane.xlu1 %2839 }
 0x36c   : > { %4051 = vmatmul.mubr.f32.gmra.mrb[114].mxu1 %v3559_v48  ;;  %v12483_v45 = vld [vmem:[#allocation118_spill] sm:$0xff]  ;;  %vm3100_vm1 = vcmp.gt.f32.partialorder %v2840_v39, 0.0  ;;  %v2843_v48 = vpop.xlane.xlu0 %2842 }
 0x36d   : > { %v4540_v44 = vpack.c.bf16 %v4419_v56, %v4418_v4  ;;  %4055 = vmatprep.mubr.f32.mxu1 %v3562_v33  ;;  %v12482_v4 = vld [vmem:[#allocation7_spill] sm:$0xff]  ;;  %v3566_v43 = vsel %vm3099_vm0, %v12483_v45, %v12410_v54  ;;  %vm3101_vm2 = vcmp.gt.f32.partialorder %v2843_v48, 0.0  ;;  %v12486_v39 = vld [vmem:[#allocation126_spill] sm:$0xff] }
 0x36e   : > { %v3563_v56 = vsel %vm3098_vm15, %v12482_v4, %v12310_v24  ;;  %v3567_v4 = vsel %vm3100_vm1, %v12486_v39, %v12325_v40  ;;  %v12489_v48 = vld [vmem:[#allocation131_spill] sm:$0xff] }
 0x36f   : > { %7272 = vmatprep.mubr.msk.bf16.mxu0 %vm4606_vm7, %v4540_v44 }
 0x370   : > { %4056 = vmatmul.mubr.f32.gmra.mrb[116].mxu1 %v3561_v57  ;;  %v12485_v57 = vld [vmem:[#allocation127_spill] sm:$0xff] }
 0x371   : > { %v3837_v19 = vpop.f32.mrb[28].mxu1  ;;  %4060 = vmatprep.mubr.f32.mxu1 %v3564_v61  ;;  %v3568_v13 = vsel %vm3100_vm1, %v12485_v57, %v12414_v34  ;;  %v12490_v57 = vld [vmem:[#allocation130_spill] sm:$0xff] }
 0x372   : > { %v3839_v38 = vpop.f32.mrb[29].mxu1  ;;  %v4420_v44 = vsub.f32 %v3837_v19, %v10674_v7  ;;  %v12487_v19 = vld [vmem:[#allocation122_spill] sm:$0xff] }
 0x373   : > { %v2846_v38 = vpop.xlane.xlu1 %2845 }
 0x374   : > { %4061 = vmatmul.mubr.f32.gmra.mrb[118].mxu1 %v3563_v56  ;;  %v3570_v56 = vsel %vm3101_vm2, %v12487_v19, %v9530_v10  ;;  %vm3102_vm3 = vcmp.gt.f32.partialorder %v2846_v38, 0.0 }
 0x375   : > { %4065 = vmatprep.mubr.f32.mxu1 %v3566_v43 }
 0x376   : > { %v3842_v28 = vpop.f32.mrb[30].mxu1 }
 0x377   : > { %v4421_v0 = vsub.f32 %v3842_v28, %v10678_v3  ;;  %v3844_v33 = vpop.f32.mrb[31].mxu1  ;;  %v2849_v28 = vpop.xlane.xlu0 %2848 }
 0x378   : > { %4066 = vmatmul.mubr.f32.gmra.mrb[120].mxu1 %v3565_v46  ;;  %v12488_v33 = vld [vmem:[#allocation121_spill] sm:$0xff]  ;;  %vm3103_vm4 = vcmp.gt.f32.partialorder %v2849_v28, 0.0  ;;  %v2852_v36 = vpop.xlane.xlu1 %2851  ;;  %v12492_v28 = vld [vmem:[#allocation124_spill] sm:$0xff] }
 0x379   : > { %v4541_v61 = vpack.c.bf16 %v4421_v0, %v4420_v44  ;;  %4070 = vmatprep.mubr.f32.mxu1 %v3568_v13  ;;  %v3569_v44 = vsel %vm3101_vm2, %v12488_v33, %v9545_v53  ;;  %v3572_v0 = vsel %vm3102_vm3, %v12489_v48, %v9619_v52  ;;  %v3571_v13 = vsel %vm3102_vm3, %v12490_v57, %v9637_v49  ;;  %v12494_v57 = vld [vmem:[#allocation134_spill] sm:$0xff] }
 0x37a   : > { %vm3104_vm5 = vcmp.gt.f32.partialorder %v2852_v36, 0.0  ;;  %v3573_v33 = vsel %vm3103_vm4, %v12492_v28, %v9166_v62 }
 0x37b   : > { %7273 = vmatmul.mubr.msk.bf16.gmra.mrb[28].mxu0 %vm4606_vm7, %v4541_v61  ;;  %v3575_v36 = vsel %vm3104_vm5, %v12494_v57, %v9193_v5 }
 0x37c   : > { %4071 = vmatmul.mubr.f32.gmra.mrb[122].mxu1 %v3567_v4  ;;  %v12491_v4 = vld [vmem:[#allocation125_spill] sm:$0xff] }
 0x37d   : > { %v3847_v45 = vpop.f32.mrb[32].mxu1  ;;  %4075 = vmatprep.mubr.f32.mxu1 %v3570_v56  ;;  %v3574_v19 = vsel %vm3103_vm4, %v12491_v4, %v9169_v30 }
 0x37e   : > { %v3849_v43 = vpop.f32.mrb[33].mxu1  ;;  %v4422_v61 = vsub.f32 %v3847_v45, %v10592_v2 }
 0x37f   : > { %v2855_v43 = vpop.xlane.xlu0 %2854 }
 0x380   : > { %4076 = vmatmul.mubr.f32.gmra.mrb[124].mxu1 %v3569_v44  ;;  %v12493_v44 = vld [vmem:[#allocation135_spill] sm:$0xff]  ;;  %vm3105_vm6 = vcmp.gt.f32.partialorder %v2855_v43, 0.0 }
 0x381   : > { %4080 = vmatprep.mubr.f32.mxu1 %v3572_v0  ;;  %v3576_v45 = vsel %vm3104_vm5, %v12493_v44, %v9197_v22  ;;  %v2858_v0 = vpop.xlane.xlu1 %2857 }
 0x382   : > { %vm3106_vm8 = vcmp.gt.f32.partialorder %v2858_v0, 0.0  ;;  %v12498_v0 = vld [vmem:[#allocation8_spill] sm:$0xff] }
 0x383   : > { %v3852_v46 = vpop.f32.mrb[34].mxu1  ;;  %v3579_v57 = vsel %vm3106_vm8, %v12498_v0, %v12310_v24 }
 0x384   : > { %v4423_v38 = vsub.f32 %v3852_v46, %v10597_v15  ;;  %v3854_v39 = vpop.f32.mrb[35].mxu1  ;;  %4081 = vmatmul.mubr.f32.gmra.mrb[126].mxu1 %v3571_v13  ;;  %v12495_v13 = vld [vmem:[#allocation129_spill] sm:$0xff] }
 0x385   : > { %4085 = vmatprep.mubr.f32.mxu1 %v3574_v19  ;;  %v12496_v39 = vld [vmem:[#allocation128_spill] sm:$0xff] }
 0x386   : > { %v4542_v56 = vpack.c.bf16 %v4423_v38, %v4422_v61  ;;  %v3578_v61 = vsel %vm3105_vm6, %v12495_v13, %v9224_v41  ;;  %v2861_v38 = vpop.xlane.xlu0 %2860  ;;  %v3577_v4 = vsel %vm3105_vm6, %v12496_v39, %v9220_v9  ;;  %v12500_v39 = vld [vmem:[#allocation132_spill] sm:$0xff] }
 0x387   : > { %vm3107_vm9 = vcmp.gt.f32.partialorder %v2861_v38, 0.0 }
 0x388   : > { %7276 = vmatprep.mubr.msk.bf16.mxu0 %vm4606_vm7, %v4542_v56  ;;  %4086 = vmatmul.mubr.f32.gmra.mrb[128].mxu1 %v3573_v33  ;;  %v12497_v56 = vld [vmem:[#allocation138_spill] sm:$0xff] }
 0x389   : > { %4090 = vmatprep.mubr.f32.mxu1 %v3576_v45  ;;  %v3580_v43 = vsel %vm3106_vm8, %v12497_v56, %v12406_v60  ;;  %v2864_v45 = vpop.xlane.xlu1 %2863 }
 0x38a   : > { %v3857_v48 = vpop.f32.mrb[36].mxu1  ;;  %vm3108_vm10 = vcmp.gt.f32.partialorder %v2864_v45, 0.0 }
 0x38b   : > { %v3859_v46 = vpop.f32.mrb[37].mxu1  ;;  %v4424_v28 = vsub.f32 %v3857_v48, %v10608_v12 }
 0x38c   : > { %4091 = vmatmul.mubr.f32.gmra.mrb[130].mxu1 %v3575_v36  ;;  %v12499_v36 = vld [vmem:[#allocation133_spill] sm:$0xff] }
 0x38d   : > { %4095 = vmatprep.mubr.f32.mxu1 %v3578_v61  ;;  %v3582_v13 = vsel %vm3107_vm9, %v12499_v36, %v12410_v54  ;;  %v2867_v61 = vpop.xlane.xlu0 %2866 }
 0x38e   : > { %vm3109_vm11 = vcmp.gt.f32.partialorder %v2867_v61, 0.0  ;;  %v12504_v61 = vld [vmem:[#allocation136_spill] sm:$0xff] }
 0x38f   : > { %v3862_v19 = vpop.f32.mrb[38].mxu1 }
 0x390   : > { %4096 = vmatmul.mubr.f32.gmra.mrb[132].mxu1 %v3577_v4  ;;  %v4425_v33 = vsub.f32 %v3862_v19, %v10613_v37  ;;  %v3864_v44 = vpop.f32.mrb[39].mxu1  ;;  %v3581_v4 = vsel %vm3107_vm9, %v12500_v39, %v12412_v55  ;;  %v12501_v19 = vld [vmem:[#allocation143_spill] sm:$0xff]  ;;  %v3585_v39 = vsel %vm3109_vm11, %v12504_v61, %v9545_v53 }
 0x391   : > { %4100 = vmatprep.mubr.f32.mxu1 %v3580_v43  ;;  %v3584_v56 = vsel %vm3108_vm10, %v12501_v19, %v12414_v34  ;;  %v2870_v43 = vpop.xlane.xlu1 %2869  ;;  %v12503_v44 = vld [vmem:[#allocation137_spill] sm:$0xff] }
 0x392   : > { %v4543_v46 = vpack.c.bf16 %v4425_v33, %v4424_v28  ;;  %v12502_v28 = vld [vmem:[#allocation142_spill] sm:$0xff]  ;;  %v3586_v45 = vsel %vm3109_vm11, %v12503_v44, %v9530_v10  ;;  %vm3110_vm12 = vcmp.gt.f32.partialorder %v2870_v43, 0.0  ;;  %v12506_v43 = vld [vmem:[#allocation147_spill] sm:$0xff]  ;;  %vm5741_vm11 = vcmask 1043456  }
 0x393   : > { %v3583_v33 = vsel %vm3108_vm10, %v12502_v28, %v12325_v40 }
 0x394   : > { %4101 = vmatmul.mubr.f32.gmra.mrb[134].mxu1 %v3579_v57  ;;  %7277 = vmatmul.mubr.msk.bf16.gmra.mrb[32].mxu0 %vm4606_vm7, %v4543_v46 }
 0x395   : > { %4105 = vmatprep.mubr.f32.mxu1 %v3582_v13  ;;  %v2873_v13 = vpop.xlane.xlu0 %2872 }
 0x396   : > { %vm3111_vm13 = vcmp.gt.f32.partialorder %v2873_v13, 0.0 }
 0x397   : > { %v3867_v48 = vpop.f32.mrb[40].mxu1 }
 0x398   : > { %v3869_v38 = vpop.f32.mrb[41].mxu1  ;;  %4106 = vmatmul.mubr.f32.gmra.mrb[136].mxu1 %v3581_v4  ;;  %v4426_v0 = vsub.f32 %v3867_v48, %v10635_v8  ;;  %v3587_v48 = vsel %vm3110_vm12, %v12506_v43, %v9637_v49 }
 0x399   : > { %4110 = vmatprep.mubr.f32.mxu1 %v3584_v56  ;;  %v12505_v38 = vld [vmem:[#allocation148_spill] sm:$0xff]  ;;  %v2876_v56 = vpop.xlane.xlu1 %2875 }
 0x39a   : > { %v3588_v19 = vsel %vm3110_vm12, %v12505_v38, %v9619_v52  ;;  %vm3112_vm14 = vcmp.gt.f32.partialorder %v2876_v56, 0.0  ;;  %v12510_v56 = vld [vmem:[#allocation43_spill] sm:$0xff] }
 0x39b   : > { %v3591_v43 = vsel %vm3112_vm14, %v12510_v56, %v9193_v5 }
 0x39c   : > { %4111 = vmatmul.mubr.f32.gmra.mrb[138].mxu1 %v3583_v33  ;;  %v3872_v46 = vpop.f32.mrb[42].mxu1  ;;  %v12507_v33 = vld [vmem:[#allocation140_spill] sm:$0xff] }
 0x39d   : > { %4115 = vmatprep.mubr.f32.mxu1 %v3586_v45  ;;  %v4427_v57 = vsub.f32 %v3872_v46, %v10639_v47  ;;  %v3874_v36 = vpop.f32.mrb[43].mxu1  ;;  %v3590_v44 = vsel %vm3111_vm13, %v12507_v33, %v9169_v30  ;;  %v2879_v46 = vpop.xlane.xlu0 %2878 }
 0x39e   : > { %v12509_v36 = vld [vmem:[#allocation150_spill] sm:$0xff]  ;;  %vm3113_vm15 = vcmp.gt.f32.partialorder %v2879_v46, 0.0  ;;  %v12512_v46 = vld [vmem:[#allocation145_spill] sm:$0xff] }
 0x39f   : > { %v4544_v4 = vpack.c.bf16 %v4427_v57, %v4426_v0  ;;  %v12508_v0 = vld [vmem:[#allocation139_spill] sm:$0xff]  ;;  %v3592_v13 = vsel %vm3112_vm14, %v12509_v36, %v9197_v22 }
 0x3a0   : > { %4116 = vmatmul.mubr.f32.gmra.mrb[140].mxu1 %v3585_v39  ;;  %v3589_v57 = vsel %vm3111_vm13, %v12508_v0, %v9166_v62  ;;  %v2882_v39 = vpop.xlane.xlu1 %2881  ;;  %v3593_v0 = vsel %vm3113_vm15, %v12512_v46, %v9220_v9 }
 0x3a1   : > { %4120 = vmatprep.mubr.f32.mxu1 %v3588_v19  ;;  %7280 = vmatprep.mubr.msk.bf16.mxu0 %vm4606_vm7, %v4544_v4  ;;  %vm3114_vm0 = vcmp.gt.f32.partialorder %v2882_v39, 0.0  ;;  %v12515_v39 = vld [vmem:[#allocation149_spill] sm:$0xff] }
 0x3a3   : > { %v3877_v28 = vpop.f32.mrb[44].mxu1 }
 0x3a4   : > { %4121 = vmatmul.mubr.f32.gmra.mrb[142].mxu1 %v3587_v48  ;;  %v3879_v45 = vpop.f32.mrb[45].mxu1  ;;  %v4428_v4 = vsub.f32 %v3877_v28, %v10674_v7  ;;  %v12511_v48 = vld [vmem:[#allocation146_spill] sm:$0xff]  ;;  %v12513_v28 = vld [vmem:[#allocation153_spill] sm:$0xff] }
 0x3a5   : > { %4125 = vmatprep.mubr.f32.mxu1 %v3590_v44  ;;  %v3594_v33 = vsel %vm3113_vm15, %v12511_v48, %v9224_v41  ;;  %v2885_v45 = vpop.xlane.xlu0 %2884  ;;  %v12516_v48 = vld [vmem:[#allocation45_spill] sm:$0xff] }
 0x3a6   : > { %vm3115_vm1 = vcmp.gt.f32.partialorder %v2885_v45, 0.0 }
 0x3a8   : > { %4126 = vmatmul.mubr.f32.gmra.mrb[144].mxu1 %v3589_v57  ;;  %v3596_v57 = vsel %vm3114_vm0, %v12513_v28, %v12406_v60 }
 0x3a9   : > { %4130 = vmatprep.mubr.f32.mxu1 %v3592_v13  ;;  %v3882_v61 = vpop.f32.mrb[46].mxu1  ;;  %v2891_v56 = vpop.xlane.xlu0 %2890 }
 0x3aa   : > { %v4429_v38 = vsub.f32 %v3882_v61, %v10678_v3  ;;  %v3884_v19 = vpop.f32.mrb[47].mxu1  ;;  %v2888_v61 = vpop.xlane.xlu1 %2887  ;;  %vm3117_vm3 = vcmp.gt.f32.partialorder %v2891_v56, 0.0 }
 0x3ab   : > { %v12514_v19 = vld [vmem:[#allocation9_spill] sm:$0xff]  ;;  %vm3116_vm2 = vcmp.gt.f32.partialorder %v2888_v61, 0.0  ;;  %v12518_v61 = vld [vmem:[#allocation156_spill] sm:$0xff] }
 0x3ac   : > { %4131 = vmatmul.mubr.f32.gmra.mrb[146].mxu1 %v3591_v43  ;;  %v4545_v44 = vpack.c.bf16 %v4429_v38, %v4428_v4  ;;  %v3595_v4 = vsel %vm3114_vm0, %v12514_v19, %v12310_v24  ;;  %v3598_v38 = vsel %vm3115_vm1, %v12515_v39, %v12410_v54  ;;  %v3599_v19 = vsel %vm3116_vm2, %v12518_v61, %v12325_v40 }
 0x3ad   : > { %4135 = vmatprep.mubr.f32.mxu1 %v3594_v33  ;;  %v3597_v33 = vsel %vm3115_vm1, %v12516_v48, %v12412_v55  ;;  %v12520_v48 = vld [vmem:[#allocation151_spill] sm:$0xff] }
 0x3ae   : > { %7281 = vmatmul.mubr.msk.bf16.gmra.mrb[36].mxu0 %vm4606_vm7, %v4545_v44  ;;  %v3601_v56 = vsel %vm3117_vm3, %v12520_v48, %v9545_v53 }
 0x3af   : > { %v3887_v36 = vpop.f32.mrb[48].mxu1 }
 0x3b0   : > { %4136 = vmatmul.mubr.f32.gmra.mrb[148].mxu1 %v3593_v0  ;;  %v3889_v13 = vpop.f32.mrb[49].mxu1  ;;  %v4430_v44 = vsub.f32 %v3887_v36, %v10592_v2  ;;  %v12517_v0 = vld [vmem:[#allocation157_spill] sm:$0xff] }
 0x3b1   : > { %4140 = vmatprep.mubr.f32.mxu1 %v3596_v57  ;;  %v3600_v28 = vsel %vm3116_vm2, %v12517_v0, %v12414_v34  ;;  %v2894_v13 = vpop.xlane.xlu1 %2893 }
 0x3b2   : > { %vm3118_vm4 = vcmp.gt.f32.partialorder %v2894_v13, 0.0  ;;  %v12523_v13 = vld [vmem:[#allocation155_spill] sm:$0xff] }
 0x3b4   : > { %4141 = vmatmul.mubr.f32.gmra.mrb[150].mxu1 %v3595_v4  ;;  %v12519_v4 = vld [vmem:[#allocation152_spill] sm:$0xff] }
 0x3b5   : > { %4145 = vmatprep.mubr.f32.mxu1 %v3598_v38  ;;  %v3602_v36 = vsel %vm3117_vm3, %v12519_v4, %v9530_v10  ;;  %v2897_v38 = vpop.xlane.xlu0 %2896 }
 0x3b6   : > { %v3892_v43 = vpop.f32.mrb[50].mxu1  ;;  %vm3119_vm5 = vcmp.gt.f32.partialorder %v2897_v38, 0.0  ;;  %v12524_v38 = vld [vmem:[#allocation154_spill] sm:$0xff] }
 0x3b7   : > { %v4431_v45 = vsub.f32 %v3892_v43, %v10597_v15  ;;  %v3894_v46 = vpop.f32.mrb[51].mxu1  ;;  %v3606_v61 = vsel %vm3119_vm5, %v12523_v13, %v9169_v30  ;;  %v3605_v48 = vsel %vm3119_vm5, %v12524_v38, %v9166_v62 }
 0x3b8   : > { %4146 = vmatmul.mubr.f32.gmra.mrb[152].mxu1 %v3597_v33  ;;  %v12521_v33 = vld [vmem:[#allocation159_spill] sm:$0xff]  ;;  %v12522_v46 = vld [vmem:[#allocation18_spill] sm:$0xff] }
 0x3b9   : > { %4150 = vmatprep.mubr.f32.mxu1 %v3600_v28  ;;  %v4546_v57 = vpack.c.bf16 %v4431_v45, %v4430_v44  ;;  %v3604_v44 = vsel %vm3118_vm4, %v12521_v33, %v9619_v52  ;;  %v2900_v45 = vpop.xlane.xlu1 %2899  ;;  %v3603_v0 = vsel %vm3118_vm4, %v12522_v46, %v9637_v49 }
 0x3ba   : > { %vm3120_vm6 = vcmp.gt.f32.partialorder %v2900_v45, 0.0 }
 0x3bb   : > { %7284 = vmatprep.mubr.msk.bf16.mxu0 %vm4606_vm7, %v4546_v57 }
 0x3bc   : > { %4151 = vmatmul.mubr.f32.gmra.mrb[154].mxu1 %v3599_v19  ;;  %v3897_v39 = vpop.f32.mrb[52].mxu1 }
 0x3bd   : > { %4155 = vmatprep.mubr.f32.mxu1 %v3602_v36  ;;  %v3899_v43 = vpop.f32.mrb[53].mxu1  ;;  %v4432_v57 = vsub.f32 %v3897_v39, %v10608_v12  ;;  %v2903_v36 = vpop.xlane.xlu0 %2902 }
 0x3be   : > { %vm3121_vm8 = vcmp.gt.f32.partialorder %v2903_v36, 0.0  ;;  %v2906_v39 = vpop.xlane.xlu1 %2905 }
 0x3bf   : > { %vm3122_vm9 = vcmp.gt.f32.partialorder %v2906_v39, 0.0 }
 0x3c0   : > { %4156 = vmatmul.mubr.f32.gmra.mrb[156].mxu1 %v3601_v56  ;;  %v12525_v56 = vld [vmem:[#allocation162_spill] sm:$0xff] }
 0x3c1   : > { %4160 = vmatprep.mubr.f32.mxu1 %v3604_v44  ;;  %v3608_v33 = vsel %vm3120_vm6, %v12525_v56, %v9197_v22  ;;  %v2909_v13 = vpop.xlane.xlu0 %2908 }
 0x3c2   : > { %v3902_v28 = vpop.f32.mrb[54].mxu1  ;;  %vm3123_vm10 = vcmp.gt.f32.partialorder %v2909_v13, 0.0 }
 0x3c3   : > { %v4433_v19 = vsub.f32 %v3902_v28, %v10613_v37  ;;  %v3904_v4 = vpop.f32.mrb[55].mxu1  ;;  %v12527_v28 = vld [vmem:[#allocation158_spill] sm:$0xff] }
 0x3c4   : > { %4161 = vmatmul.mubr.f32.gmra.mrb[158].mxu1 %v3603_v0  ;;  %v12526_v0 = vld [vmem:[#allocation17_spill] sm:$0xff] }
 0x3c5   : > { %4165 = vmatprep.mubr.f32.mxu1 %v3606_v61  ;;  %v4547_v43 = vpack.c.bf16 %v4433_v19, %v4432_v57  ;;  %v3607_v45 = vsel %vm3120_vm6, %v12526_v0, %v9193_v5  ;;  %v3610_v57 = vsel %vm3121_vm8, %v12527_v28, %v9224_v41  ;;  %v12528_v19 = vld [vmem:[#allocation51_spill] sm:$0xff]  ;;  %v12530_v0 = vld [vmem:[#allocation10_spill] sm:$0xff] }
 0x3c6   : > { %v3609_v4 = vsel %vm3121_vm8, %v12528_v19, %v9220_v9 }
 0x3c7   : > { %7285 = vmatmul.mubr.msk.bf16.gmra.mrb[40].mxu0 %vm4606_vm7, %v4547_v43 }
 0x3c8   : > { %4166 = vmatmul.mubr.f32.gmra.mrb[160].mxu1 %v3605_v48  ;;  %v12529_v48 = vld [vmem:[#allocation26_spill] sm:$0xff] }
 0x3c9   : > { %4170 = vmatprep.mubr.f32.mxu1 %v3608_v33  ;;  %v3612_v56 = vsel %vm3122_vm9, %v12529_v48, %v12406_v60  ;;  %v2912_v33 = vpop.xlane.xlu1 %2911 }
 0x3ca   : > { %vm3124_vm12 = vcmp.gt.f32.partialorder %v2912_v33, 0.0 }
 0x3cb   : > { %v3907_v44 = vpop.f32.mrb[56].mxu1 }
 0x3cc   : > { %v3909_v46 = vpop.f32.mrb[57].mxu1  ;;  %4171 = vmatmul.mubr.f32.gmra.mrb[162].mxu1 %v3607_v45  ;;  %v4434_v36 = vsub.f32 %v3907_v44, %v10635_v8  ;;  %v3611_v45 = vsel %vm3122_vm9, %v12530_v0, %v12310_v24  ;;  %v12531_v44 = vld [vmem:[#allocation161_spill] sm:$0xff] }
 0x3cd   : > { %4175 = vmatprep.mubr.f32.mxu1 %v3610_v57  ;;  %v3614_v57 = vsel %vm3123_vm10, %v12531_v44, %v12410_v54  ;;  %v12533_v0 = vld [vmem:[#allocation165_spill] sm:$0xff] }
 0x3cf   : > { %v3912_v61 = vpop.f32.mrb[58].mxu1 }
 0x3d0   : > { %v4435_v43 = vsub.f32 %v3912_v61, %v10639_v47  ;;  %v3914_v38 = vpop.f32.mrb[59].mxu1  ;;  %4176 = vmatmul.mubr.f32.gmra.mrb[164].mxu1 %v3609_v4  ;;  %v5540_v61 = vld [vmem:[%s11796_s5] sm:$0xf]  ;;  %v2915_v4 = vpop.xlane.xlu0 %2914 }
 0x3d1   : > { %4180 = vmatprep.mubr.f32.mxu1 %v3612_v56  ;;  %7618 = vmatprep.subr.msk.bf16.mxu0 %vm5741_vm11, %v5540_v61  ;;  %v5743_v19 = vsel %vm5741_vm11, %v5540_v61, 0  ;;  %vm3125_vm13 = vcmp.gt.f32.partialorder %v2915_v4, 0.0  ;;  %v12534_v61 = vld [vmem:[#allocation23_spill] sm:$0xff] }
 0x3d2   : > { %v4548_v46 = vpack.c.bf16 %v4435_v43, %v4434_v36  ;;  %7389 = vmatpush3.bf16.msra.mxu0 %v5743_v19  ;;  %v12532_v43 = vld [vmem:[#allocation160_spill] sm:$0xff]  ;;  %v3615_v13 = vsel %vm3124_vm12, %v12534_v61, %v12325_v40  ;;  %v12536_v4 = vld [vmem:[#allocation27_spill] sm:$0xff] }
 0x3d3   : > { %v3917_v39 = vpop.f32.mrb[60].mxu1  ;;  %v3613_v38 = vsel %vm3123_vm10, %v12532_v43, %v12412_v55 }
 0x3d4   : > { %v3919_v28 = vpop.f32.mrb[61].mxu1  ;;  %4181 = vmatmul.mubr.f32.gmra.mrb[166].mxu1 %v3611_v45  ;;  %7288 = vmatprep.mubr.msk.bf16.mxu0 %vm4606_vm7, %v4548_v46  ;;  %v4436_v48 = vsub.f32 %v3917_v39, %v10674_v7  ;;  %v3616_v45 = vsel %vm3124_vm12, %v12533_v0, %v12414_v34  ;;  %v12535_v39 = vld [vmem:[#allocation163_spill] sm:$0xff]  ;;  %v2921_v43 = vpop.xlane.xlu0 %2920  ;;  %v12537_v0 = vld [vmem:[#allocation30_spill] sm:$0xff] }
 0x3d5   : > { %4185 = vmatprep.mubr.f32.mxu1 %v3614_v57  ;;  %v2918_v28 = vpop.xlane.xlu1 %2917  ;;  %vm3127_vm15 = vcmp.gt.f32.partialorder %v2921_v43, 0.0  ;;  %v12540_v43 = vld [vmem:[#allocation24_spill] sm:$0xff] }
 0x3d6   : > { %vm3126_vm14 = vcmp.gt.f32.partialorder %v2918_v28, 0.0 }
 0x3d7   : > { %v3922_v36 = vpop.f32.mrb[62].mxu1 }
 0x3d8   : > { %v4437_v56 = vsub.f32 %v3922_v36, %v10678_v3  ;;  %v3924_v46 = vpop.f32.mrb[63].mxu1  ;;  %4186 = vmatmul.mubr.f32.gmra.mrb[168].mxu1 %v3613_v38  ;;  %v3618_v36 = vsel %vm3125_vm13, %v12535_v39, %v9530_v10 }
 0x3d9   : > { %4190 = vmatprep.mubr.f32.mxu1 %v3616_v45  ;;  %v3617_v46 = vsel %vm3125_vm13, %v12536_v4, %v9545_v53  ;;  %v3620_v45 = vsel %vm3126_vm14, %v12537_v0, %v9619_v52 }
 0x3da   : > { %v4549_v44 = vpack.c.bf16 %v4437_v56, %v4436_v48 }
 0x3db   : > { %v3927_v57 = vpop.f32.mrb[64].mxu1 }
 0x3dc   : > { %v3929_v19 = vpop.f32.mrb[65].mxu1  ;;  %4191 = vmatmul.mubr.f32.gmra.mrb[170].mxu1 %v3615_v13  ;;  %7289 = vmatmul.mubr.msk.bf16.gmra.mrb[44].mxu0 %vm4606_vm7, %v4549_v44  ;;  %v4438_v48 = vsub.f32 %v3927_v57, %v10592_v2  ;;  %v2924_v44 = vpop.xlane.xlu1 %2923  ;;  %v12538_v13 = vld [vmem:[#allocation25_spill] sm:$0xff]  ;;  %v12539_v2 = vld [vmem:[#allocation164_spill] sm:$0xff] }
 0x3dd   : > { %4195 = vmatprep.mubr.f32.mxu1 %v3618_v36  ;;  %v3619_v19 = vsel %vm3126_vm14, %v12538_v13, %v9637_v49  ;;  %vm3128_vm0 = vcmp.gt.f32.partialorder %v2924_v44, 0.0  ;;  %v2927_v57 = vpop.xlane.xlu0 %2926 }
 0x3de   : > { %vm3129_vm1 = vcmp.gt.f32.partialorder %v2927_v57, 0.0 }
 0x3df   : > { %v3932_v38 = vpop.f32.mrb[66].mxu1 }
 0x3e0   : > { %v4439_v56 = vsub.f32 %v3932_v38, %v10597_v15  ;;  %v3934_v33 = vpop.f32.mrb[67].mxu1  ;;  %4196 = vmatmul.mubr.f32.gmra.mrb[172].mxu1 %v3617_v46  ;;  %v3622_v15 = vsel %vm3127_vm15, %v12539_v2, %v9169_v30  ;;  %v3621_v38 = vsel %vm3127_vm15, %v12540_v43, %v9166_v62  ;;  %v2930_v0 = vpop.xlane.xlu1 %2929 }
 0x3e1   : > { %4200 = vmatprep.mubr.f32.mxu1 %v3620_v45  ;;  %vm3130_vm2 = vcmp.gt.f32.partialorder %v2930_v0, 0.0 }
 0x3e2   : > { %v4550_v61 = vpack.c.bf16 %v4439_v56, %v4438_v48  ;;  %v12541_v56 = vld [vmem:[#allocation168_spill] sm:$0xff] }
 0x3e3   : > { %v3937_v28 = vpop.f32.mrb[68].mxu1  ;;  %v3624_v33 = vsel %vm3128_vm0, %v12541_v56, %v9197_v22 }
 0x3e4   : > { %v3939_v39 = vpop.f32.mrb[69].mxu1  ;;  %4201 = vmatmul.mubr.f32.gmra.mrb[174].mxu1 %v3619_v19  ;;  %7292 = vmatprep.mubr.msk.bf16.mxu0 %vm4606_vm7, %v4550_v61  ;;  %v4440_v4 = vsub.f32 %v3937_v28, %v10608_v12  ;;  %v12542_v61 = vld [vmem:[#allocation34_spill] sm:$0xff]  ;;  %v2933_v28 = vpop.xlane.xlu0 %2932 }
 0x3e5   : > { %4205 = vmatprep.mubr.f32.mxu1 %v3622_v15  ;;  %v3623_v13 = vsel %vm3128_vm0, %v12542_v61, %v9193_v5  ;;  %v12543_v12 = vld [vmem:[#allocation166_spill] sm:$0xff]  ;;  %v10908_v39 = vld [vmem:[%s11795_s4] ss:$0 sm:$0xff]  ;;  %vm3131_vm3 = vcmp.gt.f32.partialorder %v2933_v28, 0.0 }
 0x3e6   : > { %v12544_v15 = vld [vmem:[#allocation32_spill] sm:$0xff] }
 0x3e7   : > { %v3942_v36 = vpop.f32.mrb[70].mxu1  ;;  %v3625_v57 = vsel %vm3129_vm1, %v12544_v15, %v9220_v9  ;;  %v12547_v15 = vld [vmem:[#allocation167_spill] sm:$0xff] }
 0x3e8   : > { %v4441_v46 = vsub.f32 %v3942_v36, %v10613_v37  ;;  %v3944_v48 = vpop.f32.mrb[71].mxu1  ;;  %4206 = vmatmul.mubr.f32.gmra.mrb[176].mxu1 %v3621_v38  ;;  %v3626_v37 = vsel %vm3129_vm1, %v12543_v12, %v9224_v41 }
 0x3e9   : > { %4210 = vmatprep.mubr.f32.mxu1 %v3624_v33  ;;  %v7262_v48 = vpop.f32.mrb[16].mxu0 }
 0x3ea   : > { %v4551_v45 = vpack.c.bf16 %v4441_v46, %v4440_v4  ;;  %v12545_v4 = vld [vmem:[#allocation141_spill] sm:$0xff]  ;;  %v4846_v56 = vadd.f32 %v7262_v48, %v10908_v39  ;;  %v4837_v33 = vpop.f32.mrb[17].mxu0 }
 0x3eb   : > { %v3947_v44 = vpop.f32.mrb[72].mxu1  ;;  %v3628_v46 = vsel %vm3130_vm2, %v12545_v4, %v12406_v60  ;;  %v2939_v4 = vpop.xlane.xlu0 %2938 }
 0x3ec   : > { %v3949_v19 = vpop.f32.mrb[73].mxu1  ;;  %4211 = vmatmul.mubr.f32.gmra.mrb[178].mxu1 %v3623_v13  ;;  %7293 = vmatmul.mubr.msk.bf16.gmra.mrb[48].mxu0 %vm4606_vm7, %v4551_v45  ;;  %v4442_v36 = vsub.f32 %v3947_v44, %v10635_v8  ;;  %v2936_v45 = vpop.xlane.xlu1 %2935  ;;  %v4838_v13 = vadd.f32 %v10908_v39, %v4837_v33  ;;  %v12548_v33 = vld [vmem:[#allocation36_spill] sm:$0xff]  ;;  %vm3133_vm5 = vcmp.gt.f32.partialorder %v2939_v4, 0.0 }
 0x3ed   : > { %4215 = vmatprep.mubr.f32.mxu1 %v3626_v37  ;;  %v7263_v19 = vpop.f32.mrb[18].mxu0  ;;  %vm3132_vm4 = vcmp.gt.f32.partialorder %v2936_v45, 0.0  ;;  %v10953_v45 = vld [vmem:[%s7759_s29 + $0x8] sm:$0xff] }
 0x3ee   : > { %v4849_v12 = vadd.f32 %v7263_v19, %v10908_v39  ;;  %v4840_v37 = vpop.f32.mrb[19].mxu0  ;;  %v5348_v0 = vmax.f32 %v4838_v13, 0.0  ;;  %v3629_v19 = vsel %vm3131_vm3, %v12548_v33, %v12412_v55  ;;  %v10949_v33 = vld [vmem:[%s7759_s29] sm:$0xff] }
 0x3ef   : > { %v3952_v2 = vpop.f32.mrb[74].mxu1 }
 0x3f0   : > { %v4443_v43 = vsub.f32 %v3952_v2, %v10639_v47  ;;  %v3954_v38 = vpop.f32.mrb[75].mxu1  ;;  %4216 = vmatmul.mubr.f32.gmra.mrb[180].mxu1 %v3625_v57  ;;  %v12546_v47 = vld [vmem:[#allocation11_spill] sm:$0xff]  ;;  %v3630_v57 = vsel %vm3131_vm3, %v12547_v15, %v12410_v54  ;;  %v2942_v28 = vpop.xlane.xlu1 %2941 }
 0x3f1   : > { %4220 = vmatprep.mubr.f32.mxu1 %v3628_v46  ;;  %v3627_v44 = vsel %vm3130_vm2, %v12546_v47, %v12310_v24  ;;  %v5351_v38 = vmax.f32 %v4849_v12, 0.0  ;;  %vm3134_vm6 = vcmp.gt.f32.partialorder %v2942_v28, 0.0  ;;  %v10972_v28 = vld [vmem:[%s7759_s29 + $0x18] sm:$0xff] }
 0x3f2   : > { %v4552_v61 = vpack.c.bf16 %v4443_v43, %v4442_v36  ;;  %v4841_v36 = vadd.f32 %v10908_v39, %v4840_v37  ;;  %v5350_v43 = vmax.f32 %v4846_v56, 0.0  ;;  %v12550_v37 = vld [vmem:[#allocation170_spill] sm:$0xff] }
 0x3f3   : > { %v3957_v8 = vpop.f32.mrb[76].mxu1  ;;  %v3632_v56 = vsel %vm3132_vm4, %v12550_v37, %v12414_v34 }
 0x3f4   : > { %v3959_v2 = vpop.f32.mrb[77].mxu1  ;;  %4221 = vmatmul.mubr.f32.gmra.mrb[182].mxu1 %v3627_v44  ;;  %7296 = vmatprep.mubr.msk.bf16.mxu0 %vm4606_vm7, %v4552_v61  ;;  %v5349_v46 = vmax.f32 %v4841_v36, 0.0  ;;  %v10931_v47 = vpack.c.bf16 %v5351_v38, %v5350_v43  ;;  %v4444_v61 = vsub.f32 %v3957_v8, %v10674_v7  ;;  %v12553_v43 = vld [vmem:[#allocation169_spill] sm:$0xff] }
 0x3f5   : > { %4225 = vmatprep.mubr.f32.mxu1 %v3630_v57  ;;  %v12552_v57 = vld [vmem:[#allocation44_spill] sm:$0xff]  ;;  %v3634_v38 = vsel %vm3133_vm5, %v12553_v43, %v9530_v10  ;;  %v12557_v43 = vld [vmem:[#allocation46_spill] sm:$0xff] }
 0x3f6   : > { %12549 = vst [vmem:[#allocation35_spill] sm:$0xff] %v10931_v47  ;;  %v10938_v12 = vpack.c.bf16 %v5349_v46, %v5348_v0  ;;  %v3631_v8 = vsel %vm3132_vm4, %v12552_v57, %v12325_v40  ;;  %v2945_v0 = vpop.xlane.xlu0 %2944  ;;  %v12554_v46 = vld [vmem:[#allocation40_spill] sm:$0xff] }
 0x3f7   : > { %v3962_v48 = vpop.f32.mrb[78].mxu1  ;;  %vm3135_vm8 = vcmp.gt.f32.partialorder %v2945_v0, 0.0 }
 0x3f8   : > { %v4445_v44 = vsub.f32 %v3962_v48, %v10678_v3  ;;  %v3964_v2 = vpop.f32.mrb[79].mxu1  ;;  %4226 = vmatmul.mubr.f32.gmra.mrb[184].mxu1 %v3629_v19  ;;  %12551 = vst [vmem:[#allocation65_spill] sm:$0xff] %v10938_v12  ;;  %v3633_v48 = vsel %vm3133_vm5, %v12554_v46, %v9545_v53  ;;  %v12558_v46 = vld [vmem:[#allocation39_spill] sm:$0xff] }
 0x3f9   : > { %4230 = vmatprep.mubr.f32.mxu1 %v3632_v56  ;;  %v12555_v2 = vld [vmem:[#allocation31_spill] sm:$0xff]  ;;  %v2948_v56 = vpop.xlane.xlu1 %2947 }
 0x3fa   : > { %v4553_v13 = vpack.c.bf16 %v4445_v44, %v4444_v61  ;;  %v3636_v37 = vsel %vm3134_vm6, %v12555_v2, %v9619_v52  ;;  %vm3136_vm9 = vcmp.gt.f32.partialorder %v2948_v56, 0.0  ;;  %v10991_v56 = vld [vmem:[%s7759_s29 + $0x28] sm:$0xff] }
 0x3fb   : > { %v3967_v15 = vpop.f32.mrb[80].mxu1 }
 0x3fc   : > { %v3969_v36 = vpop.f32.mrb[81].mxu1  ;;  %4231 = vmatmul.mubr.f32.gmra.mrb[186].mxu1 %v3631_v8  ;;  %7297 = vmatmul.mubr.msk.bf16.gmra.mrb[52].mxu0 %vm4606_vm7, %v4553_v13  ;;  %v4446_v19 = vsub.f32 %v3967_v15, %v10949_v33  ;;  %v12556_v8 = vld [vmem:[#allocation52_spill] sm:$0xff] }
 0x3fd   : > { %4235 = vmatprep.mubr.f32.mxu1 %v3634_v38  ;;  %v3635_v15 = vsel %vm3134_vm6, %v12556_v8, %v9637_v49  ;;  %v3638_v38 = vsel %vm3135_vm8, %v12557_v43, %v9169_v30  ;;  %v2954_v8 = vpop.xlane.xlu1 %2953  ;;  %v12560_v43 = vld [vmem:[#allocation29_spill] sm:$0xff] }
 0x3fe   : > { %vm3138_vm11 = vcmp.gt.f32.partialorder %v2954_v8, 0.0 }
 0x3ff   : > { %v3972_v4 = vpop.f32.mrb[82].mxu1 }
 0x400   : > { %v4447_v61 = vsub.f32 %v3972_v4, %v10953_v45  ;;  %v3974_v44 = vpop.f32.mrb[83].mxu1  ;;  %4236 = vmatmul.mubr.f32.gmra.mrb[188].mxu1 %v3633_v48  ;;  %v2951_v4 = vpop.xlane.xlu0 %2950  ;;  %v3637_v48 = vsel %vm3135_vm8, %v12558_v46, %v9166_v62 }
 0x401   : > { %4240 = vmatprep.mubr.f32.mxu1 %v3636_v37  ;;  %v12559_v37 = vld [vmem:[#allocation174_spill] sm:$0xff]  ;;  %vm3137_vm10 = vcmp.gt.f32.partialorder %v2951_v4, 0.0 }
 0x402   : > { %v4554_v13 = vpack.c.bf16 %v4447_v61, %v4446_v19  ;;  %v10968_v19 = vld [vmem:[%s7759_s29 + $0x10] sm:$0xff] }
 0x403   : > { %v3977_v57 = vpop.f32.mrb[84].mxu1 }
 0x404   : > { %v3979_v36 = vpop.f32.mrb[85].mxu1  ;;  %4241 = vmatmul.mubr.f32.gmra.mrb[190].mxu1 %v3635_v15  ;;  %7300 = vmatprep.mubr.msk.bf16.mxu0 %vm4606_vm7, %v4554_v13  ;;  %v4448_v61 = vsub.f32 %v3977_v57, %v10968_v19  ;;  %v3640_v13 = vsel %vm3136_vm9, %v12559_v37, %v9197_v22  ;;  %v3639_v57 = vsel %vm3136_vm9, %v12560_v43, %v9193_v5 }
 0x405   : > { %4245 = vmatprep.mubr.f32.mxu1 %v3638_v38 }
 0x407   : > { %v3982_v0 = vpop.f32.mrb[86].mxu1 }
 0x408   : > { %v4449_v44 = vsub.f32 %v3982_v0, %v10972_v28  ;;  %v3984_v2 = vpop.f32.mrb[87].mxu1  ;;  %4246 = vmatmul.mubr.f32.gmra.mrb[192].mxu1 %v3637_v48  ;;  %v12561_v0 = vld [vmem:[#allocation171_spill] sm:$0xff]  ;;  %v2957_v48 = vpop.xlane.xlu0 %2956 }
 0x409   : > { %4250 = vmatprep.mubr.f32.mxu1 %v3640_v13  ;;  %v3642_v46 = vsel %vm3137_vm10, %v12561_v0, %v9224_v41  ;;  %v12562_v2 = vld [vmem:[#allocation53_spill] sm:$0xff]  ;;  %vm3139_vm12 = vcmp.gt.f32.partialorder %v2957_v48, 0.0  ;;  %v12566_v48 = vld [vmem:[#allocation172_spill] sm:$0xff] }
 0x40a   : > { %v4555_v15 = vpack.c.bf16 %v4449_v44, %v4448_v61  ;;  %v3641_v37 = vsel %vm3137_vm10, %v12562_v2, %v9220_v9  ;;  %v10987_v61 = vld [vmem:[%s7759_s29 + $0x20] sm:$0xff] }
 0x40b   : > { %v3987_v36 = vpop.f32.mrb[88].mxu1  ;;  %v12564_v2 = vld [vmem:[#allocation12_spill] sm:$0xff] }
 0x40c   : > { %v3989_v38 = vpop.f32.mrb[89].mxu1  ;;  %4251 = vmatmul.mubr.f32.gmra.mrb[194].mxu1 %v3639_v57  ;;  %7301 = vmatmul.mubr.msk.bf16.gmra.mrb[56].mxu0 %vm4606_vm7, %v4555_v15  ;;  %v4450_v44 = vsub.f32 %v3987_v36, %v10987_v61  ;;  %v12563_v15 = vld [vmem:[#allocation47_spill] sm:$0xff]  ;;  %v3643_v47 = vsel %vm3138_vm11, %v12564_v2, %v12310_v24 }
 0x40d   : > { %4255 = vmatprep.mubr.f32.mxu1 %v3642_v46  ;;  %v3644_v57 = vsel %vm3138_vm11, %v12563_v15, %v12406_v60  ;;  %v2960_v38 = vpop.xlane.xlu1 %2959 }
 0x40e   : > { %vm3140_vm13 = vcmp.gt.f32.partialorder %v2960_v38, 0.0 }
 0x40f   : > { %v3992_v4 = vpop.f32.mrb[90].mxu1 }
 0x410   : > { %v4451_v13 = vsub.f32 %v3992_v4, %v10991_v56  ;;  %v3994_v43 = vpop.f32.mrb[91].mxu1  ;;  %4256 = vmatmul.mubr.f32.gmra.mrb[196].mxu1 %v3641_v37  ;;  %v12565_v4 = vld [vmem:[#allocation173_spill] sm:$0xff] }
 0x411   : > { %4260 = vmatprep.mubr.f32.mxu1 %v3644_v57  ;;  %v3646_v37 = vsel %vm3139_vm12, %v12565_v4, %v12410_v54  ;;  %v2963_v43 = vpop.xlane.xlu0 %2962  ;;  %v3645_v57 = vsel %vm3139_vm12, %v12566_v48, %v12412_v55  ;;  %v12568_v48 = vld [vmem:[#allocation37_spill] sm:$0xff] }
 0x412   : > { %v4556_v0 = vpack.c.bf16 %v4451_v13, %v4450_v44  ;;  %vm3141_vm14 = vcmp.gt.f32.partialorder %v2963_v43, 0.0 }
 0x413   : > { %v3997_v46 = vpop.f32.mrb[92].mxu1 }
 0x414   : > { %v3999_v36 = vpop.f32.mrb[93].mxu1  ;;  %4261 = vmatmul.mubr.f32.gmra.mrb[198].mxu1 %v3643_v47  ;;  %7304 = vmatprep.mubr.msk.bf16.mxu0 %vm4606_vm7, %v4556_v0  ;;  %v4452_v44 = vsub.f32 %v3997_v46, %v10674_v7  ;;  %v12567_v47 = vld [vmem:[#allocation177_spill] sm:$0xff]  ;;  %v3647_v7 = vsel %vm3140_vm13, %v12568_v48, %v12325_v40  ;;  %v12570_v48 = vld [vmem:[#allocation48_spill] sm:$0xff] }
 0x415   : > { %4265 = vmatprep.mubr.f32.mxu1 %v3646_v37  ;;  %v3648_v0 = vsel %vm3140_vm13, %v12567_v47, %v12414_v34  ;;  %v2966_v36 = vpop.xlane.xlu1 %2965  ;;  %v2969_v38 = vpop.xlane.xlu0 %2968 }
 0x416   : > { %vm3142_vm15 = vcmp.gt.f32.partialorder %v2966_v36, 0.0  ;;  %vm3143_vm0 = vcmp.gt.f32.partialorder %v2969_v38, 0.0 }
 0x417   : > { %v4002_v15 = vpop.f32.mrb[94].mxu1 }
 0x418   : > { %v4453_v13 = vsub.f32 %v4002_v15, %v10678_v3  ;;  %v4004_v8 = vpop.f32.mrb[95].mxu1  ;;  %4266 = vmatmul.mubr.f32.gmra.mrb[200].mxu1 %v3645_v57  ;;  %v12569_v57 = vld [vmem:[#allocation175_spill] sm:$0xff] }
 0x419   : > { %4270 = vmatprep.mubr.f32.mxu1 %v3648_v0  ;;  %v3650_v8 = vsel %vm3141_vm14, %v12569_v57, %v9530_v10  ;;  %v2972_v43 = vpop.xlane.xlu1 %2971  ;;  %v2975_v38 = vpop.xlane.xlu0 %2974 }
 0x41a   : > { %v4557_v4 = vpack.c.bf16 %v4453_v13, %v4452_v44  ;;  %vm3144_vm1 = vcmp.gt.f32.partialorder %v2972_v43, 0.0  ;;  %vm3145_vm2 = vcmp.gt.f32.partialorder %v2975_v38, 0.0  ;;  %v12580_v38 = vld [vmem:[#allocation57_spill] sm:$0xff] }
 0x41b   : > { %v4007_v20 = vpop.f32.mrb[96].mxu1 }
 0x41c   : > { %v4009_v15 = vpop.f32.mrb[97].mxu1  ;;  %4271 = vmatmul.mubr.f32.gmra.mrb[202].mxu1 %v3647_v7  ;;  %7305 = vmatmul.mubr.msk.bf16.gmra.mrb[60].mxu0 %vm4606_vm7, %v4557_v4  ;;  %v3649_v7 = vsel %vm3141_vm14, %v12570_v48, %v9545_v53  ;;  %v4454_v14 = vsub.f32 %v4007_v20, %v10949_v33  ;;  %v12575_v48 = vld [vmem:[#allocation176_spill] sm:$0xff] }
 0x41d   : > { %v7266_v2 = vpop.f32.mrb[20].mxu0  ;;  %4275 = vmatprep.mubr.f32.mxu1 %v3650_v8  ;;  %v12571_v8 = vld [vmem:[#allocation42_spill] sm:$0xff] }
 0x41e   : > { %v4862_v37 = vadd.f32 %v7266_v2, %v10908_v39  ;;  %v4853_v12 = vpop.f32.mrb[21].mxu0 }
 0x41f   : > { %v4854_v3 = vadd.f32 %v10908_v39, %v4853_v12  ;;  %v7267_v46 = vpop.f32.mrb[22].mxu0  ;;  %v4012_v12 = vpop.f32.mrb[98].mxu1 }
 0x420   : > { %v4865_v44 = vadd.f32 %v7267_v46, %v10908_v39  ;;  %v4856_v13 = vpop.f32.mrb[23].mxu0  ;;  %v5354_v0 = vmax.f32 %v4862_v37, 0.0  ;;  %v4455_v57 = vsub.f32 %v4012_v12, %v10953_v45  ;;  %v4014_v46 = vpop.f32.mrb[99].mxu1  ;;  %4276 = vmatmul.mubr.f32.gmra.mrb[204].mxu1 %v3649_v7  ;;  %v3654_v7 = vsel %vm3143_vm0, %v12575_v48, %v9169_v30 }
 0x421   : > { %v4857_v47 = vadd.f32 %v10908_v39, %v4856_v13  ;;  %v5352_v4 = vmax.f32 %v4854_v3, 0.0  ;;  %v3652_v13 = vsel %vm3142_vm15, %v12571_v8, %v9619_v52  ;;  %v2978_v8 = vpop.xlane.xlu1 %2977  ;;  %v2981_v48 = vpop.xlane.xlu0 %2980 }
 0x422   : > { %v5355_v2 = vmax.f32 %v4865_v44, 0.0  ;;  %4280 = vmatprep.mubr.f32.mxu1 %v3652_v13  ;;  %v4558_v44 = vpack.c.bf16 %v4455_v57, %v4454_v14  ;;  %v12577_v57 = vld [vmem:[#allocation181_spill] sm:$0xff]  ;;  %vm3146_vm3 = vcmp.gt.f32.partialorder %v2978_v8, 0.0  ;;  %vm3147_vm4 = vcmp.gt.f32.partialorder %v2981_v48, 0.0 }
 0x423   : > { %v5353_v15 = vmax.f32 %v4857_v47, 0.0  ;;  %v4017_v3 = vpop.f32.mrb[100].mxu1  ;;  %v12574_v47 = vld [vmem:[#allocation54_spill] sm:$0xff]  ;;  %v3656_v46 = vsel %vm3144_vm1, %v12577_v57, %v9197_v22  ;;  %v12581_v8 = vld [vmem:[#allocation13_spill] sm:$0xff] }
 0x424   : > { %v11029_v6 = vpack.c.bf16 %v5355_v2, %v5354_v0  ;;  %v3651_v20 = vsel %vm3142_vm15, %v12574_v47, %v9637_v49  ;;  %v4019_v12 = vpop.f32.mrb[101].mxu1  ;;  %7308 = vmatprep.mubr.msk.bf16.mxu0 %vm4606_vm7, %v4558_v44  ;;  %v12576_v2 = vld [vmem:[#allocation38_spill] sm:$0xff]  ;;  %v4456_v14 = vsub.f32 %v4017_v3, %v10968_v19  ;;  %v12578_v44 = vld [vmem:[#allocation41_spill] sm:$0xff] }
 0x425   : > { %v11031_v37 = vpack.c.bf16 %v5353_v15, %v5352_v4  ;;  %4281 = vmatmul.mubr.f32.gmra.mrb[206].mxu1 %v3651_v20  ;;  %v3653_v4 = vsel %vm3143_vm0, %v12576_v2, %v9166_v62  ;;  %v3655_v47 = vsel %vm3144_vm1, %v12578_v44, %v9193_v5  ;;  %v12579_v3 = vld [vmem:[#allocation178_spill] sm:$0xff] }
 0x426   : > { %12572 = vst [vmem:[#allocation33_spill] sm:$0xff] %v11029_v6  ;;  %4285 = vmatprep.mubr.f32.mxu1 %v3654_v7  ;;  %v3658_v12 = vsel %vm3145_vm2, %v12579_v3, %v9224_v41 }
 0x427   : > { %12573 = vst [vmem:[#allocation64_spill] sm:$0xff] %v11031_v37  ;;  %v4022_v0 = vpop.f32.mrb[102].mxu1 }
 0x428   : > { %v4457_v15 = vsub.f32 %v4022_v0, %v10972_v28  ;;  %v4024_v36 = vpop.f32.mrb[103].mxu1  ;;  %v3657_v0 = vsel %vm3145_vm2, %v12580_v38, %v9220_v9  ;;  %v2987_v38 = vpop.xlane.xlu0 %2986 }
 0x429   : > { %4286 = vmatmul.mubr.f32.gmra.mrb[208].mxu1 %v3653_v4  ;;  %v2984_v36 = vpop.xlane.xlu1 %2983  ;;  %vm3149_vm6 = vcmp.gt.f32.partialorder %v2987_v38, 0.0  ;;  %v12590_v38 = vld [vmem:[#allocation50_spill] sm:$0xff] }
 0x42a   : > { %4290 = vmatprep.mubr.f32.mxu1 %v3656_v46  ;;  %v4559_v13 = vpack.c.bf16 %v4457_v15, %v4456_v14  ;;  %v3660_v15 = vsel %vm3146_vm3, %v10222_v23, %v12406_v60  ;;  %vm3148_vm5 = vcmp.gt.f32.partialorder %v2984_v36, 0.0 }
 0x42b   : > { %v4027_v43 = vpop.f32.mrb[104].mxu1 }
 0x42c   : > { %v4029_v20 = vpop.f32.mrb[105].mxu1  ;;  %7309 = vmatmul.mubr.msk.bf16.gmra.mrb[64].mxu0 %vm4606_vm7, %v4559_v13  ;;  %v4458_v2 = vsub.f32 %v4027_v43, %v10987_v61  ;;  %v3659_v13 = vsel %vm3146_vm3, %v12581_v8, %v12310_v24  ;;  %v12582_v43 = vld [vmem:[#allocation180_spill] sm:$0xff] }
 0x42d   : > { %4291 = vmatmul.mubr.f32.gmra.mrb[210].mxu1 %v3655_v47  ;;  %v3662_v23 = vsel %vm3147_vm4, %v12582_v43, %v12410_v54  ;;  %v11077_v43 = vld [vmem:[%s7759_s29 + $0x38] sm:$0xff]  ;;  %v2990_v37 = vpop.xlane.xlu1 %2989 }
 0x42e   : > { %4295 = vmatprep.mubr.f32.mxu1 %v3658_v12  ;;  %vm3150_vm8 = vcmp.gt.f32.partialorder %v2990_v37, 0.0 }
 0x42f   : > { %v4032_v7 = vpop.f32.mrb[106].mxu1 }
 0x430   : > { %v4459_v4 = vsub.f32 %v4032_v7, %v10991_v56  ;;  %v4034_v14 = vpop.f32.mrb[107].mxu1 }
 0x431   : > { %4296 = vmatmul.mubr.f32.gmra.mrb[212].mxu1 %v3657_v0  ;;  %v12583_v14 = vld [vmem:[#allocation179_spill] sm:$0xff] }
 0x432   : > { %4300 = vmatprep.mubr.f32.mxu1 %v3660_v15  ;;  %v4560_v57 = vpack.c.bf16 %v4459_v4, %v4458_v2  ;;  %v3661_v15 = vsel %vm3147_vm4, %v12583_v14, %v12412_v55 }
 0x433   : > { %v4037_v46 = vpop.f32.mrb[108].mxu1 }
 0x434   : > { %v4039_v47 = vpop.f32.mrb[109].mxu1  ;;  %7312 = vmatprep.mubr.msk.bf16.mxu0 %vm4606_vm7, %v4560_v57  ;;  %v12584_v57 = vld [vmem:[#allocation183_spill] sm:$0xff] }
 0x435   : > { %v7270_v44 = vpop.f32.mrb[24].mxu0  ;;  %4301 = vmatmul.mubr.f32.gmra.mrb[214].mxu1 %v3659_v13  ;;  %v3664_v8 = vsel %vm3148_vm5, %v12584_v57, %v12414_v34 }
 0x436   : > { %v4878_v20 = vadd.f32 %v7270_v44, %v10908_v39  ;;  %v4869_v3 = vpop.f32.mrb[25].mxu0  ;;  %4305 = vmatprep.mubr.f32.mxu1 %v3662_v23  ;;  %v11073_v44 = vld [vmem:[%s7759_s29 + $0x30] sm:$0xff] }
 0x437   : > { %v4870_v12 = vadd.f32 %v10908_v39, %v4869_v3  ;;  %v7271_v7 = vpop.f32.mrb[26].mxu0  ;;  %v4042_v4 = vpop.f32.mrb[110].mxu1  ;;  %v4460_v47 = vsub.f32 %v4037_v46, %v11073_v44  ;;  %v3663_v46 = vsel %vm3148_vm5, %v12585_v58, %v12325_v40 }
 0x438   : > { %v4881_v0 = vadd.f32 %v7271_v7, %v10908_v39  ;;  %v4872_v2 = vpop.f32.mrb[27].mxu0  ;;  %v4461_v23 = vsub.f32 %v4042_v4, %v11077_v43  ;;  %v4044_v3 = vpop.f32.mrb[111].mxu1  ;;  %v5358_v7 = vmax.f32 %v4878_v20, 0.0  ;;  %v12586_v20 = vld [vmem:[#allocation182_spill] sm:$0xff] }
 0x439   : > { %v4873_v13 = vadd.f32 %v10908_v39, %v4872_v2  ;;  %4306 = vmatmul.mubr.f32.gmra.mrb[216].mxu1 %v3661_v15  ;;  %v5356_v48 = vmax.f32 %v4870_v12, 0.0  ;;  %v3666_v12 = vsel %vm3149_vm6, %v12586_v20, %v9530_v10  ;;  %v12587_v15 = vld [vmem:[#allocation59_spill] sm:$0xff]  ;;  %v2996_v3 = vpop.xlane.xlu1 %2995  ;;  %v12591_v20 = vld [vmem:[#allocation58_spill] sm:$0xff] }
 0x43a   : > { %v5359_v6 = vmax.f32 %v4881_v0, 0.0  ;;  %4310 = vmatprep.mubr.f32.mxu1 %v3664_v8  ;;  %v4561_v57 = vpack.c.bf16 %v4461_v23, %v4460_v47  ;;  %v2993_v0 = vpop.xlane.xlu0 %2992  ;;  %v3665_v8 = vsel %vm3149_vm6, %v12587_v15, %v9545_v53  ;;  %v12588_v47 = vld [vmem:[#allocation56_spill] sm:$0xff]  ;;  %vm3152_vm10 = vcmp.gt.f32.partialorder %v2996_v3, 0.0 }
 0x43b   : > { %v5357_v14 = vmax.f32 %v4873_v13, 0.0  ;;  %v4047_v2 = vpop.f32.mrb[112].mxu1  ;;  %v3668_v23 = vsel %vm3150_vm8, %v12588_v47, %v9619_v52  ;;  %vm3151_vm9 = vcmp.gt.f32.partialorder %v2993_v0, 0.0  ;;  %v12592_v47 = vld [vmem:[#allocation55_spill] sm:$0xff] }
 0x43c   : > { %v11080_v11 = vpack.c.bf16 %v5359_v6, %v5358_v7  ;;  %v4049_v4 = vpop.f32.mrb[113].mxu1  ;;  %7313 = vmatmul.mubr.msk.bf16.gmra.mrb[68].mxu0 %vm4606_vm7, %v4561_v57  ;;  %v4462_v58 = vsub.f32 %v4047_v2, %v10949_v33  ;;  %v3670_v2 = vsel %vm3151_vm9, %v12590_v38, %v9169_v30 }
 0x43d   : > { %v11085_v63 = vpack.c.bf16 %v5357_v14, %v5356_v48  ;;  %4311 = vmatmul.mubr.f32.gmra.mrb[218].mxu1 %v3663_v46  ;;  %v12589_v48 = vld [vmem:[#allocation62_spill] sm:$0xff] }
 0x43e   : > { %4315 = vmatprep.mubr.f32.mxu1 %v3666_v12  ;;  %v3667_v14 = vsel %vm3150_vm8, %v12589_v48, %v9637_v49  ;;  %v2999_v46 = vpop.xlane.xlu0 %2998  ;;  %v3669_v12 = vsel %vm3151_vm9, %v12591_v20, %v9166_v62 }
 0x43f   : > { %v4052_v6 = vpop.f32.mrb[114].mxu1  ;;  %vm3153_vm11 = vcmp.gt.f32.partialorder %v2999_v46, 0.0 }
 0x440   : > { %v4463_v36 = vsub.f32 %v4052_v6, %v10953_v45  ;;  %v4054_v13 = vpop.f32.mrb[115].mxu1 }
 0x441   : > { %4316 = vmatmul.mubr.f32.gmra.mrb[220].mxu1 %v3665_v8  ;;  %v3672_v8 = vsel %vm3152_vm10, %v10332_v32, %v9197_v22 }
 0x442   : > { %4320 = vmatprep.mubr.f32.mxu1 %v3668_v23  ;;  %v4562_v37 = vpack.c.bf16 %v4463_v36, %v4462_v58  ;;  %v3002_v58 = vpop.xlane.xlu1 %3001  ;;  %v3671_v23 = vsel %vm3152_vm10, %v12592_v47, %v9193_v5  ;;  %v3005_v32 = vpop.xlane.xlu0 %3004  ;;  %vm5548_vm10 = vcmask 64512  }
 0x443   : > { %v4057_v7 = vpop.f32.mrb[116].mxu1  ;;  %vm3154_vm12 = vcmp.gt.f32.partialorder %v3002_v58, 0.0  ;;  %vm3155_vm13 = vcmp.gt.f32.partialorder %v3005_v32, 0.0 }
 0x444   : > { %v4059_v57 = vpop.f32.mrb[117].mxu1  ;;  %7316 = vmatprep.mubr.msk.bf16.mxu0 %vm4606_vm7, %v4562_v37  ;;  %v4464_v0 = vsub.f32 %v4057_v7, %v10968_v19  ;;  %v12593_v37 = vld [vmem:[#allocation184_spill] sm:$0xff] }
 0x445   : > { %4321 = vmatmul.mubr.f32.gmra.mrb[222].mxu1 %v3667_v14  ;;  %v3674_v7 = vsel %vm3153_vm11, %v12593_v37, %v9224_v41 }
 0x446   : > { %4325 = vmatprep.mubr.f32.mxu1 %v3670_v2  ;;  %v12594_v2 = vld [vmem:[#allocation63_spill] sm:$0xff] }
 0x447   : > { %v4062_v4 = vpop.f32.mrb[118].mxu1 }
 0x448   : > { %v4465_v6 = vsub.f32 %v4062_v4, %v10972_v28  ;;  %v4064_v15 = vpop.f32.mrb[119].mxu1  ;;  %v3673_v4 = vsel %vm3153_vm11, %v12594_v2, %v9220_v9 }
 0x449   : > { %4326 = vmatmul.mubr.f32.gmra.mrb[224].mxu1 %v3669_v12 }
 0x44a   : > { %4330 = vmatprep.mubr.f32.mxu1 %v3672_v8  ;;  %v4563_v36 = vpack.c.bf16 %v4465_v6, %v4464_v0  ;;  %v3676_v8 = vsel %vm3154_vm12, %v10378_v31, %v12406_v60  ;;  %v12595_v31 = vld [vmem:[#allocation186_spill] sm:$0xff] }
 0x44b   : > { %v4067_v13 = vpop.f32.mrb[120].mxu1 }
 0x44c   : > { %v4069_v3 = vpop.f32.mrb[121].mxu1  ;;  %7317 = vmatmul.mubr.msk.bf16.gmra.mrb[72].mxu0 %vm4606_vm7, %v4563_v36  ;;  %v4466_v0 = vsub.f32 %v4067_v13, %v10987_v61 }
 0x44d   : > { %4331 = vmatmul.mubr.f32.gmra.mrb[226].mxu1 %v3671_v23  ;;  %v3008_v23 = vpop.xlane.xlu1 %3007 }
 0x44e   : > { %4335 = vmatprep.mubr.f32.mxu1 %v3674_v7  ;;  %v7274_v48 = vpop.f32.mrb[28].mxu0  ;;  %vm3156_vm14 = vcmp.gt.f32.partialorder %v3008_v23, 0.0 }
 0x44f   : > { %v4894_v14 = vadd.f32 %v7274_v48, %v10908_v39  ;;  %v4885_v57 = vpop.f32.mrb[29].mxu0  ;;  %v4072_v38 = vpop.f32.mrb[122].mxu1  ;;  %v3675_v48 = vsel %vm3154_vm12, %v10372_v21, %v12310_v24  ;;  %v12596_v21 = vld [vmem:[#allocation185_spill] sm:$0xff]  ;;  %v3679_v32 = vsel %vm3156_vm14, %v10407_v35, %v12325_v40 }
 0x450   : > { %v4886_v20 = vadd.f32 %v10908_v39, %v4885_v57  ;;  %v7275_v12 = vpop.f32.mrb[30].mxu0  ;;  %v4467_v6 = vsub.f32 %v4072_v38, %v10991_v56  ;;  %v4074_v15 = vpop.f32.mrb[123].mxu1  ;;  %v3677_v58 = vsel %vm3155_vm13, %v12596_v21, %v12412_v55 }
 0x451   : > { %4336 = vmatmul.mubr.f32.gmra.mrb[228].mxu1 %v3673_v4  ;;  %v4897_v36 = vadd.f32 %v7275_v12, %v10908_v39  ;;  %v4888_v47 = vpop.f32.mrb[31].mxu0  ;;  %v5362_v37 = vmax.f32 %v4894_v14, 0.0  ;;  %v3678_v4 = vsel %vm3155_vm13, %v12595_v31, %v12410_v54 }
 0x452   : > { %4340 = vmatprep.mubr.f32.mxu1 %v3676_v8  ;;  %v4889_v46 = vadd.f32 %v10908_v39, %v4888_v47  ;;  %v4564_v3 = vpack.c.bf16 %v4467_v6, %v4466_v0  ;;  %v5360_v57 = vmax.f32 %v4886_v20, 0.0  ;;  %v3011_v0 = vpop.xlane.xlu0 %3010  ;;  %v3014_v47 = vpop.xlane.xlu1 %3013 }
 0x453   : > { %v5363_v7 = vmax.f32 %v4897_v36, 0.0  ;;  %v4077_v13 = vpop.f32.mrb[124].mxu1  ;;  %v3680_v36 = vsel %vm3156_vm14, %v10410_v27, %v12414_v34  ;;  %vm3157_vm15 = vcmp.gt.f32.partialorder %v3011_v0, 0.0  ;;  %vm3158_vm0 = vcmp.gt.f32.partialorder %v3014_v47, 0.0 }
 0x454   : > { %v5361_v38 = vmax.f32 %v4889_v46, 0.0  ;;  %v4079_v2 = vpop.f32.mrb[125].mxu1  ;;  %7320 = vmatprep.mubr.msk.bf16.mxu0 %vm4606_vm7, %v4564_v3  ;;  %v4468_v20 = vsub.f32 %v4077_v13, %v11073_v44  ;;  %v3684_v35 = vsel %vm3158_vm0, %v10458_v50, %v9619_v52  ;;  %v3683_v21 = vsel %vm3158_vm0, %v10450_v42, %v9637_v49 }
 0x455   : > { %4341 = vmatmul.mubr.f32.gmra.mrb[230].mxu1 %v3675_v48  ;;  %v11134_v12 = vpack.c.bf16 %v5363_v7, %v5362_v37  ;;  %v12597_v7 = vld [vmem:[#allocation187_spill] sm:$0xff] }
 0x456   : > { %4345 = vmatprep.mubr.f32.mxu1 %v3678_v4  ;;  %v11136_v14 = vpack.c.bf16 %v5361_v38, %v5360_v57  ;;  %v3682_v13 = vsel %vm3157_vm15, %v12597_v7, %v9530_v10  ;;  %v3017_v48 = vpop.xlane.xlu0 %3016  ;;  %v12598_v57 = vld [vmem:[#allocation67_spill] sm:$0xff]  ;;  %v3020_v4 = vpop.xlane.xlu1 %3019 }
 0x457   : > { %v4082_v6 = vpop.f32.mrb[126].mxu1  ;;  %v3681_v38 = vsel %vm3157_vm15, %v12598_v57, %v9545_v53  ;;  %vm3159_vm1 = vcmp.gt.f32.partialorder %v3017_v48, 0.0  ;;  %vm3160_vm2 = vcmp.gt.f32.partialorder %v3020_v4, 0.0 }
 0x458   : > { %v4469_v15 = vsub.f32 %v4082_v6, %v11077_v43  ;;  %v4084_v8 = vpop.f32.mrb[127].mxu1  ;;  %v3685_v50 = vsel %vm3159_vm1, %v10389_v59, %v9166_v62 }
 0x459   : > { %4346 = vmatmul.mubr.f32.gmra.mrb[232].mxu1 %v3677_v58 }
 0x45a   : > { %4350 = vmatprep.mubr.f32.mxu1 %v3680_v36  ;;  %v4565_v46 = vpack.c.bf16 %v4469_v15, %v4468_v20  ;;  %v3686_v20 = vsel %vm3159_vm1, %v10392_v26, %v9169_v30  ;;  %v3023_v15 = vpop.xlane.xlu0 %3022  ;;  %v3026_v62 = vpop.xlane.xlu1 %3025 }
 0x45b   : > { %v4087_v3 = vpop.f32.mrb[128].mxu1  ;;  %vm3161_vm3 = vcmp.gt.f32.partialorder %v3023_v15, 0.0  ;;  %vm3162_vm4 = vcmp.gt.f32.partialorder %v3026_v62, 0.0 }
 0x45c   : > { %v4089_v37 = vpop.f32.mrb[129].mxu1  ;;  %7321 = vmatmul.mubr.msk.bf16.gmra.mrb[76].mxu0 %vm4606_vm7, %v4565_v46  ;;  %v4470_v2 = vsub.f32 %v4087_v3, %v10949_v33  ;;  %v3688_v3 = vsel %vm3160_vm2, %v10488_v18, %v9197_v22  ;;  %v3690_v57 = vsel %vm3161_vm3, %v10429_v51, %v9224_v41 }
 0x45d   : > { %4351 = vmatmul.mubr.f32.gmra.mrb[234].mxu1 %v3679_v32 }
 0x45e   : > { %4355 = vmatprep.mubr.f32.mxu1 %v3682_v13 }
 0x45f   : > { %v4092_v27 = vpop.f32.mrb[130].mxu1 }
 0x460   : > { %v4471_v31 = vsub.f32 %v4092_v27, %v10953_v45  ;;  %v4094_v23 = vpop.f32.mrb[131].mxu1  ;;  %v3687_v27 = vsel %vm3160_vm2, %v10485_v29, %v9193_v5  ;;  %v12599_v29 = vld [vmem:[#allocation14_spill] sm:$0xff] }
 0x461   : > { %4356 = vmatmul.mubr.f32.gmra.mrb[236].mxu1 %v3681_v38  ;;  %v3689_v4 = vsel %vm3161_vm3, %v12599_v29, %v9220_v9  ;;  %v3691_v9 = vsel %vm3162_vm4, %v10526_v1, %v12310_v24  ;;  %v12600_v24 = vld [vmem:[#allocation28_spill] sm:$0xff] }
 0x462   : > { %4360 = vmatprep.mubr.f32.mxu1 %v3684_v35  ;;  %v4566_v0 = vpack.c.bf16 %v4471_v31, %v4470_v2  ;;  %v3029_v35 = vpop.xlane.xlu0 %3028 }
 0x463   : > { %v4097_v6 = vpop.f32.mrb[132].mxu1  ;;  %vm3163_vm5 = vcmp.gt.f32.partialorder %v3029_v35, 0.0 }
 0x464   : > { %v4099_v58 = vpop.f32.mrb[133].mxu1  ;;  %7324 = vmatprep.mubr.msk.bf16.mxu0 %vm4606_vm7, %v4566_v0  ;;  %v4472_v47 = vsub.f32 %v4097_v6, %v10968_v19 }
 0x465   : > { %4361 = vmatmul.mubr.f32.gmra.mrb[238].mxu1 %v3683_v21  ;;  %v3692_v58 = vsel %vm3162_vm4, %v10529_v17, %v12406_v60  ;;  %v3693_v17 = vsel %vm3163_vm5, %v10469_v16, %v12412_v55  ;;  %v12602_v16 = vld [vmem:[#allocation61_spill] sm:$0xff] }
 0x466   : > { %4365 = vmatprep.mubr.f32.mxu1 %v3686_v20  ;;  %v3032_v20 = vpop.xlane.xlu1 %3031 }
 0x467   : > { %v4102_v8 = vpop.f32.mrb[134].mxu1  ;;  %v7278_v36 = vpop.f32.mrb[32].mxu0  ;;  %vm3164_vm6 = vcmp.gt.f32.partialorder %v3032_v20, 0.0 }
 0x468   : > { %v4473_v46 = vsub.f32 %v4102_v8, %v10972_v28  ;;  %v4104_v42 = vpop.f32.mrb[135].mxu1  ;;  %v4910_v30 = vadd.f32 %v7278_v36, %v10908_v39  ;;  %v4901_v26 = vpop.f32.mrb[33].mxu0  ;;  %v3694_v36 = vsel %vm3163_vm5, %v10472_v25, %v12410_v54  ;;  %v3696_v1 = vsel %vm3164_vm6, %v12600_v24, %v12414_v34  ;;  %v12603_v34 = vld [vmem:[#allocation66_spill] sm:$0xff] }
 0x469   : > { %4366 = vmatmul.mubr.f32.gmra.mrb[240].mxu1 %v3685_v50  ;;  %v4902_v32 = vadd.f32 %v10908_v39, %v4901_v26  ;;  %v7279_v37 = vpop.f32.mrb[34].mxu0  ;;  %v12601_v26 = vld [vmem:[#allocation60_spill] sm:$0xff] }
 0x46a   : > { %4370 = vmatprep.mubr.f32.mxu1 %v3688_v3  ;;  %v4567_v59 = vpack.c.bf16 %v4473_v46, %v4472_v47  ;;  %v4913_v7 = vadd.f32 %v7279_v37, %v10908_v39  ;;  %v4904_v13 = vpop.f32.mrb[35].mxu0  ;;  %v5366_v38 = vmax.f32 %v4910_v30, 0.0  ;;  %v3035_v47 = vpop.xlane.xlu0 %3034 }
 0x46b   : > { %v4107_v48 = vpop.f32.mrb[136].mxu1  ;;  %v4905_v22 = vadd.f32 %v10908_v39, %v4904_v13  ;;  %v5364_v31 = vmax.f32 %v4902_v32, 0.0  ;;  %vm3165_vm8 = vcmp.gt.f32.partialorder %v3035_v47, 0.0  ;;  %v3038_v30 = vpop.xlane.xlu1 %3037  ;;  %v3695_v32 = vsel %vm3164_vm6, %v12601_v26, %v12325_v40  ;;  %v12604_v40 = vld [vmem:[#allocation69_spill] sm:$0xff] }
 0x46c   : > { %v4109_v18 = vpop.f32.mrb[137].mxu1  ;;  %7325 = vmatmul.mubr.msk.bf16.gmra.mrb[80].mxu0 %vm4606_vm7, %v4567_v59  ;;  %v5367_v2 = vmax.f32 %v4913_v7, 0.0  ;;  %v4474_v21 = vsub.f32 %v4107_v48, %v10987_v61  ;;  %v3698_v55 = vsel %vm3165_vm8, %v12602_v16, %v9530_v10  ;;  %vm3166_vm9 = vcmp.gt.f32.partialorder %v3038_v30, 0.0 }
 0x46d   : > { %4371 = vmatmul.mubr.f32.gmra.mrb[242].mxu1 %v3687_v27  ;;  %v5365_v23 = vmax.f32 %v4905_v22, 0.0  ;;  %v3697_v59 = vsel %vm3165_vm8, %v12603_v34, %v9545_v53  ;;  %v3700_v27 = vsel %vm3166_vm9, %v12604_v40, %v9619_v52 }
 0x46e   : > { %4375 = vmatprep.mubr.f32.mxu1 %v3690_v57  ;;  %v11181_v0 = vpack.c.bf16 %v5367_v2, %v5366_v38  ;;  %v12605_v2 = vld [vmem:[#allocation70_spill] sm:$0xff] }
 0x46f   : > { %v4112_v5 = vpop.f32.mrb[138].mxu1  ;;  %v11186_v6 = vpack.c.bf16 %v5365_v23, %v5364_v31  ;;  %v3699_v31 = vsel %vm3166_vm9, %v12605_v2, %v9637_v49 }
 0x470   : > { %v4475_v41 = vsub.f32 %v4112_v5, %v10991_v56  ;;  %v4114_v51 = vpop.f32.mrb[139].mxu1 }
 0x471   : > { %4376 = vmatmul.mubr.f32.gmra.mrb[244].mxu1 %v3689_v4 }
 0x472   : > { %4380 = vmatprep.mubr.f32.mxu1 %v3692_v58  ;;  %v4568_v8 = vpack.c.bf16 %v4475_v41, %v4474_v21 }
 0x473   : > { %v4117_v50 = vpop.f32.mrb[140].mxu1 }
 0x474   : > { %v4119_v15 = vpop.f32.mrb[141].mxu1  ;;  %7328 = vmatprep.mubr.msk.bf16.mxu0 %vm4606_vm7, %v4568_v8  ;;  %v4476_v46 = vsub.f32 %v4117_v50, %v11073_v44 }
 0x475   : > { %4381 = vmatmul.mubr.f32.gmra.mrb[246].mxu1 %v3691_v9 }
 0x476   : > { %4385 = vmatprep.mubr.f32.mxu1 %v3694_v36 }
 0x477   : > { %v4122_v60 = vpop.f32.mrb[142].mxu1 }
 0x478   : > { %v4477_v42 = vsub.f32 %v4122_v60, %v11077_v43  ;;  %v4124_v3 = vpop.f32.mrb[143].mxu1 }
 0x479   : > { %4386 = vmatmul.mubr.f32.gmra.mrb[248].mxu1 %v3693_v17 }
 0x47a   : > { %4390 = vmatprep.mubr.f32.mxu1 %v3696_v1  ;;  %v4569_v54 = vpack.c.bf16 %v4477_v42, %v4476_v46 }
 0x47b   : > { %v4127_v25 = vpop.f32.mrb[144].mxu1 }
 0x47c   : > { %v4129_v37 = vpop.f32.mrb[145].mxu1  ;;  %7329 = vmatmul.mubr.msk.bf16.gmra.mrb[84].mxu0 %vm4606_vm7, %v4569_v54  ;;  %v4478_v7 = vsub.f32 %v4127_v25, %v10949_v33 }
 0x47d   : > { %4391 = vmatmul.mubr.f32.gmra.mrb[250].mxu1 %v3695_v32 }
 0x47e   : > { %4395 = vmatprep.mubr.f32.mxu1 %v3698_v55 }
 0x47f   : > { %v4132_v62 = vpop.f32.mrb[146].mxu1 }
 0x480   : > { %v4479_v13 = vsub.f32 %v4132_v62, %v10953_v45  ;;  %v4134_v48 = vpop.f32.mrb[147].mxu1 }
 0x481   : > { %4396 = vmatmul.mubr.f32.gmra.mrb[252].mxu1 %v3697_v59  ;;  %v7282_v22 = vpop.f32.mrb[36].mxu0 }
 0x482   : > { %4400 = vmatprep.mubr.f32.mxu1 %v3700_v27  ;;  %v4570_v18 = vpack.c.bf16 %v4479_v13, %v4478_v7  ;;  %v4926_v10 = vadd.f32 %v7282_v22, %v10908_v39  ;;  %v4917_v57 = vpop.f32.mrb[37].mxu0 }
 0x483   : > { %v4137_v38 = vpop.f32.mrb[148].mxu1  ;;  %v4918_v53 = vadd.f32 %v10908_v39, %v4917_v57  ;;  %v7283_v23 = vpop.f32.mrb[38].mxu0 }
 0x484   : > { %v4139_v35 = vpop.f32.mrb[149].mxu1  ;;  %7332 = vmatprep.mubr.msk.bf16.mxu0 %vm4606_vm7, %v4570_v18  ;;  %v4929_v5 = vadd.f32 %v7283_v23, %v10908_v39  ;;  %v4920_v52 = vpop.f32.mrb[39].mxu0  ;;  %v5370_v4 = vmax.f32 %v4926_v10, 0.0  ;;  %v4480_v20 = vsub.f32 %v4137_v38, %v10968_v19 }
 0x485   : > { %4401 = vmatmul.mubr.f32.gmra.mrb[254].mxu1 %v3699_v31  ;;  %v4921_v29 = vadd.f32 %v10908_v39, %v4920_v52  ;;  %v5368_v51 = vmax.f32 %v4918_v53, 0.0 }
 0x486   : > { %v5371_v21 = vmax.f32 %v4929_v5, 0.0 }
 0x487   : > { %v4142_v41 = vpop.f32.mrb[150].mxu1  ;;  %v5369_v58 = vmax.f32 %v4921_v29, 0.0 }
 0x488   : > { %v4481_v49 = vsub.f32 %v4142_v41, %v10972_v28  ;;  %v4144_v8 = vpop.f32.mrb[151].mxu1  ;;  %v11225_v50 = vpack.c.bf16 %v5371_v21, %v5370_v4 }
 0x489   : > { %v11227_v9 = vpack.c.bf16 %v5369_v58, %v5368_v51 }
 0x48a   : > { %v4571_v15 = vpack.c.bf16 %v4481_v49, %v4480_v20 }
 0x48b   : > { %v4147_v36 = vpop.f32.mrb[152].mxu1 }
 0x48c   : > { %v4149_v47 = vpop.f32.mrb[153].mxu1  ;;  %7333 = vmatmul.mubr.msk.bf16.gmra.mrb[88].mxu0 %vm4606_vm7, %v4571_v15  ;;  %v4482_v17 = vsub.f32 %v4147_v36, %v10987_v61  ;;  %v11255_v36 = vld [vmem:[%s11795_s4] ss:$0 sm:$0xff] }
 0x48f   : > { %v4152_v60 = vpop.f32.mrb[154].mxu1 }
 0x490   : > { %v4483_v46 = vsub.f32 %v4152_v60, %v10991_v56  ;;  %v4154_v42 = vpop.f32.mrb[155].mxu1 }
 0x492   : > { %v4572_v3 = vpack.c.bf16 %v4483_v46, %v4482_v17 }
 0x493   : > { %v4157_v24 = vpop.f32.mrb[156].mxu1 }
 0x494   : > { %v4159_v1 = vpop.f32.mrb[157].mxu1  ;;  %7336 = vmatprep.mubr.msk.bf16.mxu0 %vm4606_vm7, %v4572_v3  ;;  %v4484_v54 = vsub.f32 %v4157_v24, %v11073_v44 }
 0x497   : > { %v4162_v30 = vpop.f32.mrb[158].mxu1 }
 0x498   : > { %v4485_v25 = vsub.f32 %v4162_v30, %v11077_v43  ;;  %v4164_v26 = vpop.f32.mrb[159].mxu1 }
 0x49a   : > { %v4573_v32 = vpack.c.bf16 %v4485_v25, %v4484_v54  ;;  %v7286_v16 = vpop.f32.mrb[40].mxu0 }
 0x49b   : > { %v4167_v37 = vpop.f32.mrb[160].mxu1  ;;  %v4942_v62 = vadd.f32 %v7286_v16, %v10908_v39  ;;  %v4933_v34 = vpop.f32.mrb[41].mxu0 }
 0x49c   : > { %v4169_v55 = vpop.f32.mrb[161].mxu1  ;;  %7337 = vmatmul.mubr.msk.bf16.gmra.mrb[92].mxu0 %vm4606_vm7, %v4573_v32  ;;  %v4934_v59 = vadd.f32 %v10908_v39, %v4933_v34  ;;  %v7287_v7 = vpop.f32.mrb[42].mxu0  ;;  %v4486_v22 = vsub.f32 %v4167_v37, %v10949_v33 }
 0x49d   : > { %v4945_v13 = vadd.f32 %v7287_v7, %v10908_v39  ;;  %v4936_v48 = vpop.f32.mrb[43].mxu0  ;;  %v5374_v10 = vmax.f32 %v4942_v62, 0.0 }
 0x49e   : > { %v4937_v27 = vadd.f32 %v10908_v39, %v4936_v48  ;;  %v5372_v2 = vmax.f32 %v4934_v59, 0.0 }
 0x49f   : > { %v4172_v40 = vpop.f32.mrb[162].mxu1  ;;  %v5375_v38 = vmax.f32 %v4945_v13, 0.0 }
 0x4a0   : > { %v4487_v18 = vsub.f32 %v4172_v40, %v10953_v45  ;;  %v4174_v57 = vpop.f32.mrb[163].mxu1  ;;  %v5373_v31 = vmax.f32 %v4937_v27, 0.0 }
 0x4a1   : > { %v11242_v23 = vpack.c.bf16 %v5375_v38, %v5374_v10 }
 0x4a2   : > { %v4574_v53 = vpack.c.bf16 %v4487_v18, %v4486_v22  ;;  %v11244_v35 = vpack.c.bf16 %v5373_v31, %v5372_v2 }
 0x4a3   : > { %v4177_v5 = vpop.f32.mrb[164].mxu1 }
 0x4a4   : > { %v4179_v52 = vpop.f32.mrb[165].mxu1  ;;  %7340 = vmatprep.mubr.msk.bf16.mxu0 %vm4606_vm7, %v4574_v53  ;;  %v4488_v39 = vsub.f32 %v4177_v5, %v10968_v19 }
 0x4a7   : > { %v4182_v29 = vpop.f32.mrb[166].mxu1 }
 0x4a8   : > { %v4489_v4 = vsub.f32 %v4182_v29, %v10972_v28  ;;  %v4184_v21 = vpop.f32.mrb[167].mxu1 }
 0x4aa   : > { %v4575_v41 = vpack.c.bf16 %v4489_v4, %v4488_v39 }
 0x4ab   : > { %v4187_v51 = vpop.f32.mrb[168].mxu1 }
 0x4ac   : > { %v4189_v58 = vpop.f32.mrb[169].mxu1  ;;  %7341 = vmatmul.mubr.msk.bf16.gmra.mrb[96].mxu0 %vm4606_vm7, %v4575_v41  ;;  %v4490_v8 = vsub.f32 %v4187_v51, %v10987_v61 }
 0x4af   : > { %v4192_v20 = vpop.f32.mrb[170].mxu1  ;;  %v7290_v49 = vpop.f32.mrb[44].mxu0 }
 0x4b0   : > { %v4491_v15 = vsub.f32 %v4192_v20, %v10991_v56  ;;  %v4958_v47 = vadd.f32 %v11255_v36, %v7290_v49  ;;  %v4194_v60 = vpop.f32.mrb[171].mxu1  ;;  %v4949_v17 = vpop.f32.mrb[45].mxu0 }
 0x4b1   : > { %v4950_v46 = vadd.f32 %v11255_v36, %v4949_v17  ;;  %v7291_v42 = vpop.f32.mrb[46].mxu0 }
 0x4b2   : > { %v4576_v3 = vpack.c.bf16 %v4491_v15, %v4490_v8  ;;  %v4961_v24 = vadd.f32 %v11255_v36, %v7291_v42  ;;  %v4952_v1 = vpop.f32.mrb[47].mxu0  ;;  %v5378_v25 = vmax.f32 %v4958_v47, 0.0 }
 0x4b3   : > { %v4953_v30 = vadd.f32 %v11255_v36, %v4952_v1  ;;  %v4197_v54 = vpop.f32.mrb[172].mxu1  ;;  %v5376_v37 = vmax.f32 %v4950_v46, 0.0 }
 0x4b4   : > { %v5379_v26 = vmax.f32 %v4961_v24, 0.0  ;;  %v4199_v32 = vpop.f32.mrb[173].mxu1  ;;  %7344 = vmatprep.mubr.msk.bf16.mxu0 %vm4606_vm7, %v4576_v3  ;;  %v4492_v59 = vsub.f32 %v4197_v54, %v11073_v44 }
 0x4b5   : > { %v5377_v16 = vmax.f32 %v4953_v30, 0.0 }
 0x4b6   : > { %v11262_v55 = vpack.c.bf16 %v5379_v26, %v5378_v25 }
 0x4b7   : > { %v11264_v62 = vpack.c.bf16 %v5377_v16, %v5376_v37  ;;  %v4202_v34 = vpop.f32.mrb[174].mxu1 }
 0x4b8   : > { %v4493_v7 = vsub.f32 %v4202_v34, %v11077_v43  ;;  %v4204_v13 = vpop.f32.mrb[175].mxu1 }
 0x4ba   : > { %v4577_v48 = vpack.c.bf16 %v4493_v7, %v4492_v59 }
 0x4bb   : > { %v4207_v40 = vpop.f32.mrb[176].mxu1 }
 0x4bc   : > { %v4209_v27 = vpop.f32.mrb[177].mxu1  ;;  %7345 = vmatmul.mubr.msk.bf16.gmra.mrb[100].mxu0 %vm4606_vm7, %v4577_v48  ;;  %v4494_v10 = vsub.f32 %v4207_v40, %v10949_v33 }
 0x4bf   : > { %v4212_v22 = vpop.f32.mrb[178].mxu1  ;;  %v7294_v18 = vpop.f32.mrb[48].mxu0 }
 0x4c0   : > { %v4495_v57 = vsub.f32 %v4212_v22, %v10953_v45  ;;  %v4974_v38 = vadd.f32 %v11255_v36, %v7294_v18  ;;  %v4214_v2 = vpop.f32.mrb[179].mxu1  ;;  %v4965_v31 = vpop.f32.mrb[49].mxu0 }
 0x4c1   : > { %v4966_v53 = vadd.f32 %v11255_v36, %v4965_v31  ;;  %v7295_v5 = vpop.f32.mrb[50].mxu0 }
 0x4c2   : > { %v4578_v52 = vpack.c.bf16 %v4495_v57, %v4494_v10  ;;  %v4977_v29 = vadd.f32 %v11255_v36, %v7295_v5  ;;  %v4968_v39 = vpop.f32.mrb[51].mxu0  ;;  %v5382_v41 = vmax.f32 %v4974_v38, 0.0 }
 0x4c3   : > { %v4969_v4 = vadd.f32 %v11255_v36, %v4968_v39  ;;  %v4217_v21 = vpop.f32.mrb[180].mxu1  ;;  %v5380_v33 = vmax.f32 %v4966_v53, 0.0  ;;  %v11302_v39 = vld [vmem:[%s7759_s29 + $0x8] sm:$0xff] }
 0x4c4   : > { %v5383_v51 = vmax.f32 %v4977_v29, 0.0  ;;  %v4219_v58 = vpop.f32.mrb[181].mxu1  ;;  %7348 = vmatprep.mubr.msk.bf16.mxu0 %vm4606_vm7, %v4578_v52  ;;  %v4496_v15 = vsub.f32 %v4217_v21, %v10968_v19  ;;  %v11298_v52 = vld [vmem:[%s7759_s29] sm:$0xff] }
 0x4c5   : > { %v5381_v45 = vmax.f32 %v4969_v4, 0.0 }
 0x4c6   : > { %v11276_v20 = vpack.c.bf16 %v5383_v51, %v5382_v41 }
 0x4c7   : > { %v11278_v49 = vpack.c.bf16 %v5381_v45, %v5380_v33  ;;  %v4222_v8 = vpop.f32.mrb[182].mxu1 }
 0x4c8   : > { %v4497_v47 = vsub.f32 %v4222_v8, %v10972_v28  ;;  %v4224_v60 = vpop.f32.mrb[183].mxu1 }
 0x4ca   : > { %v4579_v17 = vpack.c.bf16 %v4497_v47, %v4496_v15 }
 0x4cb   : > { %v4227_v46 = vpop.f32.mrb[184].mxu1 }
 0x4cc   : > { %v4229_v42 = vpop.f32.mrb[185].mxu1  ;;  %7349 = vmatmul.mubr.msk.bf16.gmra.mrb[104].mxu0 %vm4606_vm7, %v4579_v17  ;;  %v4498_v1 = vsub.f32 %v4227_v46, %v10987_v61 }
 0x4cf   : > { %v4232_v3 = vpop.f32.mrb[186].mxu1  ;;  %v7298_v24 = vpop.f32.mrb[52].mxu0 }
 0x4d0   : > { %v4499_v30 = vsub.f32 %v4232_v3, %v10991_v56  ;;  %v4990_v54 = vadd.f32 %v11255_v36, %v7298_v24  ;;  %v4234_v25 = vpop.f32.mrb[187].mxu1  ;;  %v4981_v26 = vpop.f32.mrb[53].mxu0 }
 0x4d1   : > { %v4982_v19 = vadd.f32 %v11255_v36, %v4981_v26  ;;  %v7299_v32 = vpop.f32.mrb[54].mxu0  ;;  %v11315_v25 = vld [vmem:[%s7759_s29 + $0x10] sm:$0xff] }
 0x4d2   : > { %v4580_v28 = vpack.c.bf16 %v4499_v30, %v4498_v1  ;;  %v4993_v37 = vadd.f32 %v11255_v36, %v7299_v32  ;;  %v4984_v16 = vpop.f32.mrb[55].mxu0  ;;  %v5386_v7 = vmax.f32 %v4990_v54, 0.0 }
 0x4d3   : > { %v4985_v34 = vadd.f32 %v11255_v36, %v4984_v16  ;;  %v4237_v59 = vpop.f32.mrb[188].mxu1  ;;  %v5384_v61 = vmax.f32 %v4982_v19, 0.0  ;;  %v11319_v19 = vld [vmem:[%s7759_s29 + $0x18] sm:$0xff] }
 0x4d4   : > { %v5387_v13 = vmax.f32 %v4993_v37, 0.0  ;;  %v4239_v48 = vpop.f32.mrb[189].mxu1  ;;  %7352 = vmatprep.mubr.msk.bf16.mxu0 %vm4606_vm7, %v4580_v28  ;;  %v4500_v18 = vsub.f32 %v4237_v59, %v11073_v44 }
 0x4d5   : > { %v5385_v56 = vmax.f32 %v4985_v34, 0.0 }
 0x4d6   : > { %v11290_v40 = vpack.c.bf16 %v5387_v13, %v5386_v7  ;;  %v11324_v13 = vld [vmem:[%s7759_s29 + $0x20] sm:$0xff] }
 0x4d7   : > { %v11292_v27 = vpack.c.bf16 %v5385_v56, %v5384_v61  ;;  %v4242_v22 = vpop.f32.mrb[190].mxu1  ;;  %v11328_v61 = vld [vmem:[%s7759_s29 + $0x28] sm:$0xff] }
 0x4d8   : > { %v4501_v10 = vsub.f32 %v4242_v22, %v11077_v43  ;;  %v4244_v57 = vpop.f32.mrb[191].mxu1 }
 0x4da   : > { %v4581_v38 = vpack.c.bf16 %v4501_v10, %v4500_v18 }
 0x4db   : > { %v4247_v2 = vpop.f32.mrb[192].mxu1 }
 0x4dc   : > { %v4249_v31 = vpop.f32.mrb[193].mxu1  ;;  %7353 = vmatmul.mubr.msk.bf16.gmra.mrb[108].mxu0 %vm4606_vm7, %v4581_v38  ;;  %v4502_v29 = vsub.f32 %v4247_v2, %v11298_v52 }
 0x4df   : > { %v4252_v53 = vpop.f32.mrb[194].mxu1  ;;  %v7302_v5 = vpop.f32.mrb[56].mxu0 }
 0x4e0   : > { %v4503_v4 = vsub.f32 %v4252_v53, %v11302_v39  ;;  %v5006_v21 = vadd.f32 %v11255_v36, %v7302_v5  ;;  %v4254_v41 = vpop.f32.mrb[195].mxu1  ;;  %v4997_v51 = vpop.f32.mrb[57].mxu0 }
 0x4e1   : > { %v4998_v58 = vadd.f32 %v11255_v36, %v4997_v51  ;;  %v7303_v33 = vpop.f32.mrb[58].mxu0 }
 0x4e2   : > { %v4582_v45 = vpack.c.bf16 %v4503_v4, %v4502_v29  ;;  %v5009_v8 = vadd.f32 %v11255_v36, %v7303_v33  ;;  %v5000_v15 = vpop.f32.mrb[59].mxu0  ;;  %v5390_v17 = vmax.f32 %v5006_v21, 0.0 }
 0x4e3   : > { %v5001_v47 = vadd.f32 %v11255_v36, %v5000_v15  ;;  %v4257_v60 = vpop.f32.mrb[196].mxu1  ;;  %v5388_v3 = vmax.f32 %v4998_v58, 0.0 }
 0x4e4   : > { %v5391_v46 = vmax.f32 %v5009_v8, 0.0  ;;  %v4259_v42 = vpop.f32.mrb[197].mxu1  ;;  %7356 = vmatprep.mubr.msk.bf16.mxu0 %vm4606_vm7, %v4582_v45  ;;  %v4504_v26 = vsub.f32 %v4257_v60, %v11315_v25 }
 0x4e5   : > { %v5389_v24 = vmax.f32 %v5001_v47, 0.0 }
 0x4e6   : > { %v11310_v1 = vpack.c.bf16 %v5391_v46, %v5390_v17 }
 0x4e7   : > { %v11312_v30 = vpack.c.bf16 %v5389_v24, %v5388_v3  ;;  %v4262_v54 = vpop.f32.mrb[198].mxu1 }
 0x4e8   : > { %v4505_v32 = vsub.f32 %v4262_v54, %v11319_v19  ;;  %v4264_v28 = vpop.f32.mrb[199].mxu1 }
 0x4ea   : > { %v4583_v37 = vpack.c.bf16 %v4505_v32, %v4504_v26 }
 0x4eb   : > { %v4267_v16 = vpop.f32.mrb[200].mxu1 }
 0x4ec   : > { %v4269_v34 = vpop.f32.mrb[201].mxu1  ;;  %7357 = vmatmul.mubr.msk.bf16.gmra.mrb[112].mxu0 %vm4606_vm7, %v4583_v37  ;;  %v4506_v48 = vsub.f32 %v4267_v16, %v11324_v13 }
 0x4ef   : > { %v4272_v59 = vpop.f32.mrb[202].mxu1  ;;  %v7306_v7 = vpop.f32.mrb[60].mxu0 }
 0x4f0   : > { %v4507_v56 = vsub.f32 %v4272_v59, %v11328_v61  ;;  %v5022_v22 = vadd.f32 %v11255_v36, %v7306_v7  ;;  %v4274_v18 = vpop.f32.mrb[203].mxu1  ;;  %v5013_v10 = vpop.f32.mrb[61].mxu0 }
 0x4f1   : > { %v5014_v57 = vadd.f32 %v11255_v36, %v5013_v10  ;;  %v7307_v38 = vpop.f32.mrb[62].mxu0 }
 0x4f2   : > { %v4584_v2 = vpack.c.bf16 %v4507_v56, %v4506_v48  ;;  %v5025_v31 = vadd.f32 %v11255_v36, %v7307_v38  ;;  %v5016_v53 = vpop.f32.mrb[63].mxu0  ;;  %v5394_v4 = vmax.f32 %v5022_v22, 0.0 }
 0x4f3   : > { %v5017_v5 = vadd.f32 %v11255_v36, %v5016_v53  ;;  %v4277_v29 = vpop.f32.mrb[204].mxu1  ;;  %v5392_v51 = vmax.f32 %v5014_v57, 0.0 }
 0x4f4   : > { %v5395_v21 = vmax.f32 %v5025_v31, 0.0  ;;  %v4279_v41 = vpop.f32.mrb[205].mxu1  ;;  %7360 = vmatprep.mubr.msk.bf16.mxu0 %vm4606_vm7, %v4584_v2  ;;  %v4508_v15 = vsub.f32 %v4277_v29, %v11073_v44 }
 0x4f5   : > { %v5393_v58 = vmax.f32 %v5017_v5, 0.0 }
 0x4f6   : > { %v11336_v33 = vpack.c.bf16 %v5395_v21, %v5394_v4 }
 0x4f7   : > { %v11338_v45 = vpack.c.bf16 %v5393_v58, %v5392_v51 }
 0x4f8   : > { %v4282_v8 = vpop.f32.mrb[206].mxu1 }
 0x4f9   : > { %v4509_v47 = vsub.f32 %v4282_v8, %v11077_v43  ;;  %v4284_v60 = vpop.f32.mrb[207].mxu1 }
 0x4fb   : > { %v4585_v17 = vpack.c.bf16 %v4509_v47, %v4508_v15 }
 0x4fc   : > { %v4287_v46 = vpop.f32.mrb[208].mxu1 }
 0x4fd   : > { %v4289_v42 = vpop.f32.mrb[209].mxu1  ;;  %7361 = vmatmul.mubr.msk.bf16.gmra.mrb[116].mxu0 %vm4606_vm7, %v4585_v17  ;;  %v4510_v54 = vsub.f32 %v4287_v46, %v11298_v52 }
 0x4ff   : > { %v7310_v24 = vpop.f32.mrb[64].mxu0 }
 0x500   : > { %v4292_v3 = vpop.f32.mrb[210].mxu1  ;;  %v5038_v32 = vadd.f32 %v11255_v36, %v7310_v24  ;;  %v5029_v37 = vpop.f32.mrb[65].mxu0 }
 0x501   : > { %v4511_v26 = vsub.f32 %v4292_v3, %v11302_v39  ;;  %v4294_v28 = vpop.f32.mrb[211].mxu1  ;;  %v5030_v16 = vadd.f32 %v11255_v36, %v5029_v37  ;;  %v7311_v34 = vpop.f32.mrb[66].mxu0 }
 0x502   : > { %v5041_v7 = vadd.f32 %v11255_v36, %v7311_v34  ;;  %v5032_v48 = vpop.f32.mrb[67].mxu0  ;;  %v5398_v18 = vmax.f32 %v5038_v32, 0.0 }
 0x503   : > { %v4586_v59 = vpack.c.bf16 %v4511_v26, %v4510_v54  ;;  %v5033_v56 = vadd.f32 %v11255_v36, %v5032_v48  ;;  %v5396_v38 = vmax.f32 %v5030_v16, 0.0 }
 0x504   : > { %v4297_v22 = vpop.f32.mrb[212].mxu1  ;;  %v5399_v10 = vmax.f32 %v5041_v7, 0.0 }
 0x505   : > { %v4299_v57 = vpop.f32.mrb[213].mxu1  ;;  %7364 = vmatprep.mubr.msk.bf16.mxu0 %vm4606_vm7, %v4586_v59  ;;  %v5397_v2 = vmax.f32 %v5033_v56, 0.0  ;;  %v4512_v29 = vsub.f32 %v4297_v22, %v11315_v25 }
 0x506   : > { %v11350_v31 = vpack.c.bf16 %v5399_v10, %v5398_v18 }
 0x507   : > { %v11352_v53 = vpack.c.bf16 %v5397_v2, %v5396_v38 }
 0x508   : > { %v4302_v5 = vpop.f32.mrb[214].mxu1 }
 0x509   : > { %v4513_v4 = vsub.f32 %v4302_v5, %v11319_v19  ;;  %v4304_v21 = vpop.f32.mrb[215].mxu1 }
 0x50b   : > { %v4587_v41 = vpack.c.bf16 %v4513_v4, %v4512_v29 }
 0x50c   : > { %v4307_v51 = vpop.f32.mrb[216].mxu1 }
 0x50d   : > { %v4309_v58 = vpop.f32.mrb[217].mxu1  ;;  %7365 = vmatmul.mubr.msk.bf16.gmra.mrb[120].mxu0 %vm4606_vm7, %v4587_v41  ;;  %v4514_v47 = vsub.f32 %v4307_v51, %v11324_v13 }
 0x50f   : > { %v7314_v15 = vpop.f32.mrb[68].mxu0 }
 0x510   : > { %v4312_v8 = vpop.f32.mrb[218].mxu1  ;;  %v5054_v17 = vadd.f32 %v11255_v36, %v7314_v15  ;;  %v5045_v42 = vpop.f32.mrb[69].mxu0 }
 0x511   : > { %v4515_v60 = vsub.f32 %v4312_v8, %v11328_v61  ;;  %v4314_v46 = vpop.f32.mrb[219].mxu1  ;;  %v5046_v3 = vadd.f32 %v11255_v36, %v5045_v42  ;;  %v7315_v24 = vpop.f32.mrb[70].mxu0 }
 0x512   : > { %v5057_v26 = vadd.f32 %v11255_v36, %v7315_v24  ;;  %v5048_v32 = vpop.f32.mrb[71].mxu0  ;;  %v5402_v16 = vmax.f32 %v5054_v17, 0.0 }
 0x513   : > { %v4588_v54 = vpack.c.bf16 %v4515_v60, %v4514_v47  ;;  %v5049_v28 = vadd.f32 %v11255_v36, %v5048_v32  ;;  %v5400_v7 = vmax.f32 %v5046_v3, 0.0 }
 0x514   : > { %v4317_v37 = vpop.f32.mrb[220].mxu1  ;;  %v5403_v34 = vmax.f32 %v5057_v26, 0.0 }
 0x515   : > { %v4319_v59 = vpop.f32.mrb[221].mxu1  ;;  %7368 = vmatprep.mubr.msk.bf16.mxu0 %vm4606_vm7, %v4588_v54  ;;  %v5401_v48 = vmax.f32 %v5049_v28, 0.0  ;;  %v4516_v10 = vsub.f32 %v4317_v37, %v11073_v44 }
 0x516   : > { %v11364_v56 = vpack.c.bf16 %v5403_v34, %v5402_v16 }
 0x517   : > { %v11366_v22 = vpack.c.bf16 %v5401_v48, %v5400_v7 }
 0x518   : > { %v4322_v18 = vpop.f32.mrb[222].mxu1 }
 0x519   : > { %v4517_v57 = vsub.f32 %v4322_v18, %v11077_v43  ;;  %v4324_v38 = vpop.f32.mrb[223].mxu1 }
 0x51b   : > { %v4589_v2 = vpack.c.bf16 %v4517_v57, %v4516_v10 }
 0x51c   : > { %v4327_v5 = vpop.f32.mrb[224].mxu1 }
 0x51d   : > { %v4329_v29 = vpop.f32.mrb[225].mxu1  ;;  %7369 = vmatmul.mubr.msk.bf16.gmra.mrb[124].mxu0 %vm4606_vm7, %v4589_v2  ;;  %v4518_v41 = vsub.f32 %v4327_v5, %v11298_v52 }
 0x51f   : > { %v7318_v21 = vpop.f32.mrb[72].mxu0 }
 0x520   : > { %v4332_v4 = vpop.f32.mrb[226].mxu1  ;;  %v5070_v58 = vadd.f32 %v11255_v36, %v7318_v21  ;;  %v5061_v15 = vpop.f32.mrb[73].mxu0 }
 0x521   : > { %v4519_v51 = vsub.f32 %v4332_v4, %v11302_v39  ;;  %v4334_v8 = vpop.f32.mrb[227].mxu1  ;;  %v5062_v44 = vadd.f32 %v11255_v36, %v5061_v15  ;;  %v7319_v47 = vpop.f32.mrb[74].mxu0 }
 0x522   : > { %v5073_v60 = vadd.f32 %v11255_v36, %v7319_v47  ;;  %v5064_v17 = vpop.f32.mrb[75].mxu0  ;;  %v5406_v3 = vmax.f32 %v5070_v58, 0.0 }
 0x523   : > { %v4590_v43 = vpack.c.bf16 %v4519_v51, %v4518_v41  ;;  %v5065_v46 = vadd.f32 %v11255_v36, %v5064_v17  ;;  %v5404_v26 = vmax.f32 %v5062_v44, 0.0 }
 0x524   : > { %v4337_v42 = vpop.f32.mrb[228].mxu1  ;;  %v5407_v24 = vmax.f32 %v5073_v60, 0.0 }
 0x525   : > { %v4339_v54 = vpop.f32.mrb[229].mxu1  ;;  %7372 = vmatprep.mubr.msk.bf16.mxu0 %vm4606_vm7, %v4590_v43  ;;  %v5405_v32 = vmax.f32 %v5065_v46, 0.0  ;;  %v4520_v34 = vsub.f32 %v4337_v42, %v11315_v25 }
 0x526   : > { %v11378_v28 = vpack.c.bf16 %v5407_v24, %v5406_v3 }
 0x527   : > { %v11380_v37 = vpack.c.bf16 %v5405_v32, %v5404_v26  ;;  %v11397_v26 = vld [vmem:[%s7759_s29 + $0x30] sm:$0xff] }
 0x528   : > { %v4342_v16 = vpop.f32.mrb[230].mxu1 }
 0x529   : > { %v4521_v59 = vsub.f32 %v4342_v16, %v11319_v19  ;;  %v4344_v7 = vpop.f32.mrb[231].mxu1  ;;  %v11401_v16 = vld [vmem:[%s7759_s29 + $0x38] sm:$0xff] }
 0x52b   : > { %v4591_v48 = vpack.c.bf16 %v4521_v59, %v4520_v34 }
 0x52c   : > { %v4347_v18 = vpop.f32.mrb[232].mxu1 }
 0x52d   : > { %v4349_v10 = vpop.f32.mrb[233].mxu1  ;;  %7373 = vmatmul.mubr.msk.bf16.gmra.mrb[128].mxu0 %vm4606_vm7, %v4591_v48  ;;  %v4522_v2 = vsub.f32 %v4347_v18, %v11324_v13 }
 0x52e   : > { %v12606_v10 = vld [vmem:[#allocation65_spill] sm:$0xff] }
 0x52f   : > { %v7322_v38 = vpop.f32.mrb[76].mxu0 }
 0x530   : > { %v4352_v57 = vpop.f32.mrb[234].mxu1  ;;  %v5086_v29 = vadd.f32 %v11255_v36, %v7322_v38  ;;  %v5077_v21 = vpop.f32.mrb[77].mxu0 }
 0x531   : > { %v4523_v5 = vsub.f32 %v4352_v57, %v11328_v61  ;;  %v4354_v4 = vpop.f32.mrb[235].mxu1  ;;  %v5078_v41 = vadd.f32 %v11255_v36, %v5077_v21  ;;  %v7323_v51 = vpop.f32.mrb[78].mxu0 }
 0x532   : > { %v5089_v8 = vadd.f32 %v11255_v36, %v7323_v51  ;;  %v5080_v15 = vpop.f32.mrb[79].mxu0  ;;  %v5410_v43 = vmax.f32 %v5086_v29, 0.0 }
 0x533   : > { %v4592_v58 = vpack.c.bf16 %v4523_v5, %v4522_v2  ;;  %v5081_v44 = vadd.f32 %v11255_v36, %v5080_v15  ;;  %v5408_v46 = vmax.f32 %v5078_v41, 0.0 }
 0x534   : > { %v4357_v47 = vpop.f32.mrb[236].mxu1  ;;  %v5411_v60 = vmax.f32 %v5089_v8, 0.0 }
 0x535   : > { %v4359_v17 = vpop.f32.mrb[237].mxu1  ;;  %7376 = vmatprep.mubr.msk.bf16.mxu0 %vm4606_vm7, %v4592_v58  ;;  %v5409_v42 = vmax.f32 %v5081_v44, 0.0  ;;  %v4524_v32 = vsub.f32 %v4357_v47, %v11397_v26 }
 0x536   : > { %v11392_v3 = vpack.c.bf16 %v5411_v60, %v5410_v43 }
 0x537   : > { %v11394_v24 = vpack.c.bf16 %v5409_v42, %v5408_v46  ;;  %v12608_v42 = vld [vmem:[#allocation64_spill] sm:$0xff] }
 0x538   : > { %v4362_v54 = vpop.f32.mrb[238].mxu1 }
 0x539   : > { %v4525_v34 = vsub.f32 %v4362_v54, %v11401_v16  ;;  %v4364_v59 = vpop.f32.mrb[239].mxu1 }
 0x53b   : > { %v4593_v7 = vpack.c.bf16 %v4525_v34, %v4524_v32 }
 0x53c   : > { %v4367_v48 = vpop.f32.mrb[240].mxu1 }
 0x53d   : > { %v4369_v18 = vpop.f32.mrb[241].mxu1  ;;  %7377 = vmatmul.mubr.msk.bf16.gmra.mrb[132].mxu0 %vm4606_vm7, %v4593_v7  ;;  %v4526_v2 = vsub.f32 %v4367_v48, %v11298_v52  ;;  %v12607_v52 = vld [vmem:[#allocation35_spill] sm:$0xff] }
 0x53e   : > { %7390 = vmatprep.mubr.msk.bf16.mxu0 %vm5548_vm10, %v12606_v10 }
 0x53f   : > { %v7326_v38 = vpop.f32.mrb[80].mxu0 }
 0x540   : > { %v4372_v57 = vpop.f32.mrb[242].mxu1  ;;  %v5102_v29 = vadd.f32 %v11255_v36, %v7326_v38  ;;  %v5093_v21 = vpop.f32.mrb[81].mxu0  ;;  %v12609_v38 = vld [vmem:[#allocation33_spill] sm:$0xff] }
 0x541   : > { %v4527_v5 = vsub.f32 %v4372_v57, %v11302_v39  ;;  %v4374_v4 = vpop.f32.mrb[243].mxu1  ;;  %v5094_v41 = vadd.f32 %v11255_v36, %v5093_v21  ;;  %v7327_v51 = vpop.f32.mrb[82].mxu0 }
 0x542   : > { %v5105_v8 = vadd.f32 %v11255_v36, %v7327_v51  ;;  %v5096_v15 = vpop.f32.mrb[83].mxu0  ;;  %v5414_v43 = vmax.f32 %v5102_v29, 0.0 }
 0x543   : > { %v4594_v58 = vpack.c.bf16 %v4527_v5, %v4526_v2  ;;  %v5097_v44 = vadd.f32 %v11255_v36, %v5096_v15  ;;  %v5412_v39 = vmax.f32 %v5094_v41, 0.0 }
 0x544   : > { %v4377_v47 = vpop.f32.mrb[244].mxu1  ;;  %v5415_v60 = vmax.f32 %v5105_v8, 0.0 }
 0x545   : > { %v4379_v17 = vpop.f32.mrb[245].mxu1  ;;  %7380 = vmatprep.mubr.msk.bf16.mxu1 %vm4606_vm7, %v4594_v58  ;;  %7391 = vmatmul.mubr.msk.bf16.vlgmr.msra.gmra.mrb[136].mxu0 %vm5548_vm10, %v12607_v52  ;;  %v5413_v46 = vmax.f32 %v5097_v44, 0.0  ;;  %v4528_v59 = vsub.f32 %v4377_v47, %v11315_v25 }
 0x546   : > { %7394 = vmatprep.mubr.msk.bf16.mxu0 %vm5548_vm10, %v12608_v42  ;;  %v11418_v54 = vpack.c.bf16 %v5415_v60, %v5414_v43 }
 0x547   : > { %v11420_v32 = vpack.c.bf16 %v5413_v46, %v5412_v39 }
 0x548   : > { %v4382_v34 = vpop.f32.mrb[246].mxu1 }
 0x549   : > { %v4529_v7 = vsub.f32 %v4382_v34, %v11319_v19  ;;  %v4384_v48 = vpop.f32.mrb[247].mxu1 }
 0x54b   : > { %v4595_v18 = vpack.c.bf16 %v4529_v7, %v4528_v59 }
 0x54c   : > { %v4387_v10 = vpop.f32.mrb[248].mxu1 }
 0x54d   : > { %v4389_v57 = vpop.f32.mrb[249].mxu1  ;;  %7381 = vmatmul.mubr.msk.bf16.vlgmr.msra.gmra.mrb[0].mxu1 %vm4606_vm7, %v4595_v18  ;;  %7395 = vmatmul.mubr.msk.bf16.gmra.mrb[140].mxu0 %vm5548_vm10, %v12609_v38  ;;  %v4530_v29 = vsub.f32 %v4387_v10, %v11324_v13 }
 0x54e   : > { %7398 = vmatprep.mubr.msk.bf16.mxu0 %vm5548_vm10, %v11085_v63 }
 0x54f   : > { %v7330_v5 = vpop.f32.mrb[84].mxu0 }
 0x550   : > { %v4392_v2 = vpop.f32.mrb[250].mxu1  ;;  %v5118_v19 = vadd.f32 %v11255_v36, %v7330_v5  ;;  %v5109_v21 = vpop.f32.mrb[85].mxu0 }
 0x551   : > { %v4531_v25 = vsub.f32 %v4392_v2, %v11328_v61  ;;  %v4394_v4 = vpop.f32.mrb[251].mxu1  ;;  %v5110_v41 = vadd.f32 %v11255_v36, %v5109_v21  ;;  %v7331_v51 = vpop.f32.mrb[86].mxu0 }
 0x552   : > { %v5121_v8 = vadd.f32 %v11255_v36, %v7331_v51  ;;  %v5112_v15 = vpop.f32.mrb[87].mxu0  ;;  %v5418_v47 = vmax.f32 %v5118_v19, 0.0 }
 0x553   : > { %v4596_v58 = vpack.c.bf16 %v4531_v25, %v4530_v29  ;;  %v5113_v44 = vadd.f32 %v11255_v36, %v5112_v15  ;;  %v5416_v13 = vmax.f32 %v5110_v41, 0.0 }
 0x554   : > { %v4397_v63 = vpop.f32.mrb[252].mxu1  ;;  %v5419_v43 = vmax.f32 %v5121_v8, 0.0 }
 0x555   : > { %v4399_v60 = vpop.f32.mrb[253].mxu1  ;;  %7384 = vmatprep.mubr.msk.bf16.mxu1 %vm4606_vm7, %v4596_v58  ;;  %7399 = vmatmul.mubr.msk.bf16.gmra.mrb[144].mxu0 %vm5548_vm10, %v11080_v11  ;;  %v5417_v61 = vmax.f32 %v5113_v44, 0.0  ;;  %v4532_v46 = vsub.f32 %v4397_v63, %v11397_v26 }
 0x556   : > { %7402 = vmatprep.mubr.msk.bf16.mxu0 %vm5548_vm10, %v11136_v14  ;;  %v11440_v17 = vpack.c.bf16 %v5419_v43, %v5418_v47 }
 0x557   : > { %v11442_v52 = vpack.c.bf16 %v5417_v61, %v5416_v13 }
 0x558   : > { %v4402_v39 = vpop.f32.mrb[254].mxu1 }
 0x559   : > { %v4533_v42 = vsub.f32 %v4402_v39, %v11401_v16  ;;  %v4404_v34 = vpop.f32.mrb[255].mxu1 }
 0x55b   : > { %v4597_v59 = vpack.c.bf16 %v4533_v42, %v4532_v46 }
 0x55d   : > { %7385 = vmatmul.mubr.msk.bf16.gmra.mrb[4].mxu1 %vm4606_vm7, %v4597_v59  ;;  %7403 = vmatmul.mubr.msk.bf16.gmra.mrb[148].mxu0 %vm5548_vm10, %v11134_v12  ;;  %vm6538_vm7 = vcmask 130048  }
 0x55e   : > { %7406 = vmatprep.mubr.msk.bf16.mxu0 %vm5548_vm10, %v11186_v6 }
 0x55f   : > { %v7334_v11 = vpop.f32.mrb[88].mxu0 }
 0x560   : > { %v5134_v14 = vadd.f32 %v11255_v36, %v7334_v11  ;;  %v5125_v7 = vpop.f32.mrb[89].mxu0 }
 0x561   : > { %v5126_v48 = vadd.f32 %v11255_v36, %v5125_v7  ;;  %v7335_v18 = vpop.f32.mrb[90].mxu0 }
 0x562   : > { %v5137_v26 = vadd.f32 %v11255_v36, %v7335_v18  ;;  %v5128_v16 = vpop.f32.mrb[91].mxu0  ;;  %v5422_v57 = vmax.f32 %v5134_v14, 0.0 }
 0x563   : > { %v5129_v10 = vadd.f32 %v11255_v36, %v5128_v16  ;;  %v5420_v12 = vmax.f32 %v5126_v48, 0.0 }
 0x564   : > { %v5423_v38 = vmax.f32 %v5137_v26, 0.0 }
 0x565   : > { %7407 = vmatmul.mubr.msk.bf16.gmra.mrb[152].mxu0 %vm5548_vm10, %v11181_v0  ;;  %v5421_v2 = vmax.f32 %v5129_v10, 0.0 }
 0x566   : > { %7410 = vmatprep.mubr.msk.bf16.mxu0 %vm5548_vm10, %v11227_v9  ;;  %v11459_v6 = vpack.c.bf16 %v5423_v38, %v5422_v57 }
 0x567   : > { %v11461_v5 = vpack.c.bf16 %v5421_v2, %v5420_v12 }
 0x56d   : > { %7411 = vmatmul.mubr.msk.bf16.gmra.mrb[156].mxu0 %vm5548_vm10, %v11225_v50 }
 0x56e   : > { %7414 = vmatprep.mubr.msk.bf16.mxu0 %vm5548_vm10, %v11244_v35 }
 0x56f   : > { %v7338_v29 = vpop.f32.mrb[92].mxu0 }
 0x570   : > { %v5150_v25 = vadd.f32 %v11255_v36, %v7338_v29  ;;  %v5141_v19 = vpop.f32.mrb[93].mxu0 }
 0x571   : > { %v5142_v0 = vadd.f32 %v11255_v36, %v5141_v19  ;;  %v7339_v4 = vpop.f32.mrb[94].mxu0 }
 0x572   : > { %v5153_v21 = vadd.f32 %v11255_v36, %v7339_v4  ;;  %v5144_v9 = vpop.f32.mrb[95].mxu0  ;;  %v5426_v51 = vmax.f32 %v5150_v25, 0.0 }
 0x573   : > { %v5145_v41 = vadd.f32 %v11255_v36, %v5144_v9  ;;  %v5424_v50 = vmax.f32 %v5142_v0, 0.0 }
 0x574   : > { %v5427_v58 = vmax.f32 %v5153_v21, 0.0 }
 0x575   : > { %7415 = vmatmul.mubr.msk.bf16.gmra.mrb[160].mxu0 %vm5548_vm10, %v11242_v23  ;;  %v5425_v8 = vmax.f32 %v5145_v41, 0.0 }
 0x576   : > { %7418 = vmatprep.mubr.msk.bf16.mxu0 %vm5548_vm10, %v11264_v62  ;;  %v11475_v35 = vpack.c.bf16 %v5427_v58, %v5426_v51 }
 0x577   : > { %v11477_v15 = vpack.c.bf16 %v5425_v8, %v5424_v50 }
 0x57d   : > { %7419 = vmatmul.mubr.msk.bf16.gmra.mrb[164].mxu0 %vm5548_vm10, %v11262_v55 }
 0x57e   : > { %7422 = vmatprep.mubr.msk.bf16.mxu0 %vm5548_vm10, %v11278_v49 }
 0x57f   : > { %v7342_v44 = vpop.f32.mrb[96].mxu0 }
 0x580   : > { %v5166_v63 = vadd.f32 %v11255_v36, %v7342_v44  ;;  %v5157_v47 = vpop.f32.mrb[97].mxu0 }
 0x581   : > { %v5158_v23 = vadd.f32 %v11255_v36, %v5157_v47  ;;  %v7343_v43 = vpop.f32.mrb[98].mxu0 }
 0x582   : > { %v5169_v60 = vadd.f32 %v11255_v36, %v7343_v43  ;;  %v5160_v62 = vpop.f32.mrb[99].mxu0  ;;  %v5430_v61 = vmax.f32 %v5166_v63, 0.0 }
 0x583   : > { %v5161_v13 = vadd.f32 %v11255_v36, %v5160_v62  ;;  %v5428_v55 = vmax.f32 %v5158_v23, 0.0 }
 0x584   : > { %v5431_v39 = vmax.f32 %v5169_v60, 0.0 }
 0x585   : > { %7423 = vmatmul.mubr.msk.bf16.gmra.mrb[168].mxu0 %vm5548_vm10, %v11276_v20  ;;  %v5429_v46 = vmax.f32 %v5161_v13, 0.0 }
 0x586   : > { %7426 = vmatprep.mubr.msk.bf16.mxu0 %vm5548_vm10, %v11292_v27  ;;  %v11491_v49 = vpack.c.bf16 %v5431_v39, %v5430_v61 }
 0x587   : > { %v11493_v42 = vpack.c.bf16 %v5429_v46, %v5428_v55 }
 0x58d   : > { %7427 = vmatmul.mubr.msk.bf16.gmra.mrb[172].mxu0 %vm5548_vm10, %v11290_v40 }
 0x58e   : > { %7430 = vmatprep.mubr.msk.bf16.mxu0 %vm5548_vm10, %v11312_v30 }
 0x58f   : > { %v7346_v34 = vpop.f32.mrb[100].mxu0 }
 0x590   : > { %v5182_v59 = vadd.f32 %v11255_v36, %v7346_v34  ;;  %v5173_v11 = vpop.f32.mrb[101].mxu0 }
 0x591   : > { %v5174_v20 = vadd.f32 %v11255_v36, %v5173_v11  ;;  %v7347_v14 = vpop.f32.mrb[102].mxu0 }
 0x592   : > { %v5185_v7 = vadd.f32 %v11255_v36, %v7347_v14  ;;  %v5176_v27 = vpop.f32.mrb[103].mxu0  ;;  %v5434_v18 = vmax.f32 %v5182_v59, 0.0 }
 0x593   : > { %v5177_v48 = vadd.f32 %v11255_v36, %v5176_v27  ;;  %v5432_v40 = vmax.f32 %v5174_v20, 0.0 }
 0x594   : > { %v5435_v26 = vmax.f32 %v5185_v7, 0.0 }
 0x595   : > { %7431 = vmatmul.mubr.msk.bf16.gmra.mrb[176].mxu0 %vm5548_vm10, %v11310_v1  ;;  %v5433_v16 = vmax.f32 %v5177_v48, 0.0 }
 0x596   : > { %7434 = vmatprep.mubr.msk.bf16.mxu0 %vm5548_vm10, %v11338_v45  ;;  %v11507_v30 = vpack.c.bf16 %v5435_v26, %v5434_v18 }
 0x597   : > { %v11509_v10 = vpack.c.bf16 %v5433_v16, %v5432_v40 }
 0x59d   : > { %7435 = vmatmul.mubr.msk.bf16.gmra.mrb[180].mxu0 %vm5548_vm10, %v11336_v33 }
 0x59e   : > { %7438 = vmatprep.mubr.msk.bf16.mxu0 %vm5548_vm10, %v11352_v53 }
 0x59f   : > { %v7350_v57 = vpop.f32.mrb[104].mxu0 }
 0x5a0   : > { %v5198_v38 = vadd.f32 %v11255_v36, %v7350_v57  ;;  %v5189_v12 = vpop.f32.mrb[105].mxu0 }
 0x5a1   : > { %v5190_v1 = vadd.f32 %v11255_v36, %v5189_v12  ;;  %v7351_v2 = vpop.f32.mrb[106].mxu0 }
 0x5a2   : > { %v5201_v29 = vadd.f32 %v11255_v36, %v7351_v2  ;;  %v5192_v45 = vpop.f32.mrb[107].mxu0  ;;  %v5438_v19 = vmax.f32 %v5198_v38, 0.0 }
 0x5a3   : > { %v5193_v25 = vadd.f32 %v11255_v36, %v5192_v45  ;;  %v5436_v33 = vmax.f32 %v5190_v1, 0.0 }
 0x5a4   : > { %v5439_v0 = vmax.f32 %v5201_v29, 0.0 }
 0x5a5   : > { %7439 = vmatmul.mubr.msk.bf16.gmra.mrb[184].mxu0 %vm5548_vm10, %v11350_v31  ;;  %v5437_v4 = vmax.f32 %v5193_v25, 0.0 }
 0x5a6   : > { %7442 = vmatprep.mubr.msk.bf16.mxu0 %vm5548_vm10, %v11366_v22  ;;  %v11523_v53 = vpack.c.bf16 %v5439_v0, %v5438_v19 }
 0x5a7   : > { %v11525_v21 = vpack.c.bf16 %v5437_v4, %v5436_v33 }
 0x5ad   : > { %7443 = vmatmul.mubr.msk.bf16.gmra.mrb[188].mxu0 %vm5548_vm10, %v11364_v56 }
 0x5ae   : > { %7446 = vmatprep.mubr.msk.bf16.mxu0 %vm5548_vm10, %v11380_v37 }
 0x5af   : > { %v7354_v9 = vpop.f32.mrb[108].mxu0 }
 0x5b0   : > { %v5214_v41 = vadd.f32 %v11255_v36, %v7354_v9  ;;  %v5205_v51 = vpop.f32.mrb[109].mxu0 }
 0x5b1   : > { %v5206_v31 = vadd.f32 %v11255_v36, %v5205_v51  ;;  %v7355_v58 = vpop.f32.mrb[110].mxu0 }
 0x5b2   : > { %v5217_v50 = vadd.f32 %v11255_v36, %v7355_v58  ;;  %v5208_v22 = vpop.f32.mrb[111].mxu0  ;;  %v5442_v44 = vmax.f32 %v5214_v41, 0.0 }
 0x5b3   : > { %v5209_v8 = vadd.f32 %v11255_v36, %v5208_v22  ;;  %v5440_v56 = vmax.f32 %v5206_v31, 0.0 }
 0x5b4   : > { %v5443_v63 = vmax.f32 %v5217_v50, 0.0 }
 0x5b5   : > { %7447 = vmatmul.mubr.msk.bf16.gmra.mrb[192].mxu0 %vm5548_vm10, %v11378_v28  ;;  %v5441_v47 = vmax.f32 %v5209_v8, 0.0 }
 0x5b6   : > { %7450 = vmatprep.mubr.msk.bf16.mxu0 %vm5548_vm10, %v11394_v24  ;;  %v11539_v37 = vpack.c.bf16 %v5443_v63, %v5442_v44 }
 0x5b7   : > { %v11541_v23 = vpack.c.bf16 %v5441_v47, %v5440_v56 }
 0x5bd   : > { %7451 = vmatmul.mubr.msk.bf16.gmra.mrb[196].mxu0 %vm5548_vm10, %v11392_v3 }
 0x5be   : > { %7454 = vmatprep.mubr.msk.bf16.mxu0 %vm5548_vm10, %v11420_v32 }
 0x5bf   : > { %v7358_v43 = vpop.f32.mrb[112].mxu0 }
 0x5c0   : > { %v5230_v60 = vadd.f32 %v11255_v36, %v7358_v43  ;;  %v5221_v62 = vpop.f32.mrb[113].mxu0 }
 0x5c1   : > { %v5222_v28 = vadd.f32 %v11255_v36, %v5221_v62  ;;  %v7359_v13 = vpop.f32.mrb[114].mxu0 }
 0x5c2   : > { %v5233_v61 = vadd.f32 %v11255_v36, %v7359_v13  ;;  %v5224_v24 = vpop.f32.mrb[115].mxu0  ;;  %v5446_v55 = vmax.f32 %v5230_v60, 0.0 }
 0x5c3   : > { %v5225_v39 = vadd.f32 %v11255_v36, %v5224_v24  ;;  %v5444_v3 = vmax.f32 %v5222_v28, 0.0 }
 0x5c4   : > { %v5447_v46 = vmax.f32 %v5233_v61, 0.0 }
 0x5c5   : > { %7455 = vmatmul.mubr.msk.bf16.gmra.mrb[200].mxu0 %vm5548_vm10, %v11418_v54  ;;  %v5445_v34 = vmax.f32 %v5225_v39, 0.0 }
 0x5c6   : > { %7458 = vmatprep.mubr.msk.bf16.mxu0 %vm5548_vm10, %v11442_v52  ;;  %v11555_v32 = vpack.c.bf16 %v5447_v46, %v5446_v55 }
 0x5c7   : > { %v5524_v59 = vpack.c.bf16 %v5445_v34, %v5444_v3 }
 0x5cd   : > { %7459 = vmatmul.mubr.msk.bf16.gmra.mrb[204].mxu0 %vm5548_vm10, %v11440_v17 }
 0x5ce   : > { %7462 = vmatprep.mubr.msk.bf16.mxu0 %vm5548_vm10, %v11461_v5 }
 0x5d0   : > { %v7362_v11 = vpop.f32.mrb[116].mxu0 }
 0x5d1   : > { %v5246_v20 = vadd.f32 %v11255_v36, %v7362_v11  ;;  %v5237_v14 = vpop.f32.mrb[117].mxu0 }
 0x5d2   : > { %v5238_v54 = vadd.f32 %v11255_v36, %v5237_v14  ;;  %v7363_v7 = vpop.f32.mrb[118].mxu0 }
 0x5d3   : > { %v5249_v27 = vadd.f32 %v11255_v36, %v7363_v7  ;;  %v5240_v48 = vpop.f32.mrb[119].mxu0  ;;  %v5450_v18 = vmax.f32 %v5246_v20, 0.0 }
 0x5d4   : > { %v5241_v52 = vadd.f32 %v11255_v36, %v5240_v48  ;;  %v5448_v17 = vmax.f32 %v5238_v54, 0.0 }
 0x5d5   : > { %v5451_v26 = vmax.f32 %v5249_v27, 0.0  ;;  %7463 = vmatmul.mubr.msk.bf16.gmra.mrb[208].mxu0 %vm5548_vm10, %v11459_v6 }
 0x5d6   : > { %v5449_v40 = vmax.f32 %v5241_v52, 0.0  ;;  %7466 = vmatprep.mubr.msk.bf16.mxu0 %vm5548_vm10, %v11477_v15 }
 0x5d7   : > { %v5527_v5 = vpack.c.bf16 %v5451_v26, %v5450_v18 }
 0x5d8   : > { %v5526_v16 = vpack.c.bf16 %v5449_v40, %v5448_v17 }
 0x5dd   : > { %7467 = vmatmul.mubr.msk.bf16.gmra.mrb[212].mxu0 %vm5548_vm10, %v11475_v35 }
 0x5de   : > { %7470 = vmatprep.mubr.msk.bf16.mxu0 %vm5548_vm10, %v11493_v42 }
 0x5e0   : > { %v7366_v57 = vpop.f32.mrb[120].mxu0 }
 0x5e1   : > { %v5262_v38 = vadd.f32 %v11255_v36, %v7366_v57  ;;  %v5253_v12 = vpop.f32.mrb[121].mxu0 }
 0x5e2   : > { %v5254_v1 = vadd.f32 %v11255_v36, %v5253_v12  ;;  %v7367_v6 = vpop.f32.mrb[122].mxu0 }
 0x5e3   : > { %v5265_v2 = vadd.f32 %v11255_v36, %v7367_v6  ;;  %v5256_v29 = vpop.f32.mrb[123].mxu0  ;;  %v5454_v45 = vmax.f32 %v5262_v38, 0.0 }
 0x5e4   : > { %v5257_v15 = vadd.f32 %v11255_v36, %v5256_v29  ;;  %v5452_v35 = vmax.f32 %v5254_v1, 0.0 }
 0x5e5   : > { %v5455_v25 = vmax.f32 %v5265_v2, 0.0  ;;  %7471 = vmatmul.mubr.msk.bf16.gmra.mrb[216].mxu0 %vm5548_vm10, %v11491_v49 }
 0x5e6   : > { %v5453_v19 = vmax.f32 %v5257_v15, 0.0  ;;  %7474 = vmatprep.mubr.msk.bf16.mxu0 %vm5548_vm10, %v11509_v10 }
 0x5e7   : > { %v5529_v42 = vpack.c.bf16 %v5455_v25, %v5454_v45  ;;  %v11624_v45 = vld [vmem:[%s11797_s6] ss:$0 sm:$0xff] }
 0x5e8   : > { %v5528_v0 = vpack.c.bf16 %v5453_v19, %v5452_v35 }
 0x5ed   : > { %7475 = vmatmul.mubr.msk.bf16.gmra.mrb[220].mxu0 %vm5548_vm10, %v11507_v30 }
 0x5ee   : > { %7478 = vmatprep.mubr.msk.bf16.mxu0 %vm5548_vm10, %v11525_v21 }
 0x5f0   : > { %v7370_v33 = vpop.f32.mrb[124].mxu0 }
 0x5f1   : > { %v5278_v4 = vadd.f32 %v11255_v36, %v7370_v33  ;;  %v5269_v9 = vpop.f32.mrb[125].mxu0 }
 0x5f2   : > { %v5270_v41 = vadd.f32 %v11255_v36, %v5269_v9  ;;  %v7371_v49 = vpop.f32.mrb[126].mxu0 }
 0x5f3   : > { %v5281_v51 = vadd.f32 %v11255_v36, %v7371_v49  ;;  %v5272_v31 = vpop.f32.mrb[127].mxu0  ;;  %v5458_v58 = vmax.f32 %v5278_v4, 0.0 }
 0x5f4   : > { %v5273_v10 = vadd.f32 %v11255_v36, %v5272_v31  ;;  %v5456_v30 = vmax.f32 %v5270_v41, 0.0  ;;  %v11599_v36 = vld [vmem:[%s11795_s4] ss:$0 sm:$0xff] }
 0x5f5   : > { %v5459_v50 = vmax.f32 %v5281_v51, 0.0  ;;  %7479 = vmatmul.mubr.msk.bf16.gmra.mrb[224].mxu0 %vm5548_vm10, %v11523_v53 }
 0x5f6   : > { %v5457_v22 = vmax.f32 %v5273_v10, 0.0  ;;  %7482 = vmatprep.mubr.msk.bf16.mxu0 %vm5548_vm10, %v11541_v23 }
 0x5f7   : > { %v5531_v21 = vpack.c.bf16 %v5459_v50, %v5458_v58 }
 0x5f8   : > { %v5530_v8 = vpack.c.bf16 %v5457_v22, %v5456_v30 }
 0x5fd   : > { %7483 = vmatmul.mubr.msk.bf16.gmra.mrb[228].mxu0 %vm5548_vm10, %v11539_v37 }
 0x5fe   : > { %7486 = vmatprep.mubr.msk.bf16.mxu0 %vm5548_vm10, %v5524_v59 }
 0x600   : > { %v7374_v44 = vpop.f32.mrb[128].mxu0 }
 0x601   : > { %v5294_v53 = vadd.f32 %v11599_v36, %v7374_v44  ;;  %v5285_v63 = vpop.f32.mrb[129].mxu0 }
 0x602   : > { %v5286_v56 = vadd.f32 %v11599_v36, %v5285_v63  ;;  %v7375_v47 = vpop.f32.mrb[130].mxu0 }
 0x603   : > { %v5297_v23 = vadd.f32 %v11599_v36, %v7375_v47  ;;  %v5288_v43 = vpop.f32.mrb[131].mxu0  ;;  %v5462_v37 = vmax.f32 %v5294_v53, 0.0 }
 0x604   : > { %v5289_v60 = vadd.f32 %v11599_v36, %v5288_v43  ;;  %v5460_v28 = vmax.f32 %v5286_v56, 0.0 }
 0x605   : > { %v5463_v62 = vmax.f32 %v5297_v23, 0.0  ;;  %7487 = vmatmul.mubr.msk.bf16.gmra.mrb[232].mxu0 %vm5548_vm10, %v11555_v32 }
 0x606   : > { %v5461_v13 = vmax.f32 %v5289_v60, 0.0  ;;  %7490 = vmatprep.mubr.msk.bf16.mxu0 %vm5548_vm10, %v5526_v16 }
 0x607   : > { %v5533_v61 = vpack.c.bf16 %v5463_v62, %v5462_v37 }
 0x608   : > { %v5532_v24 = vpack.c.bf16 %v5461_v13, %v5460_v28 }
 0x60d   : > { %7491 = vmatmul.mubr.msk.bf16.gmra.mrb[236].mxu0 %vm5548_vm10, %v5527_v5 }
 0x60e   : > { %7494 = vmatprep.mubr.msk.bf16.mxu0 %vm5548_vm10, %v5528_v0 }
 0x610   : > { %v7378_v39 = vpop.f32.mrb[132].mxu0 }
 0x611   : > { %v5310_v55 = vadd.f32 %v11599_v36, %v7378_v39  ;;  %v5301_v46 = vpop.f32.mrb[133].mxu0 }
 0x612   : > { %v5302_v3 = vadd.f32 %v11599_v36, %v5301_v46  ;;  %v7379_v34 = vpop.f32.mrb[134].mxu0 }
 0x613   : > { %v5313_v59 = vadd.f32 %v11599_v36, %v7379_v34  ;;  %v5304_v32 = vpop.f32.mrb[135].mxu0  ;;  %v5466_v20 = vmax.f32 %v5310_v55, 0.0 }
 0x614   : > { %v5305_v11 = vadd.f32 %v11599_v36, %v5304_v32  ;;  %v5464_v54 = vmax.f32 %v5302_v3, 0.0 }
 0x615   : > { %v5467_v14 = vmax.f32 %v5313_v59, 0.0  ;;  %7495 = vmatmul.mubr.msk.bf16.gmra.mrb[240].mxu0 %vm5548_vm10, %v5529_v42 }
 0x616   : > { %v5465_v7 = vmax.f32 %v5305_v11, 0.0  ;;  %7498 = vmatprep.mubr.msk.bf16.mxu0 %vm5548_vm10, %v5530_v8 }
 0x617   : > { %v5535_v27 = vpack.c.bf16 %v5467_v14, %v5466_v20 }
 0x618   : > { %v5534_v48 = vpack.c.bf16 %v5465_v7, %v5464_v54  ;;  %v7392_v52 = vpop.f32.mrb[136].mxu0 }
 0x619   : > { %v5779_v18 = vpop.f32.mrb[137].mxu0  ;;  %v5788_v33 = vadd.f32 %v7392_v52, %v11624_v45 }
 0x61a   : > { %v7393_v26 = vpop.f32.mrb[138].mxu0  ;;  %v5780_v9 = vadd.f32 %v11624_v45, %v5779_v18 }
 0x61b   : > { %v5782_v17 = vpop.f32.mrb[139].mxu0  ;;  %v5791_v51 = vadd.f32 %v7393_v26, %v11624_v45  ;;  %v6292_v22 = vmax.f32 %v5788_v33, 0.0 }
 0x61c   : > { %v5783_v31 = vadd.f32 %v11624_v45, %v5782_v17  ;;  %v6290_v53 = vmax.f32 %v5780_v9, 0.0 }
 0x61d   : > { %7499 = vmatmul.mubr.msk.bf16.gmra.mrb[244].mxu0 %vm5548_vm10, %v5531_v21  ;;  %v6293_v47 = vmax.f32 %v5791_v51, 0.0 }
 0x61e   : > { %7502 = vmatprep.mubr.msk.bf16.mxu0 %vm5548_vm10, %v5532_v24  ;;  %v6291_v23 = vmax.f32 %v5783_v31, 0.0 }
 0x620   : > { %v7382_v40 = vpop.f32.mrb[0].mxu1  ;;  %v7396_v5 = vpop.f32.mrb[140].mxu0 }
 0x621   : > { %v5326_v16 = vadd.f32 %v11599_v36, %v7382_v40  ;;  %v5317_v57 = vpop.f32.mrb[1].mxu1  ;;  %v5795_v38 = vpop.f32.mrb[141].mxu0  ;;  %v5804_v37 = vadd.f32 %v7396_v5, %v11624_v45 }
 0x622   : > { %v5318_v12 = vadd.f32 %v11599_v36, %v5317_v57  ;;  %v7383_v1 = vpop.f32.mrb[2].mxu1  ;;  %v7397_v6 = vpop.f32.mrb[142].mxu0  ;;  %v5796_v62 = vadd.f32 %v11624_v45, %v5795_v38 }
 0x623   : > { %v5329_v2 = vadd.f32 %v11599_v36, %v7383_v1  ;;  %v5320_v29 = vpop.f32.mrb[3].mxu1  ;;  %v5798_v15 = vpop.f32.mrb[143].mxu0  ;;  %v5470_v35 = vmax.f32 %v5326_v16, 0.0  ;;  %v6296_v20 = vmax.f32 %v5804_v37, 0.0 }
 0x624   : > { %v5321_v25 = vadd.f32 %v11599_v36, %v5320_v29  ;;  %v5468_v42 = vmax.f32 %v5318_v12, 0.0  ;;  %v5799_v39 = vadd.f32 %v11624_v45, %v5798_v15  ;;  %v6294_v14 = vmax.f32 %v5796_v62, 0.0 }
 0x625   : > { %v5471_v19 = vmax.f32 %v5329_v2, 0.0  ;;  %7503 = vmatmul.mubr.msk.bf16.gmra.mrb[248].mxu0 %vm5548_vm10, %v5533_v61  ;;  %v5807_v61 = vadd.f32 %v7397_v6, %v11624_v45 }
 0x626   : > { %v5469_v0 = vmax.f32 %v5321_v25, 0.0  ;;  %7506 = vmatprep.mubr.msk.bf16.mxu0 %vm5548_vm10, %v5534_v48  ;;  %v6295_v16 = vmax.f32 %v5799_v39, 0.0 }
 0x627   : > { %v5537_v4 = vpack.c.bf16 %v5471_v19, %v5470_v35  ;;  %v6297_v52 = vmax.f32 %v5807_v61, 0.0 }
 0x628   : > { %v5536_v41 = vpack.c.bf16 %v5469_v0, %v5468_v42  ;;  %v7400_v49 = vpop.f32.mrb[144].mxu0 }
 0x629   : > { %v5820_v10 = vadd.f32 %v7400_v49, %v11624_v45  ;;  %v5811_v58 = vpop.f32.mrb[145].mxu0 }
 0x62a   : > { %v5812_v50 = vadd.f32 %v11624_v45, %v5811_v58  ;;  %v7401_v30 = vpop.f32.mrb[146].mxu0 }
 0x62b   : > { %v6300_v21 = vmax.f32 %v5820_v10, 0.0  ;;  %v5823_v8 = vadd.f32 %v7401_v30, %v11624_v45  ;;  %v5814_v44 = vpop.f32.mrb[147].mxu0 }
 0x62c   : > { %v6298_v63 = vmax.f32 %v5812_v50, 0.0  ;;  %v5815_v56 = vadd.f32 %v11624_v45, %v5814_v44 }
 0x62d   : > { %v6420_v43 = vmax.f32 %v6292_v22, %v6300_v21  ;;  %v6301_v60 = vmax.f32 %v5823_v8, 0.0  ;;  %7507 = vmatmul.mubr.msk.bf16.gmra.mrb[252].mxu0 %vm5548_vm10, %v5535_v27 }
 0x62e   : > { %v6418_v28 = vmax.f32 %v6290_v53, %v6298_v63  ;;  %v6299_v13 = vmax.f32 %v5815_v56, 0.0  ;;  %7510 = vmatprep.mubr.msk.bf16.mxu0 %vm5548_vm10, %v5536_v41 }
 0x62f   : > { %v6421_v24 = vmax.f32 %v6293_v47, %v6301_v60 }
 0x630   : > { %v6419_v55 = vmax.f32 %v6291_v23, %v6299_v13  ;;  %v7386_v46 = vpop.f32.mrb[4].mxu1  ;;  %v7404_v3 = vpop.f32.mrb[148].mxu0 }
 0x631   : > { %v5342_v34 = vadd.f32 %v11599_v36, %v7386_v46  ;;  %v5836_v59 = vadd.f32 %v7404_v3, %v11624_v45  ;;  %v5333_v32 = vpop.f32.mrb[5].mxu1  ;;  %v5827_v11 = vpop.f32.mrb[149].mxu0 }
 0x632   : > { %v5334_v54 = vadd.f32 %v11599_v36, %v5333_v32  ;;  %v5828_v7 = vadd.f32 %v11624_v45, %v5827_v11  ;;  %v7387_v27 = vpop.f32.mrb[6].mxu1  ;;  %v7405_v48 = vpop.f32.mrb[150].mxu0 }
 0x633   : > { %v6304_v18 = vmax.f32 %v5836_v59, 0.0  ;;  %v5345_v26 = vadd.f32 %v11599_v36, %v7387_v27  ;;  %v5839_v17 = vadd.f32 %v7405_v48, %v11624_v45  ;;  %v5336_v40 = vpop.f32.mrb[7].mxu1  ;;  %v5830_v5 = vpop.f32.mrb[151].mxu0  ;;  %v5474_v1 = vmax.f32 %v5342_v34, 0.0 }
 0x634   : > { %v6302_v57 = vmax.f32 %v5828_v7, 0.0  ;;  %v5337_v38 = vadd.f32 %v11599_v36, %v5336_v40  ;;  %v5831_v12 = vadd.f32 %v11624_v45, %v5830_v5  ;;  %v5472_v15 = vmax.f32 %v5334_v54, 0.0 }
 0x635   : > { %v6424_v6 = vmax.f32 %v6296_v20, %v6304_v18  ;;  %v5475_v2 = vmax.f32 %v5345_v26, 0.0  ;;  %v6305_v29 = vmax.f32 %v5839_v17, 0.0  ;;  %7511 = vmatmul.mubr.msk.bf16.gmra.mrb[0].mxu0 %vm5548_vm10, %v5537_v4 }
 0x636   : > { %v6422_v25 = vmax.f32 %v6294_v14, %v6302_v57  ;;  %v5473_v35 = vmax.f32 %v5337_v38, 0.0  ;;  %v6303_v19 = vmax.f32 %v5831_v12, 0.0 }
 0x637   : > { %v5539_v42 = vpack.c.bf16 %v5475_v2, %v5474_v1  ;;  %v6425_v0 = vmax.f32 %v6297_v52, %v6305_v29 }
 0x638   : > { %v5538_v33 = vpack.c.bf16 %v5473_v35, %v5472_v15  ;;  %v6423_v9 = vmax.f32 %v6295_v16, %v6303_v19  ;;  %v7408_v41 = vpop.f32.mrb[152].mxu0 }
 0x639   : > { %v5852_v49 = vadd.f32 %v7408_v41, %v11624_v45  ;;  %v5843_v36 = vpop.f32.mrb[153].mxu0 }
 0x63a   : > { %v5844_v51 = vadd.f32 %v11624_v45, %v5843_v36  ;;  %v7409_v31 = vpop.f32.mrb[154].mxu0  ;;  %7514 = vmatprep.mubr.msk.bf16.mxu0 %vm5548_vm10, %v5538_v33 }
 0x63b   : > { %v6308_v10 = vmax.f32 %v5852_v49, 0.0  ;;  %v5855_v4 = vadd.f32 %v7409_v31, %v11624_v45  ;;  %v5846_v58 = vpop.f32.mrb[155].mxu0 }
 0x63c   : > { %v6306_v50 = vmax.f32 %v5844_v51, 0.0  ;;  %v5847_v30 = vadd.f32 %v11624_v45, %v5846_v58 }
 0x63d   : > { %v6428_v22 = vmax.f32 %v6420_v43, %v6308_v10  ;;  %v6309_v21 = vmax.f32 %v5855_v4, 0.0  ;;  %7515 = vmatmul.mubr.msk.bf16.gmra.mrb[4].mxu0 %vm5548_vm10, %v5539_v42 }
 0x63e   : > { %v6426_v8 = vmax.f32 %v6418_v28, %v6306_v50  ;;  %v6307_v44 = vmax.f32 %v5847_v30, 0.0 }
 0x63f   : > { %v6429_v53 = vmax.f32 %v6421_v24, %v6309_v21 }
 0x640   : > { %v6427_v63 = vmax.f32 %v6419_v55, %v6307_v44  ;;  %v7412_v56 = vpop.f32.mrb[156].mxu0 }
 0x641   : > { %v5868_v47 = vadd.f32 %v7412_v56, %v11624_v45  ;;  %v5859_v23 = vpop.f32.mrb[157].mxu0 }
 0x642   : > { %v5860_v60 = vadd.f32 %v11624_v45, %v5859_v23  ;;  %v7413_v37 = vpop.f32.mrb[158].mxu0 }
 0x643   : > { %v6312_v62 = vmax.f32 %v5868_v47, 0.0  ;;  %v5871_v13 = vadd.f32 %v7413_v37, %v11624_v45  ;;  %v5862_v61 = vpop.f32.mrb[159].mxu0 }
 0x644   : > { %v6310_v39 = vmax.f32 %v5860_v60, 0.0  ;;  %v5863_v43 = vadd.f32 %v11624_v45, %v5862_v61 }
 0x645   : > { %v6432_v46 = vmax.f32 %v6424_v6, %v6312_v62  ;;  %v6313_v3 = vmax.f32 %v5871_v13, 0.0 }
 0x646   : > { %v6430_v28 = vmax.f32 %v6422_v25, %v6310_v39  ;;  %v6311_v34 = vmax.f32 %v5863_v43, 0.0 }
 0x647   : > { %v6433_v24 = vmax.f32 %v6425_v0, %v6313_v3 }
 0x648   : > { %v6431_v55 = vmax.f32 %v6423_v9, %v6311_v34  ;;  %v7416_v59 = vpop.f32.mrb[160].mxu0 }
 0x649   : > { %v5884_v32 = vadd.f32 %v7416_v59, %v11624_v45  ;;  %v5875_v11 = vpop.f32.mrb[161].mxu0 }
 0x64a   : > { %v5876_v20 = vadd.f32 %v11624_v45, %v5875_v11  ;;  %v7417_v14 = vpop.f32.mrb[162].mxu0 }
 0x64b   : > { %v6316_v54 = vmax.f32 %v5884_v32, 0.0  ;;  %v5887_v7 = vadd.f32 %v7417_v14, %v11624_v45  ;;  %v5878_v27 = vpop.f32.mrb[163].mxu0 }
 0x64c   : > { %v6314_v48 = vmax.f32 %v5876_v20, 0.0  ;;  %v5879_v52 = vadd.f32 %v11624_v45, %v5878_v27 }
 0x64d   : > { %v6436_v18 = vmax.f32 %v6428_v22, %v6316_v54  ;;  %v6317_v26 = vmax.f32 %v5887_v7, 0.0 }
 0x64e   : > { %v6434_v17 = vmax.f32 %v6426_v8, %v6314_v48  ;;  %v6315_v40 = vmax.f32 %v5879_v52, 0.0 }
 0x64f   : > { %v6437_v5 = vmax.f32 %v6429_v53, %v6317_v26 }
 0x650   : > { %v6435_v16 = vmax.f32 %v6427_v63, %v6315_v40  ;;  %v7420_v57 = vpop.f32.mrb[164].mxu0 }
 0x651   : > { %v5900_v38 = vadd.f32 %v7420_v57, %v11624_v45  ;;  %v5891_v12 = vpop.f32.mrb[165].mxu0 }
 0x652   : > { %v5892_v1 = vadd.f32 %v11624_v45, %v5891_v12  ;;  %v7421_v6 = vpop.f32.mrb[166].mxu0 }
 0x653   : > { %v6320_v2 = vmax.f32 %v5900_v38, 0.0  ;;  %v5903_v29 = vadd.f32 %v7421_v6, %v11624_v45  ;;  %v5894_v15 = vpop.f32.mrb[167].mxu0 }
 0x654   : > { %v6318_v25 = vmax.f32 %v5892_v1, 0.0  ;;  %v5895_v35 = vadd.f32 %v11624_v45, %v5894_v15 }
 0x655   : > { %v6440_v19 = vmax.f32 %v6432_v46, %v6320_v2  ;;  %v6321_v42 = vmax.f32 %v5903_v29, 0.0 }
 0x656   : > { %v6438_v0 = vmax.f32 %v6430_v28, %v6318_v25  ;;  %v6319_v33 = vmax.f32 %v5895_v35, 0.0 }
 0x657   : > { %v6441_v9 = vmax.f32 %v6433_v24, %v6321_v42 }
 0x658   : > { %v6439_v41 = vmax.f32 %v6431_v55, %v6319_v33  ;;  %v7424_v49 = vpop.f32.mrb[168].mxu0 }
 0x659   : > { %v5916_v36 = vadd.f32 %v7424_v49, %v11624_v45  ;;  %v5907_v51 = vpop.f32.mrb[169].mxu0 }
 0x65a   : > { %v5908_v31 = vadd.f32 %v11624_v45, %v5907_v51  ;;  %v7425_v10 = vpop.f32.mrb[170].mxu0 }
 0x65b   : > { %v6324_v4 = vmax.f32 %v5916_v36, 0.0  ;;  %v5919_v58 = vadd.f32 %v7425_v10, %v11624_v45  ;;  %v5910_v50 = vpop.f32.mrb[171].mxu0 }
 0x65c   : > { %v6322_v30 = vmax.f32 %v5908_v31, 0.0  ;;  %v5911_v22 = vadd.f32 %v11624_v45, %v5910_v50 }
 0x65d   : > { %v6444_v21 = vmax.f32 %v6436_v18, %v6324_v4  ;;  %v6325_v8 = vmax.f32 %v5919_v58, 0.0 }
 0x65e   : > { %v6442_v44 = vmax.f32 %v6434_v17, %v6322_v30  ;;  %v6323_v53 = vmax.f32 %v5911_v22, 0.0 }
 0x65f   : > { %v6445_v63 = vmax.f32 %v6437_v5, %v6325_v8 }
 0x660   : > { %v6443_v56 = vmax.f32 %v6435_v16, %v6323_v53  ;;  %v7428_v47 = vpop.f32.mrb[172].mxu0 }
 0x661   : > { %v5932_v23 = vadd.f32 %v7428_v47, %v11624_v45  ;;  %v5923_v60 = vpop.f32.mrb[173].mxu0 }
 0x662   : > { %v5924_v37 = vadd.f32 %v11624_v45, %v5923_v60  ;;  %v7429_v62 = vpop.f32.mrb[174].mxu0 }
 0x663   : > { %v6328_v13 = vmax.f32 %v5932_v23, 0.0  ;;  %v5935_v61 = vadd.f32 %v7429_v62, %v11624_v45  ;;  %v5926_v39 = vpop.f32.mrb[175].mxu0 }
 0x664   : > { %v6326_v43 = vmax.f32 %v5924_v37, 0.0  ;;  %v5927_v46 = vadd.f32 %v11624_v45, %v5926_v39 }
 0x665   : > { %v6448_v3 = vmax.f32 %v6440_v19, %v6328_v13  ;;  %v6329_v28 = vmax.f32 %v5935_v61, 0.0 }
 0x666   : > { %v6446_v34 = vmax.f32 %v6438_v0, %v6326_v43  ;;  %v6327_v24 = vmax.f32 %v5927_v46, 0.0 }
 0x667   : > { %v6449_v55 = vmax.f32 %v6441_v9, %v6329_v28 }
 0x668   : > { %v6447_v59 = vmax.f32 %v6439_v41, %v6327_v24  ;;  %v7432_v32 = vpop.f32.mrb[176].mxu0 }
 0x669   : > { %v5948_v11 = vadd.f32 %v7432_v32, %v11624_v45  ;;  %v5939_v20 = vpop.f32.mrb[177].mxu0 }
 0x66a   : > { %v5940_v14 = vadd.f32 %v11624_v45, %v5939_v20  ;;  %v7433_v54 = vpop.f32.mrb[178].mxu0 }
 0x66b   : > { %v6332_v7 = vmax.f32 %v5948_v11, 0.0  ;;  %v5951_v27 = vadd.f32 %v7433_v54, %v11624_v45  ;;  %v5942_v48 = vpop.f32.mrb[179].mxu0 }
 0x66c   : > { %v6330_v52 = vmax.f32 %v5940_v14, 0.0  ;;  %v5943_v18 = vadd.f32 %v11624_v45, %v5942_v48 }
 0x66d   : > { %v6452_v26 = vmax.f32 %v6444_v21, %v6332_v7  ;;  %v6333_v17 = vmax.f32 %v5951_v27, 0.0 }
 0x66e   : > { %v6450_v40 = vmax.f32 %v6442_v44, %v6330_v52  ;;  %v6331_v5 = vmax.f32 %v5943_v18, 0.0 }
 0x66f   : > { %v6453_v16 = vmax.f32 %v6445_v63, %v6333_v17 }
 0x670   : > { %v6451_v57 = vmax.f32 %v6443_v56, %v6331_v5  ;;  %v7436_v38 = vpop.f32.mrb[180].mxu0 }
 0x671   : > { %v5964_v12 = vadd.f32 %v7436_v38, %v11624_v45  ;;  %v5955_v1 = vpop.f32.mrb[181].mxu0 }
 0x672   : > { %v5956_v6 = vadd.f32 %v11624_v45, %v5955_v1  ;;  %v7437_v2 = vpop.f32.mrb[182].mxu0 }
 0x673   : > { %v6336_v29 = vmax.f32 %v5964_v12, 0.0  ;;  %v5967_v15 = vadd.f32 %v7437_v2, %v11624_v45  ;;  %v5958_v25 = vpop.f32.mrb[183].mxu0 }
 0x674   : > { %v6334_v35 = vmax.f32 %v5956_v6, 0.0  ;;  %v5959_v19 = vadd.f32 %v11624_v45, %v5958_v25 }
 0x675   : > { %v6456_v42 = vmax.f32 %v6448_v3, %v6336_v29  ;;  %v6337_v0 = vmax.f32 %v5967_v15, 0.0 }
 0x676   : > { %v6454_v33 = vmax.f32 %v6446_v34, %v6334_v35  ;;  %v6335_v9 = vmax.f32 %v5959_v19, 0.0 }
 0x677   : > { %v6457_v41 = vmax.f32 %v6449_v55, %v6337_v0 }
 0x678   : > { %v6455_v49 = vmax.f32 %v6447_v59, %v6335_v9  ;;  %v7440_v36 = vpop.f32.mrb[184].mxu0 }
 0x679   : > { %v5980_v51 = vadd.f32 %v7440_v36, %v11624_v45  ;;  %v5971_v31 = vpop.f32.mrb[185].mxu0 }
 0x67a   : > { %v5972_v10 = vadd.f32 %v11624_v45, %v5971_v31  ;;  %v7441_v4 = vpop.f32.mrb[186].mxu0 }
 0x67b   : > { %v6340_v58 = vmax.f32 %v5980_v51, 0.0  ;;  %v5983_v50 = vadd.f32 %v7441_v4, %v11624_v45  ;;  %v5974_v30 = vpop.f32.mrb[187].mxu0 }
 0x67c   : > { %v6338_v22 = vmax.f32 %v5972_v10, 0.0  ;;  %v5975_v21 = vadd.f32 %v11624_v45, %v5974_v30 }
 0x67d   : > { %v6460_v8 = vmax.f32 %v6452_v26, %v6340_v58  ;;  %v6341_v44 = vmax.f32 %v5983_v50, 0.0 }
 0x67e   : > { %v6458_v53 = vmax.f32 %v6450_v40, %v6338_v22  ;;  %v6339_v63 = vmax.f32 %v5975_v21, 0.0 }
 0x67f   : > { %v6461_v56 = vmax.f32 %v6453_v16, %v6341_v44 }
 0x680   : > { %v6459_v47 = vmax.f32 %v6451_v57, %v6339_v63  ;;  %v7444_v23 = vpop.f32.mrb[188].mxu0 }
 0x681   : > { %v5996_v60 = vadd.f32 %v7444_v23, %v11624_v45  ;;  %v5987_v37 = vpop.f32.mrb[189].mxu0 }
 0x682   : > { %v5988_v62 = vadd.f32 %v11624_v45, %v5987_v37  ;;  %v7445_v13 = vpop.f32.mrb[190].mxu0 }
 0x683   : > { %v6344_v61 = vmax.f32 %v5996_v60, 0.0  ;;  %v5999_v39 = vadd.f32 %v7445_v13, %v11624_v45  ;;  %v5990_v43 = vpop.f32.mrb[191].mxu0 }
 0x684   : > { %v6342_v46 = vmax.f32 %v5988_v62, 0.0  ;;  %v5991_v3 = vadd.f32 %v11624_v45, %v5990_v43 }
 0x685   : > { %v6464_v28 = vmax.f32 %v6456_v42, %v6344_v61  ;;  %v6345_v34 = vmax.f32 %v5999_v39, 0.0 }
 0x686   : > { %v6462_v24 = vmax.f32 %v6454_v33, %v6342_v46  ;;  %v6343_v55 = vmax.f32 %v5991_v3, 0.0 }
 0x687   : > { %v6465_v59 = vmax.f32 %v6457_v41, %v6345_v34 }
 0x688   : > { %v6463_v32 = vmax.f32 %v6455_v49, %v6343_v55  ;;  %v7448_v11 = vpop.f32.mrb[192].mxu0 }
 0x689   : > { %v6012_v20 = vadd.f32 %v7448_v11, %v11624_v45  ;;  %v6003_v14 = vpop.f32.mrb[193].mxu0 }
 0x68a   : > { %v6004_v54 = vadd.f32 %v11624_v45, %v6003_v14  ;;  %v7449_v7 = vpop.f32.mrb[194].mxu0 }
 0x68b   : > { %v6348_v27 = vmax.f32 %v6012_v20, 0.0  ;;  %v6015_v48 = vadd.f32 %v7449_v7, %v11624_v45  ;;  %v6006_v52 = vpop.f32.mrb[195].mxu0 }
 0x68c   : > { %v6346_v18 = vmax.f32 %v6004_v54, 0.0  ;;  %v6007_v26 = vadd.f32 %v11624_v45, %v6006_v52 }
 0x68d   : > { %v6468_v17 = vmax.f32 %v6460_v8, %v6348_v27  ;;  %v6349_v40 = vmax.f32 %v6015_v48, 0.0 }
 0x68e   : > { %v6466_v5 = vmax.f32 %v6458_v53, %v6346_v18  ;;  %v6347_v16 = vmax.f32 %v6007_v26, 0.0 }
 0x68f   : > { %v6469_v57 = vmax.f32 %v6461_v56, %v6349_v40 }
 0x690   : > { %v6467_v38 = vmax.f32 %v6459_v47, %v6347_v16  ;;  %v7452_v12 = vpop.f32.mrb[196].mxu0 }
 0x691   : > { %v6028_v1 = vadd.f32 %v7452_v12, %v11624_v45  ;;  %v6019_v6 = vpop.f32.mrb[197].mxu0 }
 0x692   : > { %v6020_v2 = vadd.f32 %v11624_v45, %v6019_v6  ;;  %v7453_v29 = vpop.f32.mrb[198].mxu0 }
 0x693   : > { %v6352_v15 = vmax.f32 %v6028_v1, 0.0  ;;  %v6031_v25 = vadd.f32 %v7453_v29, %v11624_v45  ;;  %v6022_v35 = vpop.f32.mrb[199].mxu0 }
 0x694   : > { %v6350_v19 = vmax.f32 %v6020_v2, 0.0  ;;  %v6023_v42 = vadd.f32 %v11624_v45, %v6022_v35 }
 0x695   : > { %v6472_v0 = vmax.f32 %v6464_v28, %v6352_v15  ;;  %v6353_v33 = vmax.f32 %v6031_v25, 0.0 }
 0x696   : > { %v6470_v9 = vmax.f32 %v6462_v24, %v6350_v19  ;;  %v6351_v41 = vmax.f32 %v6023_v42, 0.0 }
 0x697   : > { %v6473_v49 = vmax.f32 %v6465_v59, %v6353_v33 }
 0x698   : > { %v6471_v36 = vmax.f32 %v6463_v32, %v6351_v41  ;;  %v7456_v51 = vpop.f32.mrb[200].mxu0 }
 0x699   : > { %v6044_v31 = vadd.f32 %v7456_v51, %v11624_v45  ;;  %v6035_v10 = vpop.f32.mrb[201].mxu0 }
 0x69a   : > { %v6036_v4 = vadd.f32 %v11624_v45, %v6035_v10  ;;  %v7457_v58 = vpop.f32.mrb[202].mxu0 }
 0x69b   : > { %v6356_v50 = vmax.f32 %v6044_v31, 0.0  ;;  %v6047_v30 = vadd.f32 %v7457_v58, %v11624_v45  ;;  %v6038_v22 = vpop.f32.mrb[203].mxu0 }
 0x69c   : > { %v6354_v21 = vmax.f32 %v6036_v4, 0.0  ;;  %v6039_v8 = vadd.f32 %v11624_v45, %v6038_v22 }
 0x69d   : > { %v6476_v44 = vmax.f32 %v6468_v17, %v6356_v50  ;;  %v6357_v53 = vmax.f32 %v6047_v30, 0.0 }
 0x69e   : > { %v6474_v63 = vmax.f32 %v6466_v5, %v6354_v21  ;;  %v6355_v56 = vmax.f32 %v6039_v8, 0.0 }
 0x69f   : > { %v6477_v47 = vmax.f32 %v6469_v57, %v6357_v53 }
 0x6a0   : > { %v6475_v23 = vmax.f32 %v6467_v38, %v6355_v56  ;;  %v7460_v60 = vpop.f32.mrb[204].mxu0 }
 0x6a1   : > { %v6060_v37 = vadd.f32 %v7460_v60, %v11624_v45  ;;  %v6051_v62 = vpop.f32.mrb[205].mxu0 }
 0x6a2   : > { %v6052_v13 = vadd.f32 %v11624_v45, %v6051_v62  ;;  %v7461_v61 = vpop.f32.mrb[206].mxu0 }
 0x6a3   : > { %v6360_v39 = vmax.f32 %v6060_v37, 0.0  ;;  %v6063_v43 = vadd.f32 %v7461_v61, %v11624_v45  ;;  %v6054_v46 = vpop.f32.mrb[207].mxu0 }
 0x6a4   : > { %v6358_v3 = vmax.f32 %v6052_v13, 0.0  ;;  %v6055_v28 = vadd.f32 %v11624_v45, %v6054_v46 }
 0x6a5   : > { %v6480_v34 = vmax.f32 %v6472_v0, %v6360_v39  ;;  %v6361_v24 = vmax.f32 %v6063_v43, 0.0 }
 0x6a6   : > { %v6478_v55 = vmax.f32 %v6470_v9, %v6358_v3  ;;  %v6359_v59 = vmax.f32 %v6055_v28, 0.0 }
 0x6a7   : > { %v6481_v32 = vmax.f32 %v6473_v49, %v6361_v24 }
 0x6a8   : > { %v6479_v11 = vmax.f32 %v6471_v36, %v6359_v59  ;;  %v7464_v20 = vpop.f32.mrb[208].mxu0 }
 0x6a9   : > { %v6076_v14 = vadd.f32 %v7464_v20, %v11624_v45  ;;  %v6067_v54 = vpop.f32.mrb[209].mxu0 }
 0x6aa   : > { %v6068_v7 = vadd.f32 %v11624_v45, %v6067_v54  ;;  %v7465_v27 = vpop.f32.mrb[210].mxu0 }
 0x6ab   : > { %v6364_v48 = vmax.f32 %v6076_v14, 0.0  ;;  %v6079_v52 = vadd.f32 %v7465_v27, %v11624_v45  ;;  %v6070_v18 = vpop.f32.mrb[211].mxu0 }
 0x6ac   : > { %v6362_v26 = vmax.f32 %v6068_v7, 0.0  ;;  %v6071_v17 = vadd.f32 %v11624_v45, %v6070_v18 }
 0x6ad   : > { %v6484_v40 = vmax.f32 %v6476_v44, %v6364_v48  ;;  %v6365_v5 = vmax.f32 %v6079_v52, 0.0 }
 0x6ae   : > { %v6482_v16 = vmax.f32 %v6474_v63, %v6362_v26  ;;  %v6363_v57 = vmax.f32 %v6071_v17, 0.0 }
 0x6af   : > { %v6485_v38 = vmax.f32 %v6477_v47, %v6365_v5 }
 0x6b0   : > { %v6483_v12 = vmax.f32 %v6475_v23, %v6363_v57  ;;  %v7468_v1 = vpop.f32.mrb[212].mxu0 }
 0x6b1   : > { %v6092_v6 = vadd.f32 %v7468_v1, %v11624_v45  ;;  %v6083_v2 = vpop.f32.mrb[213].mxu0 }
 0x6b2   : > { %v6084_v29 = vadd.f32 %v11624_v45, %v6083_v2  ;;  %v7469_v15 = vpop.f32.mrb[214].mxu0 }
 0x6b3   : > { %v6368_v25 = vmax.f32 %v6092_v6, 0.0  ;;  %v6095_v35 = vadd.f32 %v7469_v15, %v11624_v45  ;;  %v6086_v19 = vpop.f32.mrb[215].mxu0 }
 0x6b4   : > { %v6366_v42 = vmax.f32 %v6084_v29, 0.0  ;;  %v6087_v0 = vadd.f32 %v11624_v45, %v6086_v19 }
 0x6b5   : > { %v6488_v33 = vmax.f32 %v6480_v34, %v6368_v25  ;;  %v6369_v9 = vmax.f32 %v6095_v35, 0.0 }
 0x6b6   : > { %v6486_v41 = vmax.f32 %v6478_v55, %v6366_v42  ;;  %v6367_v49 = vmax.f32 %v6087_v0, 0.0 }
 0x6b7   : > { %v6489_v36 = vmax.f32 %v6481_v32, %v6369_v9 }
 0x6b8   : > { %v6487_v51 = vmax.f32 %v6479_v11, %v6367_v49  ;;  %v7472_v31 = vpop.f32.mrb[216].mxu0 }
 0x6b9   : > { %v6108_v10 = vadd.f32 %v7472_v31, %v11624_v45  ;;  %v6099_v4 = vpop.f32.mrb[217].mxu0 }
 0x6ba   : > { %v6100_v58 = vadd.f32 %v11624_v45, %v6099_v4  ;;  %v7473_v50 = vpop.f32.mrb[218].mxu0 }
 0x6bb   : > { %v6372_v30 = vmax.f32 %v6108_v10, 0.0  ;;  %v6111_v22 = vadd.f32 %v7473_v50, %v11624_v45  ;;  %v6102_v21 = vpop.f32.mrb[219].mxu0 }
 0x6bc   : > { %v6370_v8 = vmax.f32 %v6100_v58, 0.0  ;;  %v6103_v44 = vadd.f32 %v11624_v45, %v6102_v21 }
 0x6bd   : > { %v6492_v53 = vmax.f32 %v6484_v40, %v6372_v30  ;;  %v6373_v63 = vmax.f32 %v6111_v22, 0.0 }
 0x6be   : > { %v6490_v56 = vmax.f32 %v6482_v16, %v6370_v8  ;;  %v6371_v47 = vmax.f32 %v6103_v44, 0.0 }
 0x6bf   : > { %v6493_v23 = vmax.f32 %v6485_v38, %v6373_v63 }
 0x6c0   : > { %v6491_v60 = vmax.f32 %v6483_v12, %v6371_v47  ;;  %v7476_v37 = vpop.f32.mrb[220].mxu0 }
 0x6c1   : > { %v6124_v62 = vadd.f32 %v7476_v37, %v11624_v45  ;;  %v6115_v13 = vpop.f32.mrb[221].mxu0 }
 0x6c2   : > { %v6116_v61 = vadd.f32 %v11624_v45, %v6115_v13  ;;  %v7477_v39 = vpop.f32.mrb[222].mxu0 }
 0x6c3   : > { %v6376_v43 = vmax.f32 %v6124_v62, 0.0  ;;  %v6127_v46 = vadd.f32 %v7477_v39, %v11624_v45  ;;  %v6118_v3 = vpop.f32.mrb[223].mxu0 }
 0x6c4   : > { %v6374_v28 = vmax.f32 %v6116_v61, 0.0  ;;  %v6119_v34 = vadd.f32 %v11624_v45, %v6118_v3 }
 0x6c5   : > { %v6496_v24 = vmax.f32 %v6488_v33, %v6376_v43  ;;  %v6377_v55 = vmax.f32 %v6127_v46, 0.0 }
 0x6c6   : > { %v6494_v59 = vmax.f32 %v6486_v41, %v6374_v28  ;;  %v6375_v32 = vmax.f32 %v6119_v34, 0.0 }
 0x6c7   : > { %v6497_v11 = vmax.f32 %v6489_v36, %v6377_v55 }
 0x6c8   : > { %v6495_v20 = vmax.f32 %v6487_v51, %v6375_v32  ;;  %v7480_v14 = vpop.f32.mrb[224].mxu0 }
 0x6c9   : > { %v6140_v54 = vadd.f32 %v7480_v14, %v11624_v45  ;;  %v6131_v7 = vpop.f32.mrb[225].mxu0 }
 0x6ca   : > { %v6132_v27 = vadd.f32 %v11624_v45, %v6131_v7  ;;  %v7481_v48 = vpop.f32.mrb[226].mxu0 }
 0x6cb   : > { %v6380_v52 = vmax.f32 %v6140_v54, 0.0  ;;  %v6143_v18 = vadd.f32 %v7481_v48, %v11624_v45  ;;  %v6134_v26 = vpop.f32.mrb[227].mxu0 }
 0x6cc   : > { %v6378_v17 = vmax.f32 %v6132_v27, 0.0  ;;  %v6135_v40 = vadd.f32 %v11624_v45, %v6134_v26 }
 0x6cd   : > { %v6500_v5 = vmax.f32 %v6492_v53, %v6380_v52  ;;  %v6381_v16 = vmax.f32 %v6143_v18, 0.0 }
 0x6ce   : > { %v6498_v57 = vmax.f32 %v6490_v56, %v6378_v17  ;;  %v6379_v38 = vmax.f32 %v6135_v40, 0.0 }
 0x6cf   : > { %v6501_v12 = vmax.f32 %v6493_v23, %v6381_v16 }
 0x6d0   : > { %v6499_v1 = vmax.f32 %v6491_v60, %v6379_v38  ;;  %v7484_v6 = vpop.f32.mrb[228].mxu0 }
 0x6d1   : > { %v6156_v2 = vadd.f32 %v7484_v6, %v11624_v45  ;;  %v6147_v29 = vpop.f32.mrb[229].mxu0 }
 0x6d2   : > { %v6148_v15 = vadd.f32 %v11624_v45, %v6147_v29  ;;  %v7485_v25 = vpop.f32.mrb[230].mxu0 }
 0x6d3   : > { %v6384_v35 = vmax.f32 %v6156_v2, 0.0  ;;  %v6159_v19 = vadd.f32 %v7485_v25, %v11624_v45  ;;  %v6150_v42 = vpop.f32.mrb[231].mxu0 }
 0x6d4   : > { %v6382_v0 = vmax.f32 %v6148_v15, 0.0  ;;  %v6151_v33 = vadd.f32 %v11624_v45, %v6150_v42 }
 0x6d5   : > { %v6504_v9 = vmax.f32 %v6496_v24, %v6384_v35  ;;  %v6385_v41 = vmax.f32 %v6159_v19, 0.0 }
 0x6d6   : > { %v6502_v49 = vmax.f32 %v6494_v59, %v6382_v0  ;;  %v6383_v36 = vmax.f32 %v6151_v33, 0.0 }
 0x6d7   : > { %v6505_v51 = vmax.f32 %v6497_v11, %v6385_v41 }
 0x6d8   : > { %v6503_v31 = vmax.f32 %v6495_v20, %v6383_v36  ;;  %v7488_v10 = vpop.f32.mrb[232].mxu0 }
 0x6d9   : > { %v6172_v4 = vadd.f32 %v7488_v10, %v11624_v45  ;;  %v6163_v58 = vpop.f32.mrb[233].mxu0 }
 0x6da   : > { %v6164_v50 = vadd.f32 %v11624_v45, %v6163_v58  ;;  %v7489_v30 = vpop.f32.mrb[234].mxu0 }
 0x6db   : > { %v6388_v22 = vmax.f32 %v6172_v4, 0.0  ;;  %v6175_v21 = vadd.f32 %v7489_v30, %v11624_v45  ;;  %v6166_v8 = vpop.f32.mrb[235].mxu0 }
 0x6dc   : > { %v6386_v44 = vmax.f32 %v6164_v50, 0.0  ;;  %v6167_v53 = vadd.f32 %v11624_v45, %v6166_v8 }
 0x6dd   : > { %v6508_v63 = vmax.f32 %v6500_v5, %v6388_v22  ;;  %v6389_v56 = vmax.f32 %v6175_v21, 0.0 }
 0x6de   : > { %v6506_v47 = vmax.f32 %v6498_v57, %v6386_v44  ;;  %v6387_v23 = vmax.f32 %v6167_v53, 0.0 }
 0x6df   : > { %v6509_v60 = vmax.f32 %v6501_v12, %v6389_v56 }
 0x6e0   : > { %v6507_v37 = vmax.f32 %v6499_v1, %v6387_v23  ;;  %v7492_v62 = vpop.f32.mrb[236].mxu0 }
 0x6e1   : > { %v6188_v13 = vadd.f32 %v7492_v62, %v11624_v45  ;;  %v6179_v61 = vpop.f32.mrb[237].mxu0 }
 0x6e2   : > { %v6180_v39 = vadd.f32 %v11624_v45, %v6179_v61  ;;  %v7493_v43 = vpop.f32.mrb[238].mxu0 }
 0x6e3   : > { %v6392_v46 = vmax.f32 %v6188_v13, 0.0  ;;  %v6191_v3 = vadd.f32 %v7493_v43, %v11624_v45  ;;  %v6182_v28 = vpop.f32.mrb[239].mxu0 }
 0x6e4   : > { %v6390_v34 = vmax.f32 %v6180_v39, 0.0  ;;  %v6183_v24 = vadd.f32 %v11624_v45, %v6182_v28 }
 0x6e5   : > { %v6512_v55 = vmax.f32 %v6504_v9, %v6392_v46  ;;  %v6393_v59 = vmax.f32 %v6191_v3, 0.0 }
 0x6e6   : > { %v6510_v32 = vmax.f32 %v6502_v49, %v6390_v34  ;;  %v6391_v11 = vmax.f32 %v6183_v24, 0.0 }
 0x6e7   : > { %v6513_v20 = vmax.f32 %v6505_v51, %v6393_v59 }
 0x6e8   : > { %v6511_v14 = vmax.f32 %v6503_v31, %v6391_v11  ;;  %v7496_v54 = vpop.f32.mrb[240].mxu0 }
 0x6e9   : > { %v6204_v7 = vadd.f32 %v7496_v54, %v11624_v45  ;;  %v6195_v27 = vpop.f32.mrb[241].mxu0 }
 0x6ea   : > { %v6196_v48 = vadd.f32 %v11624_v45, %v6195_v27  ;;  %v7497_v52 = vpop.f32.mrb[242].mxu0 }
 0x6eb   : > { %v6396_v18 = vmax.f32 %v6204_v7, 0.0  ;;  %v6207_v26 = vadd.f32 %v7497_v52, %v11624_v45  ;;  %v6198_v17 = vpop.f32.mrb[243].mxu0 }
 0x6ec   : > { %v6394_v40 = vmax.f32 %v6196_v48, 0.0  ;;  %v6199_v5 = vadd.f32 %v11624_v45, %v6198_v17 }
 0x6ed   : > { %v6516_v16 = vmax.f32 %v6508_v63, %v6396_v18  ;;  %v6397_v57 = vmax.f32 %v6207_v26, 0.0 }
 0x6ee   : > { %v6514_v38 = vmax.f32 %v6506_v47, %v6394_v40  ;;  %v6395_v12 = vmax.f32 %v6199_v5, 0.0 }
 0x6ef   : > { %v6517_v1 = vmax.f32 %v6509_v60, %v6397_v57 }
 0x6f0   : > { %v6515_v6 = vmax.f32 %v6507_v37, %v6395_v12  ;;  %v7500_v2 = vpop.f32.mrb[244].mxu0 }
 0x6f1   : > { %v6220_v29 = vadd.f32 %v7500_v2, %v11624_v45  ;;  %v6211_v15 = vpop.f32.mrb[245].mxu0 }
 0x6f2   : > { %v6212_v25 = vadd.f32 %v11624_v45, %v6211_v15  ;;  %v7501_v35 = vpop.f32.mrb[246].mxu0  ;;  %v7679_v15 = vld [vmem:[%s11797_s6] ss:$0 sm:$0xff] }
 0x6f3   : > { %v6400_v19 = vmax.f32 %v6220_v29, 0.0  ;;  %v6223_v42 = vadd.f32 %v7501_v35, %v11624_v45  ;;  %v6214_v0 = vpop.f32.mrb[247].mxu0 }
 0x6f4   : > { %v6398_v33 = vmax.f32 %v6212_v25, 0.0  ;;  %v6215_v9 = vadd.f32 %v11624_v45, %v6214_v0 }
 0x6f5   : > { %v6520_v41 = vmax.f32 %v6512_v55, %v6400_v19  ;;  %v6401_v49 = vmax.f32 %v6223_v42, 0.0 }
 0x6f6   : > { %v6518_v36 = vmax.f32 %v6510_v32, %v6398_v33  ;;  %v6399_v51 = vmax.f32 %v6215_v9, 0.0 }
 0x6f7   : > { %v6521_v31 = vmax.f32 %v6513_v20, %v6401_v49 }
 0x6f8   : > { %v6519_v10 = vmax.f32 %v6511_v14, %v6399_v51  ;;  %v7504_v4 = vpop.f32.mrb[248].mxu0 }
 0x6f9   : > { %v6236_v58 = vadd.f32 %v7504_v4, %v11624_v45  ;;  %v6227_v50 = vpop.f32.mrb[249].mxu0 }
 0x6fa   : > { %v6228_v30 = vadd.f32 %v11624_v45, %v6227_v50  ;;  %v7505_v22 = vpop.f32.mrb[250].mxu0 }
 0x6fb   : > { %v6404_v21 = vmax.f32 %v6236_v58, 0.0  ;;  %v6239_v8 = vadd.f32 %v7505_v22, %v11624_v45  ;;  %v6230_v44 = vpop.f32.mrb[251].mxu0 }
 0x6fc   : > { %v6402_v53 = vmax.f32 %v6228_v30, 0.0  ;;  %v6231_v63 = vadd.f32 %v11624_v45, %v6230_v44 }
 0x6fd   : > { %v6524_v56 = vmax.f32 %v6516_v16, %v6404_v21  ;;  %v6405_v47 = vmax.f32 %v6239_v8, 0.0 }
 0x6fe   : > { %v6522_v23 = vmax.f32 %v6514_v38, %v6402_v53  ;;  %v6403_v60 = vmax.f32 %v6231_v63, 0.0 }
 0x6ff   : > { %v6525_v37 = vmax.f32 %v6517_v1, %v6405_v47 }
 0x700   : > { %v6523_v62 = vmax.f32 %v6515_v6, %v6403_v60  ;;  %v7508_v13 = vpop.f32.mrb[252].mxu0 }
 0x701   : > { %v6252_v61 = vadd.f32 %v7508_v13, %v11624_v45  ;;  %v6243_v39 = vpop.f32.mrb[253].mxu0 }
 0x702   : > { %v6244_v43 = vadd.f32 %v11624_v45, %v6243_v39  ;;  %v7509_v46 = vpop.f32.mrb[254].mxu0 }
 0x703   : > { %v6408_v3 = vmax.f32 %v6252_v61, 0.0  ;;  %v6255_v28 = vadd.f32 %v7509_v46, %v11624_v45  ;;  %v6246_v34 = vpop.f32.mrb[255].mxu0 }
 0x704   : > { %v6406_v24 = vmax.f32 %v6244_v43, 0.0  ;;  %v6247_v55 = vadd.f32 %v11624_v45, %v6246_v34 }
 0x705   : > { %v6528_v59 = vmax.f32 %v6520_v41, %v6408_v3  ;;  %v6409_v32 = vmax.f32 %v6255_v28, 0.0 }
 0x706   : > { %v6526_v11 = vmax.f32 %v6518_v36, %v6406_v24  ;;  %v6407_v20 = vmax.f32 %v6247_v55, 0.0 }
 0x707   : > { %v6529_v14 = vmax.f32 %v6521_v31, %v6409_v32 }
 0x708   : > { %v6527_v54 = vmax.f32 %v6519_v10, %v6407_v20  ;;  %v7512_v7 = vpop.f32.mrb[0].mxu0 }
 0x709   : > { %v6268_v27 = vadd.f32 %v7512_v7, %v11624_v45  ;;  %v6259_v48 = vpop.f32.mrb[1].mxu0 }
 0x70a   : > { %v6260_v52 = vadd.f32 %v11624_v45, %v6259_v48  ;;  %v7513_v18 = vpop.f32.mrb[2].mxu0 }
 0x70b   : > { %v6412_v26 = vmax.f32 %v6268_v27, 0.0  ;;  %v6271_v17 = vadd.f32 %v7513_v18, %v11624_v45  ;;  %v6262_v40 = vpop.f32.mrb[3].mxu0 }
 0x70c   : > { %v6410_v5 = vmax.f32 %v6260_v52, 0.0  ;;  %v6263_v16 = vadd.f32 %v11624_v45, %v6262_v40 }
 0x70d   : > { %v6532_v57 = vmax.f32 %v6524_v56, %v6412_v26  ;;  %v6413_v38 = vmax.f32 %v6271_v17, 0.0 }
 0x70e   : > { %v6530_v12 = vmax.f32 %v6522_v23, %v6410_v5  ;;  %v6411_v1 = vmax.f32 %v6263_v16, 0.0 }
 0x70f   : > { %6541 = vst.msk [vmem:[%s11766_s9 + $0x10] sm:$0xff] %vm6538_vm7, %v6532_v57  ;;  %v6533_v6 = vmax.f32 %v6525_v37, %v6413_v38 }
 0x710   : > { %6539 = vst.msk [vmem:[%s11766_s9] sm:$0xff] %vm6538_vm7, %v6530_v12  ;;  %v6531_v2 = vmax.f32 %v6523_v62, %v6411_v1  ;;  %v7516_v29 = vpop.f32.mrb[4].mxu0 }
 0x711   : > { %6542 = vst.msk [vmem:[%s11766_s9 + $0x18] sm:$0xff] %vm6538_vm7, %v6533_v6  ;;  %v6284_v25 = vadd.f32 %v7679_v15, %v7516_v29  ;;  %v6275_v45 = vpop.f32.mrb[5].mxu0 }
 0x712   : > { %6540 = vst.msk [vmem:[%s11766_s9 + $0x8] sm:$0xff] %vm6538_vm7, %v6531_v2  ;;  %v6276_v35 = vadd.f32 %v7679_v15, %v6275_v45  ;;  %v7517_v19 = vpop.f32.mrb[6].mxu0 }
 0x713   : > { %v6416_v42 = vmax.f32 %v6284_v25, 0.0  ;;  %v6287_v0 = vadd.f32 %v7679_v15, %v7517_v19  ;;  %v6278_v33 = vpop.f32.mrb[7].mxu0 }
 0x714   : > { %v6414_v9 = vmax.f32 %v6276_v35, 0.0  ;;  %v6279_v41 = vadd.f32 %v7679_v15, %v6278_v33 }
 0x715   : > { %v6536_v49 = vmax.f32 %v6528_v59, %v6416_v42  ;;  %v6417_v36 = vmax.f32 %v6287_v0, 0.0 }
 0x716   : > { %v6534_v51 = vmax.f32 %v6526_v11, %v6414_v9  ;;  %v6415_v31 = vmax.f32 %v6279_v41, 0.0 }
 0x717   : > { %6545 = vst.msk [vmem:[%s11766_s9 + $0x30] sm:$0xff] %vm6538_vm7, %v6536_v49  ;;  %v6537_v10 = vmax.f32 %v6529_v14, %v6417_v36 }
 0x718   : > { %6543 = vst.msk [vmem:[%s11766_s9 + $0x20] sm:$0xff] %vm6538_vm7, %v6534_v51  ;;  %v6535_v4 = vmax.f32 %v6527_v54, %v6415_v31 }
 0x719   : > { %6546 = vst.msk [vmem:[%s11766_s9 + $0x38] sm:$0xff] %vm6538_vm7, %v6537_v10 }
 0x71a   : > { %6544 = vst.msk [vmem:[%s11766_s9 + $0x28] sm:$0xff] %vm6538_vm7, %v6535_v4 }
 0x71b PF: > { %s17_s24 = sadd.s32 1, %s7686_s24  }
 0x71c   : > { %p14_p4 = scmp.ge.s32.totalorder %s17_s24, 4  }
 0x71e   :  { %16 = sbr.rel (!%p14_p4) target bundleno = 1 (0x1), region = 84 }

</bundles_post_ra>
